<compile_context>
chip_gen: v6e
topology: v6e:2x2x1
jax: 0.10.0
libtpu: 0.0.40
codegen_flags: <defaults>
</compile_context>

<pallas_src>
import jax
import jax.numpy as jnp
from jax import lax
from jax.experimental import pallas as pl
from jax.experimental.pallas import tpu as pltpu


def _round_up(x, m):
    return ((x + m - 1) // m) * m


# gate order: PyTorch stores (i, f, g, o); the kernel uses (i, f, o, g) so the three
# sigmoid gates form one contiguous lane slab.
_GATE_PERM = (0, 1, 3, 2)


def _vmem_limit_bytes(est):
    """VMEM limit: 2x the estimate, floored at 32 MiB, capped at 75% of physical VMEM
    (v7x has only 64 MiB per TensorCore, so never request the full ceiling)."""
    try:
        phys = int(pltpu.get_tpu_info().vmem_capacity_bytes)
    except Exception:
        phys = 128 * 2 ** 20
    cap = (3 * phys) // 4
    return int(min(cap, max(32 * 2 ** 20, 2 * est)))


# ----------------------------------------------------------------------------
# Kernel 1: TT LSTM timesteps (2 layers) per grid step.
# grid = (num_batch_blocks, T//TT); h/c persist in VMEM scratch across the time axis.
# ----------------------------------------------------------------------------
def _lstm_step_kernel(x_ref,                         # [TT, BB, Ep] input tile
                      wx0_ref, wh0_ref, b0_ref,      # [Ep,4Hp], [Hp,4Hp], [1,4Hp]
                      wx1_ref, wh1_ref, b1_ref,      # [Hp,4Hp], [Hp,4Hp], [1,4Hp]
                      h_out_ref,                     # [TT, BB, Hp] layer-1 hidden out
                      h0_ref, c0_ref, h1_ref, c1_ref):   # scratch [BB, Hp] f32
    tb = pl.program_id(1)
    BB, Hp = h0_ref.shape
    TT = x_ref.shape[0]

    # zero initial hidden/cell state at the start of each batch block's sequence
    # (PyTorch default when states=None)
    @pl.when(tb == 0)
    def _():
        h0_ref[...] = jnp.zeros_like(h0_ref)
        c0_ref[...] = jnp.zeros_like(c0_ref)
        h1_ref[...] = jnp.zeros_like(h1_ref)
        c1_ref[...] = jnp.zeros_like(c1_ref)

    # hoist resident-weight loads and the bias broadcasts out of the unrolled loop
    wx0, wh0 = wx0_ref[...], wh0_ref[...]
    wx1, wh1 = wx1_ref[...], wh1_ref[...]
    b0 = jnp.broadcast_to(b0_ref[...], (BB, 4 * Hp))
    b1 = jnp.broadcast_to(b1_ref[...], (BB, 4 * Hp))

    def cell(x_t, h, c, wx, wh, b):
        # two MXU dots (no concat temp); f32 accumulation; f32 elementwise gate math
        gates = (jnp.dot(x_t.astype(wx.dtype), wx, preferred_element_type=jnp.float32)
                 + jnp.dot(h.astype(wh.dtype), wh, preferred_element_type=jnp.float32)
                 + b)
        ifo = jax.nn.sigmoid(gates[:, :3 * Hp])      # i | f | o, one contiguous slab
        g = jnp.tanh(gates[:, 3 * Hp:])
        c_new = ifo[:, Hp:2 * Hp] * c + ifo[:, :Hp] * g
        h_new = ifo[:, 2 * Hp:] * jnp.tanh(c_new)
        return h_new, c_new

    def step(t, carry):
        h0, c0, h1, c1 = carry
        h0, c0 = cell(x_ref[t], h0, c0, wx0, wh0, b0)     # layer 0
        h1, c1 = cell(h0, h1, c1, wx1, wh1, b1)           # layer 1
        h_out_ref[t] = h1.astype(h_out_ref.dtype)
        return h0, c0, h1, c1

    carry = (h0_ref[...], c0_ref[...], h1_ref[...], c1_ref[...])
    h0, c0, h1, c1 = lax.fori_loop(0, TT, step, carry, unroll=True)
    h0_ref[...], c0_ref[...] = h0, c0
    h1_ref[...], c1_ref[...] = h1, c1


def _lstm_pallas(x, wx0, wh0, b0, wx1, wh1, b1, Hp, BB, TT):
    """x: [Tp, Bp, Ep] -> layer-1 hidden states [Tp, Bp, Hp] (same dtype as x)."""
    Tp, Bp, Ep = x.shape
    nb, nt = Bp // BB, Tp // TT

    # resident-VMEM estimate: weights (assume double-buffered) + biases,
    # double-buffered x / h_out tiles, h/c scratch, gate temps + bias broadcasts.
    wbytes = sum(int(a.size) * a.dtype.itemsize for a in (wx0, wh0, wx1, wh1))
    bbytes = (int(b0.size) + int(b1.size)) * 4
    io_bytes = 2 * TT * BB * (Ep + Hp) * x.dtype.itemsize
    scratch_bytes = 4 * BB * Hp * 4
    temp_bytes = 6 * BB * 4 * Hp * 4
    est = 2 * wbytes + 2 * bbytes + io_bytes + scratch_bytes + temp_bytes

    def resident(arr):   # whole-array block, constant index -> fetched once, stays in VMEM
        return pl.BlockSpec(arr.shape, lambda b, t: (0, 0))

    return pl.pallas_call(
        _lstm_step_kernel,
        out_shape=jax.ShapeDtypeStruct((Tp, Bp, Hp), x.dtype),
        grid_spec=pltpu.PrefetchScalarGridSpec(
            num_scalar_prefetch=0,
            grid=(nb, nt),
            in_specs=[
                pl.BlockSpec((TT, BB, Ep), lambda b, t: (t, b, 0)),
                resident(wx0), resident(wh0), resident(b0),
                resident(wx1), resident(wh1), resident(b1),
            ],
            out_specs=pl.BlockSpec((TT, BB, Hp), lambda b, t: (t, b, 0)),
            scratch_shapes=[pltpu.VMEM((BB, Hp), jnp.float32)] * 4,
        ),
        compiler_params=pltpu.CompilerParams(
            # batch blocks are independent (megacore-splittable on v7x);
            # the recurrence is serial along time.
            dimension_semantics=("parallel", "arbitrary"),
            vmem_limit_bytes=_vmem_limit_bytes(est),
        ),
    )(x, wx0, wh0, b0, wx1, wh1, b1)


# ----------------------------------------------------------------------------
# Kernel 2: vocab projection, vocab axis outer so the weight tile stays resident.
# ----------------------------------------------------------------------------
def _proj_kernel(h_ref, w_ref, b_ref, out_ref):
    out_ref[...] = (jnp.dot(h_ref[...], w_ref[...],
                            preferred_element_type=jnp.float32)
                    + b_ref[...]).astype(out_ref.dtype)


def _projection_pallas(h_flat, w, b):
    """h_flat: [M, Hp], w: [Hp, Vp], b: [1, Vp] -> logits [M, Vp] f32."""
    M, Hp = h_flat.shape
    Vp = w.shape[1]

    TM = 512 if M >= 512 else M                     # M is already a multiple of 8
    Mp = _round_up(M, TM)
    if Mp != M:
        h_flat = jnp.pad(h_flat, ((0, Mp - M), (0, 0)))
    TN = 512 if Vp % 512 == 0 else (256 if Vp % 256 == 0 else 128)
    TN = min(TN, Vp)

    est = 2 * (TM * Hp * h_flat.dtype.itemsize + Hp * TN * w.dtype.itemsize
               + TN * 4 + TM * TN * 4)

    out = pl.pallas_call(
        _proj_kernel,
        out_shape=jax.ShapeDtypeStruct((Mp, Vp), jnp.float32),
        grid_spec=pltpu.PrefetchScalarGridSpec(
            num_scalar_prefetch=0,
            # vocab axis OUTER: the (Hp, TN) weight tile index depends only on the
            # outer grid index, so it is fetched once and reused for every row tile.
            grid=(Vp // TN, Mp // TM),
            in_specs=[
                pl.BlockSpec((TM, Hp), lambda j, i: (i, 0)),
                pl.BlockSpec((Hp, TN), lambda j, i: (0, j)),
                pl.BlockSpec((1, TN), lambda j, i: (0, j)),
            ],
            out_specs=pl.BlockSpec((TM, TN), lambda j, i: (i, j)),
        ),
        compiler_params=pltpu.CompilerParams(
            dimension_semantics=("parallel", "parallel"),
            vmem_limit_bytes=_vmem_limit_bytes(est),
        ),
    )(h_flat, w, b)
    return out[:M]


# ----------------------------------------------------------------------------
# Host-side weight preparation: gate reorder (i,f,g,o -> i,f,o,g), split Wx / Wh,
# pre-sum biases, zero-pad to lane/sublane tiles, optional bf16 cast for matmuls.
# ----------------------------------------------------------------------------
def _gate_weight(w, in_dim_p, H, Hp, dtype):
    """w: [4H, in_dim] (PyTorch) -> [in_dim_p, 4Hp], columns in (i,f,o,g) order."""
    in_dim = w.shape[1]
    wt = w.T.reshape(in_dim, 4, H)[:, jnp.asarray(_GATE_PERM), :]
    wt = jnp.pad(wt, ((0, in_dim_p - in_dim), (0, 0), (0, Hp - H)))
    return wt.reshape(in_dim_p, 4 * Hp).astype(dtype)


def _gate_bias(b_ih, b_hh, H, Hp):
    bt = (b_ih + b_hh).reshape(4, H)[jnp.asarray(_GATE_PERM), :]
    bt = jnp.pad(bt, ((0, 0), (0, Hp - H)))
    return bt.reshape(1, 4 * Hp).astype(jnp.float32)


def prepare_kernel_params(params, Ep, Hp, Vp, compute_dtype):
    H = params["w_hh_l0"].shape[1]
    V = params["w_lin"].shape[0]
    return {
        "embedding": params["embedding"],
        "wx0": _gate_weight(params["w_ih_l0"], Ep, H, Hp, compute_dtype),
        "wh0": _gate_weight(params["w_hh_l0"], Hp, H, Hp, compute_dtype),
        "b0": _gate_bias(params["b_ih_l0"], params["b_hh_l0"], H, Hp),
        "wx1": _gate_weight(params["w_ih_l1"], Hp, H, Hp, compute_dtype),
        "wh1": _gate_weight(params["w_hh_l1"], Hp, H, Hp, compute_dtype),
        "b1": _gate_bias(params["b_ih_l1"], params["b_hh_l1"], H, Hp),
        "w_lin": jnp.pad(params["w_lin"].T,
                         ((0, Hp - H), (0, Vp - V))).astype(compute_dtype),
        "b_lin": jnp.pad(params["b_lin"], (0, Vp - V)).reshape(1, Vp)
                    .astype(jnp.float32),
    }


# ----------------------------------------------------------------------------
# Module-level forward (matches DecoderRNN.forward, batch_first layout).
# ----------------------------------------------------------------------------
def build_decoder_forward(params, compute_dtype=jnp.float32):
    """Returns a jitted forward(features, captions) -> [B, T, V] f32 logits.

    compute_dtype sets the MXU-input dtype for x/h/weights (jnp.bfloat16 recommended
    on v5e/v6e/v7x); the h/c carry, accumulation and gate elementwise math stay f32.
    """
    E = params["embedding"].shape[1]
    H = params["w_hh_l0"].shape[1]
    V = params["w_lin"].shape[0]
    Ep, Hp, Vp = _round_up(E, 128), _round_up(H, 128), _round_up(V, 128)
    kp = prepare_kernel_params(params, Ep, Hp, Vp, compute_dtype)

    @jax.jit
    def forward(features, captions):
        B = features.shape[0]
        # embedding lookup + prepend image feature (plain-JAX glue, as in PyTorch)
        emb = jnp.take(kp["embedding"], captions[:, :-1], axis=0)        # [B, T-1, E]
        inputs = jnp.concatenate([features[:, None, :], emb], axis=1)    # [B, T, E]
        T = inputs.shape[1]
        x = jnp.transpose(inputs, (1, 0, 2)).astype(compute_dtype)       # time-major

        # batch block: sublane-aligned; split into >=2 blocks for B>=16 so the
        # "parallel" batch axis can span both TensorCores on v7x.
        if B >= 16:
            BB = min(128, _round_up((B + 1) // 2, 8))
        else:
            BB = _round_up(B, 8)
        Bp = _round_up(B, BB)

        TT = min(8, T)                         # unrolled timesteps per grid step
        Tp = _round_up(T, TT)
        x = jnp.pad(x, ((0, Tp - T), (0, Bp - B), (0, Ep - E)))          # [Tp, Bp, Ep]

        h_all = _lstm_pallas(x, kp["wx0"], kp["wh0"], kp["b0"],
                             kp["wx1"], kp["wh1"], kp["b1"],
                             Hp, BB, TT)                                 # [Tp, Bp, Hp]
        logits = _projection_pallas(h_all.reshape(Tp * Bp, Hp),
                                    kp["w_lin"], kp["b_lin"])            # [Tp*Bp, Vp]
        logits = logits.reshape(Tp, Bp, Vp)[:T, :B, :V]
        return jnp.transpose(logits, (1, 0, 2))                          # [B, T, V]

    return forward


# ----------------------------------------------------------------------------
# Deterministic synthetic parameters in PyTorch layout
# (nn.Embedding / nn.LSTM(num_layers=2) / nn.Linear; gate order i, f, g, o).
# ----------------------------------------------------------------------------
def init_params(key, embed_size, hidden_size, vocab_size):
    ks = jax.random.split(key, 11)
    H = hidden_size
    s = 1.0 / jnp.sqrt(H)
    u = lambda k, shape: jax.random.uniform(k, shape, jnp.float32, -s, s)
    return {
        "embedding": jax.random.normal(ks[0], (vocab_size, embed_size), jnp.float32),
        "w_ih_l0": u(ks[1], (4 * H, embed_size)),
        "w_hh_l0": u(ks[2], (4 * H, H)),
        "b_ih_l0": u(ks[3], (4 * H,)),
        "b_hh_l0": u(ks[4], (4 * H,)),
        "w_ih_l1": u(ks[5], (4 * H, H)),
        "w_hh_l1": u(ks[6], (4 * H, H)),
        "b_ih_l1": u(ks[7], (4 * H,)),
        "b_hh_l1": u(ks[8], (4 * H,)),
        "w_lin":   u(ks[9], (vocab_size, H)),
        "b_lin":   u(ks[10], (vocab_size,)),
    }


# ----------------------------------------------------------------------------
# Pure-JAX reference (PyTorch semantics, unfused/unpadded) for correctness check.
# ----------------------------------------------------------------------------
def decoder_rnn_reference(features, captions, params):
    emb = jnp.take(params["embedding"], captions[:, :-1], axis=0)
    inputs = jnp.concatenate([features[:, None, :], emb], axis=1)        # [B, T, E]
    B = inputs.shape[0]
    H = params["w_hh_l0"].shape[1]

    def cell(x_t, h, c, w_ih, w_hh, b_ih, b_hh):
        g = x_t @ w_ih.T + h @ w_hh.T + b_ih + b_hh
        i = jax.nn.sigmoid(g[:, 0 * H:1 * H])
        f = jax.nn.sigmoid(g[:, 1 * H:2 * H])
        gg = jnp.tanh(g[:, 2 * H:3 * H])
        o = jax.nn.sigmoid(g[:, 3 * H:4 * H])
        c = f * c + i * gg
        h = o * jnp.tanh(c)
        return h, c

    def step(carry, x_t):
        h0, c0, h1, c1 = carry
        h0, c0 = cell(x_t, h0, c0, params["w_ih_l0"], params["w_hh_l0"],
                      params["b_ih_l0"], params["b_hh_l0"])
        h1, c1 = cell(h0, h1, c1, params["w_ih_l1"], params["w_hh_l1"],
                      params["b_ih_l1"], params["b_hh_l1"])
        return (h0, c0, h1, c1), h1

    z = jnp.zeros((B, H), jnp.float32)
    _, hs = jax.lax.scan(step, (z, z, z, z), jnp.transpose(inputs, (1, 0, 2)))
    logits = hs @ params["w_lin"].T + params["b_lin"]                    # [T, B, V]
    return jnp.transpose(logits, (1, 0, 2))


# TODO(synk): DecoderRNN.sample() (greedy decode with host-side Python loop) is not
# implemented; only the training-time forward() is translated.

if __name__ == "__main__":
    # small shapes: batch=2, caption length=8 (-> T=8), embed=32, hidden=32, vocab=64
    B, Tc, E, H, V = 2, 8, 32, 32, 64

    key = jax.random.PRNGKey(0)
    k_par, k_feat, k_cap = jax.random.split(key, 3)

    params = init_params(k_par, E, H, V)
    features = jax.random.normal(k_feat, (B, E), jnp.float32)
    captions = jax.random.randint(k_cap, (B, Tc), 0, V, jnp.int32)

    # f32 matmul-input path: exactness check against the PyTorch-semantics reference
    forward = build_decoder_forward(params, compute_dtype=jnp.float32)
    out = jax.block_until_ready(forward(features, captions))

    ref = decoder_rnn_reference(features, captions, params)
    assert out.shape == (B, Tc, V)
    assert jnp.allclose(out, ref, atol=1e-4, rtol=1e-4), "f32 mismatch vs reference"

    # bf16 MXU-input path: tolerance check against the f32 reference (not just isfinite)
    forward_bf16 = build_decoder_forward(params, compute_dtype=jnp.bfloat16)
    out_bf16 = jax.block_until_ready(forward_bf16(features, captions))
    assert out_bf16.shape == (B, Tc, V)
    assert bool(jnp.all(jnp.isfinite(out_bf16)))
    assert jnp.allclose(out_bf16, ref, atol=1e-1, rtol=1e-1), "bf16 mismatch vs reference"

    print("KERNEL_OK")
</pallas_src>

<mosaic_0001>
module attributes {stable_mosaic.version = 11 : i64} {
  func.func @_proj_kernel(%arg0: i32, %arg1: i32, %arg2: memref<64x128xf32, #tpu.memory_space<vmem>>, %arg3: memref<128x128xf32, #tpu.memory_space<vmem>>, %arg4: memref<1x128xf32, #tpu.memory_space<vmem>>, %arg5: memref<64x128xf32, #tpu.memory_space<vmem>>) attributes {dimension_semantics = [#tpu.dimension_semantics<parallel>, #tpu.dimension_semantics<parallel>], iteration_bounds = array<i64: 1, 1>, scalar_prefetch = 0 : i64, scratch_operands = 0 : i64, tpu.core_type = #tpu.core_type<tc>, window_params = [{transform_indices = @transform_0, window_bounds = array<i64: 64, 128>}, {transform_indices = @transform_1, window_bounds = array<i64: 128, 128>}, {transform_indices = @transform_2, window_bounds = array<i64: 1, 128>}, {transform_indices = @transform_3, window_bounds = array<i64: 64, 128>}]} {
    %c0 = arith.constant 0 : index
    %c0_0 = arith.constant 0 : index
    %0 = vector.load %arg2[%c0, %c0_0] : memref<64x128xf32, #tpu.memory_space<vmem>>, vector<64x128xf32>
    %c0_1 = arith.constant 0 : index
    %c0_2 = arith.constant 0 : index
    %1 = vector.load %arg3[%c0_1, %c0_2] : memref<128x128xf32, #tpu.memory_space<vmem>>, vector<128x128xf32>
    %cst = arith.constant dense<0.000000e+00> : vector<64x128xf32>
    %2 = tpu.matmul %0, %1, %cst {dimension_numbers = #tpu.dot_dimension_numbers<[1], [0], [0], [1], [0, 0, 1, 1], [], []>} : vector<64x128xf32>, vector<128x128xf32>, vector<64x128xf32> -> vector<64x128xf32>
    %c0_3 = arith.constant 0 : index
    %c0_4 = arith.constant 0 : index
    %3 = vector.load %arg4[%c0_3, %c0_4] : memref<1x128xf32, #tpu.memory_space<vmem>>, vector<1x128xf32>
    %4 = vector.broadcast %3 : vector<1x128xf32> to vector<64x128xf32>
    %5 = arith.addf %2, %4 : vector<64x128xf32>
    %c0_5 = arith.constant 0 : index
    %c0_6 = arith.constant 0 : index
    %6 = vector.load %arg5[%c0_5, %c0_6] : memref<64x128xf32, #tpu.memory_space<vmem>>, vector<64x128xf32>
    tpu.vector_store %arg5[%c0_5, %c0_6], %5 {strides = array<i32>} : memref<64x128xf32, #tpu.memory_space<vmem>>, vector<64x128xf32>,
    return
  }
  func.func @transform_0(%arg0: i32, %arg1: i32) -> (i32, i32) {
    %c0_i32 = arith.constant 0 : i32
    %c0_i32_0 = arith.constant 0 : i32
    return %arg1, %c0_i32 : i32, i32
  }
  func.func @transform_1(%arg0: i32, %arg1: i32) -> (i32, i32) {
    %c0_i32 = arith.constant 0 : i32
    %c0_i32_0 = arith.constant 0 : i32
    return %c0_i32, %arg0 : i32, i32
  }
  func.func @transform_2(%arg0: i32, %arg1: i32) -> (i32, i32) {
    %c0_i32 = arith.constant 0 : i32
    %c0_i32_0 = arith.constant 0 : i32
    return %c0_i32, %arg0 : i32, i32
  }
  func.func @transform_3(%arg0: i32, %arg1: i32) -> (i32, i32) {
    %c0_i32 = arith.constant 0 : i32
    return %arg1, %arg0 : i32, i32
  }
}

module attributes {stable_mosaic.version = 11 : i64} {
  func.func @_lstm_step_kernel(%arg0: i32, %arg1: i32, %arg2: memref<8x8x128xf32, #tpu.memory_space<vmem>>, %arg3: memref<128x512xf32, #tpu.memory_space<vmem>>, %arg4: memref<128x512xf32, #tpu.memory_space<vmem>>, %arg5: memref<1x512xf32, #tpu.memory_space<vmem>>, %arg6: memref<128x512xf32, #tpu.memory_space<vmem>>, %arg7: memref<128x512xf32, #tpu.memory_space<vmem>>, %arg8: memref<1x512xf32, #tpu.memory_space<vmem>>, %arg9: memref<8x8x128xf32, #tpu.memory_space<vmem>>, %arg10: memref<8x128xf32, #tpu.memory_space<vmem>>, %arg11: memref<8x128xf32, #tpu.memory_space<vmem>>, %arg12: memref<8x128xf32, #tpu.memory_space<vmem>>, %arg13: memref<8x128xf32, #tpu.memory_space<vmem>>) attributes {dimension_semantics = [#tpu.dimension_semantics<parallel>, #tpu.dimension_semantics<arbitrary>], iteration_bounds = array<i64: 1, 1>, scalar_prefetch = 0 : i64, scratch_operands = 4 : i64, tpu.core_type = #tpu.core_type<tc>, window_params = [{transform_indices = @transform_0, window_bounds = array<i64: 8, 8, 128>}, {pipeline_mode = #tpu.pipeline_mode<synchronous>, transform_indices = @transform_1, window_bounds = array<i64: 128, 512>}, {pipeline_mode = #tpu.pipeline_mode<synchronous>, transform_indices = @transform_2, window_bounds = array<i64: 128, 512>}, {pipeline_mode = #tpu.pipeline_mode<synchronous>, transform_indices = @transform_3, window_bounds = array<i64: 1, 512>}, {pipeline_mode = #tpu.pipeline_mode<synchronous>, transform_indices = @transform_4, window_bounds = array<i64: 128, 512>}, {pipeline_mode = #tpu.pipeline_mode<synchronous>, transform_indices = @transform_5, window_bounds = array<i64: 128, 512>}, {pipeline_mode = #tpu.pipeline_mode<synchronous>, transform_indices = @transform_6, window_bounds = array<i64: 1, 512>}, {transform_indices = @transform_7, window_bounds = array<i64: 8, 8, 128>}]} {
    %c0_i32 = arith.constant 0 : i32
    %0 = arith.cmpi eq, %arg1, %c0_i32 : i32
    %1 = arith.extui %0 : i1 to i32
    %c0_i32_0 = arith.constant 0 : i32
    %2 = arith.cmpi ne, %1, %c0_i32_0 : i32
    scf.if %2 {
      %cst_108 = arith.constant 0.000000e+00 : f32
      %397 = vector.broadcast %cst_108 : f32 to vector<8x128xf32>
      %c0_109 = arith.constant 0 : index
      %c0_110 = arith.constant 0 : index
      %398 = vector.load %arg10[%c0_109, %c0_110] : memref<8x128xf32, #tpu.memory_space<vmem>>, vector<8x128xf32>
      tpu.vector_store %arg10[%c0_109, %c0_110], %397 {strides = array<i32>} : memref<8x128xf32, #tpu.memory_space<vmem>>, vector<8x128xf32>,
      %cst_111 = arith.constant 0.000000e+00 : f32
      %399 = vector.broadcast %cst_111 : f32 to vector<8x128xf32>
      %c0_112 = arith.constant 0 : index
      %c0_113 = arith.constant 0 : index
      %400 = vector.load %arg11[%c0_112, %c0_113] : memref<8x128xf32, #tpu.memory_space<vmem>>, vector<8x128xf32>
      tpu.vector_store %arg11[%c0_112, %c0_113], %399 {strides = array<i32>} : memref<8x128xf32, #tpu.memory_space<vmem>>, vector<8x128xf32>,
      %cst_114 = arith.constant 0.000000e+00 : f32
      %401 = vector.broadcast %cst_114 : f32 to vector<8x128xf32>
      %c0_115 = arith.constant 0 : index
      %c0_116 = arith.constant 0 : index
      %402 = vector.load %arg12[%c0_115, %c0_116] : memref<8x128xf32, #tpu.memory_space<vmem>>, vector<8x128xf32>
      tpu.vector_store %arg12[%c0_115, %c0_116], %401 {strides = array<i32>} : memref<8x128xf32, #tpu.memory_space<vmem>>, vector<8x128xf32>,
      %cst_117 = arith.constant 0.000000e+00 : f32
      %403 = vector.broadcast %cst_117 : f32 to vector<8x128xf32>
      %c0_118 = arith.constant 0 : index
      %c0_119 = arith.constant 0 : index
      %404 = vector.load %arg13[%c0_118, %c0_119] : memref<8x128xf32, #tpu.memory_space<vmem>>, vector<8x128xf32>
      tpu.vector_store %arg13[%c0_118, %c0_119], %403 {strides = array<i32>} : memref<8x128xf32, #tpu.memory_space<vmem>>, vector<8x128xf32>,
    } else {
    }
    %c0 = arith.constant 0 : index
    %c0_1 = arith.constant 0 : index
    %3 = vector.load %arg3[%c0, %c0_1] : memref<128x512xf32, #tpu.memory_space<vmem>>, vector<128x512xf32>
    %c0_2 = arith.constant 0 : index
    %c0_3 = arith.constant 0 : index
    %4 = vector.load %arg4[%c0_2, %c0_3] : memref<128x512xf32, #tpu.memory_space<vmem>>, vector<128x512xf32>
    %c0_4 = arith.constant 0 : index
    %c0_5 = arith.constant 0 : index
    %5 = vector.load %arg6[%c0_4, %c0_5] : memref<128x512xf32, #tpu.memory_space<vmem>>, vector<128x512xf32>
    %c0_6 = arith.constant 0 : index
    %c0_7 = arith.constant 0 : index
    %6 = vector.load %arg7[%c0_6, %c0_7] : memref<128x512xf32, #tpu.memory_space<vmem>>, vector<128x512xf32>
    %c0_8 = arith.constant 0 : index
    %c0_9 = arith.constant 0 : index
    %7 = vector.load %arg5[%c0_8, %c0_9] : memref<1x512xf32, #tpu.memory_space<vmem>>, vector<1x512xf32>
    %8 = vector.shape_cast %7 : vector<1x512xf32> to vector<1x512xf32>
    %9 = vector.broadcast %8 : vector<1x512xf32> to vector<8x512xf32>
    %c0_10 = arith.constant 0 : index
    %c0_11 = arith.constant 0 : index
    %10 = vector.load %arg8[%c0_10, %c0_11] : memref<1x512xf32, #tpu.memory_space<vmem>>, vector<1x512xf32>
    %11 = vector.shape_cast %10 : vector<1x512xf32> to vector<1x512xf32>
    %12 = vector.broadcast %11 : vector<1x512xf32> to vector<8x512xf32>
    %c0_12 = arith.constant 0 : index
    %c0_13 = arith.constant 0 : index
    %13 = vector.load %arg10[%c0_12, %c0_13] : memref<8x128xf32, #tpu.memory_space<vmem>>, vector<8x128xf32>
    %c0_14 = arith.constant 0 : index
    %c0_15 = arith.constant 0 : index
    %14 = vector.load %arg11[%c0_14, %c0_15] : memref<8x128xf32, #tpu.memory_space<vmem>>, vector<8x128xf32>
    %c0_16 = arith.constant 0 : index
    %c0_17 = arith.constant 0 : index
    %15 = vector.load %arg12[%c0_16, %c0_17] : memref<8x128xf32, #tpu.memory_space<vmem>>, vector<8x128xf32>
    %c0_18 = arith.constant 0 : index
    %c0_19 = arith.constant 0 : index
    %16 = vector.load %arg13[%c0_18, %c0_19] : memref<8x128xf32, #tpu.memory_space<vmem>>, vector<8x128xf32>
    %c0_i32_20 = arith.constant 0 : i32
    %17 = arith.index_cast %c0_i32_20 : i32 to index
    %c0_21 = arith.constant 0 : index
    %c0_22 = arith.constant 0 : index
    %18 = vector.load %arg2[%17, %c0_21, %c0_22] : memref<8x8x128xf32, #tpu.memory_space<vmem>>, vector<1x8x128xf32>
    %19 = vector.shape_cast %18 : vector<1x8x128xf32> to vector<8x128xf32>
    %cst = arith.constant dense<0.000000e+00> : vector<8x512xf32>
    %20 = tpu.matmul %19, %3, %cst {dimension_numbers = #tpu.dot_dimension_numbers<[1], [0], [0], [1], [0, 0, 1, 1], [], []>} : vector<8x128xf32>, vector<128x512xf32>, vector<8x512xf32> -> vector<8x512xf32>
    %cst_23 = arith.constant dense<0.000000e+00> : vector<8x512xf32>
    %21 = tpu.matmul %13, %4, %cst_23 {dimension_numbers = #tpu.dot_dimension_numbers<[1], [0], [0], [1], [0, 0, 1, 1], [], []>} : vector<8x128xf32>, vector<128x512xf32>, vector<8x512xf32> -> vector<8x512xf32>
    %22 = arith.addf %20, %21 : vector<8x512xf32>
    %23 = arith.addf %22, %9 : vector<8x512xf32>
    %24 = vector.extract_strided_slice %23 {offsets = [0, 0], sizes = [8, 384], strides = [1, 1]} : vector<8x512xf32> to vector<8x384xf32>
    %25 = arith.negf %24 : vector<8x384xf32>
    %26 = math.exp %25 : vector<8x384xf32>
    %cst_24 = arith.constant 1.000000e+00 : f32
    %27 = vector.broadcast %cst_24 : f32 to vector<8x384xf32>
    %28 = arith.addf %27, %26 : vector<8x384xf32>
    %29 = arith.divf %27, %28 : vector<8x384xf32>
    %30 = vector.extract_strided_slice %23 {offsets = [0, 384], sizes = [8, 128], strides = [1, 1]} : vector<8x512xf32> to vector<8x128xf32>
    %31 = math.tanh %30 : vector<8x128xf32>
    %32 = vector.extract_strided_slice %29 {offsets = [0, 128], sizes = [8, 128], strides = [1, 1]} : vector<8x384xf32> to vector<8x128xf32>
    %33 = arith.mulf %32, %14 : vector<8x128xf32>
    %34 = vector.extract_strided_slice %29 {offsets = [0, 0], sizes = [8, 128], strides = [1, 1]} : vector<8x384xf32> to vector<8x128xf32>
    %35 = arith.mulf %34, %31 : vector<8x128xf32>
    %36 = arith.addf %33, %35 : vector<8x128xf32>
    %37 = vector.extract_strided_slice %29 {offsets = [0, 256], sizes = [8, 128], strides = [1, 1]} : vector<8x384xf32> to vector<8x128xf32>
    %38 = math.tanh %36 : vector<8x128xf32>
    %39 = arith.mulf %37, %38 : vector<8x128xf32>
    %cst_25 = arith.constant dense<0.000000e+00> : vector<8x512xf32>
    %40 = tpu.matmul %39, %5, %cst_25 {dimension_numbers = #tpu.dot_dimension_numbers<[1], [0], [0], [1], [0, 0, 1, 1], [], []>} : vector<8x128xf32>, vector<128x512xf32>, vector<8x512xf32> -> vector<8x512xf32>
    %cst_26 = arith.constant dense<0.000000e+00> : vector<8x512xf32>
    %41 = tpu.matmul %15, %6, %cst_26 {dimension_numbers = #tpu.dot_dimension_numbers<[1], [0], [0], [1], [0, 0, 1, 1], [], []>} : vector<8x128xf32>, vector<128x512xf32>, vector<8x512xf32> -> vector<8x512xf32>
    %42 = arith.addf %40, %41 : vector<8x512xf32>
    %43 = arith.addf %42, %12 : vector<8x512xf32>
    %44 = vector.extract_strided_slice %43 {offsets = [0, 0], sizes = [8, 384], strides = [1, 1]} : vector<8x512xf32> to vector<8x384xf32>
    %45 = arith.negf %44 : vector<8x384xf32>
    %46 = math.exp %45 : vector<8x384xf32>
    %cst_27 = arith.constant 1.000000e+00 : f32
    %47 = vector.broadcast %cst_27 : f32 to vector<8x384xf32>
    %48 = arith.addf %47, %46 : vector<8x384xf32>
    %49 = arith.divf %47, %48 : vector<8x384xf32>
    %50 = vector.extract_strided_slice %43 {offsets = [0, 384], sizes = [8, 128], strides = [1, 1]} : vector<8x512xf32> to vector<8x128xf32>
    %51 = math.tanh %50 : vector<8x128xf32>
    %52 = vector.extract_strided_slice %49 {offsets = [0, 128], sizes = [8, 128], strides = [1, 1]} : vector<8x384xf32> to vector<8x128xf32>
    %53 = arith.mulf %52, %16 : vector<8x128xf32>
    %54 = vector.extract_strided_slice %49 {offsets = [0, 0], sizes = [8, 128], strides = [1, 1]} : vector<8x384xf32> to vector<8x128xf32>
    %55 = arith.mulf %54, %51 : vector<8x128xf32>
    %56 = arith.addf %53, %55 : vector<8x128xf32>
    %57 = vector.extract_strided_slice %49 {offsets = [0, 256], sizes = [8, 128], strides = [1, 1]} : vector<8x384xf32> to vector<8x128xf32>
    %58 = math.tanh %56 : vector<8x128xf32>
    %59 = arith.mulf %57, %58 : vector<8x128xf32>
    %60 = arith.index_cast %c0_i32_20 : i32 to index
    %c0_28 = arith.constant 0 : index
    %c0_29 = arith.constant 0 : index
    %61 = vector.load %arg9[%60, %c0_28, %c0_29] : memref<8x8x128xf32, #tpu.memory_space<vmem>>, vector<1x8x128xf32>
    %62 = vector.shape_cast %61 : vector<1x8x128xf32> to vector<8x128xf32>
    %63 = vector.shape_cast %59 : vector<8x128xf32> to vector<1x8x128xf32>
    tpu.vector_store %arg9[%60, %c0_28, %c0_29], %63 {strides = array<i32>} : memref<8x8x128xf32, #tpu.memory_space<vmem>>, vector<1x8x128xf32>,
    %c1_i32 = arith.constant 1 : i32
    %64 = arith.index_cast %c1_i32 : i32 to index
    %c0_30 = arith.constant 0 : index
    %c0_31 = arith.constant 0 : index
    %65 = vector.load %arg2[%64, %c0_30, %c0_31] : memref<8x8x128xf32, #tpu.memory_space<vmem>>, vector<1x8x128xf32>
    %66 = vector.shape_cast %65 : vector<1x8x128xf32> to vector<8x128xf32>
    %cst_32 = arith.constant dense<0.000000e+00> : vector<8x512xf32>
    %67 = tpu.matmul %66, %3, %cst_32 {dimension_numbers = #tpu.dot_dimension_numbers<[1], [0], [0], [1], [0, 0, 1, 1], [], []>} : vector<8x128xf32>, vector<128x512xf32>, vector<8x512xf32> -> vector<8x512xf32>
    %cst_33 = arith.constant dense<0.000000e+00> : vector<8x512xf32>
    %68 = tpu.matmul %39, %4, %cst_33 {dimension_numbers = #tpu.dot_dimension_numbers<[1], [0], [0], [1], [0, 0, 1, 1], [], []>} : vector<8x128xf32>, vector<128x512xf32>, vector<8x512xf32> -> vector<8x512xf32>
    %69 = arith.addf %67, %68 : vector<8x512xf32>
    %70 = arith.addf %69, %9 : vector<8x512xf32>
    %71 = vector.extract_strided_slice %70 {offsets = [0, 0], sizes = [8, 384], strides = [1, 1]} : vector<8x512xf32> to vector<8x384xf32>
    %72 = arith.negf %71 : vector<8x384xf32>
    %73 = math.exp %72 : vector<8x384xf32>
    %cst_34 = arith.constant 1.000000e+00 : f32
    %74 = vector.broadcast %cst_34 : f32 to vector<8x384xf32>
    %75 = arith.addf %74, %73 : vector<8x384xf32>
    %76 = arith.divf %74, %75 : vector<8x384xf32>
    %77 = vector.extract_strided_slice %70 {offsets = [0, 384], sizes = [8, 128], strides = [1, 1]} : vector<8x512xf32> to vector<8x128xf32>
    %78 = math.tanh %77 : vector<8x128xf32>
    %79 = vector.extract_strided_slice %76 {offsets = [0, 128], sizes = [8, 128], strides = [1, 1]} : vector<8x384xf32> to vector<8x128xf32>
    %80 = arith.mulf %79, %36 : vector<8x128xf32>
    %81 = vector.extract_strided_slice %76 {offsets = [0, 0], sizes = [8, 128], strides = [1, 1]} : vector<8x384xf32> to vector<8x128xf32>
    %82 = arith.mulf %81, %78 : vector<8x128xf32>
    %83 = arith.addf %80, %82 : vector<8x128xf32>
    %84 = vector.extract_strided_slice %76 {offsets = [0, 256], sizes = [8, 128], strides = [1, 1]} : vector<8x384xf32> to vector<8x128xf32>
    %85 = math.tanh %83 : vector<8x128xf32>
    %86 = arith.mulf %84, %85 : vector<8x128xf32>
    %cst_35 = arith.constant dense<0.000000e+00> : vector<8x512xf32>
    %87 = tpu.matmul %86, %5, %cst_35 {dimension_numbers = #tpu.dot_dimension_numbers<[1], [0], [0], [1], [0, 0, 1, 1], [], []>} : vector<8x128xf32>, vector<128x512xf32>, vector<8x512xf32> -> vector<8x512xf32>
    %cst_36 = arith.constant dense<0.000000e+00> : vector<8x512xf32>
    %88 = tpu.matmul %59, %6, %cst_36 {dimension_numbers = #tpu.dot_dimension_numbers<[1], [0], [0], [1], [0, 0, 1, 1], [], []>} : vector<8x128xf32>, vector<128x512xf32>, vector<8x512xf32> -> vector<8x512xf32>
    %89 = arith.addf %87, %88 : vector<8x512xf32>
    %90 = arith.addf %89, %12 : vector<8x512xf32>
    %91 = vector.extract_strided_slice %90 {offsets = [0, 0], sizes = [8, 384], strides = [1, 1]} : vector<8x512xf32> to vector<8x384xf32>
    %92 = arith.negf %91 : vector<8x384xf32>
    %93 = math.exp %92 : vector<8x384xf32>
    %cst_37 = arith.constant 1.000000e+00 : f32
    %94 = vector.broadcast %cst_37 : f32 to vector<8x384xf32>
    %95 = arith.addf %94, %93 : vector<8x384xf32>
    %96 = arith.divf %94, %95 : vector<8x384xf32>
    %97 = vector.extract_strided_slice %90 {offsets = [0, 384], sizes = [8, 128], strides = [1, 1]} : vector<8x512xf32> to vector<8x128xf32>
    %98 = math.tanh %97 : vector<8x128xf32>
    %99 = vector.extract_strided_slice %96 {offsets = [0, 128], sizes = [8, 128], strides = [1, 1]} : vector<8x384xf32> to vector<8x128xf32>
    %100 = arith.mulf %99, %56 : vector<8x128xf32>
    %101 = vector.extract_strided_slice %96 {offsets = [0, 0], sizes = [8, 128], strides = [1, 1]} : vector<8x384xf32> to vector<8x128xf32>
    %102 = arith.mulf %101, %98 : vector<8x128xf32>
    %103 = arith.addf %100, %102 : vector<8x128xf32>
    %104 = vector.extract_strided_slice %96 {offsets = [0, 256], sizes = [8, 128], strides = [1, 1]} : vector<8x384xf32> to vector<8x128xf32>
    %105 = math.tanh %103 : vector<8x128xf32>
    %106 = arith.mulf %104, %105 : vector<8x128xf32>
    %107 = arith.index_cast %c1_i32 : i32 to index
    %c0_38 = arith.constant 0 : index
    %c0_39 = arith.constant 0 : index
    %108 = vector.load %arg9[%107, %c0_38, %c0_39] : memref<8x8x128xf32, #tpu.memory_space<vmem>>, vector<1x8x128xf32>
    %109 = vector.shape_cast %108 : vector<1x8x128xf32> to vector<8x128xf32>
    %110 = vector.shape_cast %106 : vector<8x128xf32> to vector<1x8x128xf32>
    tpu.vector_store %arg9[%107, %c0_38, %c0_39], %110 {strides = array<i32>} : memref<8x8x128xf32, #tpu.memory_space<vmem>>, vector<1x8x128xf32>,
    %c2_i32 = arith.constant 2 : i32
    %111 = arith.index_cast %c2_i32 : i32 to index
    %c0_40 = arith.constant 0 : index
    %c0_41 = arith.constant 0 : index
    %112 = vector.load %arg2[%111, %c0_40, %c0_41] : memref<8x8x128xf32, #tpu.memory_space<vmem>>, vector<1x8x128xf32>
    %113 = vector.shape_cast %112 : vector<1x8x128xf32> to vector<8x128xf32>
    %cst_42 = arith.constant dense<0.000000e+00> : vector<8x512xf32>
    %114 = tpu.matmul %113, %3, %cst_42 {dimension_numbers = #tpu.dot_dimension_numbers<[1], [0], [0], [1], [0, 0, 1, 1], [], []>} : vector<8x128xf32>, vector<128x512xf32>, vector<8x512xf32> -> vector<8x512xf32>
    %cst_43 = arith.constant dense<0.000000e+00> : vector<8x512xf32>
    %115 = tpu.matmul %86, %4, %cst_43 {dimension_numbers = #tpu.dot_dimension_numbers<[1], [0], [0], [1], [0, 0, 1, 1], [], []>} : vector<8x128xf32>, vector<128x512xf32>, vector<8x512xf32> -> vector<8x512xf32>
    %116 = arith.addf %114, %115 : vector<8x512xf32>
    %117 = arith.addf %116, %9 : vector<8x512xf32>
    %118 = vector.extract_strided_slice %117 {offsets = [0, 0], sizes = [8, 384], strides = [1, 1]} : vector<8x512xf32> to vector<8x384xf32>
    %119 = arith.negf %118 : vector<8x384xf32>
    %120 = math.exp %119 : vector<8x384xf32>
    %cst_44 = arith.constant 1.000000e+00 : f32
    %121 = vector.broadcast %cst_44 : f32 to vector<8x384xf32>
    %122 = arith.addf %121, %120 : vector<8x384xf32>
    %123 = arith.divf %121, %122 : vector<8x384xf32>
    %124 = vector.extract_strided_slice %117 {offsets = [0, 384], sizes = [8, 128], strides = [1, 1]} : vector<8x512xf32> to vector<8x128xf32>
    %125 = math.tanh %124 : vector<8x128xf32>
    %126 = vector.extract_strided_slice %123 {offsets = [0, 128], sizes = [8, 128], strides = [1, 1]} : vector<8x384xf32> to vector<8x128xf32>
    %127 = arith.mulf %126, %83 : vector<8x128xf32>
    %128 = vector.extract_strided_slice %123 {offsets = [0, 0], sizes = [8, 128], strides = [1, 1]} : vector<8x384xf32> to vector<8x128xf32>
    %129 = arith.mulf %128, %125 : vector<8x128xf32>
    %130 = arith.addf %127, %129 : vector<8x128xf32>
    %131 = vector.extract_strided_slice %123 {offsets = [0, 256], sizes = [8, 128], strides = [1, 1]} : vector<8x384xf32> to vector<8x128xf32>
    %132 = math.tanh %130 : vector<8x128xf32>
    %133 = arith.mulf %131, %132 : vector<8x128xf32>
    %cst_45 = arith.constant dense<0.000000e+00> : vector<8x512xf32>
    %134 = tpu.matmul %133, %5, %cst_45 {dimension_numbers = #tpu.dot_dimension_numbers<[1], [0], [0], [1], [0, 0, 1, 1], [], []>} : vector<8x128xf32>, vector<128x512xf32>, vector<8x512xf32> -> vector<8x512xf32>
    %cst_46 = arith.constant dense<0.000000e+00> : vector<8x512xf32>
    %135 = tpu.matmul %106, %6, %cst_46 {dimension_numbers = #tpu.dot_dimension_numbers<[1], [0], [0], [1], [0, 0, 1, 1], [], []>} : vector<8x128xf32>, vector<128x512xf32>, vector<8x512xf32> -> vector<8x512xf32>
    %136 = arith.addf %134, %135 : vector<8x512xf32>
    %137 = arith.addf %136, %12 : vector<8x512xf32>
    %138 = vector.extract_strided_slice %137 {offsets = [0, 0], sizes = [8, 384], strides = [1, 1]} : vector<8x512xf32> to vector<8x384xf32>
    %139 = arith.negf %138 : vector<8x384xf32>
    %140 = math.exp %139 : vector<8x384xf32>
    %cst_47 = arith.constant 1.000000e+00 : f32
    %141 = vector.broadcast %cst_47 : f32 to vector<8x384xf32>
    %142 = arith.addf %141, %140 : vector<8x384xf32>
    %143 = arith.divf %141, %142 : vector<8x384xf32>
    %144 = vector.extract_strided_slice %137 {offsets = [0, 384], sizes = [8, 128], strides = [1, 1]} : vector<8x512xf32> to vector<8x128xf32>
    %145 = math.tanh %144 : vector<8x128xf32>
    %146 = vector.extract_strided_slice %143 {offsets = [0, 128], sizes = [8, 128], strides = [1, 1]} : vector<8x384xf32> to vector<8x128xf32>
    %147 = arith.mulf %146, %103 : vector<8x128xf32>
    %148 = vector.extract_strided_slice %143 {offsets = [0, 0], sizes = [8, 128], strides = [1, 1]} : vector<8x384xf32> to vector<8x128xf32>
    %149 = arith.mulf %148, %145 : vector<8x128xf32>
    %150 = arith.addf %147, %149 : vector<8x128xf32>
    %151 = vector.extract_strided_slice %143 {offsets = [0, 256], sizes = [8, 128], strides = [1, 1]} : vector<8x384xf32> to vector<8x128xf32>
    %152 = math.tanh %150 : vector<8x128xf32>
    %153 = arith.mulf %151, %152 : vector<8x128xf32>
    %154 = arith.index_cast %c2_i32 : i32 to index
    %c0_48 = arith.constant 0 : index
    %c0_49 = arith.constant 0 : index
    %155 = vector.load %arg9[%154, %c0_48, %c0_49] : memref<8x8x128xf32, #tpu.memory_space<vmem>>, vector<1x8x128xf32>
    %156 = vector.shape_cast %155 : vector<1x8x128xf32> to vector<8x128xf32>
    %157 = vector.shape_cast %153 : vector<8x128xf32> to vector<1x8x128xf32>
    tpu.vector_store %arg9[%154, %c0_48, %c0_49], %157 {strides = array<i32>} : memref<8x8x128xf32, #tpu.memory_space<vmem>>, vector<1x8x128xf32>,
    %c3_i32 = arith.constant 3 : i32
    %158 = arith.index_cast %c3_i32 : i32 to index
    %c0_50 = arith.constant 0 : index
    %c0_51 = arith.constant 0 : index
    %159 = vector.load %arg2[%158, %c0_50, %c0_51] : memref<8x8x128xf32, #tpu.memory_space<vmem>>, vector<1x8x128xf32>
    %160 = vector.shape_cast %159 : vector<1x8x128xf32> to vector<8x128xf32>
    %cst_52 = arith.constant dense<0.000000e+00> : vector<8x512xf32>
    %161 = tpu.matmul %160, %3, %cst_52 {dimension_numbers = #tpu.dot_dimension_numbers<[1], [0], [0], [1], [0, 0, 1, 1], [], []>} : vector<8x128xf32>, vector<128x512xf32>, vector<8x512xf32> -> vector<8x512xf32>
    %cst_53 = arith.constant dense<0.000000e+00> : vector<8x512xf32>
    %162 = tpu.matmul %133, %4, %cst_53 {dimension_numbers = #tpu.dot_dimension_numbers<[1], [0], [0], [1], [0, 0, 1, 1], [], []>} : vector<8x128xf32>, vector<128x512xf32>, vector<8x512xf32> -> vector<8x512xf32>
    %163 = arith.addf %161, %162 : vector<8x512xf32>
    %164 = arith.addf %163, %9 : vector<8x512xf32>
    %165 = vector.extract_strided_slice %164 {offsets = [0, 0], sizes = [8, 384], strides = [1, 1]} : vector<8x512xf32> to vector<8x384xf32>
    %166 = arith.negf %165 : vector<8x384xf32>
    %167 = math.exp %166 : vector<8x384xf32>
    %cst_54 = arith.constant 1.000000e+00 : f32
    %168 = vector.broadcast %cst_54 : f32 to vector<8x384xf32>
    %169 = arith.addf %168, %167 : vector<8x384xf32>
    %170 = arith.divf %168, %169 : vector<8x384xf32>
    %171 = vector.extract_strided_slice %164 {offsets = [0, 384], sizes = [8, 128], strides = [1, 1]} : vector<8x512xf32> to vector<8x128xf32>
    %172 = math.tanh %171 : vector<8x128xf32>
    %173 = vector.extract_strided_slice %170 {offsets = [0, 128], sizes = [8, 128], strides = [1, 1]} : vector<8x384xf32> to vector<8x128xf32>
    %174 = arith.mulf %173, %130 : vector<8x128xf32>
    %175 = vector.extract_strided_slice %170 {offsets = [0, 0], sizes = [8, 128], strides = [1, 1]} : vector<8x384xf32> to vector<8x128xf32>
    %176 = arith.mulf %175, %172 : vector<8x128xf32>
    %177 = arith.addf %174, %176 : vector<8x128xf32>
    %178 = vector.extract_strided_slice %170 {offsets = [0, 256], sizes = [8, 128], strides = [1, 1]} : vector<8x384xf32> to vector<8x128xf32>
    %179 = math.tanh %177 : vector<8x128xf32>
    %180 = arith.mulf %178, %179 : vector<8x128xf32>
    %cst_55 = arith.constant dense<0.000000e+00> : vector<8x512xf32>
    %181 = tpu.matmul %180, %5, %cst_55 {dimension_numbers = #tpu.dot_dimension_numbers<[1], [0], [0], [1], [0, 0, 1, 1], [], []>} : vector<8x128xf32>, vector<128x512xf32>, vector<8x512xf32> -> vector<8x512xf32>
    %cst_56 = arith.constant dense<0.000000e+00> : vector<8x512xf32>
    %182 = tpu.matmul %153, %6, %cst_56 {dimension_numbers = #tpu.dot_dimension_numbers<[1], [0], [0], [1], [0, 0, 1, 1], [], []>} : vector<8x128xf32>, vector<128x512xf32>, vector<8x512xf32> -> vector<8x512xf32>
    %183 = arith.addf %181, %182 : vector<8x512xf32>
    %184 = arith.addf %183, %12 : vector<8x512xf32>
    %185 = vector.extract_strided_slice %184 {offsets = [0, 0], sizes = [8, 384], strides = [1, 1]} : vector<8x512xf32> to vector<8x384xf32>
    %186 = arith.negf %185 : vector<8x384xf32>
    %187 = math.exp %186 : vector<8x384xf32>
    %cst_57 = arith.constant 1.000000e+00 : f32
    %188 = vector.broadcast %cst_57 : f32 to vector<8x384xf32>
    %189 = arith.addf %188, %187 : vector<8x384xf32>
    %190 = arith.divf %188, %189 : vector<8x384xf32>
    %191 = vector.extract_strided_slice %184 {offsets = [0, 384], sizes = [8, 128], strides = [1, 1]} : vector<8x512xf32> to vector<8x128xf32>
    %192 = math.tanh %191 : vector<8x128xf32>
    %193 = vector.extract_strided_slice %190 {offsets = [0, 128], sizes = [8, 128], strides = [1, 1]} : vector<8x384xf32> to vector<8x128xf32>
    %194 = arith.mulf %193, %150 : vector<8x128xf32>
    %195 = vector.extract_strided_slice %190 {offsets = [0, 0], sizes = [8, 128], strides = [1, 1]} : vector<8x384xf32> to vector<8x128xf32>
    %196 = arith.mulf %195, %192 : vector<8x128xf32>
    %197 = arith.addf %194, %196 : vector<8x128xf32>
    %198 = vector.extract_strided_slice %190 {offsets = [0, 256], sizes = [8, 128], strides = [1, 1]} : vector<8x384xf32> to vector<8x128xf32>
    %199 = math.tanh %197 : vector<8x128xf32>
    %200 = arith.mulf %198, %199 : vector<8x128xf32>
    %201 = arith.index_cast %c3_i32 : i32 to index
    %c0_58 = arith.constant 0 : index
    %c0_59 = arith.constant 0 : index
    %202 = vector.load %arg9[%201, %c0_58, %c0_59] : memref<8x8x128xf32, #tpu.memory_space<vmem>>, vector<1x8x128xf32>
    %203 = vector.shape_cast %202 : vector<1x8x128xf32> to vector<8x128xf32>
    %204 = vector.shape_cast %200 : vector<8x128xf32> to vector<1x8x128xf32>
    tpu.vector_store %arg9[%201, %c0_58, %c0_59], %204 {strides = array<i32>} : memref<8x8x128xf32, #tpu.memory_space<vmem>>, vector<1x8x128xf32>,
    %c4_i32 = arith.constant 4 : i32
    %205 = arith.index_cast %c4_i32 : i32 to index
    %c0_60 = arith.constant 0 : index
    %c0_61 = arith.constant 0 : index
    %206 = vector.load %arg2[%205, %c0_60, %c0_61] : memref<8x8x128xf32, #tpu.memory_space<vmem>>, vector<1x8x128xf32>
    %207 = vector.shape_cast %206 : vector<1x8x128xf32> to vector<8x128xf32>
    %cst_62 = arith.constant dense<0.000000e+00> : vector<8x512xf32>
    %208 = tpu.matmul %207, %3, %cst_62 {dimension_numbers = #tpu.dot_dimension_numbers<[1], [0], [0], [1], [0, 0, 1, 1], [], []>} : vector<8x128xf32>, vector<128x512xf32>, vector<8x512xf32> -> vector<8x512xf32>
    %cst_63 = arith.constant dense<0.000000e+00> : vector<8x512xf32>
    %209 = tpu.matmul %180, %4, %cst_63 {dimension_numbers = #tpu.dot_dimension_numbers<[1], [0], [0], [1], [0, 0, 1, 1], [], []>} : vector<8x128xf32>, vector<128x512xf32>, vector<8x512xf32> -> vector<8x512xf32>
    %210 = arith.addf %208, %209 : vector<8x512xf32>
    %211 = arith.addf %210, %9 : vector<8x512xf32>
    %212 = vector.extract_strided_slice %211 {offsets = [0, 0], sizes = [8, 384], strides = [1, 1]} : vector<8x512xf32> to vector<8x384xf32>
    %213 = arith.negf %212 : vector<8x384xf32>
    %214 = math.exp %213 : vector<8x384xf32>
    %cst_64 = arith.constant 1.000000e+00 : f32
    %215 = vector.broadcast %cst_64 : f32 to vector<8x384xf32>
    %216 = arith.addf %215, %214 : vector<8x384xf32>
    %217 = arith.divf %215, %216 : vector<8x384xf32>
    %218 = vector.extract_strided_slice %211 {offsets = [0, 384], sizes = [8, 128], strides = [1, 1]} : vector<8x512xf32> to vector<8x128xf32>
    %219 = math.tanh %218 : vector<8x128xf32>
    %220 = vector.extract_strided_slice %217 {offsets = [0, 128], sizes = [8, 128], strides = [1, 1]} : vector<8x384xf32> to vector<8x128xf32>
    %221 = arith.mulf %220, %177 : vector<8x128xf32>
    %222 = vector.extract_strided_slice %217 {offsets = [0, 0], sizes = [8, 128], strides = [1, 1]} : vector<8x384xf32> to vector<8x128xf32>
    %223 = arith.mulf %222, %219 : vector<8x128xf32>
    %224 = arith.addf %221, %223 : vector<8x128xf32>
    %225 = vector.extract_strided_slice %217 {offsets = [0, 256], sizes = [8, 128], strides = [1, 1]} : vector<8x384xf32> to vector<8x128xf32>
    %226 = math.tanh %224 : vector<8x128xf32>
    %227 = arith.mulf %225, %226 : vector<8x128xf32>
    %cst_65 = arith.constant dense<0.000000e+00> : vector<8x512xf32>
    %228 = tpu.matmul %227, %5, %cst_65 {dimension_numbers = #tpu.dot_dimension_numbers<[1], [0], [0], [1], [0, 0, 1, 1], [], []>} : vector<8x128xf32>, vector<128x512xf32>, vector<8x512xf32> -> vector<8x512xf32>
    %cst_66 = arith.constant dense<0.000000e+00> : vector<8x512xf32>
    %229 = tpu.matmul %200, %6, %cst_66 {dimension_numbers = #tpu.dot_dimension_numbers<[1], [0], [0], [1], [0, 0, 1, 1], [], []>} : vector<8x128xf32>, vector<128x512xf32>, vector<8x512xf32> -> vector<8x512xf32>
    %230 = arith.addf %228, %229 : vector<8x512xf32>
    %231 = arith.addf %230, %12 : vector<8x512xf32>
    %232 = vector.extract_strided_slice %231 {offsets = [0, 0], sizes = [8, 384], strides = [1, 1]} : vector<8x512xf32> to vector<8x384xf32>
    %233 = arith.negf %232 : vector<8x384xf32>
    %234 = math.exp %233 : vector<8x384xf32>
    %cst_67 = arith.constant 1.000000e+00 : f32
    %235 = vector.broadcast %cst_67 : f32 to vector<8x384xf32>
    %236 = arith.addf %235, %234 : vector<8x384xf32>
    %237 = arith.divf %235, %236 : vector<8x384xf32>
    %238 = vector.extract_strided_slice %231 {offsets = [0, 384], sizes = [8, 128], strides = [1, 1]} : vector<8x512xf32> to vector<8x128xf32>
    %239 = math.tanh %238 : vector<8x128xf32>
    %240 = vector.extract_strided_slice %237 {offsets = [0, 128], sizes = [8, 128], strides = [1, 1]} : vector<8x384xf32> to vector<8x128xf32>
    %241 = arith.mulf %240, %197 : vector<8x128xf32>
    %242 = vector.extract_strided_slice %237 {offsets = [0, 0], sizes = [8, 128], strides = [1, 1]} : vector<8x384xf32> to vector<8x128xf32>
    %243 = arith.mulf %242, %239 : vector<8x128xf32>
    %244 = arith.addf %241, %243 : vector<8x128xf32>
    %245 = vector.extract_strided_slice %237 {offsets = [0, 256], sizes = [8, 128], strides = [1, 1]} : vector<8x384xf32> to vector<8x128xf32>
    %246 = math.tanh %244 : vector<8x128xf32>
    %247 = arith.mulf %245, %246 : vector<8x128xf32>
    %248 = arith.index_cast %c4_i32 : i32 to index
    %c0_68 = arith.constant 0 : index
    %c0_69 = arith.constant 0 : index
    %249 = vector.load %arg9[%248, %c0_68, %c0_69] : memref<8x8x128xf32, #tpu.memory_space<vmem>>, vector<1x8x128xf32>
    %250 = vector.shape_cast %249 : vector<1x8x128xf32> to vector<8x128xf32>
    %251 = vector.shape_cast %247 : vector<8x128xf32> to vector<1x8x128xf32>
    tpu.vector_store %arg9[%248, %c0_68, %c0_69], %251 {strides = array<i32>} : memref<8x8x128xf32, #tpu.memory_space<vmem>>, vector<1x8x128xf32>,
    %c5_i32 = arith.constant 5 : i32
    %252 = arith.index_cast %c5_i32 : i32 to index
    %c0_70 = arith.constant 0 : index
    %c0_71 = arith.constant 0 : index
    %253 = vector.load %arg2[%252, %c0_70, %c0_71] : memref<8x8x128xf32, #tpu.memory_space<vmem>>, vector<1x8x128xf32>
    %254 = vector.shape_cast %253 : vector<1x8x128xf32> to vector<8x128xf32>
    %cst_72 = arith.constant dense<0.000000e+00> : vector<8x512xf32>
    %255 = tpu.matmul %254, %3, %cst_72 {dimension_numbers = #tpu.dot_dimension_numbers<[1], [0], [0], [1], [0, 0, 1, 1], [], []>} : vector<8x128xf32>, vector<128x512xf32>, vector<8x512xf32> -> vector<8x512xf32>
    %cst_73 = arith.constant dense<0.000000e+00> : vector<8x512xf32>
    %256 = tpu.matmul %227, %4, %cst_73 {dimension_numbers = #tpu.dot_dimension_numbers<[1], [0], [0], [1], [0, 0, 1, 1], [], []>} : vector<8x128xf32>, vector<128x512xf32>, vector<8x512xf32> -> vector<8x512xf32>
    %257 = arith.addf %255, %256 : vector<8x512xf32>
    %258 = arith.addf %257, %9 : vector<8x512xf32>
    %259 = vector.extract_strided_slice %258 {offsets = [0, 0], sizes = [8, 384], strides = [1, 1]} : vector<8x512xf32> to vector<8x384xf32>
    %260 = arith.negf %259 : vector<8x384xf32>
    %261 = math.exp %260 : vector<8x384xf32>
    %cst_74 = arith.constant 1.000000e+00 : f32
    %262 = vector.broadcast %cst_74 : f32 to vector<8x384xf32>
    %263 = arith.addf %262, %261 : vector<8x384xf32>
    %264 = arith.divf %262, %263 : vector<8x384xf32>
    %265 = vector.extract_strided_slice %258 {offsets = [0, 384], sizes = [8, 128], strides = [1, 1]} : vector<8x512xf32> to vector<8x128xf32>
    %266 = math.tanh %265 : vector<8x128xf32>
    %267 = vector.extract_strided_slice %264 {offsets = [0, 128], sizes = [8, 128], strides = [1, 1]} : vector<8x384xf32> to vector<8x128xf32>
    %268 = arith.mulf %267, %224 : vector<8x128xf32>
    %269 = vector.extract_strided_slice %264 {offsets = [0, 0], sizes = [8, 128], strides = [1, 1]} : vector<8x384xf32> to vector<8x128xf32>
    %270 = arith.mulf %269, %266 : vector<8x128xf32>
    %271 = arith.addf %268, %270 : vector<8x128xf32>
    %272 = vector.extract_strided_slice %264 {offsets = [0, 256], sizes = [8, 128], strides = [1, 1]} : vector<8x384xf32> to vector<8x128xf32>
    %273 = math.tanh %271 : vector<8x128xf32>
    %274 = arith.mulf %272, %273 : vector<8x128xf32>
    %cst_75 = arith.constant dense<0.000000e+00> : vector<8x512xf32>
    %275 = tpu.matmul %274, %5, %cst_75 {dimension_numbers = #tpu.dot_dimension_numbers<[1], [0], [0], [1], [0, 0, 1, 1], [], []>} : vector<8x128xf32>, vector<128x512xf32>, vector<8x512xf32> -> vector<8x512xf32>
    %cst_76 = arith.constant dense<0.000000e+00> : vector<8x512xf32>
    %276 = tpu.matmul %247, %6, %cst_76 {dimension_numbers = #tpu.dot_dimension_numbers<[1], [0], [0], [1], [0, 0, 1, 1], [], []>} : vector<8x128xf32>, vector<128x512xf32>, vector<8x512xf32> -> vector<8x512xf32>
    %277 = arith.addf %275, %276 : vector<8x512xf32>
    %278 = arith.addf %277, %12 : vector<8x512xf32>
    %279 = vector.extract_strided_slice %278 {offsets = [0, 0], sizes = [8, 384], strides = [1, 1]} : vector<8x512xf32> to vector<8x384xf32>
    %280 = arith.negf %279 : vector<8x384xf32>
    %281 = math.exp %280 : vector<8x384xf32>
    %cst_77 = arith.constant 1.000000e+00 : f32
    %282 = vector.broadcast %cst_77 : f32 to vector<8x384xf32>
    %283 = arith.addf %282, %281 : vector<8x384xf32>
    %284 = arith.divf %282, %283 : vector<8x384xf32>
    %285 = vector.extract_strided_slice %278 {offsets = [0, 384], sizes = [8, 128], strides = [1, 1]} : vector<8x512xf32> to vector<8x128xf32>
    %286 = math.tanh %285 : vector<8x128xf32>
    %287 = vector.extract_strided_slice %284 {offsets = [0, 128], sizes = [8, 128], strides = [1, 1]} : vector<8x384xf32> to vector<8x128xf32>
    %288 = arith.mulf %287, %244 : vector<8x128xf32>
    %289 = vector.extract_strided_slice %284 {offsets = [0, 0], sizes = [8, 128], strides = [1, 1]} : vector<8x384xf32> to vector<8x128xf32>
    %290 = arith.mulf %289, %286 : vector<8x128xf32>
    %291 = arith.addf %288, %290 : vector<8x128xf32>
    %292 = vector.extract_strided_slice %284 {offsets = [0, 256], sizes = [8, 128], strides = [1, 1]} : vector<8x384xf32> to vector<8x128xf32>
    %293 = math.tanh %291 : vector<8x128xf32>
    %294 = arith.mulf %292, %293 : vector<8x128xf32>
    %295 = arith.index_cast %c5_i32 : i32 to index
    %c0_78 = arith.constant 0 : index
    %c0_79 = arith.constant 0 : index
    %296 = vector.load %arg9[%295, %c0_78, %c0_79] : memref<8x8x128xf32, #tpu.memory_space<vmem>>, vector<1x8x128xf32>
    %297 = vector.shape_cast %296 : vector<1x8x128xf32> to vector<8x128xf32>
    %298 = vector.shape_cast %294 : vector<8x128xf32> to vector<1x8x128xf32>
    tpu.vector_store %arg9[%295, %c0_78, %c0_79], %298 {strides = array<i32>} : memref<8x8x128xf32, #tpu.memory_space<vmem>>, vector<1x8x128xf32>,
    %c6_i32 = arith.constant 6 : i32
    %299 = arith.index_cast %c6_i32 : i32 to index
    %c0_80 = arith.constant 0 : index
    %c0_81 = arith.constant 0 : index
    %300 = vector.load %arg2[%299, %c0_80, %c0_81] : memref<8x8x128xf32, #tpu.memory_space<vmem>>, vector<1x8x128xf32>
    %301 = vector.shape_cast %300 : vector<1x8x128xf32> to vector<8x128xf32>
    %cst_82 = arith.constant dense<0.000000e+00> : vector<8x512xf32>
    %302 = tpu.matmul %301, %3, %cst_82 {dimension_numbers = #tpu.dot_dimension_numbers<[1], [0], [0], [1], [0, 0, 1, 1], [], []>} : vector<8x128xf32>, vector<128x512xf32>, vector<8x512xf32> -> vector<8x512xf32>
    %cst_83 = arith.constant dense<0.000000e+00> : vector<8x512xf32>
    %303 = tpu.matmul %274, %4, %cst_83 {dimension_numbers = #tpu.dot_dimension_numbers<[1], [0], [0], [1], [0, 0, 1, 1], [], []>} : vector<8x128xf32>, vector<128x512xf32>, vector<8x512xf32> -> vector<8x512xf32>
    %304 = arith.addf %302, %303 : vector<8x512xf32>
    %305 = arith.addf %304, %9 : vector<8x512xf32>
    %306 = vector.extract_strided_slice %305 {offsets = [0, 0], sizes = [8, 384], strides = [1, 1]} : vector<8x512xf32> to vector<8x384xf32>
    %307 = arith.negf %306 : vector<8x384xf32>
    %308 = math.exp %307 : vector<8x384xf32>
    %cst_84 = arith.constant 1.000000e+00 : f32
    %309 = vector.broadcast %cst_84 : f32 to vector<8x384xf32>
    %310 = arith.addf %309, %308 : vector<8x384xf32>
    %311 = arith.divf %309, %310 : vector<8x384xf32>
    %312 = vector.extract_strided_slice %305 {offsets = [0, 384], sizes = [8, 128], strides = [1, 1]} : vector<8x512xf32> to vector<8x128xf32>
    %313 = math.tanh %312 : vector<8x128xf32>
    %314 = vector.extract_strided_slice %311 {offsets = [0, 128], sizes = [8, 128], strides = [1, 1]} : vector<8x384xf32> to vector<8x128xf32>
    %315 = arith.mulf %314, %271 : vector<8x128xf32>
    %316 = vector.extract_strided_slice %311 {offsets = [0, 0], sizes = [8, 128], strides = [1, 1]} : vector<8x384xf32> to vector<8x128xf32>
    %317 = arith.mulf %316, %313 : vector<8x128xf32>
    %318 = arith.addf %315, %317 : vector<8x128xf32>
    %319 = vector.extract_strided_slice %311 {offsets = [0, 256], sizes = [8, 128], strides = [1, 1]} : vector<8x384xf32> to vector<8x128xf32>
    %320 = math.tanh %318 : vector<8x128xf32>
    %321 = arith.mulf %319, %320 : vector<8x128xf32>
    %cst_85 = arith.constant dense<0.000000e+00> : vector<8x512xf32>
    %322 = tpu.matmul %321, %5, %cst_85 {dimension_numbers = #tpu.dot_dimension_numbers<[1], [0], [0], [1], [0, 0, 1, 1], [], []>} : vector<8x128xf32>, vector<128x512xf32>, vector<8x512xf32> -> vector<8x512xf32>
    %cst_86 = arith.constant dense<0.000000e+00> : vector<8x512xf32>
    %323 = tpu.matmul %294, %6, %cst_86 {dimension_numbers = #tpu.dot_dimension_numbers<[1], [0], [0], [1], [0, 0, 1, 1], [], []>} : vector<8x128xf32>, vector<128x512xf32>, vector<8x512xf32> -> vector<8x512xf32>
    %324 = arith.addf %322, %323 : vector<8x512xf32>
    %325 = arith.addf %324, %12 : vector<8x512xf32>
    %326 = vector.extract_strided_slice %325 {offsets = [0, 0], sizes = [8, 384], strides = [1, 1]} : vector<8x512xf32> to vector<8x384xf32>
    %327 = arith.negf %326 : vector<8x384xf32>
    %328 = math.exp %327 : vector<8x384xf32>
    %cst_87 = arith.constant 1.000000e+00 : f32
    %329 = vector.broadcast %cst_87 : f32 to vector<8x384xf32>
    %330 = arith.addf %329, %328 : vector<8x384xf32>
    %331 = arith.divf %329, %330 : vector<8x384xf32>
    %332 = vector.extract_strided_slice %325 {offsets = [0, 384], sizes = [8, 128], strides = [1, 1]} : vector<8x512xf32> to vector<8x128xf32>
    %333 = math.tanh %332 : vector<8x128xf32>
    %334 = vector.extract_strided_slice %331 {offsets = [0, 128], sizes = [8, 128], strides = [1, 1]} : vector<8x384xf32> to vector<8x128xf32>
    %335 = arith.mulf %334, %291 : vector<8x128xf32>
    %336 = vector.extract_strided_slice %331 {offsets = [0, 0], sizes = [8, 128], strides = [1, 1]} : vector<8x384xf32> to vector<8x128xf32>
    %337 = arith.mulf %336, %333 : vector<8x128xf32>
    %338 = arith.addf %335, %337 : vector<8x128xf32>
    %339 = vector.extract_strided_slice %331 {offsets = [0, 256], sizes = [8, 128], strides = [1, 1]} : vector<8x384xf32> to vector<8x128xf32>
    %340 = math.tanh %338 : vector<8x128xf32>
    %341 = arith.mulf %339, %340 : vector<8x128xf32>
    %342 = arith.index_cast %c6_i32 : i32 to index
    %c0_88 = arith.constant 0 : index
    %c0_89 = arith.constant 0 : index
    %343 = vector.load %arg9[%342, %c0_88, %c0_89] : memref<8x8x128xf32, #tpu.memory_space<vmem>>, vector<1x8x128xf32>
    %344 = vector.shape_cast %343 : vector<1x8x128xf32> to vector<8x128xf32>
    %345 = vector.shape_cast %341 : vector<8x128xf32> to vector<1x8x128xf32>
    tpu.vector_store %arg9[%342, %c0_88, %c0_89], %345 {strides = array<i32>} : memref<8x8x128xf32, #tpu.memory_space<vmem>>, vector<1x8x128xf32>,
    %c7_i32 = arith.constant 7 : i32
    %346 = arith.index_cast %c7_i32 : i32 to index
    %c0_90 = arith.constant 0 : index
    %c0_91 = arith.constant 0 : index
    %347 = vector.load %arg2[%346, %c0_90, %c0_91] : memref<8x8x128xf32, #tpu.memory_space<vmem>>, vector<1x8x128xf32>
    %348 = vector.shape_cast %347 : vector<1x8x128xf32> to vector<8x128xf32>
    %cst_92 = arith.constant dense<0.000000e+00> : vector<8x512xf32>
    %349 = tpu.matmul %348, %3, %cst_92 {dimension_numbers = #tpu.dot_dimension_numbers<[1], [0], [0], [1], [0, 0, 1, 1], [], []>} : vector<8x128xf32>, vector<128x512xf32>, vector<8x512xf32> -> vector<8x512xf32>
    %cst_93 = arith.constant dense<0.000000e+00> : vector<8x512xf32>
    %350 = tpu.matmul %321, %4, %cst_93 {dimension_numbers = #tpu.dot_dimension_numbers<[1], [0], [0], [1], [0, 0, 1, 1], [], []>} : vector<8x128xf32>, vector<128x512xf32>, vector<8x512xf32> -> vector<8x512xf32>
    %351 = arith.addf %349, %350 : vector<8x512xf32>
    %352 = arith.addf %351, %9 : vector<8x512xf32>
    %353 = vector.extract_strided_slice %352 {offsets = [0, 0], sizes = [8, 384], strides = [1, 1]} : vector<8x512xf32> to vector<8x384xf32>
    %354 = arith.negf %353 : vector<8x384xf32>
    %355 = math.exp %354 : vector<8x384xf32>
    %cst_94 = arith.constant 1.000000e+00 : f32
    %356 = vector.broadcast %cst_94 : f32 to vector<8x384xf32>
    %357 = arith.addf %356, %355 : vector<8x384xf32>
    %358 = arith.divf %356, %357 : vector<8x384xf32>
    %359 = vector.extract_strided_slice %352 {offsets = [0, 384], sizes = [8, 128], strides = [1, 1]} : vector<8x512xf32> to vector<8x128xf32>
    %360 = math.tanh %359 : vector<8x128xf32>
    %361 = vector.extract_strided_slice %358 {offsets = [0, 128], sizes = [8, 128], strides = [1, 1]} : vector<8x384xf32> to vector<8x128xf32>
    %362 = arith.mulf %361, %318 : vector<8x128xf32>
    %363 = vector.extract_strided_slice %358 {offsets = [0, 0], sizes = [8, 128], strides = [1, 1]} : vector<8x384xf32> to vector<8x128xf32>
    %364 = arith.mulf %363, %360 : vector<8x128xf32>
    %365 = arith.addf %362, %364 : vector<8x128xf32>
    %366 = vector.extract_strided_slice %358 {offsets = [0, 256], sizes = [8, 128], strides = [1, 1]} : vector<8x384xf32> to vector<8x128xf32>
    %367 = math.tanh %365 : vector<8x128xf32>
    %368 = arith.mulf %366, %367 : vector<8x128xf32>
    %cst_95 = arith.constant dense<0.000000e+00> : vector<8x512xf32>
    %369 = tpu.matmul %368, %5, %cst_95 {dimension_numbers = #tpu.dot_dimension_numbers<[1], [0], [0], [1], [0, 0, 1, 1], [], []>} : vector<8x128xf32>, vector<128x512xf32>, vector<8x512xf32> -> vector<8x512xf32>
    %cst_96 = arith.constant dense<0.000000e+00> : vector<8x512xf32>
    %370 = tpu.matmul %341, %6, %cst_96 {dimension_numbers = #tpu.dot_dimension_numbers<[1], [0], [0], [1], [0, 0, 1, 1], [], []>} : vector<8x128xf32>, vector<128x512xf32>, vector<8x512xf32> -> vector<8x512xf32>
    %371 = arith.addf %369, %370 : vector<8x512xf32>
    %372 = arith.addf %371, %12 : vector<8x512xf32>
    %373 = vector.extract_strided_slice %372 {offsets = [0, 0], sizes = [8, 384], strides = [1, 1]} : vector<8x512xf32> to vector<8x384xf32>
    %374 = arith.negf %373 : vector<8x384xf32>
    %375 = math.exp %374 : vector<8x384xf32>
    %cst_97 = arith.constant 1.000000e+00 : f32
    %376 = vector.broadcast %cst_97 : f32 to vector<8x384xf32>
    %377 = arith.addf %376, %375 : vector<8x384xf32>
    %378 = arith.divf %376, %377 : vector<8x384xf32>
    %379 = vector.extract_strided_slice %372 {offsets = [0, 384], sizes = [8, 128], strides = [1, 1]} : vector<8x512xf32> to vector<8x128xf32>
    %380 = math.tanh %379 : vector<8x128xf32>
    %381 = vector.extract_strided_slice %378 {offsets = [0, 128], sizes = [8, 128], strides = [1, 1]} : vector<8x384xf32> to vector<8x128xf32>
    %382 = arith.mulf %381, %338 : vector<8x128xf32>
    %383 = vector.extract_strided_slice %378 {offsets = [0, 0], sizes = [8, 128], strides = [1, 1]} : vector<8x384xf32> to vector<8x128xf32>
    %384 = arith.mulf %383, %380 : vector<8x128xf32>
    %385 = arith.addf %382, %384 : vector<8x128xf32>
    %386 = vector.extract_strided_slice %378 {offsets = [0, 256], sizes = [8, 128], strides = [1, 1]} : vector<8x384xf32> to vector<8x128xf32>
    %387 = math.tanh %385 : vector<8x128xf32>
    %388 = arith.mulf %386, %387 : vector<8x128xf32>
    %389 = arith.index_cast %c7_i32 : i32 to index
    %c0_98 = arith.constant 0 : index
    %c0_99 = arith.constant 0 : index
    %390 = vector.load %arg9[%389, %c0_98, %c0_99] : memref<8x8x128xf32, #tpu.memory_space<vmem>>, vector<1x8x128xf32>
    %391 = vector.shape_cast %390 : vector<1x8x128xf32> to vector<8x128xf32>
    %392 = vector.shape_cast %388 : vector<8x128xf32> to vector<1x8x128xf32>
    tpu.vector_store %arg9[%389, %c0_98, %c0_99], %392 {strides = array<i32>} : memref<8x8x128xf32, #tpu.memory_space<vmem>>, vector<1x8x128xf32>,
    %c8_i32 = arith.constant 8 : i32
    %c0_100 = arith.constant 0 : index
    %c0_101 = arith.constant 0 : index
    %393 = vector.load %arg10[%c0_100, %c0_101] : memref<8x128xf32, #tpu.memory_space<vmem>>, vector<8x128xf32>
    tpu.vector_store %arg10[%c0_100, %c0_101], %368 {strides = array<i32>} : memref<8x128xf32, #tpu.memory_space<vmem>>, vector<8x128xf32>,
    %c0_102 = arith.constant 0 : index
    %c0_103 = arith.constant 0 : index
    %394 = vector.load %arg11[%c0_102, %c0_103] : memref<8x128xf32, #tpu.memory_space<vmem>>, vector<8x128xf32>
    tpu.vector_store %arg11[%c0_102, %c0_103], %365 {strides = array<i32>} : memref<8x128xf32, #tpu.memory_space<vmem>>, vector<8x128xf32>,
    %c0_104 = arith.constant 0 : index
    %c0_105 = arith.constant 0 : index
    %395 = vector.load %arg12[%c0_104, %c0_105] : memref<8x128xf32, #tpu.memory_space<vmem>>, vector<8x128xf32>
    tpu.vector_store %arg12[%c0_104, %c0_105], %388 {strides = array<i32>} : memref<8x128xf32, #tpu.memory_space<vmem>>, vector<8x128xf32>,
    %c0_106 = arith.constant 0 : index
    %c0_107 = arith.constant 0 : index
    %396 = vector.load %arg13[%c0_106, %c0_107] : memref<8x128xf32, #tpu.memory_space<vmem>>, vector<8x128xf32>
    tpu.vector_store %arg13[%c0_106, %c0_107], %385 {strides = array<i32>} : memref<8x128xf32, #tpu.memory_space<vmem>>, vector<8x128xf32>,
    return
  }
  func.func @transform_0(%arg0: i32, %arg1: i32) -> (i32, i32, i32) {
    %c0_i32 = arith.constant 0 : i32
    %c0_i32_0 = arith.constant 0 : i32
    return %arg1, %arg0, %c0_i32 : i32, i32, i32
  }
  func.func @transform_1(%arg0: i32, %arg1: i32) -> (i32, i32) {
    %c0_i32 = arith.constant 0 : i32
    %c0_i32_0 = arith.constant 0 : i32
    %c0_i32_1 = arith.constant 0 : i32
    return %c0_i32, %c0_i32_0 : i32, i32
  }
  func.func @transform_2(%arg0: i32, %arg1: i32) -> (i32, i32) {
    %c0_i32 = arith.constant 0 : i32
    %c0_i32_0 = arith.constant 0 : i32
    %c0_i32_1 = arith.constant 0 : i32
    return %c0_i32, %c0_i32_0 : i32, i32
  }
  func.func @transform_3(%arg0: i32, %arg1: i32) -> (i32, i32) {
    %c0_i32 = arith.constant 0 : i32
    %c0_i32_0 = arith.constant 0 : i32
    %c0_i32_1 = arith.constant 0 : i32
    return %c0_i32, %c0_i32_0 : i32, i32
  }
  func.func @transform_4(%arg0: i32, %arg1: i32) -> (i32, i32) {
    %c0_i32 = arith.constant 0 : i32
    %c0_i32_0 = arith.constant 0 : i32
    %c0_i32_1 = arith.constant 0 : i32
    return %c0_i32, %c0_i32_0 : i32, i32
  }
  func.func @transform_5(%arg0: i32, %arg1: i32) -> (i32, i32) {
    %c0_i32 = arith.constant 0 : i32
    %c0_i32_0 = arith.constant 0 : i32
    %c0_i32_1 = arith.constant 0 : i32
    return %c0_i32, %c0_i32_0 : i32, i32
  }
  func.func @transform_6(%arg0: i32, %arg1: i32) -> (i32, i32) {
    %c0_i32 = arith.constant 0 : i32
    %c0_i32_0 = arith.constant 0 : i32
    %c0_i32_1 = arith.constant 0 : i32
    return %c0_i32, %c0_i32_0 : i32, i32
  }
  func.func @transform_7(%arg0: i32, %arg1: i32) -> (i32, i32, i32) {
    %c0_i32 = arith.constant 0 : i32
    %c0_i32_0 = arith.constant 0 : i32
    return %arg1, %arg0, %c0_i32 : i32, i32, i32
  }
}

</mosaic_0001>

<bundles_post_ra>
// kernel: forward.3
= control target key start
LH: loop header
LB: loop body
LE: loop exit
PB: predicated region body
PF: predicated region fallthrough
CT: control target
= control target key end

     0   :  { %s382_s1 = inlined_call_operand.vmem [shape: f32[128,128], index: 1, kind: input, shape index: {}]   ;;  %s383_s0 = inlined_call_operand.vmem [shape: f32[64,128], index: 0, kind: input, shape index: {}]   ;;  %s384_s2 = inlined_call_operand.vmem [shape: f32[1,128], index: 2, kind: input, shape index: {}]   ;;  %s385_s3 = inlined_call_operand.vmem [shape: f32[64,128], index: 3, kind: output, shape index: {}]  }
   0x1   :  { %v37_v0 = vld [vmem:[%s382_s1 + $0x78] sm:$0xff]  ;;  %v36_v1 = vld [vmem:[%s382_s1 + $0x70] sm:$0xff]  ;;  %v35_v2 = vld [vmem:[%s382_s1 + $0x68] sm:$0xff] }
   0x2   :  { %187 = vmatprep.subr.mxu0 %v37_v0  ;;  %231 = vmatprep.subr.mxu1 %v37_v0  ;;  %v34_v3 = vld [vmem:[%s382_s1 + $0x60] sm:$0xff]  ;;  %v33_v4 = vld [vmem:[%s382_s1 + $0x58] sm:$0xff]  ;;  %v32_v5 = vld [vmem:[%s382_s1 + $0x50] sm:$0xff] }
   0x3   :  { %188 = vmatpush3.msra.mxu0 %v37_v0  ;;  %247 = vmatpush3.msra.mxu1 %v37_v0  ;;  %v31_v6 = vld [vmem:[%s382_s1 + $0x48] sm:$0xff]  ;;  %v30_v7 = vld [vmem:[%s382_s1 + $0x40] sm:$0xff]  ;;  %v29_v8 = vld [vmem:[%s382_s1 + $0x38] sm:$0xff] }
   0x4   :  { %189 = vmatprep.subr.mxu0 %v36_v1  ;;  %232 = vmatprep.subr.mxu1 %v36_v1  ;;  %v28_v9 = vld [vmem:[%s382_s1 + $0x30] sm:$0xff]  ;;  %v27_v10 = vld [vmem:[%s382_s1 + $0x28] sm:$0xff]  ;;  %v26_v11 = vld [vmem:[%s382_s1 + $0x20] sm:$0xff] }
   0x5   :  { %190 = vmatpush3.msra.mxu0 %v36_v1  ;;  %248 = vmatpush3.msra.mxu1 %v36_v1  ;;  %v25_v12 = vld [vmem:[%s382_s1 + $0x18] sm:$0xff]  ;;  %v24_v13 = vld [vmem:[%s382_s1 + $0x10] sm:$0xff]  ;;  %v23_v14 = vld [vmem:[%s382_s1 + $0x8] sm:$0xff] }
   0x6   :  { %191 = vmatprep.subr.mxu0 %v35_v2  ;;  %233 = vmatprep.subr.mxu1 %v35_v2  ;;  %v22_v15 = vld [vmem:[%s382_s1] sm:$0xff]  ;;  %v15_v18 = vld [vmem:[%s383_s0 + $0x8] sm:$0xff]  ;;  %v16_v20 = vld [vmem:[%s383_s0 + $0x10] sm:$0xff] }
   0x7   :  { %192 = vmatpush3.msra.mxu0 %v35_v2  ;;  %249 = vmatpush3.msra.mxu1 %v35_v2  ;;  %v14_v16 = vld [vmem:[%s383_s0] sm:$0xff]  ;;  %v19_v19 = vld [vmem:[%s383_s0 + $0x28] sm:$0xff]  ;;  %v20_v21 = vld [vmem:[%s383_s0 + $0x30] sm:$0xff] }
   0x8   :  { %193 = vmatprep.subr.mxu0 %v34_v3  ;;  %234 = vmatprep.subr.mxu1 %v34_v3  ;;  %v18_v17 = vld [vmem:[%s383_s0 + $0x20] sm:$0xff]  ;;  %v17_v22 = vld [vmem:[%s383_s0 + $0x18] sm:$0xff] }
   0x9   :  { %194 = vmatpush3.msra.mxu0 %v34_v3  ;;  %250 = vmatpush3.msra.mxu1 %v34_v3  ;;  %v21_v23 = vld [vmem:[%s383_s0 + $0x38] sm:$0xff]  ;;  %v162_v24 = vld [vmem:[%s384_s2] ss:$0 sm:$0xff] }
   0xa   :  { %195 = vmatprep.subr.mxu0 %v33_v4  ;;  %235 = vmatprep.subr.mxu1 %v33_v4 }
   0xb   :  { %196 = vmatpush3.msra.mxu0 %v33_v4  ;;  %251 = vmatpush3.msra.mxu1 %v33_v4 }
   0xc   :  { %197 = vmatprep.subr.mxu0 %v32_v5  ;;  %236 = vmatprep.subr.mxu1 %v32_v5 }
   0xd   :  { %198 = vmatpush3.msra.mxu0 %v32_v5  ;;  %252 = vmatpush3.msra.mxu1 %v32_v5 }
   0xe   :  { %199 = vmatprep.subr.mxu0 %v31_v6  ;;  %237 = vmatprep.subr.mxu1 %v31_v6 }
   0xf   :  { %200 = vmatpush3.msra.mxu0 %v31_v6  ;;  %253 = vmatpush3.msra.mxu1 %v31_v6 }
  0x10   :  { %201 = vmatprep.subr.mxu0 %v30_v7  ;;  %238 = vmatprep.subr.mxu1 %v30_v7 }
  0x11   :  { %202 = vmatpush3.msra.mxu0 %v30_v7  ;;  %254 = vmatpush3.msra.mxu1 %v30_v7 }
  0x12   :  { %203 = vmatprep.subr.mxu0 %v29_v8  ;;  %239 = vmatprep.subr.mxu1 %v29_v8 }
  0x13   :  { %204 = vmatpush3.msra.mxu0 %v29_v8  ;;  %255 = vmatpush3.msra.mxu1 %v29_v8 }
  0x14   :  { %205 = vmatprep.subr.mxu0 %v28_v9  ;;  %240 = vmatprep.subr.mxu1 %v28_v9 }
  0x15   :  { %206 = vmatpush3.msra.mxu0 %v28_v9  ;;  %256 = vmatpush3.msra.mxu1 %v28_v9 }
  0x16   :  { %207 = vmatprep.subr.mxu0 %v27_v10  ;;  %241 = vmatprep.subr.mxu1 %v27_v10 }
  0x17   :  { %208 = vmatpush3.msra.mxu0 %v27_v10  ;;  %257 = vmatpush3.msra.mxu1 %v27_v10 }
  0x18   :  { %209 = vmatprep.subr.mxu0 %v26_v11  ;;  %242 = vmatprep.subr.mxu1 %v26_v11 }
  0x19   :  { %210 = vmatpush3.msra.mxu0 %v26_v11  ;;  %258 = vmatpush3.msra.mxu1 %v26_v11 }
  0x1a   :  { %211 = vmatprep.subr.mxu0 %v25_v12  ;;  %243 = vmatprep.subr.mxu1 %v25_v12 }
  0x1b   :  { %212 = vmatpush3.msra.mxu0 %v25_v12  ;;  %259 = vmatpush3.msra.mxu1 %v25_v12 }
  0x1c   :  { %213 = vmatprep.subr.mxu0 %v24_v13  ;;  %244 = vmatprep.subr.mxu1 %v24_v13 }
  0x1d   :  { %214 = vmatpush3.msra.mxu0 %v24_v13  ;;  %260 = vmatpush3.msra.mxu1 %v24_v13 }
  0x1e   :  { %215 = vmatprep.subr.mxu0 %v23_v14  ;;  %245 = vmatprep.subr.mxu1 %v23_v14 }
  0x1f   :  { %216 = vmatpush3.msra.mxu0 %v23_v14  ;;  %261 = vmatpush3.msra.mxu1 %v23_v14 }
  0x20   :  { %217 = vmatprep.subr.mxu0 %v22_v15  ;;  %246 = vmatprep.subr.mxu1 %v22_v15 }
  0x21   :  { %218 = vmatpush3.msra.mxu0 %v22_v15  ;;  %262 = vmatpush3.msra.mxu1 %v22_v15 }
  0x22   :  { %219 = vmatprep.mubr.f32.mxu0 %v14_v16  ;;  %225 = vmatprep.mubr.f32.mxu1 %v18_v17 }
  0x23   :  { %220 = vmatmul.mubr.f32.vlgmr.msra.gmra.mxu0 %v15_v18  ;;  %226 = vmatmul.mubr.f32.vlgmr.msra.gmra.mxu1 %v19_v19 }
  0x24   :  { %222 = vmatprep.mubr.f32.mxu0 %v16_v20  ;;  %228 = vmatprep.mubr.f32.mxu1 %v20_v21 }
  0x27   :  { %223 = vmatmul.mubr.f32.gmra.mxu0 %v17_v22  ;;  %229 = vmatmul.mubr.f32.gmra.mxu1 %v21_v23 }
  0xe3   :  { %v221_v25 = vpop.f32.mrf.mxu0  ;;  %v227_v26 = vpop.f32.mrf.mxu1 }
  0xe4   :  { %v117_v27 = vadd.f32 %v221_v25, %v162_v24  ;;  %v137_v28 = vadd.f32 %v227_v26, %v162_v24 }
  0xe5   :  { %v111_v29 = vpop.f32.mrf.mxu0  ;;  %v131_v30 = vpop.f32.mrf.mxu1 }
  0xe6   :  { %151 = vst [vmem:[%s385_s3 + $0x8] sm:$0xff] %v117_v27  ;;  %155 = vst [vmem:[%s385_s3 + $0x28] sm:$0xff] %v137_v28  ;;  %v112_v31 = vadd.f32 %v162_v24, %v111_v29  ;;  %v132_v32 = vadd.f32 %v162_v24, %v131_v30 }
  0xe7   :  { %v224_v33 = vpop.f32.mrf.mxu0  ;;  %v230_v34 = vpop.f32.mrf.mxu1 }
  0xe8   :  { %150 = vst [vmem:[%s385_s3] sm:$0xff] %v112_v31  ;;  %154 = vst [vmem:[%s385_s3 + $0x20] sm:$0xff] %v132_v32  ;;  %v127_v35 = vadd.f32 %v224_v33, %v162_v24  ;;  %v147_v36 = vadd.f32 %v230_v34, %v162_v24 }
  0xe9   :  { %v121_v37 = vpop.f32.mrf.mxu0  ;;  %v141_v38 = vpop.f32.mrf.mxu1 }
  0xea   :  { %153 = vst [vmem:[%s385_s3 + $0x18] sm:$0xff] %v127_v35  ;;  %157 = vst [vmem:[%s385_s3 + $0x38] sm:$0xff] %v147_v36  ;;  %v122_v39 = vadd.f32 %v162_v24, %v121_v37  ;;  %v142_v40 = vadd.f32 %v162_v24, %v141_v38 }
  0xec   :  { %152 = vst [vmem:[%s385_s3 + $0x10] sm:$0xff] %v122_v39  ;;  %156 = vst [vmem:[%s385_s3 + $0x30] sm:$0xff] %v142_v40 }

// kernel: forward.2
= control target key start
LH: loop header
LB: loop body
LE: loop exit
PB: predicated region body
PF: predicated region fallthrough
CT: control target
= control target key end

     0   :  { %12 = vsyncpa [#allocation7], 0  ;;  %s10866_s0 = inlined_call_operand.vmem [shape: f32[8,8,128], index: 0, kind: input, shape index: {}]   ;;  %s10867_s1 = inlined_call_operand.hbm [shape: f32[128,512], index: 1, kind: input, shape index: {}]   ;;  %s10868_s2 = inlined_call_operand.hbm [shape: f32[128,512], index: 2, kind: input, shape index: {}]   ;;  %s10869_s3 = inlined_call_operand.vmem [shape: f32[1,512], index: 3, kind: input, shape index: {}]   ;;  %s10870_s4 = inlined_call_operand.hbm [shape: f32[128,512], index: 4, kind: input, shape index: {}]   ;;  %s10871_s5 = inlined_call_operand.hbm [shape: f32[128,512], index: 5, kind: input, shape index: {}]   ;;  %s10872_s6 = inlined_call_operand.vmem [shape: f32[1,512], index: 6, kind: input, shape index: {}]   ;;  %s10873_s7 = inlined_call_operand.vmem [shape: f32[8,8,128], index: 7, kind: output, shape index: {}]  }
   0x1   :  { %13 = vsyncpa [#allocation9], 0 }
   0x2   :  { %14 = vsyncpa [#allocation12], 0  ;;  %s6681_s24 = smov [#allocation8]   ;;  %s6682_s26 = smov [#allocation6]  }
   0x3   :  { %s34_s25 = sshll.u32 %s6681_s24, 4  ;;  %s22_s27 = sshll.u32 %s6682_s26, 4  ;;  %s35_s25 = int_to_ptr.vmem [resolvable:$true] %s34_s25  ;;  %s23_s27 = int_to_ptr.vmem [resolvable:$true] %s22_s27 }
   0x4   :  { %s6603_s28 = scalar_lea.vmem %s35_s25, 8192  ;;  %p6608_p1 = scmp.lt.s32.totalorder %s35_s25, %s35_s25 }
   0x5   :  { %p6604_p0 = scmp.ne.s32.totalorder %s35_s25, %s6603_s28  ;;  %p6609_p2 = scmp.lt.s32.totalorder %s6603_s28, %s6603_s28 }
   0x7   :  { %p6610_p3 = por %p6609_p2, %p6608_p1 }
   0x9   :  { %p6611_p4 = pnand %p6610_p3, %p6604_p0 }
   0xb   :  { %6614 = shalt.err (!%p6611_p4)
}
   0xc   :  { %s6683_s29 = smov 512   ;;  %s6684_s30 = smov 32  }
   0xd   :  { %40 = dma.hbm_to_vmem [thread:$0]  %s10868_s2, 8192, %s35_s25, [#allocation9], %s6683_s29, %s6683_s29, %s6684_s30  }
   0xe   :  { %s6623_s10 = scalar_lea.vmem %s23_s27, 8192  ;;  %p6628_p6 = scmp.lt.s32.totalorder %s23_s27, %s23_s27 }
   0xf   :  { %p6624_p5 = scmp.ne.s32.totalorder %s23_s27, %s6623_s10  ;;  %p6629_p7 = scmp.lt.s32.totalorder %s6623_s10, %s6623_s10 }
  0x11   :  { %p6630_p8 = por %p6629_p7, %p6628_p6 }
  0x13   :  { %p6631_p9 = pnand %p6630_p8, %p6624_p5 }
  0x15   :  { %6634 = shalt.err (!%p6631_p9)
}
  0x16   :  { %28 = dma.hbm_to_vmem [thread:$0]  %s10867_s1, 8192, %s23_s27, [#allocation7], %s6683_s29, %s6683_s29, %s6684_s30  }
  0x17   :  { %s6685_s13 = smov [#allocation10]   ;;  %s6686_s15 = smov [#allocation11]  }
  0x18   :  { %s48_s14 = sshll.u32 %s6685_s13, 4  ;;  %s60_s16 = sshll.u32 %s6686_s15, 4  ;;  %s49_s14 = int_to_ptr.vmem [resolvable:$true] %s48_s14  ;;  %s61_s16 = int_to_ptr.vmem [resolvable:$true] %s60_s16 }
  0x19   :  { %s6643_s2 = scalar_lea.vmem %s49_s14, 8192  ;;  %p6648_p11 = scmp.lt.s32.totalorder %s49_s14, %s49_s14 }
  0x1a   :  { %p6644_p10 = scmp.ne.s32.totalorder %s49_s14, %s6643_s2  ;;  %p6649_p12 = scmp.lt.s32.totalorder %s6643_s2, %s6643_s2 }
  0x1c   :  { %p6650_p13 = por %p6649_p12, %p6648_p11 }
  0x1e   :  { %p6651_p0 = pnand %p6650_p13, %p6644_p10 }
  0x20   :  { %6654 = shalt.err (!%p6651_p0)
}
  0x21   :  { %54 = dma.hbm_to_vmem [thread:$0]  %s10870_s4, 8192, %s49_s14, [#allocation9], %s6683_s29, %s6683_s29, %s6684_s30  }
  0x22   :  { %s6663_s1 = scalar_lea.vmem %s61_s16, 8192  ;;  %p6668_p2 = scmp.lt.s32.totalorder %s61_s16, %s61_s16 }
  0x23   :  { %p6664_p1 = scmp.ne.s32.totalorder %s61_s16, %s6663_s1  ;;  %p6669_p3 = scmp.lt.s32.totalorder %s6663_s1, %s6663_s1 }
  0x25   :  { %p6670_p4 = por %p6669_p3, %p6668_p2 }
  0x27   :  { %p6671_p5 = pnand %p6670_p4, %p6664_p1 }
  0x29   :  { %6674 = shalt.err (!%p6671_p5)
}
  0x2a   :  { %66 = dma.hbm_to_vmem [thread:$0]  %s10871_s5, 8192, %s61_s16, [#allocation12], %s6683_s29, %s6683_s29, %s6684_s30  }
  0x2b   :  { %6675 = dma.done.wait [#allocation7], 8192  }
  0x2c   :  { %6676 = vsyncadd [#allocation7], 4294959104 }
  0x2d   :  { %6677 = dma.done.wait [#allocation9], 16384  }
  0x2e   :  { %6678 = vsyncadd [#allocation9], 4294950912 }
  0x2f   :  { %6679 = dma.done.wait [#allocation12], 8192  }
  0x30   :  { %6680 = vsyncadd [#allocation12], 4294959104  ;;  %v10874_v0 = vmov 0.0   ;;  %v214_v1 = vld [vmem:[#allocation8 + $0x1e8] sm:$0xff]  ;;  %v216_v2 = vld [vmem:[#allocation8 + $0x1f8] sm:$0xff] }
  0x31   :  { %458 = vmatprep.mubr.f32.mxu0 %v10874_v0  ;;  %529 = vmatprep.mubr.f32.mxu1 %v10874_v0  ;;  %v213_v3 = vld [vmem:[#allocation8 + $0x1e0] sm:$0xff]  ;;  %v215_v4 = vld [vmem:[#allocation8 + $0x1f0] sm:$0xff]  ;;  %v210_v5 = vld [vmem:[#allocation8 + $0x1c8] sm:$0xff] }
  0x32   :  { %394 = vmatprep.subr.mxu0 %v214_v1  ;;  %465 = vmatprep.subr.mxu1 %v216_v2  ;;  %v212_v6 = vld [vmem:[#allocation8 + $0x1d8] sm:$0xff]  ;;  %v209_v7 = vld [vmem:[#allocation8 + $0x1c0] sm:$0xff]  ;;  %v211_v8 = vld [vmem:[#allocation8 + $0x1d0] sm:$0xff] }
  0x33   :  { %395 = vmatpush1.msra.mxu0 %v213_v3  ;;  %466 = vmatpush1.msra.mxu1 %v215_v4  ;;  %v206_v9 = vld [vmem:[#allocation8 + $0x1a8] sm:$0xff]  ;;  %v208_v10 = vld [vmem:[#allocation8 + $0x1b8] sm:$0xff]  ;;  %v205_v11 = vld [vmem:[#allocation8 + $0x1a0] sm:$0xff] }
  0x34   :  { %396 = vmatprep.subr.mxu0 %v210_v5  ;;  %467 = vmatprep.subr.mxu1 %v212_v6  ;;  %v207_v12 = vld [vmem:[#allocation8 + $0x1b0] sm:$0xff]  ;;  %v202_v13 = vld [vmem:[#allocation8 + $0x188] sm:$0xff]  ;;  %v204_v14 = vld [vmem:[#allocation8 + $0x198] sm:$0xff] }
  0x35   :  { %397 = vmatpush1.msra.mxu0 %v209_v7  ;;  %468 = vmatpush1.msra.mxu1 %v211_v8  ;;  %v201_v15 = vld [vmem:[#allocation8 + $0x180] sm:$0xff]  ;;  %v203_v16 = vld [vmem:[#allocation8 + $0x190] sm:$0xff]  ;;  %v198_v17 = vld [vmem:[#allocation8 + $0x168] sm:$0xff] }
  0x36   :  { %398 = vmatprep.subr.mxu0 %v206_v9  ;;  %469 = vmatprep.subr.mxu1 %v208_v10  ;;  %v200_v18 = vld [vmem:[#allocation8 + $0x178] sm:$0xff]  ;;  %v197_v19 = vld [vmem:[#allocation8 + $0x160] sm:$0xff]  ;;  %v199_v20 = vld [vmem:[#allocation8 + $0x170] sm:$0xff] }
  0x37   :  { %399 = vmatpush1.msra.mxu0 %v205_v11  ;;  %470 = vmatpush1.msra.mxu1 %v207_v12  ;;  %v194_v21 = vld [vmem:[#allocation8 + $0x148] sm:$0xff]  ;;  %v196_v22 = vld [vmem:[#allocation8 + $0x158] sm:$0xff]  ;;  %v193_v23 = vld [vmem:[#allocation8 + $0x140] sm:$0xff] }
  0x38   :  { %400 = vmatprep.subr.mxu0 %v202_v13  ;;  %471 = vmatprep.subr.mxu1 %v204_v14  ;;  %v195_v24 = vld [vmem:[#allocation8 + $0x150] sm:$0xff]  ;;  %v190_v25 = vld [vmem:[#allocation8 + $0x128] sm:$0xff]  ;;  %v192_v26 = vld [vmem:[#allocation8 + $0x138] sm:$0xff] }
  0x39   :  { %401 = vmatpush1.msra.mxu0 %v201_v15  ;;  %472 = vmatpush1.msra.mxu1 %v203_v16  ;;  %v189_v27 = vld [vmem:[#allocation8 + $0x120] sm:$0xff]  ;;  %v191_v28 = vld [vmem:[#allocation8 + $0x130] sm:$0xff]  ;;  %v186_v29 = vld [vmem:[#allocation8 + $0x108] sm:$0xff] }
  0x3a   :  { %402 = vmatprep.subr.mxu0 %v198_v17  ;;  %473 = vmatprep.subr.mxu1 %v200_v18  ;;  %v188_v30 = vld [vmem:[#allocation8 + $0x118] sm:$0xff]  ;;  %v185_v31 = vld [vmem:[#allocation8 + $0x100] sm:$0xff]  ;;  %v187_v32 = vld [vmem:[#allocation8 + $0x110] sm:$0xff] }
  0x3b   :  { %403 = vmatpush1.msra.mxu0 %v197_v19  ;;  %474 = vmatpush1.msra.mxu1 %v199_v20  ;;  %v182_v33 = vld [vmem:[#allocation8 + $0xe8] sm:$0xff]  ;;  %v184_v34 = vld [vmem:[#allocation8 + $0xf8] sm:$0xff]  ;;  %v181_v35 = vld [vmem:[#allocation8 + $0xe0] sm:$0xff] }
  0x3c   :  { %404 = vmatprep.subr.mxu0 %v194_v21  ;;  %475 = vmatprep.subr.mxu1 %v196_v22  ;;  %v183_v36 = vld [vmem:[#allocation8 + $0xf0] sm:$0xff]  ;;  %v178_v37 = vld [vmem:[#allocation8 + $0xc8] sm:$0xff]  ;;  %v180_v38 = vld [vmem:[#allocation8 + $0xd8] sm:$0xff] }
  0x3d   :  { %405 = vmatpush1.msra.mxu0 %v193_v23  ;;  %476 = vmatpush1.msra.mxu1 %v195_v24  ;;  %v177_v39 = vld [vmem:[#allocation8 + $0xc0] sm:$0xff]  ;;  %v179_v40 = vld [vmem:[#allocation8 + $0xd0] sm:$0xff]  ;;  %v174_v41 = vld [vmem:[#allocation8 + $0xa8] sm:$0xff] }
  0x3e   :  { %406 = vmatprep.subr.mxu0 %v190_v25  ;;  %477 = vmatprep.subr.mxu1 %v192_v26  ;;  %v176_v42 = vld [vmem:[#allocation8 + $0xb8] sm:$0xff]  ;;  %v173_v43 = vld [vmem:[#allocation8 + $0xa0] sm:$0xff]  ;;  %v175_v44 = vld [vmem:[#allocation8 + $0xb0] sm:$0xff] }
  0x3f   :  { %407 = vmatpush1.msra.mxu0 %v189_v27  ;;  %478 = vmatpush1.msra.mxu1 %v191_v28  ;;  %v170_v45 = vld [vmem:[#allocation8 + $0x88] sm:$0xff]  ;;  %v172_v46 = vld [vmem:[#allocation8 + $0x98] sm:$0xff]  ;;  %v169_v47 = vld [vmem:[#allocation8 + $0x80] sm:$0xff] }
  0x40   :  { %408 = vmatprep.subr.mxu0 %v186_v29  ;;  %479 = vmatprep.subr.mxu1 %v188_v30  ;;  %v171_v48 = vld [vmem:[#allocation8 + $0x90] sm:$0xff]  ;;  %v166_v49 = vld [vmem:[#allocation8 + $0x68] sm:$0xff]  ;;  %v168_v50 = vld [vmem:[#allocation8 + $0x78] sm:$0xff] }
  0x41   :  { %409 = vmatpush1.msra.mxu0 %v185_v31  ;;  %480 = vmatpush1.msra.mxu1 %v187_v32  ;;  %v165_v51 = vld [vmem:[#allocation8 + $0x60] sm:$0xff]  ;;  %v167_v52 = vld [vmem:[#allocation8 + $0x70] sm:$0xff]  ;;  %v162_v53 = vld [vmem:[#allocation8 + $0x48] sm:$0xff] }
  0x42   :  { %410 = vmatprep.subr.mxu0 %v182_v33  ;;  %481 = vmatprep.subr.mxu1 %v184_v34  ;;  %v164_v54 = vld [vmem:[#allocation8 + $0x58] sm:$0xff]  ;;  %v161_v55 = vld [vmem:[#allocation8 + $0x40] sm:$0xff]  ;;  %v163_v56 = vld [vmem:[#allocation8 + $0x50] sm:$0xff] }
  0x43   :  { %411 = vmatpush1.msra.mxu0 %v181_v35  ;;  %482 = vmatpush1.msra.mxu1 %v183_v36  ;;  %v158_v57 = vld [vmem:[#allocation8 + $0x28] sm:$0xff]  ;;  %v160_v58 = vld [vmem:[#allocation8 + $0x38] sm:$0xff]  ;;  %v157_v59 = vld [vmem:[#allocation8 + $0x20] sm:$0xff] }
  0x44   :  { %412 = vmatprep.subr.mxu0 %v178_v37  ;;  %483 = vmatprep.subr.mxu1 %v180_v38  ;;  %v159_v60 = vld [vmem:[#allocation8 + $0x30] sm:$0xff]  ;;  %v154_v61 = vld [vmem:[#allocation8 + $0x8] sm:$0xff]  ;;  %v156_v62 = vld [vmem:[#allocation8 + $0x18] sm:$0xff] }
  0x45   :  { %413 = vmatpush1.msra.mxu0 %v177_v39  ;;  %484 = vmatpush1.msra.mxu1 %v179_v40  ;;  %v153_v63 = vld [vmem:[#allocation8] sm:$0xff]  ;;  %v155_v1 = vld [vmem:[#allocation8 + $0x10] sm:$0xff]  ;;  %v150_v2 = vld [vmem:[#allocation6 + $0x1e8] sm:$0xff] }
  0x46   :  { %414 = vmatprep.subr.mxu0 %v174_v41  ;;  %485 = vmatprep.subr.mxu1 %v176_v42  ;;  %v152_v3 = vld [vmem:[#allocation6 + $0x1f8] sm:$0xff]  ;;  %v149_v4 = vld [vmem:[#allocation6 + $0x1e0] sm:$0xff]  ;;  %v151_v5 = vld [vmem:[#allocation6 + $0x1f0] sm:$0xff] }
  0x47   :  { %415 = vmatpush1.msra.mxu0 %v173_v43  ;;  %486 = vmatpush1.msra.mxu1 %v175_v44  ;;  %v146_v6 = vld [vmem:[#allocation6 + $0x1c8] sm:$0xff]  ;;  %v148_v7 = vld [vmem:[#allocation6 + $0x1d8] sm:$0xff]  ;;  %v145_v8 = vld [vmem:[#allocation6 + $0x1c0] sm:$0xff] }
  0x48   :  { %416 = vmatprep.subr.mxu0 %v170_v45  ;;  %487 = vmatprep.subr.mxu1 %v172_v46  ;;  %v147_v9 = vld [vmem:[#allocation6 + $0x1d0] sm:$0xff]  ;;  %v142_v10 = vld [vmem:[#allocation6 + $0x1a8] sm:$0xff]  ;;  %v144_v11 = vld [vmem:[#allocation6 + $0x1b8] sm:$0xff] }
  0x49   :  { %417 = vmatpush1.msra.mxu0 %v169_v47  ;;  %488 = vmatpush1.msra.mxu1 %v171_v48  ;;  %v141_v12 = vld [vmem:[#allocation6 + $0x1a0] sm:$0xff]  ;;  %v143_v13 = vld [vmem:[#allocation6 + $0x1b0] sm:$0xff]  ;;  %v6756_v14 = vld [vmem:[#allocation6 + $0x188] sm:$0xff] }
  0x4a   :  { %418 = vmatprep.subr.mxu0 %v166_v49  ;;  %489 = vmatprep.subr.mxu1 %v168_v50  ;;  %v6758_v15 = vld [vmem:[#allocation6 + $0x198] sm:$0xff]  ;;  %v6760_v16 = vld [vmem:[#allocation6 + $0x180] sm:$0xff]  ;;  %v6762_v17 = vld [vmem:[#allocation6 + $0x190] sm:$0xff] }
  0x4b   :  { %419 = vmatpush1.msra.mxu0 %v165_v51  ;;  %490 = vmatpush1.msra.mxu1 %v167_v52  ;;  %v6764_v18 = vld [vmem:[#allocation6 + $0x168] sm:$0xff]  ;;  %v6766_v19 = vld [vmem:[#allocation6 + $0x178] sm:$0xff]  ;;  %v6770_v20 = vld [vmem:[#allocation6 + $0x160] sm:$0xff] }
  0x4c   :  { %420 = vmatprep.subr.mxu0 %v162_v53  ;;  %491 = vmatprep.subr.mxu1 %v164_v54  ;;  %v6772_v21 = vld [vmem:[#allocation6 + $0x170] sm:$0xff]  ;;  %v6776_v22 = vld [vmem:[#allocation6 + $0x148] sm:$0xff]  ;;  %v6778_v23 = vld [vmem:[#allocation6 + $0x158] sm:$0xff] }
  0x4d   :  { %421 = vmatpush1.msra.mxu0 %v161_v55  ;;  %492 = vmatpush1.msra.mxu1 %v163_v56  ;;  %v6782_v24 = vld [vmem:[#allocation6 + $0x140] sm:$0xff]  ;;  %v6784_v25 = vld [vmem:[#allocation6 + $0x150] sm:$0xff]  ;;  %v6788_v26 = vld [vmem:[#allocation6 + $0x128] sm:$0xff] }
  0x4e   :  { %422 = vmatprep.subr.mxu0 %v158_v57  ;;  %493 = vmatprep.subr.mxu1 %v160_v58  ;;  %v6790_v27 = vld [vmem:[#allocation6 + $0x138] sm:$0xff]  ;;  %v6794_v28 = vld [vmem:[#allocation6 + $0x120] sm:$0xff]  ;;  %v6796_v29 = vld [vmem:[#allocation6 + $0x130] sm:$0xff] }
  0x4f   :  { %423 = vmatpush1.msra.mxu0 %v157_v59  ;;  %494 = vmatpush1.msra.mxu1 %v159_v60  ;;  %v6800_v30 = vld [vmem:[#allocation6 + $0x108] sm:$0xff]  ;;  %v6802_v31 = vld [vmem:[#allocation6 + $0x118] sm:$0xff]  ;;  %v6806_v32 = vld [vmem:[#allocation6 + $0x100] sm:$0xff] }
  0x50   :  { %424 = vmatprep.subr.mxu0 %v154_v61  ;;  %495 = vmatprep.subr.mxu1 %v156_v62  ;;  %v6808_v33 = vld [vmem:[#allocation6 + $0x110] sm:$0xff]  ;;  %v6812_v34 = vld [vmem:[#allocation6 + $0xe8] sm:$0xff]  ;;  %v6814_v35 = vld [vmem:[#allocation6 + $0xf8] sm:$0xff] }
  0x51   :  { %425 = vmatpush1.msra.mxu0 %v153_v63  ;;  %496 = vmatpush1.msra.mxu1 %v155_v1  ;;  %v6818_v36 = vld [vmem:[#allocation6 + $0xe0] sm:$0xff]  ;;  %v6820_v37 = vld [vmem:[#allocation6 + $0xf0] sm:$0xff]  ;;  %v6824_v38 = vld [vmem:[#allocation6 + $0xc8] sm:$0xff] }
  0x52   :  { %459 = vmatmul.mubr.f32.vlgmr.msra.gmra.mxu0 %v10874_v0  ;;  %536 = vmatprep.subr.mxu0 %v150_v2  ;;  %v6826_v39 = vld [vmem:[#allocation6 + $0xd8] sm:$0xff]  ;;  %v6830_v40 = vld [vmem:[#allocation6 + $0xc0] sm:$0xff]  ;;  %v6832_v41 = vld [vmem:[#allocation6 + $0xd0] sm:$0xff] }
  0x53   :  { %607 = vmatprep.subr.mxu1 %v152_v3  ;;  %530 = vmatmul.mubr.f32.vlgmr.msra.gmra.mxu1 %v10874_v0  ;;  %v6836_v42 = vld [vmem:[#allocation6 + $0xa8] sm:$0xff]  ;;  %v6838_v43 = vld [vmem:[#allocation6 + $0xb8] sm:$0xff]  ;;  %v6842_v44 = vld [vmem:[#allocation6 + $0xa0] sm:$0xff] }
  0x54   :  { %537 = vmatpush1.msra.mxu0 %v149_v4  ;;  %608 = vmatpush1.msra.mxu1 %v151_v5  ;;  %v6844_v45 = vld [vmem:[#allocation6 + $0xb0] sm:$0xff]  ;;  %v6848_v46 = vld [vmem:[#allocation6 + $0x88] sm:$0xff]  ;;  %v6850_v47 = vld [vmem:[#allocation6 + $0x98] sm:$0xff] }
  0x55   :  { %538 = vmatprep.subr.mxu0 %v146_v6  ;;  %609 = vmatprep.subr.mxu1 %v148_v7  ;;  %v6854_v48 = vld [vmem:[#allocation6 + $0x80] sm:$0xff]  ;;  %v6856_v49 = vld [vmem:[#allocation6 + $0x90] sm:$0xff]  ;;  %v6860_v50 = vld [vmem:[#allocation6 + $0x68] sm:$0xff] }
  0x56   :  { %539 = vmatpush1.msra.mxu0 %v145_v8  ;;  %610 = vmatpush1.msra.mxu1 %v147_v9  ;;  %v6862_v51 = vld [vmem:[#allocation6 + $0x78] sm:$0xff]  ;;  %v6866_v52 = vld [vmem:[#allocation6 + $0x60] sm:$0xff]  ;;  %v6868_v53 = vld [vmem:[#allocation6 + $0x70] sm:$0xff] }
  0x57   :  { %540 = vmatprep.subr.mxu0 %v142_v10  ;;  %611 = vmatprep.subr.mxu1 %v144_v11  ;;  %v6872_v54 = vld [vmem:[#allocation6 + $0x48] sm:$0xff]  ;;  %v6874_v55 = vld [vmem:[#allocation6 + $0x58] sm:$0xff]  ;;  %v6878_v56 = vld [vmem:[#allocation6 + $0x40] sm:$0xff] }
  0x58   :  { %541 = vmatpush1.msra.mxu0 %v141_v12  ;;  %612 = vmatpush1.msra.mxu1 %v143_v13  ;;  %v6880_v57 = vld [vmem:[#allocation6 + $0x50] sm:$0xff]  ;;  %v6884_v58 = vld [vmem:[#allocation6 + $0x28] sm:$0xff]  ;;  %v6886_v59 = vld [vmem:[#allocation6 + $0x38] sm:$0xff] }
  0x59   :  { %542 = vmatprep.subr.mxu0 %v6756_v14  ;;  %613 = vmatprep.subr.mxu1 %v6758_v15  ;;  %11629 = vst [vmem:[#allocation16_spill] sm:$0xff] %v6880_v57  ;;  %11630 = vst [vmem:[#allocation17_spill] sm:$0xff] %v6884_v58  ;;  %v6890_v60 = vld [vmem:[#allocation6 + $0x20] sm:$0xff]  ;;  %v6892_v61 = vld [vmem:[#allocation6 + $0x30] sm:$0xff] }
  0x5a   :  { %543 = vmatpush1.msra.mxu0 %v6760_v16  ;;  %614 = vmatpush1.msra.mxu1 %v6762_v17  ;;  %11631 = vst [vmem:[#allocation18_spill] sm:$0xff] %v6886_v59  ;;  %11632 = vst [vmem:[#allocation19_spill] sm:$0xff] %v6890_v60  ;;  %v6896_v62 = vld [vmem:[#allocation6 + $0x8] sm:$0xff]  ;;  %v6898_v63 = vld [vmem:[#allocation6 + $0x18] sm:$0xff] }
  0x5b   :  { %544 = vmatprep.subr.mxu0 %v6764_v18  ;;  %615 = vmatprep.subr.mxu1 %v6766_v19  ;;  %11633 = vst [vmem:[#allocation20_spill] sm:$0xff] %v6892_v61  ;;  %11634 = vst [vmem:[#allocation21_spill] sm:$0xff] %v6896_v62  ;;  %v6902_v1 = vld [vmem:[#allocation6] sm:$0xff]  ;;  %v6906_v2 = vld [vmem:[#allocation6 + $0x10] sm:$0xff] }
  0x5c   :  { %545 = vmatpush1.msra.mxu0 %v6770_v20  ;;  %616 = vmatpush1.msra.mxu1 %v6772_v21  ;;  %11635 = vst [vmem:[#allocation22_spill] sm:$0xff] %v6898_v63  ;;  %11636 = vst [vmem:[#allocation23_spill] sm:$0xff] %v6902_v1  ;;  %v393_v3 = vld [vmem:[%s10866_s0] sm:$0xff]  ;;  %v6919_v4 = vld [vmem:[#allocation11 + $0x1e8] sm:$0xff] }
  0x5d   :  { %546 = vmatprep.subr.mxu0 %v6776_v22  ;;  %617 = vmatprep.subr.mxu1 %v6778_v23  ;;  %11637 = vst [vmem:[#allocation24_spill] sm:$0xff] %v6906_v2  ;;  %11638 = vst [vmem:[#allocation25_spill] sm:$0xff] %v6919_v4  ;;  %v6921_v5 = vld [vmem:[#allocation11 + $0x1e0] sm:$0xff]  ;;  %v6923_v6 = vld [vmem:[#allocation11 + $0x1f8] sm:$0xff] }
  0x5e   :  { %547 = vmatpush1.msra.mxu0 %v6782_v24  ;;  %618 = vmatpush1.msra.mxu1 %v6784_v25  ;;  %11639 = vst [vmem:[#allocation26_spill] sm:$0xff] %v6921_v5  ;;  %11640 = vst [vmem:[#allocation27_spill] sm:$0xff] %v6923_v6  ;;  %v6927_v7 = vld [vmem:[#allocation11 + $0x1c8] sm:$0xff]  ;;  %v6929_v8 = vld [vmem:[#allocation11 + $0x1f0] sm:$0xff] }
  0x5f   :  { %548 = vmatprep.subr.mxu0 %v6788_v26  ;;  %619 = vmatprep.subr.mxu1 %v6790_v27  ;;  %11641 = vst [vmem:[#allocation28_spill] sm:$0xff] %v6927_v7  ;;  %11642 = vst [vmem:[#allocation29_spill] sm:$0xff] %v6929_v8  ;;  %v6931_v9 = vld [vmem:[#allocation11 + $0x1c0] sm:$0xff]  ;;  %v6935_v10 = vld [vmem:[#allocation11 + $0x1d8] sm:$0xff] }
  0x60   :  { %549 = vmatpush1.msra.mxu0 %v6794_v28  ;;  %620 = vmatpush1.msra.mxu1 %v6796_v29  ;;  %11643 = vst [vmem:[#allocation30_spill] sm:$0xff] %v6931_v9  ;;  %11644 = vst [vmem:[#allocation31_spill] sm:$0xff] %v6935_v10  ;;  %v6937_v11 = vld [vmem:[#allocation11 + $0x1a8] sm:$0xff]  ;;  %v6939_v12 = vld [vmem:[#allocation11 + $0x1d0] sm:$0xff] }
  0x61   :  { %550 = vmatprep.subr.mxu0 %v6800_v30  ;;  %621 = vmatprep.subr.mxu1 %v6802_v31  ;;  %11645 = vst [vmem:[#allocation32_spill] sm:$0xff] %v6937_v11  ;;  %11646 = vst [vmem:[#allocation33_spill] sm:$0xff] %v6939_v12  ;;  %v6943_v13 = vld [vmem:[#allocation11 + $0x1a0] sm:$0xff] }
  0x62   :  { %551 = vmatpush1.msra.mxu0 %v6806_v32  ;;  %622 = vmatpush1.msra.mxu1 %v6808_v33  ;;  %11647 = vst [vmem:[#allocation34_spill] sm:$0xff] %v6943_v13 }
  0x63   :  { %552 = vmatprep.subr.mxu0 %v6812_v34  ;;  %623 = vmatprep.subr.mxu1 %v6814_v35 }
  0x64   :  { %553 = vmatpush1.msra.mxu0 %v6818_v36  ;;  %624 = vmatpush1.msra.mxu1 %v6820_v37 }
  0x65   :  { %554 = vmatprep.subr.mxu0 %v6824_v38  ;;  %625 = vmatprep.subr.mxu1 %v6826_v39 }
  0x66   :  { %555 = vmatpush1.msra.mxu0 %v6830_v40  ;;  %626 = vmatpush1.msra.mxu1 %v6832_v41 }
  0x67   :  { %556 = vmatprep.subr.mxu0 %v6836_v42  ;;  %627 = vmatprep.subr.mxu1 %v6838_v43 }
  0x68   :  { %557 = vmatpush1.msra.mxu0 %v6842_v44  ;;  %628 = vmatpush1.msra.mxu1 %v6844_v45 }
  0x69   :  { %558 = vmatprep.subr.mxu0 %v6848_v46  ;;  %629 = vmatprep.subr.mxu1 %v6850_v47 }
  0x6a   :  { %559 = vmatpush1.msra.mxu0 %v6854_v48  ;;  %630 = vmatpush1.msra.mxu1 %v6856_v49 }
  0x6b   :  { %560 = vmatprep.subr.mxu0 %v6860_v50  ;;  %631 = vmatprep.subr.mxu1 %v6862_v51 }
  0x6c   :  { %561 = vmatpush1.msra.mxu0 %v6866_v52  ;;  %632 = vmatpush1.msra.mxu1 %v6868_v53 }
  0x6d   :  { %562 = vmatprep.subr.mxu0 %v6872_v54  ;;  %633 = vmatprep.subr.mxu1 %v6874_v55 }
  0x6e   :  { %563 = vmatpush1.msra.mxu0 %v6878_v56  ;;  %634 = vmatpush1.msra.mxu1 %v6880_v57 }
  0x6f   :  { %564 = vmatprep.subr.mxu0 %v6884_v58  ;;  %635 = vmatprep.subr.mxu1 %v6886_v59 }
  0x70   :  { %565 = vmatpush1.msra.mxu0 %v6890_v60  ;;  %636 = vmatpush1.msra.mxu1 %v6892_v61 }
  0x71   :  { %566 = vmatprep.subr.mxu0 %v6896_v62  ;;  %637 = vmatprep.subr.mxu1 %v6898_v63 }
  0x72   :  { %567 = vmatpush1.msra.mxu0 %v6902_v1  ;;  %600 = vmatprep.mubr.f32.mxu0 %v10874_v0 }
  0x73   :  { %638 = vmatpush1.msra.mxu1 %v6906_v2  ;;  %671 = vmatprep.mubr.f32.mxu1 %v10874_v0 }
  0x74   :  { %601 = vmatmul.mubr.f32.vlgmr.msra.gmra.mxu0 %v393_v3  ;;  %672 = vmatmul.mubr.f32.vlgmr.msra.gmra.mxu1 %v393_v3  ;;  %v6945_v3 = vld [vmem:[#allocation11 + $0x1b8] sm:$0xff] }
  0x75   :  { %770 = vmatprep.mubr.f32.mxu0 %v10874_v0  ;;  %841 = vmatprep.mubr.f32.mxu1 %v10874_v0  ;;  %11648 = vst [vmem:[#allocation35_spill] sm:$0xff] %v6945_v3  ;;  %v6949_v0 = vld [vmem:[#allocation11 + $0x188] sm:$0xff] }
  0x76   :  { %706 = vmatprep.subr.mxu0 %v6919_v4  ;;  %777 = vmatprep.subr.mxu1 %v6923_v6  ;;  %11649 = vst [vmem:[#allocation36_spill] sm:$0xff] %v6949_v0  ;;  %v7222_v6 = vld [vmem:[#allocation10 + $0xc0] sm:$0xff]  ;;  %v7238_v4 = vld [vmem:[#allocation10 + $0xb0] sm:$0xff] }
  0x77   :  { %707 = vmatpush1.msra.mxu0 %v6921_v5  ;;  %778 = vmatpush1.msra.mxu1 %v6929_v8  ;;  %v6951_v8 = vld [vmem:[#allocation11 + $0x1b0] sm:$0xff]  ;;  %11741 = vst [vmem:[#allocation127_spill] sm:$0xff] %v7222_v6  ;;  %11746 = vst [vmem:[#allocation132_spill] sm:$0xff] %v7238_v4 }
  0x78   :  { %708 = vmatprep.subr.mxu0 %v6927_v7  ;;  %779 = vmatprep.subr.mxu1 %v6935_v10  ;;  %11650 = vst [vmem:[#allocation37_spill] sm:$0xff] %v6951_v8  ;;  %v6958_v10 = vld [vmem:[#allocation11 + $0x180] sm:$0xff]  ;;  %v6960_v7 = vld [vmem:[#allocation11 + $0x198] sm:$0xff]  ;;  %v7214_v5 = vld [vmem:[#allocation10 + $0xf0] sm:$0xff] }
  0x79   :  { %709 = vmatpush1.msra.mxu0 %v6931_v9  ;;  %780 = vmatpush1.msra.mxu1 %v6939_v12  ;;  %11651 = vst [vmem:[#allocation38_spill] sm:$0xff] %v6958_v10  ;;  %11652 = vst [vmem:[#allocation39_spill] sm:$0xff] %v6960_v7  ;;  %v6964_v12 = vld [vmem:[#allocation11 + $0x168] sm:$0xff]  ;;  %v6966_v9 = vld [vmem:[#allocation11 + $0x190] sm:$0xff] }
  0x7a   :  { %710 = vmatprep.subr.mxu0 %v6937_v11  ;;  %781 = vmatprep.subr.mxu1 %v6945_v3  ;;  %11653 = vst [vmem:[#allocation40_spill] sm:$0xff] %v6964_v12  ;;  %11654 = vst [vmem:[#allocation41_spill] sm:$0xff] %v6966_v9  ;;  %v7114_v3 = vld [vmem:[#allocation10 + $0x1f8] sm:$0xff] }
  0x7b   :  { %711 = vmatpush1.msra.mxu0 %v6943_v13  ;;  %782 = vmatpush1.msra.mxu1 %v6951_v8  ;;  %v6970_v13 = vld [vmem:[#allocation11 + $0x160] sm:$0xff]  ;;  %v6972_v8 = vld [vmem:[#allocation11 + $0x178] sm:$0xff]  ;;  %11704 = vst [vmem:[#allocation90_spill] sm:$0xff] %v7114_v3  ;;  %11738 = vst [vmem:[#allocation124_spill] sm:$0xff] %v7214_v5 }
  0x7c   :  { %712 = vmatprep.subr.mxu0 %v6949_v0  ;;  %783 = vmatprep.subr.mxu1 %v6960_v7  ;;  %11655 = vst [vmem:[#allocation42_spill] sm:$0xff] %v6970_v13  ;;  %11656 = vst [vmem:[#allocation43_spill] sm:$0xff] %v6972_v8  ;;  %v6976_v0 = vld [vmem:[#allocation11 + $0x148] sm:$0xff]  ;;  %v6982_v7 = vld [vmem:[#allocation11 + $0x140] sm:$0xff] }
  0x7d   :  { %713 = vmatpush1.msra.mxu0 %v6958_v10  ;;  %784 = vmatpush1.msra.mxu1 %v6966_v9  ;;  %11657 = vst [vmem:[#allocation44_spill] sm:$0xff] %v6976_v0  ;;  %v6978_v10 = vld [vmem:[#allocation11 + $0x170] sm:$0xff]  ;;  %11659 = vst [vmem:[#allocation46_spill] sm:$0xff] %v6982_v7  ;;  %v6988_v9 = vld [vmem:[#allocation11 + $0x128] sm:$0xff] }
  0x7e   :  { %714 = vmatprep.subr.mxu0 %v6964_v12  ;;  %785 = vmatprep.subr.mxu1 %v6972_v8  ;;  %11658 = vst [vmem:[#allocation45_spill] sm:$0xff] %v6978_v10  ;;  %v6984_v12 = vld [vmem:[#allocation11 + $0x158] sm:$0xff]  ;;  %11661 = vst [vmem:[#allocation48_spill] sm:$0xff] %v6988_v9  ;;  %v6994_v8 = vld [vmem:[#allocation11 + $0x120] sm:$0xff] }
  0x7f   :  { %715 = vmatpush1.msra.mxu0 %v6970_v13  ;;  %786 = vmatpush1.msra.mxu1 %v6978_v10  ;;  %11660 = vst [vmem:[#allocation47_spill] sm:$0xff] %v6984_v12  ;;  %v6990_v13 = vld [vmem:[#allocation11 + $0x150] sm:$0xff]  ;;  %11663 = vst [vmem:[#allocation50_spill] sm:$0xff] %v6994_v8  ;;  %v7000_v10 = vld [vmem:[#allocation11 + $0x108] sm:$0xff] }
  0x80   :  { %716 = vmatprep.subr.mxu0 %v6976_v0  ;;  %787 = vmatprep.subr.mxu1 %v6984_v12  ;;  %11662 = vst [vmem:[#allocation49_spill] sm:$0xff] %v6990_v13  ;;  %v6996_v0 = vld [vmem:[#allocation11 + $0x138] sm:$0xff]  ;;  %11665 = vst [vmem:[#allocation52_spill] sm:$0xff] %v7000_v10  ;;  %v7006_v12 = vld [vmem:[#allocation11 + $0x100] sm:$0xff] }
  0x81   :  { %717 = vmatpush1.msra.mxu0 %v6982_v7  ;;  %788 = vmatpush1.msra.mxu1 %v6990_v13  ;;  %11664 = vst [vmem:[#allocation51_spill] sm:$0xff] %v6996_v0  ;;  %v7002_v7 = vld [vmem:[#allocation11 + $0x130] sm:$0xff]  ;;  %11667 = vst [vmem:[#allocation54_spill] sm:$0xff] %v7006_v12  ;;  %v7012_v13 = vld [vmem:[#allocation11 + $0xe8] sm:$0xff] }
  0x82   :  { %718 = vmatprep.subr.mxu0 %v6988_v9  ;;  %789 = vmatprep.subr.mxu1 %v6996_v0  ;;  %11666 = vst [vmem:[#allocation53_spill] sm:$0xff] %v7002_v7  ;;  %v7008_v9 = vld [vmem:[#allocation11 + $0x118] sm:$0xff]  ;;  %11669 = vst [vmem:[#allocation56_spill] sm:$0xff] %v7012_v13  ;;  %v7018_v0 = vld [vmem:[#allocation11 + $0xe0] sm:$0xff] }
  0x83   :  { %719 = vmatpush1.msra.mxu0 %v6994_v8  ;;  %790 = vmatpush1.msra.mxu1 %v7002_v7  ;;  %11668 = vst [vmem:[#allocation55_spill] sm:$0xff] %v7008_v9  ;;  %v7014_v8 = vld [vmem:[#allocation11 + $0x110] sm:$0xff]  ;;  %11671 = vst [vmem:[#allocation58_spill] sm:$0xff] %v7018_v0  ;;  %v7024_v7 = vld [vmem:[#allocation11 + $0xc8] sm:$0xff] }
  0x84   :  { %720 = vmatprep.subr.mxu0 %v7000_v10  ;;  %791 = vmatprep.subr.mxu1 %v7008_v9  ;;  %11670 = vst [vmem:[#allocation57_spill] sm:$0xff] %v7014_v8  ;;  %v7020_v10 = vld [vmem:[#allocation11 + $0xf8] sm:$0xff]  ;;  %11673 = vst [vmem:[#allocation60_spill] sm:$0xff] %v7024_v7  ;;  %v7030_v9 = vld [vmem:[#allocation11 + $0xc0] sm:$0xff] }
  0x85   :  { %721 = vmatpush1.msra.mxu0 %v7006_v12  ;;  %792 = vmatpush1.msra.mxu1 %v7014_v8  ;;  %11672 = vst [vmem:[#allocation59_spill] sm:$0xff] %v7020_v10  ;;  %v7026_v12 = vld [vmem:[#allocation11 + $0xf0] sm:$0xff]  ;;  %11675 = vst [vmem:[#allocation62_spill] sm:$0xff] %v7030_v9  ;;  %v7036_v8 = vld [vmem:[#allocation11 + $0xa8] sm:$0xff] }
  0x86   :  { %722 = vmatprep.subr.mxu0 %v7012_v13  ;;  %793 = vmatprep.subr.mxu1 %v7020_v10  ;;  %11674 = vst [vmem:[#allocation61_spill] sm:$0xff] %v7026_v12  ;;  %v7032_v13 = vld [vmem:[#allocation11 + $0xd8] sm:$0xff]  ;;  %11677 = vst [vmem:[#allocation64_spill] sm:$0xff] %v7036_v8  ;;  %v7042_v10 = vld [vmem:[#allocation11 + $0xa0] sm:$0xff] }
  0x87   :  { %723 = vmatpush1.msra.mxu0 %v7018_v0  ;;  %794 = vmatpush1.msra.mxu1 %v7026_v12  ;;  %11676 = vst [vmem:[#allocation63_spill] sm:$0xff] %v7032_v13  ;;  %v7038_v0 = vld [vmem:[#allocation11 + $0xd0] sm:$0xff]  ;;  %11679 = vst [vmem:[#allocation66_spill] sm:$0xff] %v7042_v10  ;;  %v7048_v12 = vld [vmem:[#allocation11 + $0x88] sm:$0xff] }
  0x88   :  { %724 = vmatprep.subr.mxu0 %v7024_v7  ;;  %795 = vmatprep.subr.mxu1 %v7032_v13  ;;  %11678 = vst [vmem:[#allocation65_spill] sm:$0xff] %v7038_v0  ;;  %v7044_v7 = vld [vmem:[#allocation11 + $0xb8] sm:$0xff]  ;;  %11681 = vst [vmem:[#allocation68_spill] sm:$0xff] %v7048_v12  ;;  %v7054_v13 = vld [vmem:[#allocation11 + $0x80] sm:$0xff] }
  0x89   :  { %725 = vmatpush1.msra.mxu0 %v7030_v9  ;;  %796 = vmatpush1.msra.mxu1 %v7038_v0  ;;  %11680 = vst [vmem:[#allocation67_spill] sm:$0xff] %v7044_v7  ;;  %v7050_v9 = vld [vmem:[#allocation11 + $0xb0] sm:$0xff]  ;;  %11683 = vst [vmem:[#allocation70_spill] sm:$0xff] %v7054_v13  ;;  %v7060_v0 = vld [vmem:[#allocation11 + $0x68] sm:$0xff] }
  0x8a   :  { %726 = vmatprep.subr.mxu0 %v7036_v8  ;;  %797 = vmatprep.subr.mxu1 %v7044_v7  ;;  %11682 = vst [vmem:[#allocation69_spill] sm:$0xff] %v7050_v9  ;;  %v7056_v8 = vld [vmem:[#allocation11 + $0x98] sm:$0xff]  ;;  %11685 = vst [vmem:[#allocation72_spill] sm:$0xff] %v7060_v0  ;;  %v7066_v7 = vld [vmem:[#allocation11 + $0x60] sm:$0xff] }
  0x8b   :  { %727 = vmatpush1.msra.mxu0 %v7042_v10  ;;  %798 = vmatpush1.msra.mxu1 %v7050_v9  ;;  %11684 = vst [vmem:[#allocation71_spill] sm:$0xff] %v7056_v8  ;;  %v7062_v10 = vld [vmem:[#allocation11 + $0x90] sm:$0xff]  ;;  %11687 = vst [vmem:[#allocation74_spill] sm:$0xff] %v7066_v7  ;;  %v7072_v9 = vld [vmem:[#allocation11 + $0x48] sm:$0xff] }
  0x8c   :  { %728 = vmatprep.subr.mxu0 %v7048_v12  ;;  %799 = vmatprep.subr.mxu1 %v7056_v8  ;;  %11686 = vst [vmem:[#allocation73_spill] sm:$0xff] %v7062_v10  ;;  %v7068_v12 = vld [vmem:[#allocation11 + $0x78] sm:$0xff]  ;;  %11689 = vst [vmem:[#allocation76_spill] sm:$0xff] %v7072_v9  ;;  %v7078_v8 = vld [vmem:[#allocation11 + $0x40] sm:$0xff] }
  0x8d   :  { %729 = vmatpush1.msra.mxu0 %v7054_v13  ;;  %800 = vmatpush1.msra.mxu1 %v7062_v10  ;;  %11688 = vst [vmem:[#allocation75_spill] sm:$0xff] %v7068_v12  ;;  %v7074_v13 = vld [vmem:[#allocation11 + $0x70] sm:$0xff]  ;;  %11691 = vst [vmem:[#allocation78_spill] sm:$0xff] %v7078_v8  ;;  %v7084_v10 = vld [vmem:[#allocation11 + $0x28] sm:$0xff] }
  0x8e   :  { %730 = vmatprep.subr.mxu0 %v7060_v0  ;;  %801 = vmatprep.subr.mxu1 %v7068_v12  ;;  %11690 = vst [vmem:[#allocation77_spill] sm:$0xff] %v7074_v13  ;;  %v7080_v0 = vld [vmem:[#allocation11 + $0x58] sm:$0xff]  ;;  %11693 = vst [vmem:[#allocation80_spill] sm:$0xff] %v7084_v10  ;;  %v7090_v12 = vld [vmem:[#allocation11 + $0x20] sm:$0xff] }
  0x8f   :  { %731 = vmatpush1.msra.mxu0 %v7066_v7  ;;  %802 = vmatpush1.msra.mxu1 %v7074_v13  ;;  %11692 = vst [vmem:[#allocation79_spill] sm:$0xff] %v7080_v0  ;;  %v7086_v7 = vld [vmem:[#allocation11 + $0x50] sm:$0xff]  ;;  %11695 = vst [vmem:[#allocation82_spill] sm:$0xff] %v7090_v12  ;;  %v7096_v13 = vld [vmem:[#allocation11 + $0x8] sm:$0xff] }
  0x90   :  { %732 = vmatprep.subr.mxu0 %v7072_v9  ;;  %803 = vmatprep.subr.mxu1 %v7080_v0  ;;  %11694 = vst [vmem:[#allocation81_spill] sm:$0xff] %v7086_v7  ;;  %v7092_v9 = vld [vmem:[#allocation11 + $0x38] sm:$0xff]  ;;  %11697 = vst [vmem:[#allocation84_spill] sm:$0xff] %v7096_v13  ;;  %v7102_v0 = vld [vmem:[#allocation11] sm:$0xff] }
  0x91   :  { %733 = vmatpush1.msra.mxu0 %v7078_v8  ;;  %804 = vmatpush1.msra.mxu1 %v7086_v7  ;;  %11696 = vst [vmem:[#allocation83_spill] sm:$0xff] %v7092_v9  ;;  %v7098_v8 = vld [vmem:[#allocation11 + $0x30] sm:$0xff]  ;;  %11699 = vst [vmem:[#allocation86_spill] sm:$0xff] %v7102_v0  ;;  %v7138_v11 = vld [vmem:[#allocation10 + $0x1b8] sm:$0xff] }
  0x92   :  { %734 = vmatprep.subr.mxu0 %v7084_v10  ;;  %805 = vmatprep.subr.mxu1 %v7092_v9  ;;  %11698 = vst [vmem:[#allocation85_spill] sm:$0xff] %v7098_v8  ;;  %v7104_v10 = vld [vmem:[#allocation11 + $0x18] sm:$0xff]  ;;  %v7108_v7 = vld [vmem:[#allocation11 + $0x10] sm:$0xff]  ;;  %v7112_v9 = vld [vmem:[#allocation10 + $0x1e8] sm:$0xff] }
  0x93   :  { %735 = vmatpush1.msra.mxu0 %v7090_v12  ;;  %806 = vmatpush1.msra.mxu1 %v7098_v8  ;;  %11700 = vst [vmem:[#allocation87_spill] sm:$0xff] %v7104_v10  ;;  %11701 = vst [vmem:[#allocation88_spill] sm:$0xff] %v7108_v7  ;;  %v11702_v12 = vmov 0.0   ;;  %v7120_v8 = vld [vmem:[#allocation10 + $0x1f0] sm:$0xff] }
  0x94   :  { %736 = vmatprep.subr.mxu0 %v7096_v13  ;;  %807 = vmatprep.subr.mxu1 %v7104_v10  ;;  %11703 = vst [vmem:[#allocation89_spill] sm:$0xff] %v7112_v9  ;;  %v7118_v13 = vld [vmem:[#allocation10 + $0x1e0] sm:$0xff]  ;;  %11706 = vst [vmem:[#allocation92_spill] sm:$0xff] %v7120_v8  ;;  %v7126_v10 = vld [vmem:[#allocation10 + $0x1d8] sm:$0xff] }
  0x95   :  { %737 = vmatpush1.msra.mxu0 %v7102_v0  ;;  %808 = vmatpush1.msra.mxu1 %v7108_v7  ;;  %11705 = vst [vmem:[#allocation91_spill] sm:$0xff] %v7118_v13  ;;  %v7124_v0 = vld [vmem:[#allocation10 + $0x1c8] sm:$0xff]  ;;  %11708 = vst [vmem:[#allocation94_spill] sm:$0xff] %v7126_v10  ;;  %v7130_v7 = vld [vmem:[#allocation10 + $0x1c0] sm:$0xff] }
  0x96   :  { %771 = vmatmul.mubr.f32.vlgmr.msra.gmra.mxu0 %v11702_v12  ;;  %848 = vmatprep.subr.mxu0 %v7112_v9  ;;  %11707 = vst [vmem:[#allocation93_spill] sm:$0xff] %v7124_v0  ;;  %11709 = vst [vmem:[#allocation95_spill] sm:$0xff] %v7130_v7  ;;  %v7132_v9 = vld [vmem:[#allocation10 + $0x1d0] sm:$0xff] }
  0x97   :  { %919 = vmatprep.subr.mxu1 %v7114_v3  ;;  %842 = vmatmul.mubr.f32.vlgmr.msra.gmra.mxu1 %v11702_v12  ;;  %11710 = vst [vmem:[#allocation96_spill] sm:$0xff] %v7132_v9  ;;  %v7136_v3 = vld [vmem:[#allocation10 + $0x1a8] sm:$0xff]  ;;  %11712 = vst [vmem:[#allocation98_spill] sm:$0xff] %v7138_v11 }
  0x98   :  { %849 = vmatpush1.msra.mxu0 %v7118_v13  ;;  %920 = vmatpush1.msra.mxu1 %v7120_v8  ;;  %11711 = vst [vmem:[#allocation97_spill] sm:$0xff] %v7136_v3  ;;  %v7142_v13 = vld [vmem:[#allocation10 + $0x1a0] sm:$0xff]  ;;  %v7144_v8 = vld [vmem:[#allocation10 + $0x1b0] sm:$0xff] }
  0x99   :  { %850 = vmatprep.subr.mxu0 %v7124_v0  ;;  %921 = vmatprep.subr.mxu1 %v7126_v10  ;;  %11713 = vst [vmem:[#allocation99_spill] sm:$0xff] %v7142_v13  ;;  %11714 = vst [vmem:[#allocation100_spill] sm:$0xff] %v7144_v8  ;;  %v7148_v0 = vld [vmem:[#allocation10 + $0x188] sm:$0xff]  ;;  %v7150_v10 = vld [vmem:[#allocation10 + $0x198] sm:$0xff] }
  0x9a   :  { %851 = vmatpush1.msra.mxu0 %v7130_v7  ;;  %922 = vmatpush1.msra.mxu1 %v7132_v9  ;;  %11715 = vst [vmem:[#allocation101_spill] sm:$0xff] %v7148_v0  ;;  %11716 = vst [vmem:[#allocation102_spill] sm:$0xff] %v7150_v10  ;;  %v7154_v7 = vld [vmem:[#allocation10 + $0x180] sm:$0xff]  ;;  %v7156_v9 = vld [vmem:[#allocation10 + $0x190] sm:$0xff] }
  0x9b   :  { %852 = vmatprep.subr.mxu0 %v7136_v3  ;;  %923 = vmatprep.subr.mxu1 %v7138_v11  ;;  %11717 = vst [vmem:[#allocation103_spill] sm:$0xff] %v7154_v7  ;;  %11718 = vst [vmem:[#allocation104_spill] sm:$0xff] %v7156_v9  ;;  %v7160_v3 = vld [vmem:[#allocation10 + $0x168] sm:$0xff]  ;;  %v7162_v11 = vld [vmem:[#allocation10 + $0x178] sm:$0xff] }
  0x9c   :  { %853 = vmatpush1.msra.mxu0 %v7142_v13  ;;  %924 = vmatpush1.msra.mxu1 %v7144_v8  ;;  %11719 = vst [vmem:[#allocation105_spill] sm:$0xff] %v7160_v3  ;;  %11720 = vst [vmem:[#allocation106_spill] sm:$0xff] %v7162_v11  ;;  %v7166_v13 = vld [vmem:[#allocation10 + $0x160] sm:$0xff]  ;;  %v7168_v8 = vld [vmem:[#allocation10 + $0x170] sm:$0xff] }
  0x9d   :  { %854 = vmatprep.subr.mxu0 %v7148_v0  ;;  %925 = vmatprep.subr.mxu1 %v7150_v10  ;;  %11721 = vst [vmem:[#allocation107_spill] sm:$0xff] %v7166_v13  ;;  %11722 = vst [vmem:[#allocation108_spill] sm:$0xff] %v7168_v8  ;;  %v7172_v0 = vld [vmem:[#allocation10 + $0x148] sm:$0xff]  ;;  %v7174_v10 = vld [vmem:[#allocation10 + $0x158] sm:$0xff] }
  0x9e   :  { %855 = vmatpush1.msra.mxu0 %v7154_v7  ;;  %926 = vmatpush1.msra.mxu1 %v7156_v9  ;;  %11723 = vst [vmem:[#allocation109_spill] sm:$0xff] %v7172_v0  ;;  %11724 = vst [vmem:[#allocation110_spill] sm:$0xff] %v7174_v10  ;;  %v7178_v7 = vld [vmem:[#allocation10 + $0x140] sm:$0xff]  ;;  %v7180_v9 = vld [vmem:[#allocation10 + $0x150] sm:$0xff] }
  0x9f   :  { %856 = vmatprep.subr.mxu0 %v7160_v3  ;;  %927 = vmatprep.subr.mxu1 %v7162_v11  ;;  %11725 = vst [vmem:[#allocation111_spill] sm:$0xff] %v7178_v7  ;;  %11726 = vst [vmem:[#allocation112_spill] sm:$0xff] %v7180_v9  ;;  %v7184_v3 = vld [vmem:[#allocation10 + $0x128] sm:$0xff]  ;;  %v7186_v11 = vld [vmem:[#allocation10 + $0x138] sm:$0xff] }
  0xa0   :  { %857 = vmatpush1.msra.mxu0 %v7166_v13  ;;  %928 = vmatpush1.msra.mxu1 %v7168_v8  ;;  %11727 = vst [vmem:[#allocation113_spill] sm:$0xff] %v7184_v3  ;;  %11728 = vst [vmem:[#allocation114_spill] sm:$0xff] %v7186_v11  ;;  %v7190_v13 = vld [vmem:[#allocation10 + $0x120] sm:$0xff]  ;;  %v7192_v8 = vld [vmem:[#allocation10 + $0x130] sm:$0xff] }
  0xa1   :  { %858 = vmatprep.subr.mxu0 %v7172_v0  ;;  %929 = vmatprep.subr.mxu1 %v7174_v10  ;;  %11729 = vst [vmem:[#allocation115_spill] sm:$0xff] %v7190_v13  ;;  %11730 = vst [vmem:[#allocation116_spill] sm:$0xff] %v7192_v8  ;;  %v7196_v0 = vld [vmem:[#allocation10 + $0x108] sm:$0xff]  ;;  %v7198_v10 = vld [vmem:[#allocation10 + $0x118] sm:$0xff] }
  0xa2   :  { %859 = vmatpush1.msra.mxu0 %v7178_v7  ;;  %930 = vmatpush1.msra.mxu1 %v7180_v9  ;;  %11731 = vst [vmem:[#allocation117_spill] sm:$0xff] %v7196_v0  ;;  %11732 = vst [vmem:[#allocation118_spill] sm:$0xff] %v7198_v10  ;;  %v7202_v7 = vld [vmem:[#allocation10 + $0x100] sm:$0xff]  ;;  %v7204_v9 = vld [vmem:[#allocation10 + $0x110] sm:$0xff] }
  0xa3   :  { %860 = vmatprep.subr.mxu0 %v7184_v3  ;;  %931 = vmatprep.subr.mxu1 %v7186_v11  ;;  %11733 = vst [vmem:[#allocation119_spill] sm:$0xff] %v7202_v7  ;;  %11734 = vst [vmem:[#allocation120_spill] sm:$0xff] %v7204_v9  ;;  %v7206_v3 = vld [vmem:[#allocation10 + $0xe8] sm:$0xff]  ;;  %v7210_v11 = vld [vmem:[#allocation10 + $0xf8] sm:$0xff] }
  0xa4   :  { %861 = vmatpush1.msra.mxu0 %v7190_v13  ;;  %932 = vmatpush1.msra.mxu1 %v7192_v8  ;;  %11735 = vst [vmem:[#allocation121_spill] sm:$0xff] %v7206_v3  ;;  %11736 = vst [vmem:[#allocation122_spill] sm:$0xff] %v7210_v11  ;;  %v7212_v13 = vld [vmem:[#allocation10 + $0xe0] sm:$0xff]  ;;  %v7220_v8 = vld [vmem:[#allocation10 + $0xd8] sm:$0xff] }
  0xa5   :  { %862 = vmatprep.subr.mxu0 %v7196_v0  ;;  %933 = vmatprep.subr.mxu1 %v7198_v10  ;;  %11737 = vst [vmem:[#allocation123_spill] sm:$0xff] %v7212_v13  ;;  %v7218_v0 = vld [vmem:[#allocation10 + $0xc8] sm:$0xff]  ;;  %11740 = vst [vmem:[#allocation126_spill] sm:$0xff] %v7220_v8 }
  0xa6   :  { %863 = vmatpush1.msra.mxu0 %v7202_v7  ;;  %934 = vmatpush1.msra.mxu1 %v7204_v9  ;;  %11739 = vst [vmem:[#allocation125_spill] sm:$0xff] %v7218_v0  ;;  %v7226_v7 = vld [vmem:[#allocation10 + $0xd0] sm:$0xff]  ;;  %v7228_v10 = vld [vmem:[#allocation10 + $0xa8] sm:$0xff]  ;;  %v7232_v9 = vld [vmem:[#allocation10 + $0xb8] sm:$0xff] }
  0xa7   :  { %864 = vmatprep.subr.mxu0 %v7206_v3  ;;  %935 = vmatprep.subr.mxu1 %v7210_v11  ;;  %11742 = vst [vmem:[#allocation128_spill] sm:$0xff] %v7226_v7  ;;  %11743 = vst [vmem:[#allocation129_spill] sm:$0xff] %v7228_v10  ;;  %v7234_v3 = vld [vmem:[#allocation10 + $0xa0] sm:$0xff]  ;;  %v7240_v11 = vld [vmem:[#allocation10 + $0x88] sm:$0xff] }
  0xa8   :  { %865 = vmatpush1.msra.mxu0 %v7212_v13  ;;  %936 = vmatpush1.msra.mxu1 %v7214_v5  ;;  %11744 = vst [vmem:[#allocation130_spill] sm:$0xff] %v7232_v9  ;;  %11745 = vst [vmem:[#allocation131_spill] sm:$0xff] %v7234_v3  ;;  %v7244_v13 = vld [vmem:[#allocation10 + $0x98] sm:$0xff]  ;;  %v7246_v5 = vld [vmem:[#allocation10 + $0x80] sm:$0xff] }
  0xa9   :  { %866 = vmatprep.subr.mxu0 %v7218_v0  ;;  %937 = vmatprep.subr.mxu1 %v7220_v8  ;;  %11747 = vst [vmem:[#allocation133_spill] sm:$0xff] %v7240_v11  ;;  %11748 = vst [vmem:[#allocation134_spill] sm:$0xff] %v7244_v13  ;;  %v7250_v0 = vld [vmem:[#allocation10 + $0x90] sm:$0xff]  ;;  %v7252_v8 = vld [vmem:[#allocation10 + $0x68] sm:$0xff] }
  0xaa   :  { %867 = vmatpush1.msra.mxu0 %v7222_v6  ;;  %938 = vmatpush1.msra.mxu1 %v7226_v7  ;;  %11749 = vst [vmem:[#allocation135_spill] sm:$0xff] %v7246_v5  ;;  %11750 = vst [vmem:[#allocation136_spill] sm:$0xff] %v7250_v0  ;;  %v7256_v6 = vld [vmem:[#allocation10 + $0x78] sm:$0xff]  ;;  %v7258_v7 = vld [vmem:[#allocation10 + $0x60] sm:$0xff] }
  0xab   :  { %868 = vmatprep.subr.mxu0 %v7228_v10  ;;  %939 = vmatprep.subr.mxu1 %v7232_v9  ;;  %11751 = vst [vmem:[#allocation137_spill] sm:$0xff] %v7252_v8  ;;  %11752 = vst [vmem:[#allocation138_spill] sm:$0xff] %v7256_v6  ;;  %v7262_v10 = vld [vmem:[#allocation10 + $0x70] sm:$0xff]  ;;  %v7264_v9 = vld [vmem:[#allocation10 + $0x48] sm:$0xff] }
  0xac   :  { %869 = vmatpush1.msra.mxu0 %v7234_v3  ;;  %940 = vmatpush1.msra.mxu1 %v7238_v4  ;;  %11753 = vst [vmem:[#allocation139_spill] sm:$0xff] %v7258_v7  ;;  %11754 = vst [vmem:[#allocation140_spill] sm:$0xff] %v7262_v10  ;;  %v7268_v3 = vld [vmem:[#allocation10 + $0x58] sm:$0xff]  ;;  %v7270_v4 = vld [vmem:[#allocation10 + $0x40] sm:$0xff] }
  0xad   :  { %870 = vmatprep.subr.mxu0 %v7240_v11  ;;  %941 = vmatprep.subr.mxu1 %v7244_v13  ;;  %11755 = vst [vmem:[#allocation141_spill] sm:$0xff] %v7264_v9  ;;  %11756 = vst [vmem:[#allocation142_spill] sm:$0xff] %v7268_v3  ;;  %v7274_v11 = vld [vmem:[#allocation10 + $0x50] sm:$0xff]  ;;  %v7276_v13 = vld [vmem:[#allocation10 + $0x28] sm:$0xff] }
  0xae   :  { %871 = vmatpush1.msra.mxu0 %v7246_v5  ;;  %942 = vmatpush1.msra.mxu1 %v7250_v0  ;;  %11757 = vst [vmem:[#allocation143_spill] sm:$0xff] %v7270_v4  ;;  %11758 = vst [vmem:[#allocation144_spill] sm:$0xff] %v7274_v11  ;;  %v7280_v5 = vld [vmem:[#allocation10 + $0x38] sm:$0xff]  ;;  %v7282_v0 = vld [vmem:[#allocation10 + $0x20] sm:$0xff] }
  0xaf   :  { %872 = vmatprep.subr.mxu0 %v7252_v8  ;;  %943 = vmatprep.subr.mxu1 %v7256_v6  ;;  %11759 = vst [vmem:[#allocation145_spill] sm:$0xff] %v7276_v13  ;;  %11760 = vst [vmem:[#allocation146_spill] sm:$0xff] %v7280_v5  ;;  %v7286_v8 = vld [vmem:[#allocation10 + $0x30] sm:$0xff]  ;;  %v7288_v6 = vld [vmem:[#allocation10 + $0x8] sm:$0xff] }
  0xb0   :  { %873 = vmatpush1.msra.mxu0 %v7258_v7  ;;  %944 = vmatpush1.msra.mxu1 %v7262_v10  ;;  %11761 = vst [vmem:[#allocation147_spill] sm:$0xff] %v7282_v0  ;;  %11762 = vst [vmem:[#allocation148_spill] sm:$0xff] %v7286_v8  ;;  %v7292_v7 = vld [vmem:[#allocation10 + $0x18] sm:$0xff]  ;;  %v7294_v10 = vld [vmem:[#allocation10] sm:$0xff] }
  0xb1   :  { %874 = vmatprep.subr.mxu0 %v7264_v9  ;;  %945 = vmatprep.subr.mxu1 %v7268_v3  ;;  %11763 = vst [vmem:[#allocation149_spill] sm:$0xff] %v7288_v6  ;;  %11764 = vst [vmem:[#allocation150_spill] sm:$0xff] %v7292_v7  ;;  %v7298_v9 = vld [vmem:[#allocation10 + $0x10] sm:$0xff] }
  0xb2   :  { %875 = vmatpush1.msra.mxu0 %v7270_v4  ;;  %946 = vmatpush1.msra.mxu1 %v7274_v11  ;;  %11765 = vst [vmem:[#allocation151_spill] sm:$0xff] %v7294_v10  ;;  %11766 = vst [vmem:[#allocation152_spill] sm:$0xff] %v7298_v9 }
  0xb3   :  { %876 = vmatprep.subr.mxu0 %v7276_v13  ;;  %947 = vmatprep.subr.mxu1 %v7280_v5  ;;  %v7307_v13 = vld [vmem:[#allocation8 + $0x1e8] sm:$0xff] }
  0xb4   :  { %877 = vmatpush1.msra.mxu0 %v7282_v0  ;;  %948 = vmatpush1.msra.mxu1 %v7286_v8  ;;  %11767 = vst [vmem:[#allocation153_spill] sm:$0xff] %v7307_v13  ;;  %v7310_v0 = vld [vmem:[#allocation8 + $0x1f8] sm:$0xff]  ;;  %v347_v8 = vlaneseq }
  0xb5   :  { %878 = vmatprep.subr.mxu0 %v7288_v6  ;;  %949 = vmatprep.subr.mxu1 %v7292_v7  ;;  %11768 = vst [vmem:[#allocation154_spill] sm:$0xff] %v7310_v0 }
  0xb6   :  { %879 = vmatpush1.msra.mxu0 %v7294_v10  ;;  %950 = vmatpush1.msra.mxu1 %v7298_v9  ;;  %v7313_v6 = vshrl.u32 %v347_v8, 7  ;;  %v345_v9 = vld [vmem:[%s10869_s3] sm:$0xf] }
  0xb7   :  { %912 = vmatprep.mubr.f32.mxu0 %v11702_v12  ;;  %983 = vmatprep.mubr.f32.mxu1 %v11702_v12 }
  0xb8   :  { %1021 = vmatprep.subr.mxu0 %v7307_v13  ;;  %1092 = vmatprep.subr.mxu1 %v7310_v0  ;;  %v11013_v10 = vsub.s32 0, %v7313_v6  ;;  %v11015_v5 = vsub.s32 1, %v7313_v6  ;;  %v11017_v59 = vsub.s32 2, %v7313_v6 }
  0xba   :  { %v7322_v13 = vrot.slane %v345_v9, %v11013_v10  ;;  %v7326_v8 = vrot.slane %v345_v9, %v11015_v5  ;;  %v11024_v5 = vsub.s32 3, %v7313_v6 }
  0xbc   :  { %11769 = vst [vmem:[#allocation155_spill] sm:$0xff] %v7322_v13  ;;  %11770 = vst [vmem:[#allocation156_spill] sm:$0xff] %v7326_v8 }
 0x112   :  { %v460_v7 = vpop.f32.mrf.mxu0 }
 0x113   :  { %v531_v3 = vpop.f32.mrf.mxu1 }
 0x114   :  { %v462_v11 = vpop.f32.mrf.mxu0 }
 0x115   :  { %v533_v62 = vpop.f32.mrf.mxu1 }
 0x134   :  { %v602_v4 = vpop.f32.mrf.mxu0  ;;  %v673_v10 = vpop.f32.mrf.mxu1 }
 0x135   :  { %v603_v0 = vadd.f32 %v602_v4, %v460_v7  ;;  %v7333_v4 = vrot.slane %v345_v9, %v11017_v59  ;;  %v674_v7 = vadd.f32 %v673_v10, %v531_v3 }
 0x136   :  { %v604_v2 = vpop.f32.mrf.mxu0  ;;  %v675_v57 = vpop.f32.mrf.mxu1 }
 0x137   :  { %v678_v1 = vadd.f32 %v603_v0, %v7322_v13  ;;  %v605_v63 = vadd.f32 %v604_v2, %v462_v11  ;;  %11771 = vst [vmem:[#allocation157_spill] sm:$0xff] %v7333_v4  ;;  %v680_v0 = vadd.f32 %v674_v7, %v7333_v4 }
 0x139   :  { %v5426_v61 = vmul.f32 -1.442695, %v678_v1  ;;  %v679_v60 = vadd.f32 %v605_v63, %v7326_v8  ;;  %v7339_v1 = vrot.slane %v345_v9, %v11024_v5  ;;  %v676_v63 = vadd.f32 %v675_v57, %v533_v62 }
 0x13a   :  { %v5428_v2 = vmul.f32 -1.442695, %v680_v0 }
 0x13b   :  { %5495 = vpow2.f32 %v5426_v61  ;;  %v5427_v58 = vmul.f32 -1.442695, %v679_v60  ;;  %11772 = vst [vmem:[#allocation158_spill] sm:$0xff] %v7339_v1  ;;  %v681_v60 = vadd.f32 %v676_v63, %v7339_v1  ;;  %v7352_v63 = vld [vmem:[#allocation8 + $0x1f0] sm:$0xff] }
 0x13d   :  { %5497 = vpow2.f32 %v5427_v58 }
 0x13e   :  { %5499 = vpow2.f32 %v5428_v2  ;;  %v7364_v2 = vld [vmem:[#allocation8 + $0x1d0] sm:$0xff] }
 0x148   :  { %v5496_v61 = vpop.eup %5495 }
 0x149   :  { %v691_v58 = vadd.f32 1.0, %v5496_v61  ;;  %v7367_v61 = vld [vmem:[#allocation8 + $0x1a8] sm:$0xff] }
 0x14a   :  { %v5498_v11 = vpop.eup %5497 }
 0x14b   :  { %5501 = vrcp.f32 %v691_v58  ;;  %v692_v59 = vadd.f32 1.0, %v5498_v11  ;;  %v5500_v10 = vpop.eup %5499  ;;  %v7373_v58 = vld [vmem:[#allocation8 + $0x1a0] sm:$0xff]  ;;  %v7376_v11 = vld [vmem:[#allocation8 + $0x1b0] sm:$0xff] }
 0x14c   :  { %5503 = vtanh.f32 %v681_v60  ;;  %v693_v4 = vadd.f32 1.0, %v5500_v10  ;;  %v7370_v60 = vld [vmem:[#allocation8 + $0x1b8] sm:$0xff]  ;;  %v7379_v10 = vld [vmem:[#allocation8 + $0x188] sm:$0xff] }
 0x14d   :  { %5505 = vrcp.f32 %v692_v59  ;;  %v7349_v59 = vld [vmem:[#allocation8 + $0x1e0] sm:$0xff]  ;;  %11773 = vst [vmem:[#allocation159_spill] sm:$0xff] %v7379_v10 }
 0x14e   :  { %5507 = vrcp.f32 %v693_v4  ;;  %v7361_v4 = vld [vmem:[#allocation8 + $0x1c0] sm:$0xff] }
 0x158   :  { %v5502_v3 = vpop.eup %5501 }
 0x159   :  { %v5504_v8 = vpop.eup %5503 }
 0x15a   :  { %v5506_v7 = vpop.eup %5505  ;;  %v702_v9 = vmul.f32 %v5504_v8, %v5502_v3  ;;  %v7358_v8 = vld [vmem:[#allocation8 + $0x1d8] sm:$0xff] }
 0x15b   :  { %v701_v13 = vmul.f32 0.0, %v5506_v7  ;;  %v5508_v57 = vpop.eup %5507  ;;  %v7382_v3 = vld [vmem:[#allocation8 + $0x198] sm:$0xff]  ;;  %v7385_v7 = vld [vmem:[#allocation8 + $0x180] sm:$0xff] }
 0x15c   :  { %11774 = vst [vmem:[#allocation160_spill] sm:$0xff] %v7382_v3  ;;  %11775 = vst [vmem:[#allocation161_spill] sm:$0xff] %v7385_v7 }
 0x15d   :  { %v7342_v5 = vadd.f32 %v702_v9, %v701_v13  ;;  %v7355_v13 = vld [vmem:[#allocation8 + $0x1c8] sm:$0xff]  ;;  %v7388_v9 = vld [vmem:[#allocation8 + $0x190] sm:$0xff] }
 0x15e   :  { %11776 = vst [vmem:[#allocation162_spill] sm:$0xff] %v7388_v9 }
 0x15f   :  { %5509 = vtanh.f32 %v7342_v5 }
 0x16c   :  { %v5510_v62 = vpop.eup %5509 }
 0x16d   :  { %v7345_v0 = vmul.f32 %v5510_v62, %v5508_v57  ;;  %v7391_v57 = vld [vmem:[#allocation8 + $0x168] sm:$0xff]  ;;  %v7394_v62 = vld [vmem:[#allocation8 + $0x178] sm:$0xff] }
 0x16e   :  { %11777 = vst [vmem:[#allocation163_spill] sm:$0xff] %v7391_v57  ;;  %11778 = vst [vmem:[#allocation164_spill] sm:$0xff] %v7394_v62 }
 0x16f   :  { %913 = vmatmul.mubr.f32.vlgmr.msra.gmra.mxu0 %v7345_v0  ;;  %984 = vmatmul.mubr.f32.vlgmr.msra.gmra.mxu1 %v7345_v0 }
 0x170   :  { %1022 = vmatpush1.msra.mxu0 %v7349_v59  ;;  %1093 = vmatpush1.msra.mxu1 %v7352_v63 }
 0x171   :  { %1023 = vmatprep.subr.mxu0 %v7355_v13  ;;  %1094 = vmatprep.subr.mxu1 %v7358_v8 }
 0x172   :  { %1024 = vmatpush1.msra.mxu0 %v7361_v4  ;;  %1095 = vmatpush1.msra.mxu1 %v7364_v2 }
 0x173   :  { %1025 = vmatprep.subr.mxu0 %v7367_v61  ;;  %1096 = vmatprep.subr.mxu1 %v7370_v60 }
 0x174   :  { %1026 = vmatpush1.msra.mxu0 %v7373_v58  ;;  %1097 = vmatpush1.msra.mxu1 %v7376_v11 }
 0x175   :  { %1027 = vmatprep.subr.mxu0 %v7379_v10  ;;  %1098 = vmatprep.subr.mxu1 %v7382_v3  ;;  %v7397_v10 = vld [vmem:[#allocation8 + $0x160] sm:$0xff]  ;;  %v7400_v3 = vld [vmem:[#allocation8 + $0x170] sm:$0xff] }
 0x176   :  { %1028 = vmatpush1.msra.mxu0 %v7385_v7  ;;  %1099 = vmatpush1.msra.mxu1 %v7388_v9  ;;  %11779 = vst [vmem:[#allocation165_spill] sm:$0xff] %v7397_v10  ;;  %11780 = vst [vmem:[#allocation166_spill] sm:$0xff] %v7400_v3  ;;  %v7403_v7 = vld [vmem:[#allocation8 + $0x148] sm:$0xff]  ;;  %v7406_v9 = vld [vmem:[#allocation8 + $0x158] sm:$0xff] }
 0x177   :  { %1029 = vmatprep.subr.mxu0 %v7391_v57  ;;  %1100 = vmatprep.subr.mxu1 %v7394_v62  ;;  %11781 = vst [vmem:[#allocation167_spill] sm:$0xff] %v7403_v7  ;;  %11782 = vst [vmem:[#allocation168_spill] sm:$0xff] %v7406_v9  ;;  %v7409_v57 = vld [vmem:[#allocation8 + $0x140] sm:$0xff]  ;;  %v7412_v62 = vld [vmem:[#allocation8 + $0x150] sm:$0xff] }
 0x178   :  { %1030 = vmatpush1.msra.mxu0 %v7397_v10  ;;  %1101 = vmatpush1.msra.mxu1 %v7400_v3  ;;  %11783 = vst [vmem:[#allocation169_spill] sm:$0xff] %v7409_v57  ;;  %11784 = vst [vmem:[#allocation170_spill] sm:$0xff] %v7412_v62  ;;  %v7415_v10 = vld [vmem:[#allocation8 + $0x128] sm:$0xff]  ;;  %v7418_v3 = vld [vmem:[#allocation8 + $0x138] sm:$0xff] }
 0x179   :  { %1031 = vmatprep.subr.mxu0 %v7403_v7  ;;  %1102 = vmatprep.subr.mxu1 %v7406_v9  ;;  %11785 = vst [vmem:[#allocation171_spill] sm:$0xff] %v7415_v10  ;;  %11786 = vst [vmem:[#allocation172_spill] sm:$0xff] %v7418_v3  ;;  %v7421_v7 = vld [vmem:[#allocation8 + $0x120] sm:$0xff]  ;;  %v7424_v9 = vld [vmem:[#allocation8 + $0x130] sm:$0xff] }
 0x17a   :  { %1032 = vmatpush1.msra.mxu0 %v7409_v57  ;;  %1103 = vmatpush1.msra.mxu1 %v7412_v62  ;;  %11787 = vst [vmem:[#allocation173_spill] sm:$0xff] %v7421_v7  ;;  %11788 = vst [vmem:[#allocation174_spill] sm:$0xff] %v7424_v9  ;;  %v7427_v57 = vld [vmem:[#allocation8 + $0x108] sm:$0xff]  ;;  %v7430_v62 = vld [vmem:[#allocation8 + $0x118] sm:$0xff] }
 0x17b   :  { %1033 = vmatprep.subr.mxu0 %v7415_v10  ;;  %1104 = vmatprep.subr.mxu1 %v7418_v3  ;;  %11789 = vst [vmem:[#allocation175_spill] sm:$0xff] %v7427_v57  ;;  %11790 = vst [vmem:[#allocation176_spill] sm:$0xff] %v7430_v62  ;;  %v7433_v10 = vld [vmem:[#allocation8 + $0x100] sm:$0xff]  ;;  %v7436_v3 = vld [vmem:[#allocation8 + $0x110] sm:$0xff] }
 0x17c   :  { %1034 = vmatpush1.msra.mxu0 %v7421_v7  ;;  %1105 = vmatpush1.msra.mxu1 %v7424_v9  ;;  %11791 = vst [vmem:[#allocation177_spill] sm:$0xff] %v7433_v10  ;;  %11792 = vst [vmem:[#allocation178_spill] sm:$0xff] %v7436_v3  ;;  %v7439_v7 = vld [vmem:[#allocation8 + $0xe8] sm:$0xff]  ;;  %v7442_v9 = vld [vmem:[#allocation8 + $0xf8] sm:$0xff] }
 0x17d   :  { %1035 = vmatprep.subr.mxu0 %v7427_v57  ;;  %1106 = vmatprep.subr.mxu1 %v7430_v62  ;;  %11793 = vst [vmem:[#allocation179_spill] sm:$0xff] %v7439_v7  ;;  %11794 = vst [vmem:[#allocation180_spill] sm:$0xff] %v7442_v9  ;;  %v7445_v57 = vld [vmem:[#allocation8 + $0xe0] sm:$0xff]  ;;  %v7448_v62 = vld [vmem:[#allocation8 + $0xf0] sm:$0xff] }
 0x17e   :  { %1036 = vmatpush1.msra.mxu0 %v7433_v10  ;;  %1107 = vmatpush1.msra.mxu1 %v7436_v3  ;;  %11795 = vst [vmem:[#allocation181_spill] sm:$0xff] %v7445_v57  ;;  %11796 = vst [vmem:[#allocation182_spill] sm:$0xff] %v7448_v62  ;;  %v7451_v10 = vld [vmem:[#allocation8 + $0xc8] sm:$0xff]  ;;  %v7454_v3 = vld [vmem:[#allocation8 + $0xd8] sm:$0xff] }
 0x17f   :  { %1037 = vmatprep.subr.mxu0 %v7439_v7  ;;  %1108 = vmatprep.subr.mxu1 %v7442_v9  ;;  %11797 = vst [vmem:[#allocation183_spill] sm:$0xff] %v7451_v10  ;;  %11798 = vst [vmem:[#allocation184_spill] sm:$0xff] %v7454_v3  ;;  %v7457_v7 = vld [vmem:[#allocation8 + $0xc0] sm:$0xff]  ;;  %v7460_v9 = vld [vmem:[#allocation8 + $0xd0] sm:$0xff] }
 0x180   :  { %1038 = vmatpush1.msra.mxu0 %v7445_v57  ;;  %1109 = vmatpush1.msra.mxu1 %v7448_v62  ;;  %11799 = vst [vmem:[#allocation185_spill] sm:$0xff] %v7457_v7  ;;  %11800 = vst [vmem:[#allocation186_spill] sm:$0xff] %v7460_v9  ;;  %v7463_v57 = vld [vmem:[#allocation8 + $0xa8] sm:$0xff]  ;;  %v7466_v62 = vld [vmem:[#allocation8 + $0xb8] sm:$0xff] }
 0x181   :  { %1039 = vmatprep.subr.mxu0 %v7451_v10  ;;  %1110 = vmatprep.subr.mxu1 %v7454_v3  ;;  %11801 = vst [vmem:[#allocation187_spill] sm:$0xff] %v7463_v57  ;;  %11802 = vst [vmem:[#allocation188_spill] sm:$0xff] %v7466_v62  ;;  %v7469_v10 = vld [vmem:[#allocation8 + $0xa0] sm:$0xff]  ;;  %v7472_v3 = vld [vmem:[#allocation8 + $0xb0] sm:$0xff] }
 0x182   :  { %1040 = vmatpush1.msra.mxu0 %v7457_v7  ;;  %1111 = vmatpush1.msra.mxu1 %v7460_v9  ;;  %11803 = vst [vmem:[#allocation189_spill] sm:$0xff] %v7469_v10  ;;  %11804 = vst [vmem:[#allocation190_spill] sm:$0xff] %v7472_v3  ;;  %v7475_v7 = vld [vmem:[#allocation8 + $0x88] sm:$0xff]  ;;  %v7478_v9 = vld [vmem:[#allocation8 + $0x98] sm:$0xff] }
 0x183   :  { %1041 = vmatprep.subr.mxu0 %v7463_v57  ;;  %1112 = vmatprep.subr.mxu1 %v7466_v62  ;;  %11805 = vst [vmem:[#allocation191_spill] sm:$0xff] %v7475_v7  ;;  %11806 = vst [vmem:[#allocation192_spill] sm:$0xff] %v7478_v9  ;;  %v7481_v57 = vld [vmem:[#allocation8 + $0x80] sm:$0xff]  ;;  %v7484_v62 = vld [vmem:[#allocation8 + $0x90] sm:$0xff] }
 0x184   :  { %1042 = vmatpush1.msra.mxu0 %v7469_v10  ;;  %1113 = vmatpush1.msra.mxu1 %v7472_v3  ;;  %11807 = vst [vmem:[#allocation193_spill] sm:$0xff] %v7481_v57  ;;  %11808 = vst [vmem:[#allocation194_spill] sm:$0xff] %v7484_v62  ;;  %v7487_v10 = vld [vmem:[#allocation8 + $0x68] sm:$0xff]  ;;  %v7490_v3 = vld [vmem:[#allocation8 + $0x78] sm:$0xff] }
 0x185   :  { %1043 = vmatprep.subr.mxu0 %v7475_v7  ;;  %1114 = vmatprep.subr.mxu1 %v7478_v9  ;;  %11809 = vst [vmem:[#allocation195_spill] sm:$0xff] %v7487_v10  ;;  %11810 = vst [vmem:[#allocation196_spill] sm:$0xff] %v7490_v3  ;;  %v7493_v7 = vld [vmem:[#allocation8 + $0x60] sm:$0xff]  ;;  %v7496_v9 = vld [vmem:[#allocation8 + $0x70] sm:$0xff] }
 0x186   :  { %1044 = vmatpush1.msra.mxu0 %v7481_v57  ;;  %1115 = vmatpush1.msra.mxu1 %v7484_v62  ;;  %11811 = vst [vmem:[#allocation197_spill] sm:$0xff] %v7493_v7  ;;  %11812 = vst [vmem:[#allocation198_spill] sm:$0xff] %v7496_v9  ;;  %v7499_v57 = vld [vmem:[#allocation8 + $0x48] sm:$0xff]  ;;  %v7502_v62 = vld [vmem:[#allocation8 + $0x58] sm:$0xff] }
 0x187   :  { %1045 = vmatprep.subr.mxu0 %v7487_v10  ;;  %1116 = vmatprep.subr.mxu1 %v7490_v3  ;;  %11813 = vst [vmem:[#allocation199_spill] sm:$0xff] %v7499_v57  ;;  %11814 = vst [vmem:[#allocation200_spill] sm:$0xff] %v7502_v62  ;;  %v7505_v10 = vld [vmem:[#allocation8 + $0x40] sm:$0xff]  ;;  %v7508_v3 = vld [vmem:[#allocation8 + $0x50] sm:$0xff] }
 0x188   :  { %1046 = vmatpush1.msra.mxu0 %v7493_v7  ;;  %1117 = vmatpush1.msra.mxu1 %v7496_v9  ;;  %11815 = vst [vmem:[#allocation201_spill] sm:$0xff] %v7505_v10  ;;  %11816 = vst [vmem:[#allocation202_spill] sm:$0xff] %v7508_v3  ;;  %v7511_v7 = vld [vmem:[#allocation8 + $0x28] sm:$0xff]  ;;  %v7514_v9 = vld [vmem:[#allocation8 + $0x38] sm:$0xff] }
 0x189   :  { %1047 = vmatprep.subr.mxu0 %v7499_v57  ;;  %1118 = vmatprep.subr.mxu1 %v7502_v62  ;;  %11817 = vst [vmem:[#allocation203_spill] sm:$0xff] %v7511_v7  ;;  %11818 = vst [vmem:[#allocation204_spill] sm:$0xff] %v7514_v9  ;;  %v7517_v57 = vld [vmem:[#allocation8 + $0x20] sm:$0xff]  ;;  %v7520_v62 = vld [vmem:[#allocation8 + $0x30] sm:$0xff] }
 0x18a   :  { %1048 = vmatpush1.msra.mxu0 %v7505_v10  ;;  %1119 = vmatpush1.msra.mxu1 %v7508_v3  ;;  %11819 = vst [vmem:[#allocation205_spill] sm:$0xff] %v7520_v62  ;;  %v7523_v10 = vld [vmem:[#allocation8 + $0x8] sm:$0xff]  ;;  %v7526_v3 = vld [vmem:[#allocation8 + $0x18] sm:$0xff] }
 0x18b   :  { %1049 = vmatprep.subr.mxu0 %v7511_v7  ;;  %1120 = vmatprep.subr.mxu1 %v7514_v9  ;;  %11820 = vst [vmem:[#allocation206_spill] sm:$0xff] %v7523_v10  ;;  %11821 = vst [vmem:[#allocation207_spill] sm:$0xff] %v7526_v3  ;;  %v7529_v7 = vld [vmem:[#allocation8] sm:$0xff]  ;;  %v7533_v9 = vld [vmem:[#allocation8 + $0x10] sm:$0xff] }
 0x18c   :  { %1050 = vmatpush1.msra.mxu0 %v7517_v57  ;;  %1121 = vmatpush1.msra.mxu1 %v7520_v62  ;;  %11822 = vst [vmem:[#allocation208_spill] sm:$0xff] %v7529_v7  ;;  %11823 = vst [vmem:[#allocation209_spill] sm:$0xff] %v7533_v9  ;;  %v7548_v62 = vld [vmem:[#allocation6 + $0x1f0] sm:$0xff] }
 0x18d   :  { %1051 = vmatprep.subr.mxu0 %v7523_v10  ;;  %1122 = vmatprep.subr.mxu1 %v7526_v3  ;;  %v7539_v10 = vld [vmem:[#allocation6 + $0x1e8] sm:$0xff]  ;;  %v7542_v3 = vld [vmem:[#allocation6 + $0x1f8] sm:$0xff]  ;;  %11827 = vst [vmem:[#allocation213_spill] sm:$0xff] %v7548_v62 }
 0x18e   :  { %1052 = vmatpush1.msra.mxu0 %v7529_v7  ;;  %1085 = vmatprep.mubr.f32.mxu0 %v11702_v12  ;;  %11824 = vst [vmem:[#allocation210_spill] sm:$0xff] %v7539_v10  ;;  %11825 = vst [vmem:[#allocation211_spill] sm:$0xff] %v7542_v3  ;;  %v7545_v7 = vld [vmem:[#allocation6 + $0x1e0] sm:$0xff] }
 0x18f   :  { %1123 = vmatpush1.msra.mxu1 %v7533_v9  ;;  %1156 = vmatprep.mubr.f32.mxu1 %v11702_v12  ;;  %11826 = vst [vmem:[#allocation212_spill] sm:$0xff] %v7545_v7  ;;  %v7551_v9 = vld [vmem:[#allocation6 + $0x1c8] sm:$0xff] }
 0x190   :  { %1086 = vmatmul.mubr.f32.vlgmr.msra.gmra.mxu0 %v7345_v0  ;;  %1157 = vmatmul.mubr.f32.vlgmr.msra.gmra.mxu1 %v7345_v0  ;;  %11828 = vst [vmem:[#allocation214_spill] sm:$0xff] %v7551_v9  ;;  %v7554_v0 = vld [vmem:[#allocation6 + $0x1d8] sm:$0xff] }
 0x191   :  { %1163 = vmatprep.subr.mxu0 %v7539_v10  ;;  %1234 = vmatprep.subr.mxu1 %v7542_v3  ;;  %11829 = vst [vmem:[#allocation215_spill] sm:$0xff] %v7554_v0  ;;  %v7557_v10 = vld [vmem:[#allocation6 + $0x1c0] sm:$0xff]  ;;  %v7560_v3 = vld [vmem:[#allocation6 + $0x1d0] sm:$0xff] }
 0x192   :  { %1164 = vmatpush1.msra.mxu0 %v7545_v7  ;;  %1235 = vmatpush1.msra.mxu1 %v7548_v62  ;;  %v7563_v7 = vld [vmem:[#allocation6 + $0x1a8] sm:$0xff]  ;;  %v7566_v62 = vld [vmem:[#allocation6 + $0x1b8] sm:$0xff] }
 0x193   :  { %1165 = vmatprep.subr.mxu0 %v7551_v9  ;;  %1236 = vmatprep.subr.mxu1 %v7554_v0  ;;  %v7569_v9 = vld [vmem:[#allocation6 + $0x1a0] sm:$0xff]  ;;  %v7572_v0 = vld [vmem:[#allocation6 + $0x1b0] sm:$0xff] }
 0x194   :  { %1166 = vmatpush1.msra.mxu0 %v7557_v10  ;;  %1237 = vmatpush1.msra.mxu1 %v7560_v3 }
 0x195   :  { %1167 = vmatprep.subr.mxu0 %v7563_v7  ;;  %1238 = vmatprep.subr.mxu1 %v7566_v62 }
 0x196   :  { %1168 = vmatpush1.msra.mxu0 %v7569_v9  ;;  %1239 = vmatpush1.msra.mxu1 %v7572_v0 }
 0x197   :  { %1169 = vmatprep.subr.mxu0 %v6756_v14  ;;  %1240 = vmatprep.subr.mxu1 %v6758_v15  ;;  %v11830_v14 = vld [vmem:[#allocation16_spill] sm:$0xff]  ;;  %v11831_v15 = vld [vmem:[#allocation17_spill] sm:$0xff] }
 0x198   :  { %1170 = vmatpush1.msra.mxu0 %v6760_v16  ;;  %1241 = vmatpush1.msra.mxu1 %v6762_v17  ;;  %v11832_v16 = vld [vmem:[#allocation18_spill] sm:$0xff]  ;;  %v11833_v17 = vld [vmem:[#allocation19_spill] sm:$0xff] }
 0x199   :  { %1171 = vmatprep.subr.mxu0 %v6764_v18  ;;  %1242 = vmatprep.subr.mxu1 %v6766_v19  ;;  %v11834_v18 = vld [vmem:[#allocation20_spill] sm:$0xff]  ;;  %v11835_v19 = vld [vmem:[#allocation21_spill] sm:$0xff] }
 0x19a   :  { %1172 = vmatpush1.msra.mxu0 %v6770_v20  ;;  %1243 = vmatpush1.msra.mxu1 %v6772_v21  ;;  %v11836_v20 = vld [vmem:[#allocation22_spill] sm:$0xff]  ;;  %v5432_v21 = vld [vmem:[%s10866_s0 + $0x8] sm:$0xff] }
 0x19b   :  { %1173 = vmatprep.subr.mxu0 %v6776_v22  ;;  %1244 = vmatprep.subr.mxu1 %v6778_v23  ;;  %v11837_v22 = vld [vmem:[#allocation23_spill] sm:$0xff]  ;;  %v11838_v23 = vld [vmem:[#allocation24_spill] sm:$0xff] }
 0x19c   :  { %1174 = vmatpush1.msra.mxu0 %v6782_v24  ;;  %1245 = vmatpush1.msra.mxu1 %v6784_v25  ;;  %v11839_v24 = vld [vmem:[#allocation25_spill] sm:$0xff]  ;;  %v11840_v25 = vld [vmem:[#allocation27_spill] sm:$0xff] }
 0x19d   :  { %1175 = vmatprep.subr.mxu0 %v6788_v26  ;;  %1246 = vmatprep.subr.mxu1 %v6790_v27  ;;  %v11841_v26 = vld [vmem:[#allocation26_spill] sm:$0xff]  ;;  %v11842_v27 = vld [vmem:[#allocation29_spill] sm:$0xff] }
 0x19e   :  { %1176 = vmatpush1.msra.mxu0 %v6794_v28  ;;  %1247 = vmatpush1.msra.mxu1 %v6796_v29  ;;  %v11843_v28 = vld [vmem:[#allocation28_spill] sm:$0xff]  ;;  %v11844_v29 = vld [vmem:[#allocation31_spill] sm:$0xff] }
 0x19f   :  { %1177 = vmatprep.subr.mxu0 %v6800_v30  ;;  %1248 = vmatprep.subr.mxu1 %v6802_v31  ;;  %v11845_v30 = vld [vmem:[#allocation30_spill] sm:$0xff]  ;;  %v11846_v31 = vld [vmem:[#allocation33_spill] sm:$0xff] }
 0x1a0   :  { %1178 = vmatpush1.msra.mxu0 %v6806_v32  ;;  %1249 = vmatpush1.msra.mxu1 %v6808_v33  ;;  %v11847_v32 = vld [vmem:[#allocation32_spill] sm:$0xff]  ;;  %v11848_v33 = vld [vmem:[#allocation35_spill] sm:$0xff] }
 0x1a1   :  { %1179 = vmatprep.subr.mxu0 %v6812_v34  ;;  %1250 = vmatprep.subr.mxu1 %v6814_v35  ;;  %v11849_v34 = vld [vmem:[#allocation34_spill] sm:$0xff]  ;;  %v11850_v35 = vld [vmem:[#allocation37_spill] sm:$0xff] }
 0x1a2   :  { %1180 = vmatpush1.msra.mxu0 %v6818_v36  ;;  %1251 = vmatpush1.msra.mxu1 %v6820_v37  ;;  %v11851_v36 = vld [vmem:[#allocation36_spill] sm:$0xff]  ;;  %v11852_v37 = vld [vmem:[#allocation39_spill] sm:$0xff] }
 0x1a3   :  { %1181 = vmatprep.subr.mxu0 %v6824_v38  ;;  %1252 = vmatprep.subr.mxu1 %v6826_v39  ;;  %v11853_v38 = vld [vmem:[#allocation38_spill] sm:$0xff]  ;;  %v11854_v39 = vld [vmem:[#allocation41_spill] sm:$0xff] }
 0x1a4   :  { %1182 = vmatpush1.msra.mxu0 %v6830_v40  ;;  %1253 = vmatpush1.msra.mxu1 %v6832_v41  ;;  %v11855_v40 = vld [vmem:[#allocation40_spill] sm:$0xff]  ;;  %v11856_v41 = vld [vmem:[#allocation43_spill] sm:$0xff] }
 0x1a5   :  { %1183 = vmatprep.subr.mxu0 %v6836_v42  ;;  %1254 = vmatprep.subr.mxu1 %v6838_v43  ;;  %v11857_v42 = vld [vmem:[#allocation42_spill] sm:$0xff]  ;;  %v11858_v43 = vld [vmem:[#allocation45_spill] sm:$0xff] }
 0x1a6   :  { %1184 = vmatpush1.msra.mxu0 %v6842_v44  ;;  %1255 = vmatpush1.msra.mxu1 %v6844_v45  ;;  %v11859_v44 = vld [vmem:[#allocation44_spill] sm:$0xff]  ;;  %v11860_v45 = vld [vmem:[#allocation47_spill] sm:$0xff] }
 0x1a7   :  { %1185 = vmatprep.subr.mxu0 %v6848_v46  ;;  %1256 = vmatprep.subr.mxu1 %v6850_v47  ;;  %v11861_v46 = vld [vmem:[#allocation46_spill] sm:$0xff]  ;;  %v11862_v47 = vld [vmem:[#allocation49_spill] sm:$0xff] }
 0x1a8   :  { %1186 = vmatpush1.msra.mxu0 %v6854_v48  ;;  %1257 = vmatpush1.msra.mxu1 %v6856_v49  ;;  %v11863_v48 = vld [vmem:[#allocation48_spill] sm:$0xff]  ;;  %v11864_v49 = vld [vmem:[#allocation51_spill] sm:$0xff] }
 0x1a9   :  { %1187 = vmatprep.subr.mxu0 %v6860_v50  ;;  %1258 = vmatprep.subr.mxu1 %v6862_v51  ;;  %v11865_v50 = vld [vmem:[#allocation50_spill] sm:$0xff]  ;;  %v11866_v51 = vld [vmem:[#allocation53_spill] sm:$0xff] }
 0x1aa   :  { %1188 = vmatpush1.msra.mxu0 %v6866_v52  ;;  %1259 = vmatpush1.msra.mxu1 %v6868_v53  ;;  %v11867_v52 = vld [vmem:[#allocation52_spill] sm:$0xff]  ;;  %v11868_v53 = vld [vmem:[#allocation55_spill] sm:$0xff] }
 0x1ab   :  { %1189 = vmatprep.subr.mxu0 %v6872_v54  ;;  %1260 = vmatprep.subr.mxu1 %v6874_v55  ;;  %v11869_v54 = vld [vmem:[#allocation54_spill] sm:$0xff]  ;;  %v11870_v55 = vld [vmem:[#allocation57_spill] sm:$0xff] }
 0x1ac   :  { %1190 = vmatpush1.msra.mxu0 %v6878_v56  ;;  %1261 = vmatpush1.msra.mxu1 %v11830_v14  ;;  %v11871_v56 = vld [vmem:[#allocation56_spill] sm:$0xff]  ;;  %v11872_v14 = vld [vmem:[#allocation59_spill] sm:$0xff] }
 0x1ad   :  { %1191 = vmatprep.subr.mxu0 %v11831_v15  ;;  %1262 = vmatprep.subr.mxu1 %v11832_v16  ;;  %v11873_v15 = vld [vmem:[#allocation58_spill] sm:$0xff]  ;;  %v11874_v16 = vld [vmem:[#allocation61_spill] sm:$0xff] }
 0x1ae   :  { %1192 = vmatpush1.msra.mxu0 %v11833_v17  ;;  %1263 = vmatpush1.msra.mxu1 %v11834_v18  ;;  %v11875_v17 = vld [vmem:[#allocation60_spill] sm:$0xff]  ;;  %v11876_v18 = vld [vmem:[#allocation63_spill] sm:$0xff] }
 0x1af   :  { %1193 = vmatprep.subr.mxu0 %v11835_v19  ;;  %1264 = vmatprep.subr.mxu1 %v11836_v20  ;;  %v11877_v19 = vld [vmem:[#allocation62_spill] sm:$0xff]  ;;  %v11878_v20 = vld [vmem:[#allocation65_spill] sm:$0xff] }
 0x1b0   :  { %1194 = vmatpush1.msra.mxu0 %v11837_v22  ;;  %1227 = vmatprep.mubr.f32.mxu0 %v11702_v12  ;;  %v11880_v22 = vld [vmem:[#allocation67_spill] sm:$0xff] }
 0x1b1   :  { %1265 = vmatpush1.msra.mxu1 %v11838_v23  ;;  %1298 = vmatprep.mubr.f32.mxu1 %v11702_v12  ;;  %v11881_v23 = vld [vmem:[#allocation66_spill] sm:$0xff] }
 0x1b2   :  { %1228 = vmatmul.mubr.f32.vlgmr.msra.gmra.mxu0 %v5432_v21  ;;  %1299 = vmatmul.mubr.f32.vlgmr.msra.gmra.mxu1 %v5432_v21  ;;  %v11879_v21 = vld [vmem:[#allocation64_spill] sm:$0xff] }
 0x1b3   :  { %1333 = vmatprep.subr.mxu0 %v11839_v24  ;;  %1404 = vmatprep.subr.mxu1 %v11840_v25  ;;  %v11882_v24 = vld [vmem:[#allocation69_spill] sm:$0xff]  ;;  %v11883_v25 = vld [vmem:[#allocation68_spill] sm:$0xff] }
 0x1b4   :  { %1334 = vmatpush1.msra.mxu0 %v11841_v26  ;;  %1405 = vmatpush1.msra.mxu1 %v11842_v27  ;;  %v11884_v26 = vld [vmem:[#allocation71_spill] sm:$0xff]  ;;  %v11885_v27 = vld [vmem:[#allocation70_spill] sm:$0xff] }
 0x1b5   :  { %1335 = vmatprep.subr.mxu0 %v11843_v28  ;;  %1406 = vmatprep.subr.mxu1 %v11844_v29  ;;  %v11886_v28 = vld [vmem:[#allocation73_spill] sm:$0xff]  ;;  %v11887_v29 = vld [vmem:[#allocation72_spill] sm:$0xff] }
 0x1b6   :  { %1336 = vmatpush1.msra.mxu0 %v11845_v30  ;;  %1407 = vmatpush1.msra.mxu1 %v11846_v31  ;;  %v11888_v30 = vld [vmem:[#allocation75_spill] sm:$0xff]  ;;  %v11889_v31 = vld [vmem:[#allocation74_spill] sm:$0xff] }
 0x1b7   :  { %1337 = vmatprep.subr.mxu0 %v11847_v32  ;;  %1408 = vmatprep.subr.mxu1 %v11848_v33  ;;  %v11890_v32 = vld [vmem:[#allocation77_spill] sm:$0xff]  ;;  %v11891_v33 = vld [vmem:[#allocation76_spill] sm:$0xff] }
 0x1b8   :  { %1338 = vmatpush1.msra.mxu0 %v11849_v34  ;;  %1409 = vmatpush1.msra.mxu1 %v11850_v35  ;;  %v11892_v34 = vld [vmem:[#allocation79_spill] sm:$0xff]  ;;  %v11893_v35 = vld [vmem:[#allocation78_spill] sm:$0xff] }
 0x1b9   :  { %1339 = vmatprep.subr.mxu0 %v11851_v36  ;;  %1410 = vmatprep.subr.mxu1 %v11852_v37  ;;  %v11894_v36 = vld [vmem:[#allocation81_spill] sm:$0xff]  ;;  %v11895_v37 = vld [vmem:[#allocation80_spill] sm:$0xff] }
 0x1ba   :  { %1340 = vmatpush1.msra.mxu0 %v11853_v38  ;;  %1411 = vmatpush1.msra.mxu1 %v11854_v39  ;;  %v11896_v38 = vld [vmem:[#allocation83_spill] sm:$0xff]  ;;  %v11897_v39 = vld [vmem:[#allocation82_spill] sm:$0xff] }
 0x1bb   :  { %1341 = vmatprep.subr.mxu0 %v11855_v40  ;;  %1412 = vmatprep.subr.mxu1 %v11856_v41  ;;  %v11898_v40 = vld [vmem:[#allocation85_spill] sm:$0xff]  ;;  %v11899_v41 = vld [vmem:[#allocation84_spill] sm:$0xff] }
 0x1bc   :  { %1342 = vmatpush1.msra.mxu0 %v11857_v42  ;;  %1413 = vmatpush1.msra.mxu1 %v11858_v43  ;;  %v11900_v42 = vld [vmem:[#allocation87_spill] sm:$0xff]  ;;  %v11901_v43 = vld [vmem:[#allocation86_spill] sm:$0xff] }
 0x1bd   :  { %1343 = vmatprep.subr.mxu0 %v11859_v44  ;;  %1414 = vmatprep.subr.mxu1 %v11860_v45  ;;  %v11902_v44 = vld [vmem:[#allocation88_spill] sm:$0xff]  ;;  %v11903_v45 = vld [vmem:[#allocation89_spill] sm:$0xff] }
 0x1be   :  { %1344 = vmatpush1.msra.mxu0 %v11861_v46  ;;  %1415 = vmatpush1.msra.mxu1 %v11862_v47  ;;  %v11904_v46 = vld [vmem:[#allocation90_spill] sm:$0xff]  ;;  %v772_v47 = vpop.f32.mrf.mxu0 }
 0x1bf   :  { %1345 = vmatprep.subr.mxu0 %v11863_v48  ;;  %1416 = vmatprep.subr.mxu1 %v11864_v49  ;;  %v367_v48 = vld [vmem:[%s10872_s6] sm:$0xf] }
 0x1c0   :  { %1346 = vmatpush1.msra.mxu0 %v11865_v50  ;;  %1417 = vmatpush1.msra.mxu1 %v11866_v51  ;;  %v774_v49 = vpop.f32.mrf.mxu0  ;;  %v11905_v50 = vsub.s32 0, %v7313_v6 }
 0x1c1   :  { %1347 = vmatprep.subr.mxu0 %v11867_v52  ;;  %1418 = vmatprep.subr.mxu1 %v11868_v53  ;;  %v843_v53 = vpop.f32.mrf.mxu1 }
 0x1c2   :  { %1348 = vmatpush1.msra.mxu0 %v11869_v54  ;;  %1419 = vmatpush1.msra.mxu1 %v11870_v55  ;;  %v7705_v51 = vrot.slane %v367_v48, %v11905_v50  ;;  %v11906_v55 = vsub.s32 1, %v7313_v6  ;;  %v11912_v50 = vld [vmem:[#allocation94_spill] sm:$0xff] }
 0x1c3   :  { %1349 = vmatprep.subr.mxu0 %v11871_v56  ;;  %1420 = vmatprep.subr.mxu1 %v11872_v14 }
 0x1c4   :  { %1350 = vmatpush1.msra.mxu0 %v11873_v15  ;;  %1421 = vmatpush1.msra.mxu1 %v11874_v16  ;;  %v7709_v56 = vrot.slane %v367_v48, %v11906_v55  ;;  %v11916_v55 = vld [vmem:[#allocation98_spill] sm:$0xff] }
 0x1c5   :  { %1351 = vmatprep.subr.mxu0 %v11875_v17  ;;  %1422 = vmatprep.subr.mxu1 %v11876_v18  ;;  %v845_v17 = vpop.f32.mrf.mxu1 }
 0x1c6   :  { %1352 = vmatpush1.msra.mxu0 %v11877_v19  ;;  %1423 = vmatpush1.msra.mxu1 %v11878_v20 }
 0x1c7   :  { %1353 = vmatprep.subr.mxu0 %v11879_v21  ;;  %1424 = vmatprep.subr.mxu1 %v11880_v22  ;;  %v11907_v22 = vsub.s32 2, %v7313_v6 }
 0x1c8   :  { %1354 = vmatpush1.msra.mxu0 %v11881_v23  ;;  %1425 = vmatpush1.msra.mxu1 %v11882_v24 }
 0x1c9   :  { %1355 = vmatprep.subr.mxu0 %v11883_v25  ;;  %1426 = vmatprep.subr.mxu1 %v11884_v26  ;;  %v7715_v23 = vrot.slane %v367_v48, %v11907_v22  ;;  %v11923_v22 = vld [vmem:[#allocation105_spill] sm:$0xff] }
 0x1ca   :  { %1356 = vmatpush1.msra.mxu0 %v11885_v27  ;;  %1427 = vmatpush1.msra.mxu1 %v11886_v28  ;;  %v11908_v27 = vsub.s32 3, %v7313_v6 }
 0x1cb   :  { %1357 = vmatprep.subr.mxu0 %v11887_v29  ;;  %1428 = vmatprep.subr.mxu1 %v11888_v30 }
 0x1cc   :  { %1358 = vmatpush1.msra.mxu0 %v11889_v31  ;;  %1429 = vmatpush1.msra.mxu1 %v11890_v32  ;;  %v7720_v28 = vrot.slane %v367_v48, %v11908_v27  ;;  %v11925_v27 = vld [vmem:[#allocation107_spill] sm:$0xff] }
 0x1cd   :  { %1359 = vmatprep.subr.mxu0 %v11891_v33  ;;  %1430 = vmatprep.subr.mxu1 %v11892_v34 }
 0x1ce   :  { %1360 = vmatpush1.msra.mxu0 %v11893_v35  ;;  %1431 = vmatpush1.msra.mxu1 %v11894_v36 }
 0x1cf   :  { %1361 = vmatprep.subr.mxu0 %v11895_v37  ;;  %1432 = vmatprep.subr.mxu1 %v11896_v38 }
 0x1d0   :  { %1362 = vmatpush1.msra.mxu0 %v11897_v39  ;;  %1433 = vmatpush1.msra.mxu1 %v11898_v40 }
 0x1d1   :  { %1363 = vmatprep.subr.mxu0 %v11899_v41  ;;  %1434 = vmatprep.subr.mxu1 %v11900_v42 }
 0x1d2   :  { %1364 = vmatpush1.msra.mxu0 %v11901_v43  ;;  %1397 = vmatprep.mubr.f32.mxu0 %v11702_v12 }
 0x1d3   :  { %1435 = vmatpush1.msra.mxu1 %v11902_v44  ;;  %1468 = vmatprep.mubr.f32.mxu1 %v11702_v12 }
 0x1d4   :  { %1475 = vmatprep.subr.mxu0 %v11903_v45  ;;  %1546 = vmatprep.subr.mxu1 %v11904_v46  ;;  %v11909_v46 = vld [vmem:[#allocation91_spill] sm:$0xff] }
 0x22f   :  { %v914_v52 = vpop.f32.mrf.mxu0  ;;  %v985_v20 = vpop.f32.mrf.mxu1 }
 0x230   :  { %v915_v54 = vadd.f32 %v914_v52, %v772_v47  ;;  %v986_v24 = vadd.f32 %v985_v20, %v843_v53  ;;  %v11910_v47 = vld [vmem:[#allocation92_spill] sm:$0xff]  ;;  %v11913_v52 = vld [vmem:[#allocation95_spill] sm:$0xff] }
 0x231   :  { %v916_v14 = vpop.f32.mrf.mxu0  ;;  %v987_v25 = vpop.f32.mrf.mxu1  ;;  %v11914_v53 = vld [vmem:[#allocation96_spill] sm:$0xff] }
 0x232   :  { %v990_v15 = vadd.f32 %v915_v54, %v7705_v51  ;;  %v917_v16 = vadd.f32 %v916_v14, %v774_v49  ;;  %v992_v26 = vadd.f32 %v986_v24, %v7715_v23  ;;  %v988_v29 = vadd.f32 %v987_v25, %v845_v17  ;;  %v11911_v49 = vld [vmem:[#allocation93_spill] sm:$0xff]  ;;  %v11917_v14 = vld [vmem:[#allocation99_spill] sm:$0xff]  ;;  %v11922_v20 = vld [vmem:[#allocation104_spill] sm:$0xff] }
 0x233   :  { %v11915_v54 = vld [vmem:[#allocation97_spill] sm:$0xff]  ;;  %v11924_v24 = vld [vmem:[#allocation106_spill] sm:$0xff] }
 0x234   :  { %v5429_v18 = vmul.f32 -1.442695, %v990_v15  ;;  %v991_v19 = vadd.f32 %v917_v16, %v7709_v56  ;;  %v5431_v30 = vmul.f32 -1.442695, %v992_v26  ;;  %v993_v32 = vadd.f32 %v988_v29, %v7720_v28  ;;  %v11918_v15 = vld [vmem:[#allocation100_spill] sm:$0xff]  ;;  %v11919_v17 = vld [vmem:[#allocation101_spill] sm:$0xff] }
 0x235   :  { %v11926_v29 = vld [vmem:[#allocation108_spill] sm:$0xff] }
 0x236   :  { %5511 = vpow2.f32 %v5429_v18  ;;  %v5430_v21 = vmul.f32 -1.442695, %v991_v19  ;;  %v11920_v18 = vld [vmem:[#allocation102_spill] sm:$0xff]  ;;  %v11921_v19 = vld [vmem:[#allocation103_spill] sm:$0xff] }
 0x238   :  { %5513 = vpow2.f32 %v5430_v21 }
 0x239   :  { %5515 = vpow2.f32 %v5431_v30 }
 0x243   :  { %v5512_v31 = vpop.eup %5511 }
 0x244   :  { %v1003_v33 = vadd.f32 1.0, %v5512_v31  ;;  %v11927_v31 = vld [vmem:[#allocation109_spill] sm:$0xff] }
 0x245   :  { %v5514_v34 = vpop.eup %5513 }
 0x246   :  { %5517 = vrcp.f32 %v1003_v33  ;;  %v1004_v35 = vadd.f32 1.0, %v5514_v34  ;;  %v5516_v36 = vpop.eup %5515  ;;  %v11929_v33 = vld [vmem:[#allocation155_spill] sm:$0xff] }
 0x247   :  { %5519 = vtanh.f32 %v993_v32  ;;  %v1005_v40 = vadd.f32 1.0, %v5516_v36  ;;  %v11928_v32 = vld [vmem:[#allocation110_spill] sm:$0xff]  ;;  %v11930_v36 = vld [vmem:[#allocation111_spill] sm:$0xff] }
 0x248   :  { %5521 = vrcp.f32 %v1004_v35 }
 0x249   :  { %5523 = vrcp.f32 %v1005_v40 }
 0x250   :  { %v1087_v48 = vpop.f32.mrf.mxu0  ;;  %v1158_v25 = vpop.f32.mrf.mxu1 }
 0x252   :  { %v1089_v16 = vpop.f32.mrf.mxu0 }
 0x253   :  { %v5518_v37 = vpop.eup %5517 }
 0x254   :  { %v5520_v38 = vpop.eup %5519 }
 0x255   :  { %v5522_v39 = vpop.eup %5521  ;;  %v1014_v41 = vmul.f32 %v5520_v38, %v5518_v37  ;;  %v11931_v37 = vld [vmem:[#allocation112_spill] sm:$0xff]  ;;  %v11932_v38 = vld [vmem:[#allocation113_spill] sm:$0xff] }
 0x256   :  { %v1013_v6 = vmul.f32 0.0, %v5522_v39  ;;  %v5524_v43 = vpop.eup %5523  ;;  %v1160_v39 = vpop.f32.mrf.mxu1 }
 0x258   :  { %v7723_v42 = vadd.f32 %v1014_v41, %v1013_v6  ;;  %v11933_v6 = vld [vmem:[#allocation156_spill] sm:$0xff] }
 0x25a   :  { %5525 = vtanh.f32 %v7723_v42 }
 0x267   :  { %v5526_v44 = vpop.eup %5525 }
 0x268   :  { %v1017_v45 = vmul.f32 %v5526_v44, %v5524_v43  ;;  %v11934_v43 = vld [vmem:[#allocation114_spill] sm:$0xff]  ;;  %v11935_v44 = vld [vmem:[#allocation115_spill] sm:$0xff] }
 0x26a   :  { %1018 = vst [vmem:[%s10873_s7] sm:$0xff] %v1017_v45  ;;  %1398 = vmatmul.mubr.f32.vlgmr.msra.gmra.mxu0 %v1017_v45  ;;  %1469 = vmatmul.mubr.f32.vlgmr.msra.gmra.mxu1 %v1017_v45  ;;  %v11936_v45 = vld [vmem:[#allocation116_spill] sm:$0xff] }
 0x26b   :  { %1476 = vmatpush1.msra.mxu0 %v11909_v46  ;;  %1547 = vmatpush1.msra.mxu1 %v11910_v47  ;;  %v11937_v46 = vld [vmem:[#allocation117_spill] sm:$0xff] }
 0x26c   :  { %1477 = vmatprep.subr.mxu0 %v11911_v49  ;;  %1548 = vmatprep.subr.mxu1 %v11912_v50  ;;  %v11938_v49 = vld [vmem:[#allocation118_spill] sm:$0xff]  ;;  %v11939_v50 = vld [vmem:[#allocation119_spill] sm:$0xff] }
 0x26d   :  { %1478 = vmatpush1.msra.mxu0 %v11913_v52  ;;  %1549 = vmatpush1.msra.mxu1 %v11914_v53  ;;  %v11940_v52 = vld [vmem:[#allocation120_spill] sm:$0xff]  ;;  %v11941_v53 = vld [vmem:[#allocation121_spill] sm:$0xff] }
 0x26e   :  { %1479 = vmatprep.subr.mxu0 %v11915_v54  ;;  %1550 = vmatprep.subr.mxu1 %v11916_v55  ;;  %v11942_v54 = vld [vmem:[#allocation122_spill] sm:$0xff]  ;;  %v11943_v55 = vld [vmem:[#allocation123_spill] sm:$0xff] }
 0x26f   :  { %1480 = vmatpush1.msra.mxu0 %v11917_v14  ;;  %1551 = vmatpush1.msra.mxu1 %v11918_v15  ;;  %v11944_v15 = vld [vmem:[#allocation124_spill] sm:$0xff] }
 0x270   :  { %1481 = vmatprep.subr.mxu0 %v11919_v17  ;;  %1552 = vmatprep.subr.mxu1 %v11920_v18  ;;  %v11946_v17 = vld [vmem:[#allocation126_spill] sm:$0xff]  ;;  %v11947_v18 = vld [vmem:[#allocation127_spill] sm:$0xff] }
 0x271   :  { %1482 = vmatpush1.msra.mxu0 %v11921_v19  ;;  %1553 = vmatpush1.msra.mxu1 %v11922_v20  ;;  %v11948_v19 = vld [vmem:[#allocation128_spill] sm:$0xff]  ;;  %v11949_v20 = vld [vmem:[#allocation129_spill] sm:$0xff] }
 0x272   :  { %v1229_v21 = vpop.f32.mrf.mxu0  ;;  %1483 = vmatprep.subr.mxu0 %v11923_v22  ;;  %1554 = vmatprep.subr.mxu1 %v11924_v24  ;;  %v1300_v47 = vpop.f32.mrf.mxu1  ;;  %v11950_v22 = vld [vmem:[#allocation130_spill] sm:$0xff]  ;;  %v11951_v24 = vld [vmem:[#allocation131_spill] sm:$0xff] }
 0x273   :  { %v1230_v26 = vadd.f32 %v1229_v21, %v1087_v48  ;;  %1484 = vmatpush1.msra.mxu0 %v11925_v27  ;;  %1555 = vmatpush1.msra.mxu1 %v11926_v29  ;;  %v1301_v14 = vadd.f32 %v1300_v47, %v1158_v25  ;;  %v11953_v25 = vld [vmem:[#allocation132_spill] sm:$0xff]  ;;  %v11954_v29 = vld [vmem:[#allocation133_spill] sm:$0xff] }
 0x274   :  { %v1231_v30 = vpop.f32.mrf.mxu0  ;;  %1485 = vmatprep.subr.mxu0 %v11927_v31  ;;  %1556 = vmatprep.subr.mxu1 %v11928_v32  ;;  %v1302_v21 = vpop.f32.mrf.mxu1  ;;  %v11956_v31 = vld [vmem:[#allocation135_spill] sm:$0xff]  ;;  %v11966_v47 = vld [vmem:[#allocation145_spill] sm:$0xff] }
 0x275   :  { %v1305_v34 = vadd.f32 %v1230_v26, %v11929_v33  ;;  %v1232_v35 = vadd.f32 %v1231_v30, %v1089_v16  ;;  %1486 = vmatpush1.msra.mxu0 %v11930_v36  ;;  %1557 = vmatpush1.msra.mxu1 %v11931_v37  ;;  %v11945_v16 = vld [vmem:[#allocation125_spill] sm:$0xff]  ;;  %v11955_v30 = vld [vmem:[#allocation134_spill] sm:$0xff]  ;;  %v1303_v32 = vadd.f32 %v1302_v21, %v1160_v39  ;;  %v11960_v37 = vld [vmem:[#allocation139_spill] sm:$0xff] }
 0x276   :  { %1487 = vmatprep.subr.mxu0 %v11932_v38  ;;  %1558 = vmatprep.subr.mxu1 %v11934_v43  ;;  %v11952_v26 = vld [vmem:[#allocation157_spill] sm:$0xff]  ;;  %v11959_v36 = vld [vmem:[#allocation138_spill] sm:$0xff] }
 0x277   :  { %v5433_v40 = vmul.f32 -1.442695, %v1305_v34  ;;  %v1306_v41 = vadd.f32 %v1232_v35, %v11933_v6  ;;  %1488 = vmatpush1.msra.mxu0 %v11935_v44  ;;  %1559 = vmatpush1.msra.mxu1 %v11936_v45  ;;  %v1307_v27 = vadd.f32 %v1301_v14, %v11952_v26  ;;  %v11957_v34 = vld [vmem:[#allocation136_spill] sm:$0xff]  ;;  %v11958_v35 = vld [vmem:[#allocation137_spill] sm:$0xff]  ;;  %v11963_v43 = vld [vmem:[#allocation142_spill] sm:$0xff]  ;;  %v1308_v39 = vadd.f32 %v1303_v32, %v7339_v1 }
 0x278   :  { %1489 = vmatprep.subr.mxu0 %v11937_v46  ;;  %1560 = vmatprep.subr.mxu1 %v11938_v49  ;;  %v11964_v44 = vld [vmem:[#allocation143_spill] sm:$0xff]  ;;  %v11965_v46 = vld [vmem:[#allocation144_spill] sm:$0xff]  ;;  %v11967_v49 = vld [vmem:[#allocation146_spill] sm:$0xff] }
 0x279   :  { %5527 = vpow2.f32 %v5433_v40  ;;  %v5434_v48 = vmul.f32 -1.442695, %v1306_v41  ;;  %1490 = vmatpush1.msra.mxu0 %v11939_v50  ;;  %1561 = vmatpush1.msra.mxu1 %v11940_v52  ;;  %v5435_v38 = vmul.f32 -1.442695, %v1307_v27  ;;  %v11961_v40 = vld [vmem:[#allocation140_spill] sm:$0xff]  ;;  %v11962_v41 = vld [vmem:[#allocation141_spill] sm:$0xff] }
 0x27a   :  { %1491 = vmatprep.subr.mxu0 %v11941_v53  ;;  %1562 = vmatprep.subr.mxu1 %v11942_v54  ;;  %v11968_v50 = vld [vmem:[#allocation147_spill] sm:$0xff]  ;;  %v11969_v53 = vld [vmem:[#allocation148_spill] sm:$0xff]  ;;  %v11970_v54 = vld [vmem:[#allocation149_spill] sm:$0xff] }
 0x27b   :  { %5529 = vpow2.f32 %v5434_v48  ;;  %1492 = vmatpush1.msra.mxu0 %v11943_v55  ;;  %1563 = vmatpush1.msra.mxu1 %v11944_v15  ;;  %v11971_v14 = vld [vmem:[#allocation150_spill] sm:$0xff]  ;;  %v11972_v15 = vld [vmem:[#allocation151_spill] sm:$0xff] }
 0x27c   :  { %1493 = vmatprep.subr.mxu0 %v11945_v16  ;;  %1564 = vmatprep.subr.mxu1 %v11946_v17  ;;  %5531 = vpow2.f32 %v5435_v38  ;;  %v11973_v16 = vld [vmem:[#allocation152_spill] sm:$0xff]  ;;  %v11974_v17 = vld [vmem:[#allocation153_spill] sm:$0xff]  ;;  %v11991_v38 = vld [vmem:[#allocation174_spill] sm:$0xff] }
 0x27d   :  { %1494 = vmatpush1.msra.mxu0 %v11947_v18  ;;  %1565 = vmatpush1.msra.mxu1 %v11948_v19  ;;  %v11975_v18 = vld [vmem:[#allocation154_spill] sm:$0xff] }
 0x27e   :  { %1495 = vmatprep.subr.mxu0 %v11949_v20  ;;  %1566 = vmatprep.subr.mxu1 %v11950_v22 }
 0x27f   :  { %1496 = vmatpush1.msra.mxu0 %v11951_v24  ;;  %1567 = vmatpush1.msra.mxu1 %v11953_v25 }
 0x280   :  { %1497 = vmatprep.subr.mxu0 %v11954_v29  ;;  %1568 = vmatprep.subr.mxu1 %v11955_v30 }
 0x281   :  { %1498 = vmatpush1.msra.mxu0 %v11956_v31  ;;  %1569 = vmatpush1.msra.mxu1 %v11957_v34  ;;  %v11987_v34 = vld [vmem:[#allocation170_spill] sm:$0xff] }
 0x282   :  { %1499 = vmatprep.subr.mxu0 %v11958_v35  ;;  %1570 = vmatprep.subr.mxu1 %v11959_v36  ;;  %v11988_v35 = vld [vmem:[#allocation171_spill] sm:$0xff]  ;;  %v11989_v36 = vld [vmem:[#allocation172_spill] sm:$0xff] }
 0x283   :  { %1500 = vmatpush1.msra.mxu0 %v11960_v37  ;;  %1571 = vmatpush1.msra.mxu1 %v11961_v40  ;;  %v11990_v37 = vld [vmem:[#allocation173_spill] sm:$0xff]  ;;  %v11992_v40 = vld [vmem:[#allocation175_spill] sm:$0xff] }
 0x284   :  { %1501 = vmatprep.subr.mxu0 %v11962_v41  ;;  %1572 = vmatprep.subr.mxu1 %v11963_v43  ;;  %v11993_v41 = vld [vmem:[#allocation176_spill] sm:$0xff]  ;;  %v11994_v43 = vld [vmem:[#allocation177_spill] sm:$0xff] }
 0x285   :  { %1502 = vmatpush1.msra.mxu0 %v11964_v44  ;;  %1573 = vmatpush1.msra.mxu1 %v11965_v46  ;;  %v11995_v44 = vld [vmem:[#allocation178_spill] sm:$0xff]  ;;  %v11998_v46 = vld [vmem:[#allocation181_spill] sm:$0xff] }
 0x286   :  { %v5528_v45 = vpop.eup %5527  ;;  %1503 = vmatprep.subr.mxu0 %v11966_v47  ;;  %1574 = vmatprep.subr.mxu1 %v11967_v49  ;;  %v11999_v47 = vld [vmem:[#allocation182_spill] sm:$0xff]  ;;  %v12001_v49 = vld [vmem:[#allocation184_spill] sm:$0xff] }
 0x287   :  { %v1318_v48 = vadd.f32 1.0, %v5528_v45  ;;  %1504 = vmatpush1.msra.mxu0 %v11968_v50  ;;  %1575 = vmatpush1.msra.mxu1 %v11969_v53  ;;  %v11996_v45 = vld [vmem:[#allocation179_spill] sm:$0xff]  ;;  %v12002_v50 = vld [vmem:[#allocation185_spill] sm:$0xff] }
 0x288   :  { %v5530_v52 = vpop.eup %5529  ;;  %1505 = vmatprep.subr.mxu0 %v11970_v54  ;;  %1576 = vmatprep.subr.mxu1 %v11971_v14  ;;  %v12004_v53 = vld [vmem:[#allocation187_spill] sm:$0xff]  ;;  %v12005_v54 = vld [vmem:[#allocation188_spill] sm:$0xff]  ;;  %v12007_v14 = vld [vmem:[#allocation190_spill] sm:$0xff] }
 0x289   :  { %5533 = vrcp.f32 %v1318_v48  ;;  %v1319_v55 = vadd.f32 1.0, %v5530_v52  ;;  %1506 = vmatpush1.msra.mxu0 %v11972_v15  ;;  %1577 = vmatpush1.msra.mxu1 %v11973_v16  ;;  %v5532_v19 = vpop.eup %5531  ;;  %v12000_v48 = vld [vmem:[#allocation183_spill] sm:$0xff]  ;;  %v12003_v52 = vld [vmem:[#allocation186_spill] sm:$0xff]  ;;  %v12009_v16 = vld [vmem:[#allocation192_spill] sm:$0xff] }
 0x28a   :  { %5535 = vtanh.f32 %v1308_v39  ;;  %1539 = vmatprep.mubr.f32.mxu0 %v11702_v12  ;;  %1610 = vmatprep.mubr.f32.mxu1 %v11702_v12  ;;  %v1320_v24 = vadd.f32 1.0, %v5532_v19  ;;  %v11997_v39 = vld [vmem:[#allocation180_spill] sm:$0xff]  ;;  %v12008_v15 = vld [vmem:[#allocation191_spill] sm:$0xff] }
 0x28b   :  { %5537 = vrcp.f32 %v1319_v55  ;;  %1649 = vmatprep.subr.mxu0 %v11974_v17  ;;  %1720 = vmatprep.subr.mxu1 %v11975_v18  ;;  %v12006_v55 = vld [vmem:[#allocation189_spill] sm:$0xff]  ;;  %v12011_v18 = vld [vmem:[#allocation194_spill] sm:$0xff]  ;;  %v12012_v19 = vld [vmem:[#allocation195_spill] sm:$0xff] }
 0x28c   :  { %5539 = vrcp.f32 %v1320_v24  ;;  %v12010_v17 = vld [vmem:[#allocation193_spill] sm:$0xff]  ;;  %v12016_v24 = vld [vmem:[#allocation199_spill] sm:$0xff] }
 0x296   :  { %v5534_v20 = vpop.eup %5533 }
 0x297   :  { %v5536_v21 = vpop.eup %5535 }
 0x298   :  { %v5538_v22 = vpop.eup %5537  ;;  %v1329_v25 = vmul.f32 %v5536_v21, %v5534_v20  ;;  %v12013_v20 = vld [vmem:[#allocation196_spill] sm:$0xff]  ;;  %v12014_v21 = vld [vmem:[#allocation197_spill] sm:$0xff] }
 0x299   :  { %v1328_v27 = vmul.f32 %v5538_v22, %v7342_v5  ;;  %v5540_v30 = vpop.eup %5539  ;;  %v11976_v5 = vld [vmem:[#allocation159_spill] sm:$0xff]  ;;  %v12015_v22 = vld [vmem:[#allocation198_spill] sm:$0xff] }
 0x29b   :  { %v7800_v29 = vadd.f32 %v1329_v25, %v1328_v27  ;;  %v12017_v27 = vld [vmem:[#allocation200_spill] sm:$0xff]  ;;  %v12018_v25 = vld [vmem:[#allocation201_spill] sm:$0xff] }
 0x29d   :  { %5541 = vtanh.f32 %v7800_v29 }
 0x2aa   :  { %v5542_v31 = vpop.eup %5541 }
 0x2ab   :  { %v7803_v32 = vmul.f32 %v5542_v31, %v5540_v30  ;;  %v12019_v30 = vld [vmem:[#allocation202_spill] sm:$0xff]  ;;  %v12020_v31 = vld [vmem:[#allocation203_spill] sm:$0xff] }
 0x2ad   :  { %1540 = vmatmul.mubr.f32.vlgmr.msra.gmra.mxu0 %v7803_v32  ;;  %1611 = vmatmul.mubr.f32.vlgmr.msra.gmra.mxu1 %v7803_v32 }
 0x2ae   :  { %1650 = vmatpush1.msra.mxu0 %v7349_v59  ;;  %1721 = vmatpush1.msra.mxu1 %v7352_v63  ;;  %v11977_v59 = vld [vmem:[#allocation160_spill] sm:$0xff]  ;;  %v11978_v63 = vld [vmem:[#allocation161_spill] sm:$0xff] }
 0x2af   :  { %1651 = vmatprep.subr.mxu0 %v7355_v13  ;;  %1722 = vmatprep.subr.mxu1 %v7358_v8  ;;  %v11979_v13 = vld [vmem:[#allocation162_spill] sm:$0xff]  ;;  %v11980_v8 = vld [vmem:[#allocation163_spill] sm:$0xff] }
 0x2b0   :  { %1652 = vmatpush1.msra.mxu0 %v7361_v4  ;;  %1723 = vmatpush1.msra.mxu1 %v7364_v2  ;;  %v11981_v4 = vld [vmem:[#allocation164_spill] sm:$0xff]  ;;  %v11982_v2 = vld [vmem:[#allocation165_spill] sm:$0xff] }
 0x2b1   :  { %1653 = vmatprep.subr.mxu0 %v7367_v61  ;;  %1724 = vmatprep.subr.mxu1 %v7370_v60  ;;  %v11983_v61 = vld [vmem:[#allocation166_spill] sm:$0xff]  ;;  %v11984_v60 = vld [vmem:[#allocation167_spill] sm:$0xff] }
 0x2b2   :  { %1654 = vmatpush1.msra.mxu0 %v7373_v58  ;;  %1725 = vmatpush1.msra.mxu1 %v7376_v11  ;;  %v11985_v58 = vld [vmem:[#allocation168_spill] sm:$0xff]  ;;  %v11986_v11 = vld [vmem:[#allocation169_spill] sm:$0xff] }
 0x2b3   :  { %1655 = vmatprep.subr.mxu0 %v11976_v5  ;;  %1726 = vmatprep.subr.mxu1 %v11977_v59  ;;  %v12021_v5 = vld [vmem:[#allocation204_spill] sm:$0xff]  ;;  %v12022_v59 = vld [vmem:[#allocation205_spill] sm:$0xff] }
 0x2b4   :  { %1656 = vmatpush1.msra.mxu0 %v11978_v63  ;;  %1727 = vmatpush1.msra.mxu1 %v11979_v13  ;;  %v12023_v63 = vld [vmem:[#allocation206_spill] sm:$0xff]  ;;  %v12024_v13 = vld [vmem:[#allocation207_spill] sm:$0xff] }
 0x2b5   :  { %1657 = vmatprep.subr.mxu0 %v11980_v8  ;;  %1728 = vmatprep.subr.mxu1 %v11981_v4  ;;  %v12025_v8 = vld [vmem:[#allocation208_spill] sm:$0xff]  ;;  %v12026_v4 = vld [vmem:[#allocation209_spill] sm:$0xff] }
 0x2b6   :  { %1658 = vmatpush1.msra.mxu0 %v11982_v2  ;;  %1729 = vmatpush1.msra.mxu1 %v11983_v61  ;;  %v12027_v2 = vld [vmem:[#allocation210_spill] sm:$0xff]  ;;  %v12029_v61 = vld [vmem:[#allocation212_spill] sm:$0xff] }
 0x2b7   :  { %1659 = vmatprep.subr.mxu0 %v11984_v60  ;;  %1730 = vmatprep.subr.mxu1 %v11985_v58  ;;  %v12030_v60 = vld [vmem:[#allocation213_spill] sm:$0xff]  ;;  %v12031_v58 = vld [vmem:[#allocation214_spill] sm:$0xff] }
 0x2b8   :  { %1660 = vmatpush1.msra.mxu0 %v11986_v11  ;;  %1731 = vmatpush1.msra.mxu1 %v11987_v34  ;;  %v12032_v11 = vld [vmem:[#allocation215_spill] sm:$0xff] }
 0x2b9   :  { %1661 = vmatprep.subr.mxu0 %v11988_v35  ;;  %1732 = vmatprep.subr.mxu1 %v11989_v36  ;;  %v7888_v34 = vld [vmem:[#allocation6 + $0x198] sm:$0xff]  ;;  %v7891_v35 = vld [vmem:[#allocation6 + $0x180] sm:$0xff] }
 0x2ba   :  { %1662 = vmatpush1.msra.mxu0 %v11990_v37  ;;  %1733 = vmatpush1.msra.mxu1 %v11991_v38  ;;  %v7912_v36 = vld [vmem:[#allocation6 + $0x158] sm:$0xff]  ;;  %v7915_v37 = vld [vmem:[#allocation6 + $0x140] sm:$0xff]  ;;  %v7918_v38 = vld [vmem:[#allocation6 + $0x150] sm:$0xff] }
 0x2bb   :  { %1663 = vmatprep.subr.mxu0 %v11992_v40  ;;  %1734 = vmatprep.subr.mxu1 %v11993_v41  ;;  %v7921_v40 = vld [vmem:[#allocation6 + $0x128] sm:$0xff]  ;;  %v7924_v41 = vld [vmem:[#allocation6 + $0x138] sm:$0xff] }
 0x2bc   :  { %1664 = vmatpush1.msra.mxu0 %v11994_v43  ;;  %1735 = vmatpush1.msra.mxu1 %v11995_v44  ;;  %v7927_v43 = vld [vmem:[#allocation6 + $0x120] sm:$0xff]  ;;  %v7930_v44 = vld [vmem:[#allocation6 + $0x130] sm:$0xff] }
 0x2bd   :  { %1665 = vmatprep.subr.mxu0 %v11996_v45  ;;  %1736 = vmatprep.subr.mxu1 %v11997_v39  ;;  %v7933_v45 = vld [vmem:[#allocation6 + $0x108] sm:$0xff]  ;;  %v7936_v39 = vld [vmem:[#allocation6 + $0x118] sm:$0xff] }
 0x2be   :  { %1666 = vmatpush1.msra.mxu0 %v11998_v46  ;;  %1737 = vmatpush1.msra.mxu1 %v11999_v47  ;;  %v7939_v46 = vld [vmem:[#allocation6 + $0x100] sm:$0xff]  ;;  %v7942_v47 = vld [vmem:[#allocation6 + $0x110] sm:$0xff] }
 0x2bf   :  { %1667 = vmatprep.subr.mxu0 %v12000_v48  ;;  %1738 = vmatprep.subr.mxu1 %v12001_v49  ;;  %v7945_v48 = vld [vmem:[#allocation6 + $0xe8] sm:$0xff]  ;;  %v7948_v49 = vld [vmem:[#allocation6 + $0xf8] sm:$0xff] }
 0x2c0   :  { %1668 = vmatpush1.msra.mxu0 %v12002_v50  ;;  %1739 = vmatpush1.msra.mxu1 %v12003_v52  ;;  %v7951_v50 = vld [vmem:[#allocation6 + $0xe0] sm:$0xff]  ;;  %v7954_v52 = vld [vmem:[#allocation6 + $0xf0] sm:$0xff] }
 0x2c1   :  { %1669 = vmatprep.subr.mxu0 %v12004_v53  ;;  %1740 = vmatprep.subr.mxu1 %v12005_v54  ;;  %v7957_v53 = vld [vmem:[#allocation6 + $0xc8] sm:$0xff]  ;;  %v7960_v54 = vld [vmem:[#allocation6 + $0xd8] sm:$0xff] }
 0x2c2   :  { %1670 = vmatpush1.msra.mxu0 %v12006_v55  ;;  %1741 = vmatpush1.msra.mxu1 %v12007_v14  ;;  %v7963_v55 = vld [vmem:[#allocation6 + $0xc0] sm:$0xff]  ;;  %v7966_v14 = vld [vmem:[#allocation6 + $0xd0] sm:$0xff] }
 0x2c3   :  { %1671 = vmatprep.subr.mxu0 %v12008_v15  ;;  %1742 = vmatprep.subr.mxu1 %v12009_v16  ;;  %v7969_v15 = vld [vmem:[#allocation6 + $0xa8] sm:$0xff]  ;;  %v7972_v16 = vld [vmem:[#allocation6 + $0xb8] sm:$0xff] }
 0x2c4   :  { %1672 = vmatpush1.msra.mxu0 %v12010_v17  ;;  %1743 = vmatpush1.msra.mxu1 %v12011_v18  ;;  %v7975_v17 = vld [vmem:[#allocation6 + $0xa0] sm:$0xff]  ;;  %v7978_v18 = vld [vmem:[#allocation6 + $0xb0] sm:$0xff] }
 0x2c5   :  { %1673 = vmatprep.subr.mxu0 %v12012_v19  ;;  %1744 = vmatprep.subr.mxu1 %v12013_v20  ;;  %v7981_v19 = vld [vmem:[#allocation6 + $0x88] sm:$0xff]  ;;  %v7984_v20 = vld [vmem:[#allocation6 + $0x98] sm:$0xff] }
 0x2c6   :  { %1674 = vmatpush1.msra.mxu0 %v12014_v21  ;;  %1745 = vmatpush1.msra.mxu1 %v12015_v22  ;;  %v7987_v21 = vld [vmem:[#allocation6 + $0x80] sm:$0xff]  ;;  %v7990_v22 = vld [vmem:[#allocation6 + $0x90] sm:$0xff] }
 0x2c7   :  { %1675 = vmatprep.subr.mxu0 %v12016_v24  ;;  %1746 = vmatprep.subr.mxu1 %v12017_v27  ;;  %12033 = vst [vmem:[#allocation16_spill] sm:$0xff] %v7987_v21  ;;  %12034 = vst [vmem:[#allocation17_spill] sm:$0xff] %v7990_v22  ;;  %v7993_v24 = vld [vmem:[#allocation6 + $0x68] sm:$0xff]  ;;  %v7996_v27 = vld [vmem:[#allocation6 + $0x78] sm:$0xff] }
 0x2c8   :  { %1676 = vmatpush1.msra.mxu0 %v12018_v25  ;;  %1747 = vmatpush1.msra.mxu1 %v12019_v30  ;;  %12035 = vst [vmem:[#allocation18_spill] sm:$0xff] %v7993_v24  ;;  %12036 = vst [vmem:[#allocation19_spill] sm:$0xff] %v7996_v27  ;;  %v7999_v25 = vld [vmem:[#allocation6 + $0x60] sm:$0xff]  ;;  %v8002_v30 = vld [vmem:[#allocation6 + $0x70] sm:$0xff] }
 0x2c9   :  { %1677 = vmatprep.subr.mxu0 %v12020_v31  ;;  %1748 = vmatprep.subr.mxu1 %v12021_v5  ;;  %12037 = vst [vmem:[#allocation20_spill] sm:$0xff] %v7999_v25  ;;  %12038 = vst [vmem:[#allocation21_spill] sm:$0xff] %v8002_v30  ;;  %v8005_v31 = vld [vmem:[#allocation6 + $0x48] sm:$0xff]  ;;  %v8008_v5 = vld [vmem:[#allocation6 + $0x58] sm:$0xff] }
 0x2ca   :  { %1678 = vmatpush1.msra.mxu0 %v7517_v57  ;;  %1749 = vmatpush1.msra.mxu1 %v12022_v59  ;;  %v12028_v57 = vld [vmem:[#allocation211_spill] sm:$0xff]  ;;  %12039 = vst [vmem:[#allocation22_spill] sm:$0xff] %v8005_v31  ;;  %12040 = vst [vmem:[#allocation23_spill] sm:$0xff] %v8008_v5  ;;  %v8011_v59 = vld [vmem:[#allocation6 + $0x40] sm:$0xff] }
 0x2cb   :  { %1679 = vmatprep.subr.mxu0 %v12023_v63  ;;  %1750 = vmatprep.subr.mxu1 %v12024_v13  ;;  %12041 = vst [vmem:[#allocation24_spill] sm:$0xff] %v8011_v59  ;;  %v8014_v63 = vld [vmem:[#allocation6 + $0x50] sm:$0xff]  ;;  %v8017_v13 = vld [vmem:[#allocation6 + $0x28] sm:$0xff] }
 0x2cc   :  { %1680 = vmatpush1.msra.mxu0 %v12025_v8  ;;  %1713 = vmatprep.mubr.f32.mxu0 %v11702_v12  ;;  %12042 = vst [vmem:[#allocation25_spill] sm:$0xff] %v8014_v63  ;;  %12043 = vst [vmem:[#allocation27_spill] sm:$0xff] %v8017_v13  ;;  %v8020_v8 = vld [vmem:[#allocation6 + $0x38] sm:$0xff] }
 0x2cd   :  { %1751 = vmatpush1.msra.mxu1 %v12026_v4  ;;  %1784 = vmatprep.mubr.f32.mxu1 %v11702_v12  ;;  %12044 = vst [vmem:[#allocation26_spill] sm:$0xff] %v8020_v8  ;;  %v8023_v4 = vld [vmem:[#allocation6 + $0x20] sm:$0xff] }
 0x2ce   :  { %1714 = vmatmul.mubr.f32.vlgmr.msra.gmra.mxu0 %v7803_v32  ;;  %1785 = vmatmul.mubr.f32.vlgmr.msra.gmra.mxu1 %v7803_v32  ;;  %v7885_v32 = vld [vmem:[#allocation6 + $0x188] sm:$0xff]  ;;  %12045 = vst [vmem:[#allocation29_spill] sm:$0xff] %v8023_v4 }
 0x2cf   :  { %1791 = vmatprep.subr.mxu0 %v12027_v2  ;;  %1862 = vmatprep.subr.mxu1 %v12028_v57  ;;  %v8026_v2 = vld [vmem:[#allocation6 + $0x30] sm:$0xff]  ;;  %v8029_v57 = vld [vmem:[#allocation6 + $0x8] sm:$0xff] }
 0x2d0   :  { %1792 = vmatpush1.msra.mxu0 %v12029_v61  ;;  %1863 = vmatpush1.msra.mxu1 %v12030_v60  ;;  %12046 = vst [vmem:[#allocation28_spill] sm:$0xff] %v8026_v2  ;;  %12047 = vst [vmem:[#allocation31_spill] sm:$0xff] %v8029_v57  ;;  %v8032_v61 = vld [vmem:[#allocation6 + $0x18] sm:$0xff]  ;;  %v5440_v60 = vld [vmem:[%s10866_s0 + $0x10] sm:$0xff] }
 0x2d1   :  { %1793 = vmatprep.subr.mxu0 %v12031_v58  ;;  %1864 = vmatprep.subr.mxu1 %v12032_v11  ;;  %12048 = vst [vmem:[#allocation30_spill] sm:$0xff] %v8032_v61  ;;  %v8038_v58 = vld [vmem:[#allocation6] sm:$0xff]  ;;  %v8042_v11 = vld [vmem:[#allocation6 + $0x10] sm:$0xff] }
 0x2d2   :  { %1794 = vmatpush1.msra.mxu0 %v7557_v10  ;;  %1865 = vmatpush1.msra.mxu1 %v7560_v3  ;;  %v7894_v10 = vld [vmem:[#allocation6 + $0x190] sm:$0xff]  ;;  %v7897_v3 = vld [vmem:[#allocation6 + $0x168] sm:$0xff]  ;;  %12049 = vst [vmem:[#allocation33_spill] sm:$0xff] %v8038_v58  ;;  %12050 = vst [vmem:[#allocation32_spill] sm:$0xff] %v8042_v11 }
 0x2d3   :  { %1795 = vmatprep.subr.mxu0 %v7563_v7  ;;  %1866 = vmatprep.subr.mxu1 %v7566_v62  ;;  %v7900_v7 = vld [vmem:[#allocation6 + $0x178] sm:$0xff]  ;;  %v7906_v62 = vld [vmem:[#allocation6 + $0x170] sm:$0xff] }
 0x2d4   :  { %1796 = vmatpush1.msra.mxu0 %v7569_v9  ;;  %1867 = vmatpush1.msra.mxu1 %v7572_v0  ;;  %v7903_v9 = vld [vmem:[#allocation6 + $0x160] sm:$0xff]  ;;  %v7909_v0 = vld [vmem:[#allocation6 + $0x148] sm:$0xff] }
 0x2d5   :  { %1797 = vmatprep.subr.mxu0 %v7885_v32  ;;  %1868 = vmatprep.subr.mxu1 %v7888_v34 }
 0x2d6   :  { %1798 = vmatpush1.msra.mxu0 %v7891_v35  ;;  %1869 = vmatpush1.msra.mxu1 %v7894_v10 }
 0x2d7   :  { %1799 = vmatprep.subr.mxu0 %v7897_v3  ;;  %1870 = vmatprep.subr.mxu1 %v7900_v7 }
 0x2d8   :  { %1800 = vmatpush1.msra.mxu0 %v7903_v9  ;;  %1871 = vmatpush1.msra.mxu1 %v7906_v62 }
 0x2d9   :  { %1801 = vmatprep.subr.mxu0 %v7909_v0  ;;  %1872 = vmatprep.subr.mxu1 %v7912_v36 }
 0x2da   :  { %1802 = vmatpush1.msra.mxu0 %v7915_v37  ;;  %1873 = vmatpush1.msra.mxu1 %v7918_v38 }
 0x2db   :  { %1803 = vmatprep.subr.mxu0 %v7921_v40  ;;  %1874 = vmatprep.subr.mxu1 %v7924_v41 }
 0x2dc   :  { %1804 = vmatpush1.msra.mxu0 %v7927_v43  ;;  %1875 = vmatpush1.msra.mxu1 %v7930_v44 }
 0x2dd   :  { %1805 = vmatprep.subr.mxu0 %v7933_v45  ;;  %1876 = vmatprep.subr.mxu1 %v7936_v39 }
 0x2de   :  { %1806 = vmatpush1.msra.mxu0 %v7939_v46  ;;  %1877 = vmatpush1.msra.mxu1 %v7942_v47 }
 0x2df   :  { %1807 = vmatprep.subr.mxu0 %v7945_v48  ;;  %1878 = vmatprep.subr.mxu1 %v7948_v49 }
 0x2e0   :  { %1808 = vmatpush1.msra.mxu0 %v7951_v50  ;;  %1879 = vmatpush1.msra.mxu1 %v7954_v52 }
 0x2e1   :  { %1809 = vmatprep.subr.mxu0 %v7957_v53  ;;  %1880 = vmatprep.subr.mxu1 %v7960_v54 }
 0x2e2   :  { %1810 = vmatpush1.msra.mxu0 %v7963_v55  ;;  %1881 = vmatpush1.msra.mxu1 %v7966_v14 }
 0x2e3   :  { %1811 = vmatprep.subr.mxu0 %v7969_v15  ;;  %1882 = vmatprep.subr.mxu1 %v7972_v16 }
 0x2e4   :  { %1812 = vmatpush1.msra.mxu0 %v7975_v17  ;;  %1883 = vmatpush1.msra.mxu1 %v7978_v18 }
 0x2e5   :  { %1813 = vmatprep.subr.mxu0 %v7981_v19  ;;  %1884 = vmatprep.subr.mxu1 %v7984_v20 }
 0x2e6   :  { %1814 = vmatpush1.msra.mxu0 %v7987_v21  ;;  %1885 = vmatpush1.msra.mxu1 %v7990_v22 }
 0x2e7   :  { %1815 = vmatprep.subr.mxu0 %v7993_v24  ;;  %1886 = vmatprep.subr.mxu1 %v7996_v27 }
 0x2e8   :  { %1816 = vmatpush1.msra.mxu0 %v7999_v25  ;;  %1887 = vmatpush1.msra.mxu1 %v8002_v30 }
 0x2e9   :  { %1817 = vmatprep.subr.mxu0 %v8005_v31  ;;  %1888 = vmatprep.subr.mxu1 %v8008_v5 }
 0x2ea   :  { %1818 = vmatpush1.msra.mxu0 %v8011_v59  ;;  %1889 = vmatpush1.msra.mxu1 %v8014_v63 }
 0x2eb   :  { %1819 = vmatprep.subr.mxu0 %v8017_v13  ;;  %1890 = vmatprep.subr.mxu1 %v8020_v8 }
 0x2ec   :  { %1820 = vmatpush1.msra.mxu0 %v8023_v4  ;;  %1891 = vmatpush1.msra.mxu1 %v8026_v2  ;;  %v8052_v2 = vld [vmem:[#allocation11 + $0x1e0] sm:$0xff] }
 0x2ed   :  { %1821 = vmatprep.subr.mxu0 %v8029_v57  ;;  %1892 = vmatprep.subr.mxu1 %v8032_v61  ;;  %v8046_v57 = vld [vmem:[#allocation11 + $0x1e8] sm:$0xff]  ;;  %v8049_v61 = vld [vmem:[#allocation11 + $0x1f8] sm:$0xff]  ;;  %12053 = vst [vmem:[#allocation37_spill] sm:$0xff] %v8052_v2 }
 0x2ee   :  { %1822 = vmatpush1.msra.mxu0 %v8038_v58  ;;  %1855 = vmatprep.mubr.f32.mxu0 %v11702_v12  ;;  %12051 = vst [vmem:[#allocation35_spill] sm:$0xff] %v8046_v57  ;;  %12052 = vst [vmem:[#allocation34_spill] sm:$0xff] %v8049_v61  ;;  %v8055_v58 = vld [vmem:[#allocation11 + $0x1f0] sm:$0xff] }
 0x2ef   :  { %1893 = vmatpush1.msra.mxu1 %v8042_v11  ;;  %1926 = vmatprep.mubr.f32.mxu1 %v11702_v12  ;;  %12054 = vst [vmem:[#allocation36_spill] sm:$0xff] %v8055_v58  ;;  %v8058_v11 = vld [vmem:[#allocation11 + $0x1c8] sm:$0xff] }
 0x2f0   :  { %1856 = vmatmul.mubr.f32.vlgmr.msra.gmra.mxu0 %v5440_v60  ;;  %1927 = vmatmul.mubr.f32.vlgmr.msra.gmra.mxu1 %v5440_v60  ;;  %12055 = vst [vmem:[#allocation39_spill] sm:$0xff] %v8058_v11  ;;  %v8061_v60 = vld [vmem:[#allocation11 + $0x1d8] sm:$0xff] }
 0x2f1   :  { %1961 = vmatprep.subr.mxu0 %v8046_v57  ;;  %2032 = vmatprep.subr.mxu1 %v8049_v61  ;;  %12056 = vst [vmem:[#allocation38_spill] sm:$0xff] %v8061_v60  ;;  %v8064_v57 = vld [vmem:[#allocation11 + $0x1c0] sm:$0xff]  ;;  %v8067_v61 = vld [vmem:[#allocation11 + $0x1d0] sm:$0xff] }
 0x2f2   :  { %1962 = vmatpush1.msra.mxu0 %v8052_v2  ;;  %2033 = vmatpush1.msra.mxu1 %v8055_v58  ;;  %12057 = vst [vmem:[#allocation41_spill] sm:$0xff] %v8064_v57  ;;  %12058 = vst [vmem:[#allocation40_spill] sm:$0xff] %v8067_v61  ;;  %v8070_v2 = vld [vmem:[#allocation11 + $0x1a8] sm:$0xff]  ;;  %v8073_v58 = vld [vmem:[#allocation11 + $0x1b8] sm:$0xff] }
 0x2f3   :  { %1963 = vmatprep.subr.mxu0 %v8058_v11  ;;  %2034 = vmatprep.subr.mxu1 %v8061_v60  ;;  %12059 = vst [vmem:[#allocation43_spill] sm:$0xff] %v8070_v2  ;;  %12060 = vst [vmem:[#allocation42_spill] sm:$0xff] %v8073_v58  ;;  %v8076_v11 = vld [vmem:[#allocation11 + $0x1a0] sm:$0xff]  ;;  %v8079_v60 = vld [vmem:[#allocation11 + $0x1b0] sm:$0xff] }
 0x2f4   :  { %1964 = vmatpush1.msra.mxu0 %v8064_v57  ;;  %2035 = vmatpush1.msra.mxu1 %v8067_v61  ;;  %12061 = vst [vmem:[#allocation45_spill] sm:$0xff] %v8076_v11  ;;  %12062 = vst [vmem:[#allocation44_spill] sm:$0xff] %v8079_v60  ;;  %v8082_v57 = vld [vmem:[#allocation11 + $0x188] sm:$0xff]  ;;  %v8085_v61 = vld [vmem:[#allocation11 + $0x198] sm:$0xff] }
 0x2f5   :  { %1965 = vmatprep.subr.mxu0 %v8070_v2  ;;  %2036 = vmatprep.subr.mxu1 %v8073_v58  ;;  %12063 = vst [vmem:[#allocation47_spill] sm:$0xff] %v8082_v57  ;;  %12064 = vst [vmem:[#allocation46_spill] sm:$0xff] %v8085_v61  ;;  %v8088_v2 = vld [vmem:[#allocation11 + $0x180] sm:$0xff]  ;;  %v8091_v58 = vld [vmem:[#allocation11 + $0x190] sm:$0xff] }
 0x2f6   :  { %1966 = vmatpush1.msra.mxu0 %v8076_v11  ;;  %2037 = vmatpush1.msra.mxu1 %v8079_v60  ;;  %12065 = vst [vmem:[#allocation49_spill] sm:$0xff] %v8088_v2  ;;  %12066 = vst [vmem:[#allocation48_spill] sm:$0xff] %v8091_v58  ;;  %v8094_v11 = vld [vmem:[#allocation11 + $0x168] sm:$0xff]  ;;  %v8097_v60 = vld [vmem:[#allocation11 + $0x178] sm:$0xff] }
 0x2f7   :  { %1967 = vmatprep.subr.mxu0 %v8082_v57  ;;  %2038 = vmatprep.subr.mxu1 %v8085_v61  ;;  %12067 = vst [vmem:[#allocation51_spill] sm:$0xff] %v8094_v11  ;;  %12068 = vst [vmem:[#allocation50_spill] sm:$0xff] %v8097_v60  ;;  %v8100_v57 = vld [vmem:[#allocation11 + $0x160] sm:$0xff]  ;;  %v8103_v61 = vld [vmem:[#allocation11 + $0x170] sm:$0xff] }
 0x2f8   :  { %1968 = vmatpush1.msra.mxu0 %v8088_v2  ;;  %2039 = vmatpush1.msra.mxu1 %v8091_v58  ;;  %12069 = vst [vmem:[#allocation53_spill] sm:$0xff] %v8100_v57  ;;  %12070 = vst [vmem:[#allocation52_spill] sm:$0xff] %v8103_v61  ;;  %v8106_v2 = vld [vmem:[#allocation11 + $0x148] sm:$0xff]  ;;  %v8109_v58 = vld [vmem:[#allocation11 + $0x158] sm:$0xff] }
 0x2f9   :  { %1969 = vmatprep.subr.mxu0 %v8094_v11  ;;  %2040 = vmatprep.subr.mxu1 %v8097_v60  ;;  %12071 = vst [vmem:[#allocation55_spill] sm:$0xff] %v8106_v2  ;;  %12072 = vst [vmem:[#allocation54_spill] sm:$0xff] %v8109_v58  ;;  %v8112_v11 = vld [vmem:[#allocation11 + $0x140] sm:$0xff]  ;;  %v8115_v60 = vld [vmem:[#allocation11 + $0x150] sm:$0xff] }
 0x2fa   :  { %1970 = vmatpush1.msra.mxu0 %v8100_v57  ;;  %2041 = vmatpush1.msra.mxu1 %v8103_v61  ;;  %12073 = vst [vmem:[#allocation57_spill] sm:$0xff] %v8112_v11  ;;  %12074 = vst [vmem:[#allocation56_spill] sm:$0xff] %v8115_v60  ;;  %v8118_v57 = vld [vmem:[#allocation11 + $0x128] sm:$0xff]  ;;  %v8121_v61 = vld [vmem:[#allocation11 + $0x138] sm:$0xff] }
 0x2fb   :  { %1971 = vmatprep.subr.mxu0 %v8106_v2  ;;  %2042 = vmatprep.subr.mxu1 %v8109_v58  ;;  %12075 = vst [vmem:[#allocation59_spill] sm:$0xff] %v8118_v57  ;;  %12076 = vst [vmem:[#allocation58_spill] sm:$0xff] %v8121_v61  ;;  %v8124_v2 = vld [vmem:[#allocation11 + $0x120] sm:$0xff]  ;;  %v8127_v58 = vld [vmem:[#allocation11 + $0x130] sm:$0xff] }
 0x2fc   :  { %1972 = vmatpush1.msra.mxu0 %v8112_v11  ;;  %2043 = vmatpush1.msra.mxu1 %v8115_v60  ;;  %12077 = vst [vmem:[#allocation61_spill] sm:$0xff] %v8124_v2  ;;  %12078 = vst [vmem:[#allocation60_spill] sm:$0xff] %v8127_v58  ;;  %v8130_v11 = vld [vmem:[#allocation11 + $0x108] sm:$0xff]  ;;  %v8133_v60 = vld [vmem:[#allocation11 + $0x118] sm:$0xff] }
 0x2fd   :  { %1973 = vmatprep.subr.mxu0 %v8118_v57  ;;  %2044 = vmatprep.subr.mxu1 %v8121_v61  ;;  %12079 = vst [vmem:[#allocation63_spill] sm:$0xff] %v8130_v11  ;;  %12080 = vst [vmem:[#allocation62_spill] sm:$0xff] %v8133_v60  ;;  %v8136_v57 = vld [vmem:[#allocation11 + $0x100] sm:$0xff]  ;;  %v8139_v61 = vld [vmem:[#allocation11 + $0x110] sm:$0xff] }
 0x2fe   :  { %1974 = vmatpush1.msra.mxu0 %v8124_v2  ;;  %2045 = vmatpush1.msra.mxu1 %v8127_v58  ;;  %12081 = vst [vmem:[#allocation65_spill] sm:$0xff] %v8136_v57  ;;  %12082 = vst [vmem:[#allocation64_spill] sm:$0xff] %v8139_v61  ;;  %v8142_v2 = vld [vmem:[#allocation11 + $0xe8] sm:$0xff]  ;;  %v8145_v58 = vld [vmem:[#allocation11 + $0xf8] sm:$0xff] }
 0x2ff   :  { %1975 = vmatprep.subr.mxu0 %v8130_v11  ;;  %2046 = vmatprep.subr.mxu1 %v8133_v60  ;;  %12083 = vst [vmem:[#allocation67_spill] sm:$0xff] %v8142_v2  ;;  %12084 = vst [vmem:[#allocation66_spill] sm:$0xff] %v8145_v58  ;;  %v8148_v11 = vld [vmem:[#allocation11 + $0xe0] sm:$0xff]  ;;  %v8151_v60 = vld [vmem:[#allocation11 + $0xf0] sm:$0xff] }
 0x300   :  { %1976 = vmatpush1.msra.mxu0 %v8136_v57  ;;  %2047 = vmatpush1.msra.mxu1 %v8139_v61  ;;  %12085 = vst [vmem:[#allocation69_spill] sm:$0xff] %v8148_v11  ;;  %12086 = vst [vmem:[#allocation68_spill] sm:$0xff] %v8151_v60  ;;  %v8154_v57 = vld [vmem:[#allocation11 + $0xc8] sm:$0xff]  ;;  %v8157_v61 = vld [vmem:[#allocation11 + $0xd8] sm:$0xff] }
 0x301   :  { %1977 = vmatprep.subr.mxu0 %v8142_v2  ;;  %2048 = vmatprep.subr.mxu1 %v8145_v58  ;;  %12087 = vst [vmem:[#allocation71_spill] sm:$0xff] %v8154_v57  ;;  %12088 = vst [vmem:[#allocation70_spill] sm:$0xff] %v8157_v61  ;;  %v8160_v2 = vld [vmem:[#allocation11 + $0xc0] sm:$0xff]  ;;  %v8163_v58 = vld [vmem:[#allocation11 + $0xd0] sm:$0xff] }
 0x302   :  { %1978 = vmatpush1.msra.mxu0 %v8148_v11  ;;  %2049 = vmatpush1.msra.mxu1 %v8151_v60  ;;  %12089 = vst [vmem:[#allocation73_spill] sm:$0xff] %v8160_v2  ;;  %12090 = vst [vmem:[#allocation72_spill] sm:$0xff] %v8163_v58  ;;  %v8166_v11 = vld [vmem:[#allocation11 + $0xa8] sm:$0xff]  ;;  %v8169_v60 = vld [vmem:[#allocation11 + $0xb8] sm:$0xff] }
 0x303   :  { %1979 = vmatprep.subr.mxu0 %v8154_v57  ;;  %2050 = vmatprep.subr.mxu1 %v8157_v61  ;;  %12091 = vst [vmem:[#allocation75_spill] sm:$0xff] %v8166_v11  ;;  %12092 = vst [vmem:[#allocation74_spill] sm:$0xff] %v8169_v60  ;;  %v8172_v57 = vld [vmem:[#allocation11 + $0xa0] sm:$0xff]  ;;  %v8175_v61 = vld [vmem:[#allocation11 + $0xb0] sm:$0xff] }
 0x304   :  { %1980 = vmatpush1.msra.mxu0 %v8160_v2  ;;  %2051 = vmatpush1.msra.mxu1 %v8163_v58  ;;  %12093 = vst [vmem:[#allocation77_spill] sm:$0xff] %v8172_v57  ;;  %12094 = vst [vmem:[#allocation76_spill] sm:$0xff] %v8175_v61  ;;  %v8178_v2 = vld [vmem:[#allocation11 + $0x88] sm:$0xff]  ;;  %v8181_v58 = vld [vmem:[#allocation11 + $0x98] sm:$0xff] }
 0x305   :  { %1981 = vmatprep.subr.mxu0 %v8166_v11  ;;  %2052 = vmatprep.subr.mxu1 %v8169_v60  ;;  %12095 = vst [vmem:[#allocation79_spill] sm:$0xff] %v8178_v2  ;;  %12096 = vst [vmem:[#allocation78_spill] sm:$0xff] %v8181_v58  ;;  %v8184_v11 = vld [vmem:[#allocation11 + $0x80] sm:$0xff]  ;;  %v8187_v60 = vld [vmem:[#allocation11 + $0x90] sm:$0xff] }
 0x306   :  { %1982 = vmatpush1.msra.mxu0 %v8172_v57  ;;  %2053 = vmatpush1.msra.mxu1 %v8175_v61  ;;  %12097 = vst [vmem:[#allocation81_spill] sm:$0xff] %v8184_v11  ;;  %12098 = vst [vmem:[#allocation80_spill] sm:$0xff] %v8187_v60  ;;  %v8190_v57 = vld [vmem:[#allocation11 + $0x68] sm:$0xff]  ;;  %v8193_v61 = vld [vmem:[#allocation11 + $0x78] sm:$0xff] }
 0x307   :  { %1983 = vmatprep.subr.mxu0 %v8178_v2  ;;  %2054 = vmatprep.subr.mxu1 %v8181_v58  ;;  %12099 = vst [vmem:[#allocation83_spill] sm:$0xff] %v8190_v57  ;;  %12100 = vst [vmem:[#allocation82_spill] sm:$0xff] %v8193_v61  ;;  %v8196_v2 = vld [vmem:[#allocation11 + $0x60] sm:$0xff]  ;;  %v8199_v58 = vld [vmem:[#allocation11 + $0x70] sm:$0xff] }
 0x308   :  { %1984 = vmatpush1.msra.mxu0 %v8184_v11  ;;  %2055 = vmatpush1.msra.mxu1 %v8187_v60  ;;  %12101 = vst [vmem:[#allocation85_spill] sm:$0xff] %v8196_v2  ;;  %12102 = vst [vmem:[#allocation84_spill] sm:$0xff] %v8199_v58  ;;  %v8202_v11 = vld [vmem:[#allocation11 + $0x48] sm:$0xff]  ;;  %v8205_v60 = vld [vmem:[#allocation11 + $0x58] sm:$0xff] }
 0x309   :  { %1985 = vmatprep.subr.mxu0 %v8190_v57  ;;  %2056 = vmatprep.subr.mxu1 %v8193_v61  ;;  %12103 = vst [vmem:[#allocation87_spill] sm:$0xff] %v8202_v11  ;;  %12104 = vst [vmem:[#allocation86_spill] sm:$0xff] %v8205_v60  ;;  %v8208_v57 = vld [vmem:[#allocation11 + $0x40] sm:$0xff]  ;;  %v8211_v61 = vld [vmem:[#allocation11 + $0x50] sm:$0xff] }
 0x30a   :  { %1986 = vmatpush1.msra.mxu0 %v8196_v2  ;;  %2057 = vmatpush1.msra.mxu1 %v8199_v58  ;;  %12105 = vst [vmem:[#allocation88_spill] sm:$0xff] %v8208_v57  ;;  %12106 = vst [vmem:[#allocation89_spill] sm:$0xff] %v8211_v61  ;;  %v8214_v2 = vld [vmem:[#allocation11 + $0x28] sm:$0xff]  ;;  %v8217_v58 = vld [vmem:[#allocation11 + $0x38] sm:$0xff] }
 0x30b   :  { %1987 = vmatprep.subr.mxu0 %v8202_v11  ;;  %2058 = vmatprep.subr.mxu1 %v8205_v60  ;;  %12107 = vst [vmem:[#allocation90_spill] sm:$0xff] %v8214_v2  ;;  %12108 = vst [vmem:[#allocation91_spill] sm:$0xff] %v8217_v58  ;;  %v8220_v11 = vld [vmem:[#allocation11 + $0x20] sm:$0xff]  ;;  %v8223_v60 = vld [vmem:[#allocation11 + $0x30] sm:$0xff] }
 0x30c   :  { %1988 = vmatpush1.msra.mxu0 %v8208_v57  ;;  %2059 = vmatpush1.msra.mxu1 %v8211_v61  ;;  %12109 = vst [vmem:[#allocation92_spill] sm:$0xff] %v8220_v11  ;;  %12110 = vst [vmem:[#allocation93_spill] sm:$0xff] %v8223_v60  ;;  %v8226_v57 = vld [vmem:[#allocation11 + $0x8] sm:$0xff]  ;;  %v8229_v61 = vld [vmem:[#allocation11 + $0x18] sm:$0xff] }
 0x30d   :  { %1989 = vmatprep.subr.mxu0 %v8214_v2  ;;  %2060 = vmatprep.subr.mxu1 %v8217_v58  ;;  %12111 = vst [vmem:[#allocation94_spill] sm:$0xff] %v8226_v57  ;;  %12112 = vst [vmem:[#allocation95_spill] sm:$0xff] %v8229_v61  ;;  %v8232_v2 = vld [vmem:[#allocation11] sm:$0xff]  ;;  %v8236_v58 = vld [vmem:[#allocation11 + $0x10] sm:$0xff] }
 0x30e   :  { %1990 = vmatpush1.msra.mxu0 %v8220_v11  ;;  %2061 = vmatpush1.msra.mxu1 %v8223_v60  ;;  %12113 = vst [vmem:[#allocation96_spill] sm:$0xff] %v8232_v2  ;;  %12114 = vst [vmem:[#allocation97_spill] sm:$0xff] %v8236_v58  ;;  %v8240_v60 = vld [vmem:[#allocation10 + $0x1e8] sm:$0xff] }
 0x30f   :  { %1991 = vmatprep.subr.mxu0 %v8226_v57  ;;  %2062 = vmatprep.subr.mxu1 %v8229_v61  ;;  %12115 = vst [vmem:[#allocation98_spill] sm:$0xff] %v8240_v60  ;;  %v8243_v57 = vld [vmem:[#allocation10 + $0x1f8] sm:$0xff] }
 0x310   :  { %1992 = vmatpush1.msra.mxu0 %v8232_v2  ;;  %2025 = vmatprep.mubr.f32.mxu0 %v11702_v12  ;;  %12116 = vst [vmem:[#allocation99_spill] sm:$0xff] %v8243_v57 }
 0x311   :  { %2063 = vmatpush1.msra.mxu1 %v8236_v58  ;;  %2096 = vmatprep.mubr.f32.mxu1 %v11702_v12 }
 0x312   :  { %2103 = vmatprep.subr.mxu0 %v8240_v60  ;;  %2174 = vmatprep.subr.mxu1 %v8243_v57 }
 0x32a   :  { %v1399_v61 = vpop.f32.mrf.mxu0  ;;  %v1470_v2 = vpop.f32.mrf.mxu1 }
 0x32c   :  { %v1401_v11 = vpop.f32.mrf.mxu0  ;;  %v1472_v58 = vpop.f32.mrf.mxu1 }
 0x36d   :  { %v1541_v4 = vpop.f32.mrf.mxu0  ;;  %v1612_v30 = vpop.f32.mrf.mxu1 }
 0x36e   :  { %v1542_v8 = vadd.f32 %v1541_v4, %v1399_v61  ;;  %v1613_v25 = vadd.f32 %v1612_v30, %v1470_v2 }
 0x36f   :  { %v1543_v13 = vpop.f32.mrf.mxu0  ;;  %v1614_v27 = vpop.f32.mrf.mxu1 }
 0x370   :  { %v1617_v63 = vadd.f32 %v1542_v8, %v7705_v51  ;;  %v1544_v59 = vadd.f32 %v1543_v13, %v1401_v11  ;;  %v1619_v57 = vadd.f32 %v1613_v25, %v7715_v23  ;;  %v1615_v24 = vadd.f32 %v1614_v27, %v1472_v58  ;;  %v8263_v11 = vld [vmem:[#allocation10 + $0x1c8] sm:$0xff] }
 0x372   :  { %v5436_v5 = vmul.f32 -1.442695, %v1617_v63  ;;  %v1618_v31 = vadd.f32 %v1544_v59, %v7709_v56  ;;  %v5438_v22 = vmul.f32 -1.442695, %v1619_v57  ;;  %v1620_v4 = vadd.f32 %v1615_v24, %v7720_v28  ;;  %v8257_v57 = vld [vmem:[#allocation10 + $0x1e0] sm:$0xff] }
 0x374   :  { %5543 = vpow2.f32 %v5436_v5  ;;  %v5437_v60 = vmul.f32 -1.442695, %v1618_v31 }
 0x376   :  { %5545 = vpow2.f32 %v5437_v60  ;;  %v8266_v60 = vld [vmem:[#allocation10 + $0x1d8] sm:$0xff] }
 0x377   :  { %5547 = vpow2.f32 %v5438_v22 }
 0x381   :  { %v5544_v21 = vpop.eup %5543 }
 0x382   :  { %v1630_v61 = vadd.f32 1.0, %v5544_v21 }
 0x383   :  { %v5546_v8 = vpop.eup %5545 }
 0x384   :  { %5549 = vrcp.f32 %v1630_v61  ;;  %v1631_v63 = vadd.f32 1.0, %v5546_v8  ;;  %v5548_v5 = vpop.eup %5547  ;;  %v8272_v61 = vld [vmem:[#allocation10 + $0x1d0] sm:$0xff]  ;;  %v8275_v8 = vld [vmem:[#allocation10 + $0x1a8] sm:$0xff] }
 0x385   :  { %5551 = vtanh.f32 %v1620_v4  ;;  %v1632_v30 = vadd.f32 1.0, %v5548_v5  ;;  %v8269_v4 = vld [vmem:[#allocation10 + $0x1c0] sm:$0xff]  ;;  %12117 = vst [vmem:[#allocation100_spill] sm:$0xff] %v8275_v8 }
 0x386   :  { %5553 = vrcp.f32 %v1631_v63  ;;  %v8278_v63 = vld [vmem:[#allocation10 + $0x1b8] sm:$0xff]  ;;  %v8281_v5 = vld [vmem:[#allocation10 + $0x1a0] sm:$0xff] }
 0x387   :  { %5555 = vrcp.f32 %v1632_v30  ;;  %12118 = vst [vmem:[#allocation101_spill] sm:$0xff] %v8278_v63  ;;  %12119 = vst [vmem:[#allocation102_spill] sm:$0xff] %v8281_v5  ;;  %v8290_v30 = vld [vmem:[#allocation10 + $0x198] sm:$0xff] }
 0x388   :  { %12122 = vst [vmem:[#allocation105_spill] sm:$0xff] %v8290_v30 }
 0x38e   :  { %v1715_v58 = vpop.f32.mrf.mxu0 }
 0x391   :  { %v5550_v59 = vpop.eup %5549 }
 0x392   :  { %v5552_v31 = vpop.eup %5551 }
 0x393   :  { %v5554_v13 = vpop.eup %5553  ;;  %v1641_v25 = vmul.f32 %v5552_v31, %v5550_v59  ;;  %v8284_v59 = vld [vmem:[#allocation10 + $0x1b0] sm:$0xff]  ;;  %v1717_v31 = vpop.f32.mrf.mxu0 }
 0x394   :  { %v1640_v2 = vmul.f32 %v5554_v13, %v7723_v42  ;;  %v5556_v21 = vpop.eup %5555  ;;  %v8260_v42 = vld [vmem:[#allocation10 + $0x1f0] sm:$0xff]  ;;  %12120 = vst [vmem:[#allocation103_spill] sm:$0xff] %v8284_v59  ;;  %v8287_v13 = vld [vmem:[#allocation10 + $0x188] sm:$0xff] }
 0x395   :  { %12121 = vst [vmem:[#allocation104_spill] sm:$0xff] %v8287_v13 }
 0x396   :  { %v8251_v27 = vadd.f32 %v1641_v25, %v1640_v2  ;;  %v8293_v2 = vld [vmem:[#allocation10 + $0x180] sm:$0xff]  ;;  %v8296_v25 = vld [vmem:[#allocation10 + $0x190] sm:$0xff] }
 0x397   :  { %12123 = vst [vmem:[#allocation106_spill] sm:$0xff] %v8293_v2  ;;  %12124 = vst [vmem:[#allocation107_spill] sm:$0xff] %v8296_v25 }
 0x398   :  { %5557 = vtanh.f32 %v8251_v27 }
 0x3a5   :  { %v5558_v24 = vpop.eup %5557 }
 0x3a6   :  { %v1644_v22 = vmul.f32 %v5558_v24, %v5556_v21  ;;  %v8299_v24 = vld [vmem:[#allocation10 + $0x168] sm:$0xff] }
 0x3a7   :  { %12125 = vst [vmem:[#allocation108_spill] sm:$0xff] %v8299_v24 }
 0x3a8   :  { %5439 = vst [vmem:[%s10873_s7 + $0x8] sm:$0xff] %v1644_v22  ;;  %2026 = vmatmul.mubr.f32.vlgmr.msra.gmra.mxu0 %v1644_v22  ;;  %2097 = vmatmul.mubr.f32.vlgmr.msra.gmra.mxu1 %v1644_v22  ;;  %v8302_v22 = vld [vmem:[#allocation10 + $0x178] sm:$0xff] }
 0x3a9   :  { %2104 = vmatpush1.msra.mxu0 %v8257_v57  ;;  %2175 = vmatpush1.msra.mxu1 %v8260_v42  ;;  %12126 = vst [vmem:[#allocation109_spill] sm:$0xff] %v8302_v22 }
 0x3aa   :  { %2105 = vmatprep.subr.mxu0 %v8263_v11  ;;  %2176 = vmatprep.subr.mxu1 %v8266_v60 }
 0x3ab   :  { %2106 = vmatpush1.msra.mxu0 %v8269_v4  ;;  %2177 = vmatpush1.msra.mxu1 %v8272_v61 }
 0x3ac   :  { %2107 = vmatprep.subr.mxu0 %v8275_v8  ;;  %2178 = vmatprep.subr.mxu1 %v8278_v63 }
 0x3ad   :  { %2108 = vmatpush1.msra.mxu0 %v8281_v5  ;;  %2179 = vmatpush1.msra.mxu1 %v8284_v59  ;;  %v8311_v5 = vld [vmem:[#allocation10 + $0x148] sm:$0xff] }
 0x3ae   :  { %2109 = vmatprep.subr.mxu0 %v8287_v13  ;;  %2180 = vmatprep.subr.mxu1 %v8290_v30  ;;  %v1786_v13 = vpop.f32.mrf.mxu1  ;;  %v8305_v30 = vld [vmem:[#allocation10 + $0x160] sm:$0xff]  ;;  %12129 = vst [vmem:[#allocation111_spill] sm:$0xff] %v8311_v5 }
 0x3af   :  { %2110 = vmatpush1.msra.mxu0 %v8293_v2  ;;  %2181 = vmatpush1.msra.mxu1 %v8296_v25  ;;  %12127 = vst [vmem:[#allocation110_spill] sm:$0xff] %v8305_v30  ;;  %v8308_v2 = vld [vmem:[#allocation10 + $0x170] sm:$0xff] }
 0x3b0   :  { %v1857_v21 = vpop.f32.mrf.mxu0  ;;  %2111 = vmatprep.subr.mxu0 %v8299_v24  ;;  %2182 = vmatprep.subr.mxu1 %v8302_v22  ;;  %12128 = vst [vmem:[#allocation155_spill] sm:$0xff] %v8308_v2  ;;  %v8314_v24 = vld [vmem:[#allocation10 + $0x158] sm:$0xff] }
 0x3b1   :  { %v1858_v59 = vadd.f32 %v1857_v21, %v1715_v58  ;;  %2112 = vmatpush1.msra.mxu0 %v8305_v30  ;;  %2183 = vmatpush1.msra.mxu1 %v8308_v2  ;;  %12130 = vst [vmem:[#allocation112_spill] sm:$0xff] %v8314_v24  ;;  %v8318_v21 = vld [vmem:[#allocation10 + $0x140] sm:$0xff]  ;;  %v8321_v30 = vld [vmem:[#allocation10 + $0x150] sm:$0xff]  ;;  %v8324_v2 = vld [vmem:[#allocation10 + $0x128] sm:$0xff] }
 0x3b2   :  { %v1859_v25 = vpop.f32.mrf.mxu0  ;;  %2113 = vmatprep.subr.mxu0 %v8311_v5  ;;  %2184 = vmatprep.subr.mxu1 %v8314_v24  ;;  %12131 = vst [vmem:[#allocation113_spill] sm:$0xff] %v8324_v2  ;;  %v1788_v5 = vpop.f32.mrf.mxu1  ;;  %v8328_v24 = vld [vmem:[#allocation10 + $0x138] sm:$0xff] }
 0x3b3   :  { %v1933_v22 = vadd.f32 %v1858_v59, %v11929_v33  ;;  %v1860_v58 = vadd.f32 %v1859_v25, %v1717_v31  ;;  %2114 = vmatpush1.msra.mxu0 %v8318_v21  ;;  %2185 = vmatpush1.msra.mxu1 %v8321_v30  ;;  %12132 = vst [vmem:[#allocation156_spill] sm:$0xff] %v8328_v24  ;;  %v8331_v59 = vld [vmem:[#allocation10 + $0x120] sm:$0xff]  ;;  %v8334_v31 = vld [vmem:[#allocation10 + $0x130] sm:$0xff]  ;;  %v8337_v25 = vld [vmem:[#allocation10 + $0x108] sm:$0xff] }
 0x3b4   :  { %2115 = vmatprep.subr.mxu0 %v8324_v2  ;;  %2186 = vmatprep.subr.mxu1 %v8328_v24  ;;  %12133 = vst [vmem:[#allocation114_spill] sm:$0xff] %v8331_v59  ;;  %12134 = vst [vmem:[#allocation115_spill] sm:$0xff] %v8334_v31  ;;  %v8343_v24 = vld [vmem:[#allocation10 + $0x100] sm:$0xff] }
 0x3b5   :  { %v5441_v63 = vmul.f32 -1.442695, %v1933_v22  ;;  %v1934_v8 = vadd.f32 %v1860_v58, %v11933_v6  ;;  %2116 = vmatpush1.msra.mxu0 %v8331_v59  ;;  %2187 = vmatpush1.msra.mxu1 %v8334_v31  ;;  %12135 = vst [vmem:[#allocation116_spill] sm:$0xff] %v8337_v25  ;;  %v1928_v22 = vpop.f32.mrf.mxu1  ;;  %v8340_v58 = vld [vmem:[#allocation10 + $0x118] sm:$0xff]  ;;  %12137 = vst [vmem:[#allocation118_spill] sm:$0xff] %v8343_v24  ;;  %v8346_v59 = vld [vmem:[#allocation10 + $0x110] sm:$0xff] }
 0x3b6   :  { %2117 = vmatprep.subr.mxu0 %v8337_v25  ;;  %12136 = vst [vmem:[#allocation117_spill] sm:$0xff] %v8340_v58  ;;  %2188 = vmatprep.subr.mxu1 %v8340_v58  ;;  %12138 = vst [vmem:[#allocation119_spill] sm:$0xff] %v8346_v59  ;;  %v8349_v31 = vld [vmem:[#allocation10 + $0xe8] sm:$0xff]  ;;  %v1929_v58 = vadd.f32 %v1928_v22, %v1786_v13  ;;  %v8358_v25 = vld [vmem:[#allocation10 + $0xf0] sm:$0xff] }
 0x3b7   :  { %5559 = vpow2.f32 %v5441_v63  ;;  %v5442_v2 = vmul.f32 -1.442695, %v1934_v8  ;;  %2118 = vmatpush1.msra.mxu0 %v8343_v24  ;;  %2189 = vmatpush1.msra.mxu1 %v8346_v59  ;;  %v8352_v63 = vld [vmem:[#allocation10 + $0xf8] sm:$0xff]  ;;  %v8355_v8 = vld [vmem:[#allocation10 + $0xe0] sm:$0xff]  ;;  %12141 = vst [vmem:[#allocation122_spill] sm:$0xff] %v8358_v25  ;;  %v8361_v24 = vld [vmem:[#allocation10 + $0xc8] sm:$0xff]  ;;  %v1930_v22 = vpop.f32.mrf.mxu1 }
 0x3b8   :  { %2119 = vmatprep.subr.mxu0 %v8349_v31  ;;  %12139 = vst [vmem:[#allocation120_spill] sm:$0xff] %v8352_v63  ;;  %2190 = vmatprep.subr.mxu1 %v8352_v63  ;;  %12140 = vst [vmem:[#allocation121_spill] sm:$0xff] %v8355_v8  ;;  %v8364_v59 = vld [vmem:[#allocation10 + $0xd8] sm:$0xff]  ;;  %v8370_v63 = vld [vmem:[#allocation10 + $0xd0] sm:$0xff] }
 0x3b9   :  { %5561 = vpow2.f32 %v5442_v2  ;;  %2120 = vmatpush1.msra.mxu0 %v8355_v8  ;;  %2191 = vmatpush1.msra.mxu1 %v8358_v25  ;;  %12142 = vst [vmem:[#allocation123_spill] sm:$0xff] %v8361_v24  ;;  %12143 = vst [vmem:[#allocation124_spill] sm:$0xff] %v8364_v59  ;;  %v8367_v2 = vld [vmem:[#allocation10 + $0xc0] sm:$0xff]  ;;  %v8373_v13 = vld [vmem:[#allocation10 + $0xa8] sm:$0xff] }
 0x3ba   :  { %2121 = vmatprep.subr.mxu0 %v8361_v24  ;;  %2192 = vmatprep.subr.mxu1 %v8364_v59  ;;  %12144 = vst [vmem:[#allocation125_spill] sm:$0xff] %v8367_v2  ;;  %12145 = vst [vmem:[#allocation126_spill] sm:$0xff] %v8370_v63  ;;  %v8376_v25 = vld [vmem:[#allocation10 + $0xb8] sm:$0xff]  ;;  %v8379_v24 = vld [vmem:[#allocation10 + $0xa0] sm:$0xff]  ;;  %v1935_v59 = vadd.f32 %v1929_v58, %v11952_v26 }
 0x3bb   :  { %2122 = vmatpush1.msra.mxu0 %v8367_v2  ;;  %2193 = vmatpush1.msra.mxu1 %v8370_v63  ;;  %12146 = vst [vmem:[#allocation127_spill] sm:$0xff] %v8373_v13  ;;  %12147 = vst [vmem:[#allocation128_spill] sm:$0xff] %v8376_v25  ;;  %v8383_v2 = vld [vmem:[#allocation10 + $0xb0] sm:$0xff]  ;;  %v8386_v63 = vld [vmem:[#allocation10 + $0x88] sm:$0xff] }
 0x3bc   :  { %2123 = vmatprep.subr.mxu0 %v8373_v13  ;;  %2194 = vmatprep.subr.mxu1 %v8376_v25  ;;  %12148 = vst [vmem:[#allocation129_spill] sm:$0xff] %v8379_v24  ;;  %12149 = vst [vmem:[#allocation130_spill] sm:$0xff] %v8383_v2  ;;  %v8389_v13 = vld [vmem:[#allocation10 + $0x98] sm:$0xff]  ;;  %v8392_v8 = vld [vmem:[#allocation10 + $0x80] sm:$0xff]  ;;  %v1931_v25 = vadd.f32 %v1930_v22, %v1788_v5 }
 0x3bd   :  { %2124 = vmatpush1.msra.mxu0 %v8379_v24  ;;  %2195 = vmatpush1.msra.mxu1 %v8383_v2  ;;  %12150 = vst [vmem:[#allocation131_spill] sm:$0xff] %v8386_v63  ;;  %12151 = vst [vmem:[#allocation132_spill] sm:$0xff] %v8389_v13  ;;  %v8395_v24 = vld [vmem:[#allocation10 + $0x90] sm:$0xff]  ;;  %v8398_v58 = vld [vmem:[#allocation10 + $0x68] sm:$0xff] }
 0x3be   :  { %2125 = vmatprep.subr.mxu0 %v8386_v63  ;;  %2196 = vmatprep.subr.mxu1 %v8389_v13  ;;  %12152 = vst [vmem:[#allocation133_spill] sm:$0xff] %v8392_v8  ;;  %12153 = vst [vmem:[#allocation134_spill] sm:$0xff] %v8395_v24  ;;  %v8401_v2 = vld [vmem:[#allocation10 + $0x78] sm:$0xff]  ;;  %v8404_v63 = vld [vmem:[#allocation10 + $0x60] sm:$0xff]  ;;  %v5443_v13 = vmul.f32 -1.442695, %v1935_v59 }
 0x3bf   :  { %2126 = vmatpush1.msra.mxu0 %v8392_v8  ;;  %2197 = vmatpush1.msra.mxu1 %v8395_v24  ;;  %12154 = vst [vmem:[#allocation135_spill] sm:$0xff] %v8398_v58  ;;  %12155 = vst [vmem:[#allocation136_spill] sm:$0xff] %v8401_v2  ;;  %v8407_v26 = vld [vmem:[#allocation10 + $0x70] sm:$0xff]  ;;  %v8410_v5 = vld [vmem:[#allocation10 + $0x48] sm:$0xff] }
 0x3c0   :  { %2127 = vmatprep.subr.mxu0 %v8398_v58  ;;  %2198 = vmatprep.subr.mxu1 %v8401_v2  ;;  %12156 = vst [vmem:[#allocation137_spill] sm:$0xff] %v8404_v63  ;;  %12157 = vst [vmem:[#allocation138_spill] sm:$0xff] %v8407_v26  ;;  %v8413_v22 = vld [vmem:[#allocation10 + $0x58] sm:$0xff]  ;;  %v8416_v58 = vld [vmem:[#allocation10 + $0x40] sm:$0xff]  ;;  %5563 = vpow2.f32 %v5443_v13 }
 0x3c1   :  { %2128 = vmatpush1.msra.mxu0 %v8404_v63  ;;  %2199 = vmatpush1.msra.mxu1 %v8407_v26  ;;  %12158 = vst [vmem:[#allocation139_spill] sm:$0xff] %v8410_v5  ;;  %12159 = vst [vmem:[#allocation140_spill] sm:$0xff] %v8413_v22  ;;  %v1936_v63 = vadd.f32 %v1931_v25, %v7339_v1  ;;  %v8420_v59 = vld [vmem:[#allocation10 + $0x50] sm:$0xff]  ;;  %v8423_v26 = vld [vmem:[#allocation10 + $0x28] sm:$0xff] }
 0x3c2   :  { %2129 = vmatprep.subr.mxu0 %v8410_v5  ;;  %2200 = vmatprep.subr.mxu1 %v8413_v22  ;;  %12160 = vst [vmem:[#allocation141_spill] sm:$0xff] %v8416_v58  ;;  %12161 = vst [vmem:[#allocation142_spill] sm:$0xff] %v8420_v59  ;;  %v8426_v24 = vld [vmem:[#allocation10 + $0x38] sm:$0xff]  ;;  %v8429_v22 = vld [vmem:[#allocation10 + $0x20] sm:$0xff] }
 0x3c3   :  { %2130 = vmatpush1.msra.mxu0 %v8416_v58  ;;  %2201 = vmatpush1.msra.mxu1 %v8420_v59  ;;  %12162 = vst [vmem:[#allocation143_spill] sm:$0xff] %v8423_v26  ;;  %12163 = vst [vmem:[#allocation144_spill] sm:$0xff] %v8426_v24  ;;  %v8432_v25 = vld [vmem:[#allocation10 + $0x30] sm:$0xff]  ;;  %v8435_v59 = vld [vmem:[#allocation10 + $0x8] sm:$0xff] }
 0x3c4   :  { %v5560_v2 = vpop.eup %5559  ;;  %2131 = vmatprep.subr.mxu0 %v8423_v26  ;;  %2202 = vmatprep.subr.mxu1 %v8426_v24  ;;  %12164 = vst [vmem:[#allocation145_spill] sm:$0xff] %v8429_v22  ;;  %12165 = vst [vmem:[#allocation146_spill] sm:$0xff] %v8432_v25  ;;  %v8438_v26 = vld [vmem:[#allocation10 + $0x18] sm:$0xff]  ;;  %v8441_v24 = vld [vmem:[#allocation10] sm:$0xff] }
 0x3c5   :  { %v1946_v5 = vadd.f32 1.0, %v5560_v2  ;;  %2132 = vmatpush1.msra.mxu0 %v8429_v22  ;;  %2203 = vmatpush1.msra.mxu1 %v8432_v25  ;;  %12166 = vst [vmem:[#allocation147_spill] sm:$0xff] %v8435_v59  ;;  %12167 = vst [vmem:[#allocation148_spill] sm:$0xff] %v8438_v26  ;;  %v8444_v13 = vld [vmem:[#allocation10 + $0x10] sm:$0xff] }
 0x3c6   :  { %v5562_v58 = vpop.eup %5561  ;;  %2133 = vmatprep.subr.mxu0 %v8435_v59  ;;  %2204 = vmatprep.subr.mxu1 %v8438_v26  ;;  %12168 = vst [vmem:[#allocation149_spill] sm:$0xff] %v8441_v24  ;;  %12169 = vst [vmem:[#allocation150_spill] sm:$0xff] %v8444_v13 }
 0x3c7   :  { %5565 = vrcp.f32 %v1946_v5  ;;  %v1947_v2 = vadd.f32 1.0, %v5562_v58  ;;  %2134 = vmatpush1.msra.mxu0 %v8441_v24  ;;  %2205 = vmatpush1.msra.mxu1 %v8444_v13  ;;  %v8449_v5 = vld [vmem:[#allocation8 + $0x1e8] sm:$0xff]  ;;  %v8452_v58 = vld [vmem:[#allocation8 + $0x1f8] sm:$0xff] }
 0x3c8   :  { %5567 = vtanh.f32 %v1936_v63  ;;  %2167 = vmatprep.mubr.f32.mxu0 %v11702_v12  ;;  %2238 = vmatprep.mubr.f32.mxu1 %v11702_v12  ;;  %12170 = vst [vmem:[#allocation151_spill] sm:$0xff] %v8449_v5  ;;  %12171 = vst [vmem:[#allocation152_spill] sm:$0xff] %v8452_v58 }
 0x3c9   :  { %5569 = vrcp.f32 %v1947_v2  ;;  %2277 = vmatprep.subr.mxu0 %v8449_v5  ;;  %2348 = vmatprep.subr.mxu1 %v8452_v58  ;;  %v8463_v58 = vld [vmem:[#allocation8 + $0x1e0] sm:$0xff] }
 0x3cd   :  { %v5564_v26 = vpop.eup %5563 }
 0x3ce   :  { %v1948_v25 = vadd.f32 1.0, %v5564_v26  ;;  %v8466_v26 = vld [vmem:[#allocation8 + $0x1f0] sm:$0xff] }
 0x3d0   :  { %5571 = vrcp.f32 %v1948_v25  ;;  %v8484_v25 = vld [vmem:[#allocation8 + $0x1b8] sm:$0xff] }
 0x3d1   :  { %12174 = vst [vmem:[#allocation159_spill] sm:$0xff] %v8484_v25 }
 0x3d4   :  { %v5566_v24 = vpop.eup %5565 }
 0x3d5   :  { %v5568_v63 = vpop.eup %5567 }
 0x3d6   :  { %v5570_v59 = vpop.eup %5569  ;;  %v1957_v22 = vmul.f32 %v5568_v63, %v5566_v24  ;;  %v8472_v24 = vld [vmem:[#allocation8 + $0x1d8] sm:$0xff]  ;;  %v8490_v63 = vld [vmem:[#allocation8 + $0x1b0] sm:$0xff] }
 0x3d7   :  { %v1956_v13 = vmul.f32 %v5570_v59, %v7800_v29  ;;  %v8469_v29 = vld [vmem:[#allocation8 + $0x1c8] sm:$0xff]  ;;  %12176 = vst [vmem:[#allocation161_spill] sm:$0xff] %v8490_v63 }
 0x3d8   :  { %v8481_v59 = vld [vmem:[#allocation8 + $0x1a8] sm:$0xff] }
 0x3d9   :  { %v8456_v1 = vadd.f32 %v1957_v22, %v1956_v13  ;;  %v8478_v22 = vld [vmem:[#allocation8 + $0x1d0] sm:$0xff]  ;;  %12173 = vst [vmem:[#allocation154_spill] sm:$0xff] %v8481_v59  ;;  %v8487_v13 = vld [vmem:[#allocation8 + $0x1a0] sm:$0xff] }
 0x3da   :  { %12172 = vst [vmem:[#allocation153_spill] sm:$0xff] %v8478_v22  ;;  %12175 = vst [vmem:[#allocation160_spill] sm:$0xff] %v8487_v13 }
 0x3db   :  { %5573 = vtanh.f32 %v8456_v1 }
 0x3dd   :  { %v5572_v2 = vpop.eup %5571 }
 0x3e8   :  { %v5574_v8 = vpop.eup %5573 }
 0x3e9   :  { %v8459_v5 = vmul.f32 %v5574_v8, %v5572_v2  ;;  %v8475_v8 = vld [vmem:[#allocation8 + $0x1c0] sm:$0xff]  ;;  %v8493_v2 = vld [vmem:[#allocation8 + $0x188] sm:$0xff] }
 0x3ea   :  { %12177 = vst [vmem:[#allocation162_spill] sm:$0xff] %v8493_v2 }
 0x3eb   :  { %2168 = vmatmul.mubr.f32.vlgmr.msra.gmra.mxu0 %v8459_v5  ;;  %2239 = vmatmul.mubr.f32.vlgmr.msra.gmra.mxu1 %v8459_v5 }
 0x3ec   :  { %2278 = vmatpush1.msra.mxu0 %v8463_v58  ;;  %2349 = vmatpush1.msra.mxu1 %v8466_v26 }
 0x3ed   :  { %2279 = vmatprep.subr.mxu0 %v8469_v29  ;;  %2350 = vmatprep.subr.mxu1 %v8472_v24 }
 0x3ee   :  { %2280 = vmatpush1.msra.mxu0 %v8475_v8  ;;  %2351 = vmatpush1.msra.mxu1 %v8478_v22  ;;  %v8496_v22 = vld [vmem:[#allocation8 + $0x198] sm:$0xff] }
 0x3ef   :  { %2281 = vmatprep.subr.mxu0 %v8481_v59  ;;  %2352 = vmatprep.subr.mxu1 %v8484_v25  ;;  %12178 = vst [vmem:[#allocation163_spill] sm:$0xff] %v8496_v22  ;;  %v8499_v59 = vld [vmem:[#allocation8 + $0x180] sm:$0xff]  ;;  %v8502_v25 = vld [vmem:[#allocation8 + $0x190] sm:$0xff] }
 0x3f0   :  { %2282 = vmatpush1.msra.mxu0 %v8487_v13  ;;  %2353 = vmatpush1.msra.mxu1 %v8490_v63  ;;  %12179 = vst [vmem:[#allocation164_spill] sm:$0xff] %v8499_v59  ;;  %12180 = vst [vmem:[#allocation165_spill] sm:$0xff] %v8502_v25  ;;  %v8505_v13 = vld [vmem:[#allocation8 + $0x168] sm:$0xff]  ;;  %v8508_v63 = vld [vmem:[#allocation8 + $0x178] sm:$0xff] }
 0x3f1   :  { %2283 = vmatprep.subr.mxu0 %v8493_v2  ;;  %2354 = vmatprep.subr.mxu1 %v8496_v22  ;;  %12181 = vst [vmem:[#allocation166_spill] sm:$0xff] %v8505_v13  ;;  %12182 = vst [vmem:[#allocation167_spill] sm:$0xff] %v8508_v63  ;;  %v8511_v2 = vld [vmem:[#allocation8 + $0x160] sm:$0xff]  ;;  %v8514_v22 = vld [vmem:[#allocation8 + $0x170] sm:$0xff] }
 0x3f2   :  { %2284 = vmatpush1.msra.mxu0 %v8499_v59  ;;  %2355 = vmatpush1.msra.mxu1 %v8502_v25  ;;  %12183 = vst [vmem:[#allocation168_spill] sm:$0xff] %v8511_v2  ;;  %12184 = vst [vmem:[#allocation169_spill] sm:$0xff] %v8514_v22  ;;  %v8517_v59 = vld [vmem:[#allocation8 + $0x148] sm:$0xff]  ;;  %v8520_v25 = vld [vmem:[#allocation8 + $0x158] sm:$0xff] }
 0x3f3   :  { %2285 = vmatprep.subr.mxu0 %v8505_v13  ;;  %2356 = vmatprep.subr.mxu1 %v8508_v63  ;;  %12185 = vst [vmem:[#allocation170_spill] sm:$0xff] %v8517_v59  ;;  %12186 = vst [vmem:[#allocation171_spill] sm:$0xff] %v8520_v25  ;;  %v8523_v13 = vld [vmem:[#allocation8 + $0x140] sm:$0xff]  ;;  %v8526_v63 = vld [vmem:[#allocation8 + $0x150] sm:$0xff] }
 0x3f4   :  { %2286 = vmatpush1.msra.mxu0 %v8511_v2  ;;  %2357 = vmatpush1.msra.mxu1 %v8514_v22  ;;  %12187 = vst [vmem:[#allocation172_spill] sm:$0xff] %v8523_v13  ;;  %12188 = vst [vmem:[#allocation173_spill] sm:$0xff] %v8526_v63  ;;  %v8529_v2 = vld [vmem:[#allocation8 + $0x128] sm:$0xff]  ;;  %v8532_v22 = vld [vmem:[#allocation8 + $0x138] sm:$0xff] }
 0x3f5   :  { %2287 = vmatprep.subr.mxu0 %v8517_v59  ;;  %2358 = vmatprep.subr.mxu1 %v8520_v25  ;;  %12189 = vst [vmem:[#allocation174_spill] sm:$0xff] %v8529_v2  ;;  %12190 = vst [vmem:[#allocation175_spill] sm:$0xff] %v8532_v22  ;;  %v8535_v59 = vld [vmem:[#allocation8 + $0x120] sm:$0xff]  ;;  %v8538_v25 = vld [vmem:[#allocation8 + $0x130] sm:$0xff] }
 0x3f6   :  { %2288 = vmatpush1.msra.mxu0 %v8523_v13  ;;  %2359 = vmatpush1.msra.mxu1 %v8526_v63  ;;  %12191 = vst [vmem:[#allocation176_spill] sm:$0xff] %v8535_v59  ;;  %12192 = vst [vmem:[#allocation177_spill] sm:$0xff] %v8538_v25  ;;  %v8541_v13 = vld [vmem:[#allocation8 + $0x108] sm:$0xff]  ;;  %v8544_v63 = vld [vmem:[#allocation8 + $0x118] sm:$0xff] }
 0x3f7   :  { %2289 = vmatprep.subr.mxu0 %v8529_v2  ;;  %2360 = vmatprep.subr.mxu1 %v8532_v22  ;;  %12193 = vst [vmem:[#allocation178_spill] sm:$0xff] %v8541_v13  ;;  %12194 = vst [vmem:[#allocation179_spill] sm:$0xff] %v8544_v63  ;;  %v8547_v2 = vld [vmem:[#allocation8 + $0x100] sm:$0xff]  ;;  %v8550_v22 = vld [vmem:[#allocation8 + $0x110] sm:$0xff] }
 0x3f8   :  { %2290 = vmatpush1.msra.mxu0 %v8535_v59  ;;  %2361 = vmatpush1.msra.mxu1 %v8538_v25  ;;  %12195 = vst [vmem:[#allocation180_spill] sm:$0xff] %v8547_v2  ;;  %12196 = vst [vmem:[#allocation181_spill] sm:$0xff] %v8550_v22  ;;  %v8553_v59 = vld [vmem:[#allocation8 + $0xe8] sm:$0xff]  ;;  %v8556_v25 = vld [vmem:[#allocation8 + $0xf8] sm:$0xff] }
 0x3f9   :  { %2291 = vmatprep.subr.mxu0 %v8541_v13  ;;  %2362 = vmatprep.subr.mxu1 %v8544_v63  ;;  %12197 = vst [vmem:[#allocation182_spill] sm:$0xff] %v8553_v59  ;;  %12198 = vst [vmem:[#allocation183_spill] sm:$0xff] %v8556_v25  ;;  %v8559_v13 = vld [vmem:[#allocation8 + $0xe0] sm:$0xff]  ;;  %v8562_v63 = vld [vmem:[#allocation8 + $0xf0] sm:$0xff] }
 0x3fa   :  { %2292 = vmatpush1.msra.mxu0 %v8547_v2  ;;  %2363 = vmatpush1.msra.mxu1 %v8550_v22  ;;  %12199 = vst [vmem:[#allocation184_spill] sm:$0xff] %v8559_v13  ;;  %12200 = vst [vmem:[#allocation185_spill] sm:$0xff] %v8562_v63  ;;  %v8565_v2 = vld [vmem:[#allocation8 + $0xc8] sm:$0xff]  ;;  %v8568_v22 = vld [vmem:[#allocation8 + $0xd8] sm:$0xff] }
 0x3fb   :  { %2293 = vmatprep.subr.mxu0 %v8553_v59  ;;  %2364 = vmatprep.subr.mxu1 %v8556_v25  ;;  %12201 = vst [vmem:[#allocation186_spill] sm:$0xff] %v8565_v2  ;;  %12202 = vst [vmem:[#allocation187_spill] sm:$0xff] %v8568_v22  ;;  %v8571_v59 = vld [vmem:[#allocation8 + $0xc0] sm:$0xff]  ;;  %v8574_v25 = vld [vmem:[#allocation8 + $0xd0] sm:$0xff] }
 0x3fc   :  { %2294 = vmatpush1.msra.mxu0 %v8559_v13  ;;  %2365 = vmatpush1.msra.mxu1 %v8562_v63  ;;  %12203 = vst [vmem:[#allocation188_spill] sm:$0xff] %v8571_v59  ;;  %12204 = vst [vmem:[#allocation189_spill] sm:$0xff] %v8574_v25  ;;  %v8577_v13 = vld [vmem:[#allocation8 + $0xa8] sm:$0xff]  ;;  %v8580_v63 = vld [vmem:[#allocation8 + $0xb8] sm:$0xff] }
 0x3fd   :  { %2295 = vmatprep.subr.mxu0 %v8565_v2  ;;  %2366 = vmatprep.subr.mxu1 %v8568_v22  ;;  %12205 = vst [vmem:[#allocation190_spill] sm:$0xff] %v8577_v13  ;;  %12206 = vst [vmem:[#allocation191_spill] sm:$0xff] %v8580_v63  ;;  %v8583_v2 = vld [vmem:[#allocation8 + $0xa0] sm:$0xff]  ;;  %v8586_v22 = vld [vmem:[#allocation8 + $0xb0] sm:$0xff] }
 0x3fe   :  { %2296 = vmatpush1.msra.mxu0 %v8571_v59  ;;  %2367 = vmatpush1.msra.mxu1 %v8574_v25  ;;  %12207 = vst [vmem:[#allocation192_spill] sm:$0xff] %v8583_v2  ;;  %12208 = vst [vmem:[#allocation193_spill] sm:$0xff] %v8586_v22  ;;  %v8589_v59 = vld [vmem:[#allocation8 + $0x88] sm:$0xff]  ;;  %v8592_v25 = vld [vmem:[#allocation8 + $0x98] sm:$0xff] }
 0x3ff   :  { %2297 = vmatprep.subr.mxu0 %v8577_v13  ;;  %2368 = vmatprep.subr.mxu1 %v8580_v63  ;;  %12209 = vst [vmem:[#allocation194_spill] sm:$0xff] %v8589_v59  ;;  %12210 = vst [vmem:[#allocation195_spill] sm:$0xff] %v8592_v25  ;;  %v8595_v13 = vld [vmem:[#allocation8 + $0x80] sm:$0xff]  ;;  %v8598_v63 = vld [vmem:[#allocation8 + $0x90] sm:$0xff] }
 0x400   :  { %2298 = vmatpush1.msra.mxu0 %v8583_v2  ;;  %2369 = vmatpush1.msra.mxu1 %v8586_v22  ;;  %12211 = vst [vmem:[#allocation196_spill] sm:$0xff] %v8595_v13  ;;  %12212 = vst [vmem:[#allocation197_spill] sm:$0xff] %v8598_v63  ;;  %v8601_v2 = vld [vmem:[#allocation8 + $0x68] sm:$0xff]  ;;  %v8604_v22 = vld [vmem:[#allocation8 + $0x78] sm:$0xff] }
 0x401   :  { %2299 = vmatprep.subr.mxu0 %v8589_v59  ;;  %2370 = vmatprep.subr.mxu1 %v8592_v25  ;;  %12213 = vst [vmem:[#allocation198_spill] sm:$0xff] %v8601_v2  ;;  %12214 = vst [vmem:[#allocation199_spill] sm:$0xff] %v8604_v22  ;;  %v8607_v59 = vld [vmem:[#allocation8 + $0x60] sm:$0xff]  ;;  %v8610_v25 = vld [vmem:[#allocation8 + $0x70] sm:$0xff] }
 0x402   :  { %2300 = vmatpush1.msra.mxu0 %v8595_v13  ;;  %2371 = vmatpush1.msra.mxu1 %v8598_v63  ;;  %12215 = vst [vmem:[#allocation200_spill] sm:$0xff] %v8607_v59  ;;  %12216 = vst [vmem:[#allocation201_spill] sm:$0xff] %v8610_v25  ;;  %v8613_v13 = vld [vmem:[#allocation8 + $0x48] sm:$0xff]  ;;  %v8616_v63 = vld [vmem:[#allocation8 + $0x58] sm:$0xff] }
 0x403   :  { %2301 = vmatprep.subr.mxu0 %v8601_v2  ;;  %2372 = vmatprep.subr.mxu1 %v8604_v22  ;;  %12217 = vst [vmem:[#allocation202_spill] sm:$0xff] %v8613_v13  ;;  %12218 = vst [vmem:[#allocation203_spill] sm:$0xff] %v8616_v63  ;;  %v8619_v2 = vld [vmem:[#allocation8 + $0x40] sm:$0xff]  ;;  %v8622_v22 = vld [vmem:[#allocation8 + $0x50] sm:$0xff] }
 0x404   :  { %2302 = vmatpush1.msra.mxu0 %v8607_v59  ;;  %2373 = vmatpush1.msra.mxu1 %v8610_v25  ;;  %12219 = vst [vmem:[#allocation204_spill] sm:$0xff] %v8619_v2  ;;  %12220 = vst [vmem:[#allocation205_spill] sm:$0xff] %v8622_v22  ;;  %v8625_v59 = vld [vmem:[#allocation8 + $0x28] sm:$0xff]  ;;  %v8628_v25 = vld [vmem:[#allocation8 + $0x38] sm:$0xff] }
 0x405   :  { %2303 = vmatprep.subr.mxu0 %v8613_v13  ;;  %2374 = vmatprep.subr.mxu1 %v8616_v63  ;;  %12221 = vst [vmem:[#allocation206_spill] sm:$0xff] %v8625_v59  ;;  %12222 = vst [vmem:[#allocation207_spill] sm:$0xff] %v8628_v25  ;;  %v8631_v13 = vld [vmem:[#allocation8 + $0x20] sm:$0xff]  ;;  %v8634_v63 = vld [vmem:[#allocation8 + $0x30] sm:$0xff] }
 0x406   :  { %2304 = vmatpush1.msra.mxu0 %v8619_v2  ;;  %2375 = vmatpush1.msra.mxu1 %v8622_v22  ;;  %12223 = vst [vmem:[#allocation208_spill] sm:$0xff] %v8634_v63  ;;  %v8637_v2 = vld [vmem:[#allocation8 + $0x8] sm:$0xff]  ;;  %v8640_v22 = vld [vmem:[#allocation8 + $0x18] sm:$0xff] }
 0x407   :  { %2305 = vmatprep.subr.mxu0 %v8625_v59  ;;  %2376 = vmatprep.subr.mxu1 %v8628_v25  ;;  %12224 = vst [vmem:[#allocation209_spill] sm:$0xff] %v8637_v2  ;;  %12225 = vst [vmem:[#allocation210_spill] sm:$0xff] %v8640_v22  ;;  %v8643_v59 = vld [vmem:[#allocation8] sm:$0xff]  ;;  %v8647_v25 = vld [vmem:[#allocation8 + $0x10] sm:$0xff] }
 0x408   :  { %2306 = vmatpush1.msra.mxu0 %v8631_v13  ;;  %2377 = vmatpush1.msra.mxu1 %v8634_v63  ;;  %12226 = vst [vmem:[#allocation211_spill] sm:$0xff] %v8643_v59  ;;  %12227 = vst [vmem:[#allocation212_spill] sm:$0xff] %v8647_v25  ;;  %v8662_v63 = vld [vmem:[#allocation6 + $0x1f0] sm:$0xff] }
 0x409   :  { %2307 = vmatprep.subr.mxu0 %v8637_v2  ;;  %2378 = vmatprep.subr.mxu1 %v8640_v22  ;;  %v8653_v2 = vld [vmem:[#allocation6 + $0x1e8] sm:$0xff]  ;;  %v8656_v22 = vld [vmem:[#allocation6 + $0x1f8] sm:$0xff]  ;;  %12231 = vst [vmem:[#allocation216_spill] sm:$0xff] %v8662_v63 }
 0x40a   :  { %2308 = vmatpush1.msra.mxu0 %v8643_v59  ;;  %2341 = vmatprep.mubr.f32.mxu0 %v11702_v12  ;;  %12228 = vst [vmem:[#allocation213_spill] sm:$0xff] %v8653_v2  ;;  %12229 = vst [vmem:[#allocation214_spill] sm:$0xff] %v8656_v22  ;;  %v8659_v59 = vld [vmem:[#allocation6 + $0x1e0] sm:$0xff] }
 0x40b   :  { %2379 = vmatpush1.msra.mxu1 %v8647_v25  ;;  %2412 = vmatprep.mubr.f32.mxu1 %v11702_v12  ;;  %12230 = vst [vmem:[#allocation215_spill] sm:$0xff] %v8659_v59  ;;  %v8665_v25 = vld [vmem:[#allocation6 + $0x1c8] sm:$0xff] }
 0x40c   :  { %2342 = vmatmul.mubr.f32.vlgmr.msra.gmra.mxu0 %v8459_v5  ;;  %2413 = vmatmul.mubr.f32.vlgmr.msra.gmra.mxu1 %v8459_v5  ;;  %12232 = vst [vmem:[#allocation217_spill] sm:$0xff] %v8665_v25  ;;  %v8668_v5 = vld [vmem:[#allocation6 + $0x1d8] sm:$0xff] }
 0x40d   :  { %2419 = vmatprep.subr.mxu0 %v8653_v2  ;;  %2490 = vmatprep.subr.mxu1 %v8656_v22  ;;  %12233 = vst [vmem:[#allocation218_spill] sm:$0xff] %v8668_v5  ;;  %v8671_v2 = vld [vmem:[#allocation6 + $0x1c0] sm:$0xff]  ;;  %v8674_v22 = vld [vmem:[#allocation6 + $0x1d0] sm:$0xff] }
 0x40e   :  { %2420 = vmatpush1.msra.mxu0 %v8659_v59  ;;  %2491 = vmatpush1.msra.mxu1 %v8662_v63  ;;  %v8677_v59 = vld [vmem:[#allocation6 + $0x1a8] sm:$0xff]  ;;  %v8680_v63 = vld [vmem:[#allocation6 + $0x1b8] sm:$0xff] }
 0x40f   :  { %2421 = vmatprep.subr.mxu0 %v8665_v25  ;;  %2492 = vmatprep.subr.mxu1 %v8668_v5  ;;  %v8683_v25 = vld [vmem:[#allocation6 + $0x1a0] sm:$0xff]  ;;  %v8686_v5 = vld [vmem:[#allocation6 + $0x1b0] sm:$0xff] }
 0x410   :  { %2422 = vmatpush1.msra.mxu0 %v8671_v2  ;;  %2493 = vmatpush1.msra.mxu1 %v8674_v22 }
 0x411   :  { %2423 = vmatprep.subr.mxu0 %v8677_v59  ;;  %2494 = vmatprep.subr.mxu1 %v8680_v63 }
 0x412   :  { %2424 = vmatpush1.msra.mxu0 %v8683_v25  ;;  %2495 = vmatpush1.msra.mxu1 %v8686_v5 }
 0x413   :  { %2425 = vmatprep.subr.mxu0 %v7885_v32  ;;  %2496 = vmatprep.subr.mxu1 %v7888_v34  ;;  %v12234_v32 = vld [vmem:[#allocation16_spill] sm:$0xff]  ;;  %v12235_v34 = vld [vmem:[#allocation17_spill] sm:$0xff] }
 0x414   :  { %2426 = vmatpush1.msra.mxu0 %v7891_v35  ;;  %2497 = vmatpush1.msra.mxu1 %v7894_v10  ;;  %v12236_v35 = vld [vmem:[#allocation18_spill] sm:$0xff]  ;;  %v12237_v10 = vld [vmem:[#allocation19_spill] sm:$0xff] }
 0x415   :  { %2427 = vmatprep.subr.mxu0 %v7897_v3  ;;  %2498 = vmatprep.subr.mxu1 %v7900_v7  ;;  %v12238_v3 = vld [vmem:[#allocation20_spill] sm:$0xff]  ;;  %v12239_v7 = vld [vmem:[#allocation21_spill] sm:$0xff] }
 0x416   :  { %2428 = vmatpush1.msra.mxu0 %v7903_v9  ;;  %2499 = vmatpush1.msra.mxu1 %v7906_v62  ;;  %v12240_v9 = vld [vmem:[#allocation22_spill] sm:$0xff]  ;;  %v12241_v62 = vld [vmem:[#allocation23_spill] sm:$0xff] }
 0x417   :  { %2429 = vmatprep.subr.mxu0 %v7909_v0  ;;  %2500 = vmatprep.subr.mxu1 %v7912_v36  ;;  %v12242_v0 = vld [vmem:[#allocation24_spill] sm:$0xff]  ;;  %v12243_v36 = vld [vmem:[#allocation25_spill] sm:$0xff] }
 0x418   :  { %2430 = vmatpush1.msra.mxu0 %v7915_v37  ;;  %2501 = vmatpush1.msra.mxu1 %v7918_v38  ;;  %v12244_v37 = vld [vmem:[#allocation27_spill] sm:$0xff]  ;;  %v12245_v38 = vld [vmem:[#allocation26_spill] sm:$0xff] }
 0x419   :  { %2431 = vmatprep.subr.mxu0 %v7921_v40  ;;  %2502 = vmatprep.subr.mxu1 %v7924_v41  ;;  %v12246_v40 = vld [vmem:[#allocation29_spill] sm:$0xff]  ;;  %v12247_v41 = vld [vmem:[#allocation28_spill] sm:$0xff] }
 0x41a   :  { %2432 = vmatpush1.msra.mxu0 %v7927_v43  ;;  %2503 = vmatpush1.msra.mxu1 %v7930_v44  ;;  %v12248_v43 = vld [vmem:[#allocation31_spill] sm:$0xff]  ;;  %v12249_v44 = vld [vmem:[#allocation30_spill] sm:$0xff] }
 0x41b   :  { %2433 = vmatprep.subr.mxu0 %v7933_v45  ;;  %2504 = vmatprep.subr.mxu1 %v7936_v39  ;;  %v5448_v45 = vld [vmem:[%s10866_s0 + $0x18] sm:$0xff]  ;;  %v12250_v39 = vld [vmem:[#allocation33_spill] sm:$0xff] }
 0x41c   :  { %2434 = vmatpush1.msra.mxu0 %v7939_v46  ;;  %2505 = vmatpush1.msra.mxu1 %v7942_v47  ;;  %v12251_v46 = vld [vmem:[#allocation32_spill] sm:$0xff]  ;;  %v12252_v47 = vld [vmem:[#allocation35_spill] sm:$0xff] }
 0x41d   :  { %2435 = vmatprep.subr.mxu0 %v7945_v48  ;;  %2506 = vmatprep.subr.mxu1 %v7948_v49  ;;  %v12253_v48 = vld [vmem:[#allocation34_spill] sm:$0xff]  ;;  %v12254_v49 = vld [vmem:[#allocation37_spill] sm:$0xff] }
 0x41e   :  { %2436 = vmatpush1.msra.mxu0 %v7951_v50  ;;  %2507 = vmatpush1.msra.mxu1 %v7954_v52  ;;  %v12255_v50 = vld [vmem:[#allocation36_spill] sm:$0xff]  ;;  %v12256_v52 = vld [vmem:[#allocation39_spill] sm:$0xff] }
 0x41f   :  { %2437 = vmatprep.subr.mxu0 %v7957_v53  ;;  %2508 = vmatprep.subr.mxu1 %v7960_v54  ;;  %v12257_v53 = vld [vmem:[#allocation38_spill] sm:$0xff]  ;;  %v12258_v54 = vld [vmem:[#allocation41_spill] sm:$0xff] }
 0x420   :  { %2438 = vmatpush1.msra.mxu0 %v7963_v55  ;;  %2509 = vmatpush1.msra.mxu1 %v7966_v14  ;;  %v12259_v55 = vld [vmem:[#allocation40_spill] sm:$0xff]  ;;  %v12260_v14 = vld [vmem:[#allocation43_spill] sm:$0xff] }
 0x421   :  { %2439 = vmatprep.subr.mxu0 %v7969_v15  ;;  %2510 = vmatprep.subr.mxu1 %v7972_v16  ;;  %v12261_v15 = vld [vmem:[#allocation42_spill] sm:$0xff]  ;;  %v12262_v16 = vld [vmem:[#allocation45_spill] sm:$0xff] }
 0x422   :  { %2440 = vmatpush1.msra.mxu0 %v7975_v17  ;;  %2511 = vmatpush1.msra.mxu1 %v7978_v18  ;;  %v12263_v17 = vld [vmem:[#allocation44_spill] sm:$0xff]  ;;  %v12264_v18 = vld [vmem:[#allocation47_spill] sm:$0xff] }
 0x423   :  { %2441 = vmatprep.subr.mxu0 %v7981_v19  ;;  %2512 = vmatprep.subr.mxu1 %v7984_v20  ;;  %v12265_v19 = vld [vmem:[#allocation46_spill] sm:$0xff]  ;;  %v12266_v20 = vld [vmem:[#allocation49_spill] sm:$0xff] }
 0x424   :  { %2442 = vmatpush1.msra.mxu0 %v12234_v32  ;;  %2513 = vmatpush1.msra.mxu1 %v12235_v34  ;;  %v12267_v32 = vld [vmem:[#allocation48_spill] sm:$0xff]  ;;  %v12268_v34 = vld [vmem:[#allocation51_spill] sm:$0xff] }
 0x425   :  { %2443 = vmatprep.subr.mxu0 %v12236_v35  ;;  %2514 = vmatprep.subr.mxu1 %v12237_v10  ;;  %v12269_v35 = vld [vmem:[#allocation50_spill] sm:$0xff]  ;;  %v12270_v10 = vld [vmem:[#allocation53_spill] sm:$0xff] }
 0x426   :  { %2444 = vmatpush1.msra.mxu0 %v12238_v3  ;;  %2515 = vmatpush1.msra.mxu1 %v12239_v7  ;;  %v12271_v3 = vld [vmem:[#allocation52_spill] sm:$0xff]  ;;  %v12272_v7 = vld [vmem:[#allocation55_spill] sm:$0xff] }
 0x427   :  { %2445 = vmatprep.subr.mxu0 %v12240_v9  ;;  %2516 = vmatprep.subr.mxu1 %v12241_v62  ;;  %v12273_v9 = vld [vmem:[#allocation54_spill] sm:$0xff]  ;;  %v12274_v62 = vld [vmem:[#allocation57_spill] sm:$0xff] }
 0x428   :  { %2446 = vmatpush1.msra.mxu0 %v12242_v0  ;;  %2517 = vmatpush1.msra.mxu1 %v12243_v36  ;;  %v12275_v0 = vld [vmem:[#allocation56_spill] sm:$0xff]  ;;  %v12276_v36 = vld [vmem:[#allocation59_spill] sm:$0xff] }
 0x429   :  { %2447 = vmatprep.subr.mxu0 %v12244_v37  ;;  %2518 = vmatprep.subr.mxu1 %v12245_v38  ;;  %v12277_v37 = vld [vmem:[#allocation58_spill] sm:$0xff]  ;;  %v12278_v38 = vld [vmem:[#allocation61_spill] sm:$0xff] }
 0x42a   :  { %2448 = vmatpush1.msra.mxu0 %v12246_v40  ;;  %2519 = vmatpush1.msra.mxu1 %v12247_v41  ;;  %v12279_v40 = vld [vmem:[#allocation60_spill] sm:$0xff]  ;;  %v12280_v41 = vld [vmem:[#allocation63_spill] sm:$0xff] }
 0x42b   :  { %2449 = vmatprep.subr.mxu0 %v12248_v43  ;;  %2520 = vmatprep.subr.mxu1 %v12249_v44  ;;  %v12281_v43 = vld [vmem:[#allocation62_spill] sm:$0xff]  ;;  %v12282_v44 = vld [vmem:[#allocation65_spill] sm:$0xff] }
 0x42c   :  { %2450 = vmatpush1.msra.mxu0 %v12250_v39  ;;  %2483 = vmatprep.mubr.f32.mxu0 %v11702_v12  ;;  %v12284_v39 = vld [vmem:[#allocation67_spill] sm:$0xff] }
 0x42d   :  { %2521 = vmatpush1.msra.mxu1 %v12251_v46  ;;  %2554 = vmatprep.mubr.f32.mxu1 %v11702_v12  ;;  %v12285_v46 = vld [vmem:[#allocation66_spill] sm:$0xff] }
 0x42e   :  { %2484 = vmatmul.mubr.f32.vlgmr.msra.gmra.mxu0 %v5448_v45  ;;  %2555 = vmatmul.mubr.f32.vlgmr.msra.gmra.mxu1 %v5448_v45  ;;  %v12283_v45 = vld [vmem:[#allocation64_spill] sm:$0xff] }
 0x42f   :  { %2589 = vmatprep.subr.mxu0 %v12252_v47  ;;  %2660 = vmatprep.subr.mxu1 %v12253_v48  ;;  %v12286_v47 = vld [vmem:[#allocation69_spill] sm:$0xff]  ;;  %v12287_v48 = vld [vmem:[#allocation68_spill] sm:$0xff] }
 0x430   :  { %2590 = vmatpush1.msra.mxu0 %v12254_v49  ;;  %2661 = vmatpush1.msra.mxu1 %v12255_v50  ;;  %v12288_v49 = vld [vmem:[#allocation71_spill] sm:$0xff]  ;;  %v12289_v50 = vld [vmem:[#allocation70_spill] sm:$0xff] }
 0x431   :  { %2591 = vmatprep.subr.mxu0 %v12256_v52  ;;  %2662 = vmatprep.subr.mxu1 %v12257_v53  ;;  %v12290_v52 = vld [vmem:[#allocation73_spill] sm:$0xff]  ;;  %v12291_v53 = vld [vmem:[#allocation72_spill] sm:$0xff] }
 0x432   :  { %2592 = vmatpush1.msra.mxu0 %v12258_v54  ;;  %2663 = vmatpush1.msra.mxu1 %v12259_v55  ;;  %v12292_v54 = vld [vmem:[#allocation75_spill] sm:$0xff]  ;;  %v12293_v55 = vld [vmem:[#allocation74_spill] sm:$0xff] }
 0x433   :  { %2593 = vmatprep.subr.mxu0 %v12260_v14  ;;  %2664 = vmatprep.subr.mxu1 %v12261_v15  ;;  %v12294_v14 = vld [vmem:[#allocation77_spill] sm:$0xff]  ;;  %v12295_v15 = vld [vmem:[#allocation76_spill] sm:$0xff] }
 0x434   :  { %2594 = vmatpush1.msra.mxu0 %v12262_v16  ;;  %2665 = vmatpush1.msra.mxu1 %v12263_v17  ;;  %v12296_v16 = vld [vmem:[#allocation79_spill] sm:$0xff]  ;;  %v12297_v17 = vld [vmem:[#allocation78_spill] sm:$0xff] }
 0x435   :  { %2595 = vmatprep.subr.mxu0 %v12264_v18  ;;  %2666 = vmatprep.subr.mxu1 %v12265_v19  ;;  %v12298_v18 = vld [vmem:[#allocation81_spill] sm:$0xff]  ;;  %v12299_v19 = vld [vmem:[#allocation80_spill] sm:$0xff] }
 0x436   :  { %2596 = vmatpush1.msra.mxu0 %v12266_v20  ;;  %2667 = vmatpush1.msra.mxu1 %v12267_v32  ;;  %v12300_v20 = vld [vmem:[#allocation83_spill] sm:$0xff]  ;;  %v12301_v32 = vld [vmem:[#allocation82_spill] sm:$0xff] }
 0x437   :  { %2597 = vmatprep.subr.mxu0 %v12268_v34  ;;  %2668 = vmatprep.subr.mxu1 %v12269_v35  ;;  %v12302_v34 = vld [vmem:[#allocation85_spill] sm:$0xff]  ;;  %v12303_v35 = vld [vmem:[#allocation84_spill] sm:$0xff] }
 0x438   :  { %2598 = vmatpush1.msra.mxu0 %v12270_v10  ;;  %2669 = vmatpush1.msra.mxu1 %v12271_v3  ;;  %v12304_v10 = vld [vmem:[#allocation87_spill] sm:$0xff]  ;;  %v12305_v3 = vld [vmem:[#allocation86_spill] sm:$0xff] }
 0x439   :  { %2599 = vmatprep.subr.mxu0 %v12272_v7  ;;  %2670 = vmatprep.subr.mxu1 %v12273_v9  ;;  %v12306_v7 = vld [vmem:[#allocation88_spill] sm:$0xff]  ;;  %v12307_v9 = vld [vmem:[#allocation89_spill] sm:$0xff] }
 0x43a   :  { %2600 = vmatpush1.msra.mxu0 %v12274_v62  ;;  %2671 = vmatpush1.msra.mxu1 %v12275_v0  ;;  %v12308_v62 = vld [vmem:[#allocation90_spill] sm:$0xff]  ;;  %v12309_v0 = vld [vmem:[#allocation91_spill] sm:$0xff] }
 0x43b   :  { %2601 = vmatprep.subr.mxu0 %v12276_v36  ;;  %2672 = vmatprep.subr.mxu1 %v12277_v37  ;;  %v12310_v36 = vld [vmem:[#allocation92_spill] sm:$0xff]  ;;  %v12311_v37 = vld [vmem:[#allocation93_spill] sm:$0xff] }
 0x43c   :  { %2602 = vmatpush1.msra.mxu0 %v12278_v38  ;;  %2673 = vmatpush1.msra.mxu1 %v12279_v40  ;;  %v12312_v38 = vld [vmem:[#allocation94_spill] sm:$0xff]  ;;  %v12313_v40 = vld [vmem:[#allocation95_spill] sm:$0xff] }
 0x43d   :  { %2603 = vmatprep.subr.mxu0 %v12280_v41  ;;  %2674 = vmatprep.subr.mxu1 %v12281_v43  ;;  %v12314_v41 = vld [vmem:[#allocation96_spill] sm:$0xff]  ;;  %v12315_v43 = vld [vmem:[#allocation97_spill] sm:$0xff] }
 0x43e   :  { %2604 = vmatpush1.msra.mxu0 %v12282_v44  ;;  %2675 = vmatpush1.msra.mxu1 %v12283_v45  ;;  %v12316_v44 = vld [vmem:[#allocation98_spill] sm:$0xff]  ;;  %v12317_v45 = vld [vmem:[#allocation99_spill] sm:$0xff] }
 0x43f   :  { %2605 = vmatprep.subr.mxu0 %v12284_v39  ;;  %2676 = vmatprep.subr.mxu1 %v12285_v46 }
 0x440   :  { %2606 = vmatpush1.msra.mxu0 %v12286_v47  ;;  %2677 = vmatpush1.msra.mxu1 %v12287_v48 }
 0x441   :  { %2607 = vmatprep.subr.mxu0 %v12288_v49  ;;  %2678 = vmatprep.subr.mxu1 %v12289_v50 }
 0x442   :  { %2608 = vmatpush1.msra.mxu0 %v12290_v52  ;;  %2679 = vmatpush1.msra.mxu1 %v12291_v53 }
 0x443   :  { %2609 = vmatprep.subr.mxu0 %v12292_v54  ;;  %2680 = vmatprep.subr.mxu1 %v12293_v55 }
 0x444   :  { %2610 = vmatpush1.msra.mxu0 %v12294_v14  ;;  %2681 = vmatpush1.msra.mxu1 %v12295_v15 }
 0x445   :  { %2611 = vmatprep.subr.mxu0 %v12296_v16  ;;  %2682 = vmatprep.subr.mxu1 %v12297_v17 }
 0x446   :  { %2612 = vmatpush1.msra.mxu0 %v12298_v18  ;;  %2683 = vmatpush1.msra.mxu1 %v12299_v19 }
 0x447   :  { %2613 = vmatprep.subr.mxu0 %v12300_v20  ;;  %2684 = vmatprep.subr.mxu1 %v12301_v32 }
 0x448   :  { %2614 = vmatpush1.msra.mxu0 %v12302_v34  ;;  %2685 = vmatpush1.msra.mxu1 %v12303_v35 }
 0x449   :  { %2615 = vmatprep.subr.mxu0 %v12304_v10  ;;  %2686 = vmatprep.subr.mxu1 %v12305_v3 }
 0x44a   :  { %2616 = vmatpush1.msra.mxu0 %v12306_v7  ;;  %2687 = vmatpush1.msra.mxu1 %v12307_v9 }
 0x44b   :  { %2617 = vmatprep.subr.mxu0 %v12308_v62  ;;  %2688 = vmatprep.subr.mxu1 %v12309_v0 }
 0x44c   :  { %2618 = vmatpush1.msra.mxu0 %v12310_v36  ;;  %2689 = vmatpush1.msra.mxu1 %v12311_v37 }
 0x44d   :  { %2619 = vmatprep.subr.mxu0 %v12312_v38  ;;  %2690 = vmatprep.subr.mxu1 %v12313_v40 }
 0x44e   :  { %2620 = vmatpush1.msra.mxu0 %v12314_v41  ;;  %2653 = vmatprep.mubr.f32.mxu0 %v11702_v12 }
 0x44f   :  { %2691 = vmatpush1.msra.mxu1 %v12315_v43  ;;  %2724 = vmatprep.mubr.f32.mxu1 %v11702_v12 }
 0x450   :  { %2731 = vmatprep.subr.mxu0 %v12316_v44  ;;  %2802 = vmatprep.subr.mxu1 %v12317_v45 }
 0x468   :  { %v2027_v39 = vpop.f32.mrf.mxu0  ;;  %v2098_v48 = vpop.f32.mrf.mxu1 }
 0x46a   :  { %v2029_v46 = vpop.f32.mrf.mxu0  ;;  %v2100_v54 = vpop.f32.mrf.mxu1 }
 0x4ab   :  { %v2169_v47 = vpop.f32.mrf.mxu0  ;;  %v2240_v15 = vpop.f32.mrf.mxu1 }
 0x4ac   :  { %v2170_v49 = vadd.f32 %v2169_v47, %v2027_v39  ;;  %v2241_v17 = vadd.f32 %v2240_v15, %v2098_v48  ;;  %v12318_v39 = vld [vmem:[#allocation100_spill] sm:$0xff]  ;;  %v12320_v47 = vld [vmem:[#allocation102_spill] sm:$0xff]  ;;  %v12321_v48 = vld [vmem:[#allocation103_spill] sm:$0xff] }
 0x4ad   :  { %v2171_v50 = vpop.f32.mrf.mxu0  ;;  %v2242_v18 = vpop.f32.mrf.mxu1  ;;  %v12330_v15 = vld [vmem:[#allocation111_spill] sm:$0xff] }
 0x4ae   :  { %v2245_v52 = vadd.f32 %v2170_v49, %v7705_v51  ;;  %v2172_v53 = vadd.f32 %v2171_v50, %v2029_v46  ;;  %v2247_v19 = vadd.f32 %v2241_v17, %v7715_v23  ;;  %v2243_v20 = vadd.f32 %v2242_v18, %v2100_v54  ;;  %v12319_v46 = vld [vmem:[#allocation101_spill] sm:$0xff]  ;;  %v12322_v49 = vld [vmem:[#allocation104_spill] sm:$0xff]  ;;  %v12328_v54 = vld [vmem:[#allocation110_spill] sm:$0xff] }
 0x4af   :  { %v12326_v50 = vld [vmem:[#allocation108_spill] sm:$0xff] }
 0x4b0   :  { %v5444_v55 = vmul.f32 -1.442695, %v2245_v52  ;;  %v2246_v14 = vadd.f32 %v2172_v53, %v7709_v56  ;;  %v5446_v32 = vmul.f32 -1.442695, %v2247_v19  ;;  %v2248_v35 = vadd.f32 %v2243_v20, %v7720_v28  ;;  %v12332_v19 = vld [vmem:[#allocation113_spill] sm:$0xff] }
 0x4b2   :  { %5575 = vpow2.f32 %v5444_v55  ;;  %v5445_v16 = vmul.f32 -1.442695, %v2246_v14  ;;  %v12329_v55 = vld [vmem:[#allocation155_spill] sm:$0xff] }
 0x4b4   :  { %5577 = vpow2.f32 %v5445_v16  ;;  %v12331_v16 = vld [vmem:[#allocation112_spill] sm:$0xff] }
 0x4b5   :  { %5579 = vpow2.f32 %v5446_v32 }
 0x4bf   :  { %v5576_v34 = vpop.eup %5575 }
 0x4c0   :  { %v2258_v10 = vadd.f32 1.0, %v5576_v34 }
 0x4c1   :  { %v5578_v3 = vpop.eup %5577 }
 0x4c2   :  { %5581 = vrcp.f32 %v2258_v10  ;;  %v2259_v7 = vadd.f32 1.0, %v5578_v3  ;;  %v5580_v9 = vpop.eup %5579  ;;  %v12334_v10 = vld [vmem:[#allocation114_spill] sm:$0xff]  ;;  %v12335_v3 = vld [vmem:[#allocation115_spill] sm:$0xff] }
 0x4c3   :  { %5583 = vtanh.f32 %v2248_v35  ;;  %v2260_v37 = vadd.f32 1.0, %v5580_v9  ;;  %v12333_v35 = vld [vmem:[#allocation156_spill] sm:$0xff] }
 0x4c4   :  { %5585 = vrcp.f32 %v2259_v7  ;;  %v12336_v7 = vld [vmem:[#allocation116_spill] sm:$0xff] }
 0x4c5   :  { %5587 = vrcp.f32 %v2260_v37  ;;  %v12341_v37 = vld [vmem:[#allocation121_spill] sm:$0xff] }
 0x4cc   :  { %v2414_v52 = vpop.f32.mrf.mxu1 }
 0x4ce   :  { %v2416_v20 = vpop.f32.mrf.mxu1 }
 0x4cf   :  { %v5582_v62 = vpop.eup %5581 }
 0x4d0   :  { %v5584_v0 = vpop.eup %5583 }
 0x4d1   :  { %v5586_v36 = vpop.eup %5585  ;;  %v2269_v40 = vmul.f32 %v5584_v0, %v5582_v62  ;;  %v12339_v0 = vld [vmem:[#allocation119_spill] sm:$0xff] }
 0x4d2   :  { %v2268_v38 = vmul.f32 %v5586_v36, %v8251_v27  ;;  %v5588_v43 = vpop.eup %5587  ;;  %v2343_v27 = vpop.f32.mrf.mxu0  ;;  %v12340_v36 = vld [vmem:[#allocation120_spill] sm:$0xff] }
 0x4d4   :  { %v8819_v41 = vadd.f32 %v2269_v40, %v2268_v38  ;;  %v12342_v40 = vld [vmem:[#allocation122_spill] sm:$0xff] }
 0x4d6   :  { %5589 = vtanh.f32 %v8819_v41 }
 0x4e3   :  { %v5590_v44 = vpop.eup %5589 }
 0x4e4   :  { %v2272_v45 = vmul.f32 %v5590_v44, %v5588_v43  ;;  %v12343_v43 = vld [vmem:[#allocation123_spill] sm:$0xff]  ;;  %v12344_v44 = vld [vmem:[#allocation124_spill] sm:$0xff] }
 0x4e6   :  { %5447 = vst [vmem:[%s10873_s7 + $0x10] sm:$0xff] %v2272_v45  ;;  %2654 = vmatmul.mubr.f32.vlgmr.msra.gmra.mxu0 %v2272_v45  ;;  %2725 = vmatmul.mubr.f32.vlgmr.msra.gmra.mxu1 %v2272_v45  ;;  %v12345_v45 = vld [vmem:[#allocation125_spill] sm:$0xff] }
 0x4e7   :  { %2732 = vmatpush1.msra.mxu0 %v8257_v57  ;;  %2803 = vmatpush1.msra.mxu1 %v8260_v42  ;;  %v2345_v57 = vpop.f32.mrf.mxu0  ;;  %v12323_v42 = vld [vmem:[#allocation105_spill] sm:$0xff] }
 0x4e8   :  { %2733 = vmatprep.subr.mxu0 %v8263_v11  ;;  %2804 = vmatprep.subr.mxu1 %v8266_v60  ;;  %v12324_v11 = vld [vmem:[#allocation106_spill] sm:$0xff]  ;;  %v12325_v60 = vld [vmem:[#allocation107_spill] sm:$0xff] }
 0x4e9   :  { %2734 = vmatpush1.msra.mxu0 %v8269_v4  ;;  %2805 = vmatpush1.msra.mxu1 %v8272_v61  ;;  %v12327_v61 = vld [vmem:[#allocation109_spill] sm:$0xff] }
 0x4ea   :  { %2735 = vmatprep.subr.mxu0 %v12318_v39  ;;  %2806 = vmatprep.subr.mxu1 %v12319_v46  ;;  %v12347_v39 = vld [vmem:[#allocation127_spill] sm:$0xff] }
 0x4eb   :  { %2736 = vmatpush1.msra.mxu0 %v12320_v47  ;;  %2807 = vmatpush1.msra.mxu1 %v12321_v48  ;;  %v12349_v47 = vld [vmem:[#allocation129_spill] sm:$0xff] }
 0x4ec   :  { %2737 = vmatprep.subr.mxu0 %v12322_v49  ;;  %2808 = vmatprep.subr.mxu1 %v12323_v42  ;;  %v12350_v48 = vld [vmem:[#allocation157_spill] sm:$0xff]  ;;  %v12351_v49 = vld [vmem:[#allocation130_spill] sm:$0xff]  ;;  %v12352_v42 = vld [vmem:[#allocation131_spill] sm:$0xff] }
 0x4ed   :  { %2738 = vmatpush1.msra.mxu0 %v12324_v11  ;;  %2809 = vmatpush1.msra.mxu1 %v12325_v60  ;;  %v12353_v11 = vld [vmem:[#allocation132_spill] sm:$0xff]  ;;  %v12354_v60 = vld [vmem:[#allocation133_spill] sm:$0xff] }
 0x4ee   :  { %v2485_v4 = vpop.f32.mrf.mxu0  ;;  %2739 = vmatprep.subr.mxu0 %v12326_v50  ;;  %2810 = vmatprep.subr.mxu1 %v12327_v61  ;;  %v2556_v9 = vpop.f32.mrf.mxu1  ;;  %v12355_v50 = vld [vmem:[#allocation134_spill] sm:$0xff]  ;;  %v12356_v61 = vld [vmem:[#allocation135_spill] sm:$0xff] }
 0x4ef   :  { %v2486_v53 = vadd.f32 %v2485_v4, %v2343_v27  ;;  %2740 = vmatpush1.msra.mxu0 %v12328_v54  ;;  %2811 = vmatpush1.msra.mxu1 %v12329_v55  ;;  %v2557_v38 = vadd.f32 %v2556_v9, %v2414_v52  ;;  %v12346_v27 = vld [vmem:[#allocation126_spill] sm:$0xff]  ;;  %v12357_v52 = vld [vmem:[#allocation136_spill] sm:$0xff]  ;;  %v12369_v9 = vld [vmem:[#allocation147_spill] sm:$0xff] }
 0x4f0   :  { %v2487_v14 = vpop.f32.mrf.mxu0  ;;  %2741 = vmatprep.subr.mxu0 %v12330_v15  ;;  %2812 = vmatprep.subr.mxu1 %v12331_v16  ;;  %v2558_v46 = vpop.f32.mrf.mxu1  ;;  %v12359_v55 = vld [vmem:[#allocation138_spill] sm:$0xff]  ;;  %v12361_v15 = vld [vmem:[#allocation140_spill] sm:$0xff]  ;;  %v12362_v16 = vld [vmem:[#allocation141_spill] sm:$0xff] }
 0x4f1   :  { %v2561_v17 = vadd.f32 %v2486_v53, %v11929_v33  ;;  %v2488_v18 = vadd.f32 %v2487_v14, %v2345_v57  ;;  %2742 = vmatpush1.msra.mxu0 %v8318_v21  ;;  %2813 = vmatpush1.msra.mxu1 %v8321_v30  ;;  %v12337_v21 = vld [vmem:[#allocation117_spill] sm:$0xff]  ;;  %v12338_v30 = vld [vmem:[#allocation118_spill] sm:$0xff]  ;;  %v2563_v57 = vadd.f32 %v2557_v38, %v12350_v48  ;;  %v12360_v14 = vld [vmem:[#allocation139_spill] sm:$0xff] }
 0x4f2   :  { %2743 = vmatprep.subr.mxu0 %v12332_v19  ;;  %2814 = vmatprep.subr.mxu1 %v12333_v35  ;;  %v2559_v4 = vadd.f32 %v2558_v46, %v2416_v20  ;;  %v12358_v53 = vld [vmem:[#allocation137_spill] sm:$0xff]  ;;  %v12364_v20 = vld [vmem:[#allocation142_spill] sm:$0xff]  ;;  %v12366_v35 = vld [vmem:[#allocation144_spill] sm:$0xff] }
 0x4f3   :  { %v5449_v32 = vmul.f32 -1.442695, %v2561_v17  ;;  %v2562_v34 = vadd.f32 %v2488_v18, %v11933_v6  ;;  %2744 = vmatpush1.msra.mxu0 %v12334_v10  ;;  %2815 = vmatpush1.msra.mxu1 %v12335_v3  ;;  %v5451_v54 = vmul.f32 -1.442695, %v2563_v57  ;;  %v12363_v18 = vld [vmem:[#allocation158_spill] sm:$0xff]  ;;  %v12367_v10 = vld [vmem:[#allocation145_spill] sm:$0xff] }
 0x4f4   :  { %2745 = vmatprep.subr.mxu0 %v12336_v7  ;;  %2816 = vmatprep.subr.mxu1 %v12337_v21  ;;  %v2564_v19 = vadd.f32 %v2559_v4, %v12363_v18  ;;  %v12368_v7 = vld [vmem:[#allocation146_spill] sm:$0xff]  ;;  %v12370_v21 = vld [vmem:[#allocation148_spill] sm:$0xff] }
 0x4f5   :  { %5591 = vpow2.f32 %v5449_v32  ;;  %v5450_v62 = vmul.f32 -1.442695, %v2562_v34  ;;  %2746 = vmatpush1.msra.mxu0 %v12338_v30  ;;  %2817 = vmatpush1.msra.mxu1 %v12339_v0  ;;  %v12365_v32 = vld [vmem:[#allocation143_spill] sm:$0xff]  ;;  %v12371_v30 = vld [vmem:[#allocation149_spill] sm:$0xff]  ;;  %v12372_v0 = vld [vmem:[#allocation150_spill] sm:$0xff] }
 0x4f6   :  { %2747 = vmatprep.subr.mxu0 %v8349_v31  ;;  %2818 = vmatprep.subr.mxu1 %v12340_v36  ;;  %v12348_v31 = vld [vmem:[#allocation128_spill] sm:$0xff]  ;;  %v12373_v36 = vld [vmem:[#allocation151_spill] sm:$0xff]  ;;  %v12380_v4 = vld [vmem:[#allocation162_spill] sm:$0xff] }
 0x4f7   :  { %5593 = vpow2.f32 %v5450_v62  ;;  %2748 = vmatpush1.msra.mxu0 %v12341_v37  ;;  %2819 = vmatpush1.msra.mxu1 %v12342_v40  ;;  %v12374_v37 = vld [vmem:[#allocation152_spill] sm:$0xff] }
 0x4f8   :  { %2749 = vmatprep.subr.mxu0 %v12343_v43  ;;  %2820 = vmatprep.subr.mxu1 %v12344_v44  ;;  %5595 = vpow2.f32 %v5451_v54  ;;  %v12390_v54 = vld [vmem:[#allocation172_spill] sm:$0xff] }
 0x4f9   :  { %2750 = vmatpush1.msra.mxu0 %v12345_v45  ;;  %2821 = vmatpush1.msra.mxu1 %v12346_v27 }
 0x4fa   :  { %2751 = vmatprep.subr.mxu0 %v12347_v39  ;;  %2822 = vmatprep.subr.mxu1 %v12348_v31 }
 0x4fb   :  { %2752 = vmatpush1.msra.mxu0 %v12349_v47  ;;  %2823 = vmatpush1.msra.mxu1 %v12351_v49  ;;  %v12376_v49 = vld [vmem:[#allocation154_spill] sm:$0xff] }
 0x4fc   :  { %2753 = vmatprep.subr.mxu0 %v12352_v42  ;;  %2824 = vmatprep.subr.mxu1 %v12353_v11  ;;  %v12377_v42 = vld [vmem:[#allocation159_spill] sm:$0xff]  ;;  %v12378_v11 = vld [vmem:[#allocation160_spill] sm:$0xff] }
 0x4fd   :  { %2754 = vmatpush1.msra.mxu0 %v12354_v60  ;;  %2825 = vmatpush1.msra.mxu1 %v12355_v50  ;;  %v12379_v60 = vld [vmem:[#allocation161_spill] sm:$0xff]  ;;  %v12386_v50 = vld [vmem:[#allocation168_spill] sm:$0xff] }
 0x4fe   :  { %2755 = vmatprep.subr.mxu0 %v12356_v61  ;;  %2826 = vmatprep.subr.mxu1 %v12357_v52  ;;  %v12387_v61 = vld [vmem:[#allocation169_spill] sm:$0xff]  ;;  %v12388_v52 = vld [vmem:[#allocation170_spill] sm:$0xff] }
 0x4ff   :  { %2756 = vmatpush1.msra.mxu0 %v12358_v53  ;;  %2827 = vmatpush1.msra.mxu1 %v12359_v55  ;;  %v12389_v53 = vld [vmem:[#allocation171_spill] sm:$0xff]  ;;  %v12391_v55 = vld [vmem:[#allocation173_spill] sm:$0xff] }
 0x500   :  { %2757 = vmatprep.subr.mxu0 %v12360_v14  ;;  %2828 = vmatprep.subr.mxu1 %v12361_v15  ;;  %v12392_v14 = vld [vmem:[#allocation174_spill] sm:$0xff]  ;;  %v12393_v15 = vld [vmem:[#allocation175_spill] sm:$0xff] }
 0x501   :  { %2758 = vmatpush1.msra.mxu0 %v12362_v16  ;;  %2829 = vmatpush1.msra.mxu1 %v12364_v20  ;;  %v12394_v16 = vld [vmem:[#allocation176_spill] sm:$0xff]  ;;  %v12397_v20 = vld [vmem:[#allocation179_spill] sm:$0xff] }
 0x502   :  { %v5592_v17 = vpop.eup %5591  ;;  %2759 = vmatprep.subr.mxu0 %v12365_v32  ;;  %2830 = vmatprep.subr.mxu1 %v12366_v35  ;;  %v12398_v32 = vld [vmem:[#allocation180_spill] sm:$0xff]  ;;  %v12400_v35 = vld [vmem:[#allocation182_spill] sm:$0xff] }
 0x503   :  { %v2574_v34 = vadd.f32 1.0, %v5592_v17  ;;  %2760 = vmatpush1.msra.mxu0 %v12367_v10  ;;  %2831 = vmatpush1.msra.mxu1 %v12368_v7  ;;  %v12395_v17 = vld [vmem:[#allocation177_spill] sm:$0xff]  ;;  %v12401_v10 = vld [vmem:[#allocation183_spill] sm:$0xff] }
 0x504   :  { %v5594_v3 = vpop.eup %5593  ;;  %2761 = vmatprep.subr.mxu0 %v12369_v9  ;;  %2832 = vmatprep.subr.mxu1 %v12370_v21  ;;  %v12403_v7 = vld [vmem:[#allocation185_spill] sm:$0xff]  ;;  %v12404_v9 = vld [vmem:[#allocation186_spill] sm:$0xff]  ;;  %v12406_v21 = vld [vmem:[#allocation188_spill] sm:$0xff] }
 0x505   :  { %5597 = vrcp.f32 %v2574_v34  ;;  %v2575_v62 = vadd.f32 1.0, %v5594_v3  ;;  %2762 = vmatpush1.msra.mxu0 %v12371_v30  ;;  %2833 = vmatpush1.msra.mxu1 %v12372_v0  ;;  %v5596_v38 = vpop.eup %5595  ;;  %v12399_v34 = vld [vmem:[#allocation181_spill] sm:$0xff]  ;;  %v12402_v3 = vld [vmem:[#allocation184_spill] sm:$0xff]  ;;  %v12408_v0 = vld [vmem:[#allocation190_spill] sm:$0xff] }
 0x506   :  { %5599 = vtanh.f32 %v2564_v19  ;;  %2795 = vmatprep.mubr.f32.mxu0 %v11702_v12  ;;  %2866 = vmatprep.mubr.f32.mxu1 %v11702_v12  ;;  %v2576_v45 = vadd.f32 1.0, %v5596_v38  ;;  %v12396_v19 = vld [vmem:[#allocation178_spill] sm:$0xff]  ;;  %v12407_v30 = vld [vmem:[#allocation189_spill] sm:$0xff] }
 0x507   :  { %5601 = vrcp.f32 %v2575_v62  ;;  %2905 = vmatprep.subr.mxu0 %v12373_v36  ;;  %2976 = vmatprep.subr.mxu1 %v12374_v37  ;;  %v12405_v62 = vld [vmem:[#allocation187_spill] sm:$0xff]  ;;  %v12410_v37 = vld [vmem:[#allocation192_spill] sm:$0xff]  ;;  %v12411_v38 = vld [vmem:[#allocation193_spill] sm:$0xff] }
 0x508   :  { %5603 = vrcp.f32 %v2576_v45  ;;  %v12409_v36 = vld [vmem:[#allocation191_spill] sm:$0xff]  ;;  %v12415_v45 = vld [vmem:[#allocation197_spill] sm:$0xff] }
 0x512   :  { %v5598_v40 = vpop.eup %5597 }
 0x513   :  { %v5600_v43 = vpop.eup %5599 }
 0x514   :  { %v5602_v44 = vpop.eup %5601  ;;  %v2585_v39 = vmul.f32 %v5600_v43, %v5598_v40  ;;  %v12412_v40 = vld [vmem:[#allocation194_spill] sm:$0xff]  ;;  %v12413_v43 = vld [vmem:[#allocation195_spill] sm:$0xff] }
 0x515   :  { %v2584_v27 = vmul.f32 %v5602_v44, %v8456_v1  ;;  %v5604_v31 = vpop.eup %5603  ;;  %v12375_v1 = vld [vmem:[#allocation153_spill] sm:$0xff]  ;;  %v12414_v44 = vld [vmem:[#allocation196_spill] sm:$0xff] }
 0x517   :  { %v8896_v46 = vadd.f32 %v2585_v39, %v2584_v27  ;;  %v12416_v27 = vld [vmem:[#allocation198_spill] sm:$0xff]  ;;  %v12417_v39 = vld [vmem:[#allocation199_spill] sm:$0xff] }
 0x519   :  { %5605 = vtanh.f32 %v8896_v46 }
 0x526   :  { %v5606_v47 = vpop.eup %5605 }
 0x527   :  { %v8899_v57 = vmul.f32 %v5606_v47, %v5604_v31  ;;  %v12418_v31 = vld [vmem:[#allocation200_spill] sm:$0xff]  ;;  %v12419_v47 = vld [vmem:[#allocation201_spill] sm:$0xff] }
 0x529   :  { %2796 = vmatmul.mubr.f32.vlgmr.msra.gmra.mxu0 %v8899_v57  ;;  %2867 = vmatmul.mubr.f32.vlgmr.msra.gmra.mxu1 %v8899_v57 }
 0x52a   :  { %2906 = vmatpush1.msra.mxu0 %v8463_v58  ;;  %2977 = vmatpush1.msra.mxu1 %v8466_v26  ;;  %v12381_v58 = vld [vmem:[#allocation163_spill] sm:$0xff]  ;;  %v12382_v26 = vld [vmem:[#allocation164_spill] sm:$0xff] }
 0x52b   :  { %2907 = vmatprep.subr.mxu0 %v8469_v29  ;;  %2978 = vmatprep.subr.mxu1 %v8472_v24  ;;  %v12383_v29 = vld [vmem:[#allocation165_spill] sm:$0xff]  ;;  %v12384_v24 = vld [vmem:[#allocation166_spill] sm:$0xff] }
 0x52c   :  { %2908 = vmatpush1.msra.mxu0 %v8475_v8  ;;  %2979 = vmatpush1.msra.mxu1 %v12375_v1  ;;  %v12385_v8 = vld [vmem:[#allocation167_spill] sm:$0xff]  ;;  %v12420_v1 = vld [vmem:[#allocation202_spill] sm:$0xff] }
 0x52d   :  { %2909 = vmatprep.subr.mxu0 %v12376_v49  ;;  %2980 = vmatprep.subr.mxu1 %v12377_v42  ;;  %v12421_v49 = vld [vmem:[#allocation203_spill] sm:$0xff]  ;;  %v12422_v42 = vld [vmem:[#allocation204_spill] sm:$0xff] }
 0x52e   :  { %2910 = vmatpush1.msra.mxu0 %v12378_v11  ;;  %2981 = vmatpush1.msra.mxu1 %v12379_v60  ;;  %v12423_v11 = vld [vmem:[#allocation205_spill] sm:$0xff]  ;;  %v12424_v60 = vld [vmem:[#allocation206_spill] sm:$0xff] }
 0x52f   :  { %2911 = vmatprep.subr.mxu0 %v12380_v4  ;;  %2982 = vmatprep.subr.mxu1 %v12381_v58  ;;  %v12425_v4 = vld [vmem:[#allocation207_spill] sm:$0xff]  ;;  %v12426_v58 = vld [vmem:[#allocation208_spill] sm:$0xff] }
 0x530   :  { %2912 = vmatpush1.msra.mxu0 %v12382_v26  ;;  %2983 = vmatpush1.msra.mxu1 %v12383_v29  ;;  %v12427_v26 = vld [vmem:[#allocation209_spill] sm:$0xff]  ;;  %v12428_v29 = vld [vmem:[#allocation210_spill] sm:$0xff] }
 0x531   :  { %2913 = vmatprep.subr.mxu0 %v12384_v24  ;;  %2984 = vmatprep.subr.mxu1 %v12385_v8  ;;  %v12429_v24 = vld [vmem:[#allocation211_spill] sm:$0xff]  ;;  %v12430_v8 = vld [vmem:[#allocation212_spill] sm:$0xff] }
 0x532   :  { %2914 = vmatpush1.msra.mxu0 %v12386_v50  ;;  %2985 = vmatpush1.msra.mxu1 %v12387_v61  ;;  %v12431_v50 = vld [vmem:[#allocation213_spill] sm:$0xff]  ;;  %v12433_v61 = vld [vmem:[#allocation215_spill] sm:$0xff] }
 0x533   :  { %2915 = vmatprep.subr.mxu0 %v12388_v52  ;;  %2986 = vmatprep.subr.mxu1 %v12389_v53  ;;  %v12434_v52 = vld [vmem:[#allocation216_spill] sm:$0xff]  ;;  %v12435_v53 = vld [vmem:[#allocation217_spill] sm:$0xff] }
 0x534   :  { %2916 = vmatpush1.msra.mxu0 %v12390_v54  ;;  %2987 = vmatpush1.msra.mxu1 %v12391_v55  ;;  %v12436_v54 = vld [vmem:[#allocation218_spill] sm:$0xff]  ;;  %v8984_v55 = vld [vmem:[#allocation6 + $0x198] sm:$0xff] }
 0x535   :  { %2917 = vmatprep.subr.mxu0 %v12392_v14  ;;  %2988 = vmatprep.subr.mxu1 %v12393_v15  ;;  %v8987_v14 = vld [vmem:[#allocation6 + $0x180] sm:$0xff]  ;;  %v9008_v15 = vld [vmem:[#allocation6 + $0x158] sm:$0xff] }
 0x536   :  { %2918 = vmatpush1.msra.mxu0 %v12394_v16  ;;  %2989 = vmatpush1.msra.mxu1 %v12395_v17  ;;  %v9011_v16 = vld [vmem:[#allocation6 + $0x140] sm:$0xff]  ;;  %v9014_v17 = vld [vmem:[#allocation6 + $0x150] sm:$0xff] }
 0x537   :  { %2919 = vmatprep.subr.mxu0 %v12396_v19  ;;  %2990 = vmatprep.subr.mxu1 %v12397_v20  ;;  %v9017_v19 = vld [vmem:[#allocation6 + $0x128] sm:$0xff]  ;;  %v9020_v20 = vld [vmem:[#allocation6 + $0x138] sm:$0xff] }
 0x538   :  { %2920 = vmatpush1.msra.mxu0 %v12398_v32  ;;  %2991 = vmatpush1.msra.mxu1 %v12399_v34  ;;  %v9023_v32 = vld [vmem:[#allocation6 + $0x120] sm:$0xff]  ;;  %v9026_v34 = vld [vmem:[#allocation6 + $0x130] sm:$0xff] }
 0x539   :  { %2921 = vmatprep.subr.mxu0 %v12400_v35  ;;  %2992 = vmatprep.subr.mxu1 %v12401_v10  ;;  %v9029_v35 = vld [vmem:[#allocation6 + $0x108] sm:$0xff]  ;;  %v9032_v10 = vld [vmem:[#allocation6 + $0x118] sm:$0xff] }
 0x53a   :  { %2922 = vmatpush1.msra.mxu0 %v12402_v3  ;;  %2993 = vmatpush1.msra.mxu1 %v12403_v7  ;;  %v9035_v3 = vld [vmem:[#allocation6 + $0x100] sm:$0xff]  ;;  %v9038_v7 = vld [vmem:[#allocation6 + $0x110] sm:$0xff] }
 0x53b   :  { %2923 = vmatprep.subr.mxu0 %v12404_v9  ;;  %2994 = vmatprep.subr.mxu1 %v12405_v62  ;;  %v9041_v9 = vld [vmem:[#allocation6 + $0xe8] sm:$0xff]  ;;  %v9044_v62 = vld [vmem:[#allocation6 + $0xf8] sm:$0xff] }
 0x53c   :  { %2924 = vmatpush1.msra.mxu0 %v12406_v21  ;;  %2995 = vmatpush1.msra.mxu1 %v12407_v30  ;;  %v9047_v21 = vld [vmem:[#allocation6 + $0xe0] sm:$0xff]  ;;  %v9050_v30 = vld [vmem:[#allocation6 + $0xf0] sm:$0xff] }
 0x53d   :  { %2925 = vmatprep.subr.mxu0 %v12408_v0  ;;  %2996 = vmatprep.subr.mxu1 %v12409_v36  ;;  %v9053_v0 = vld [vmem:[#allocation6 + $0xc8] sm:$0xff]  ;;  %v9056_v36 = vld [vmem:[#allocation6 + $0xd8] sm:$0xff] }
 0x53e   :  { %2926 = vmatpush1.msra.mxu0 %v12410_v37  ;;  %2997 = vmatpush1.msra.mxu1 %v12411_v38  ;;  %v9059_v37 = vld [vmem:[#allocation6 + $0xc0] sm:$0xff]  ;;  %v9062_v38 = vld [vmem:[#allocation6 + $0xd0] sm:$0xff] }
 0x53f   :  { %2927 = vmatprep.subr.mxu0 %v12412_v40  ;;  %2998 = vmatprep.subr.mxu1 %v12413_v43  ;;  %v9065_v40 = vld [vmem:[#allocation6 + $0xa8] sm:$0xff]  ;;  %v9068_v43 = vld [vmem:[#allocation6 + $0xb8] sm:$0xff] }
 0x540   :  { %2928 = vmatpush1.msra.mxu0 %v12414_v44  ;;  %2999 = vmatpush1.msra.mxu1 %v12415_v45  ;;  %v9071_v44 = vld [vmem:[#allocation6 + $0xa0] sm:$0xff]  ;;  %v9074_v45 = vld [vmem:[#allocation6 + $0xb0] sm:$0xff] }
 0x541   :  { %2929 = vmatprep.subr.mxu0 %v12416_v27  ;;  %3000 = vmatprep.subr.mxu1 %v12417_v39  ;;  %v9077_v27 = vld [vmem:[#allocation6 + $0x88] sm:$0xff]  ;;  %v9080_v39 = vld [vmem:[#allocation6 + $0x98] sm:$0xff] }
 0x542   :  { %2930 = vmatpush1.msra.mxu0 %v12418_v31  ;;  %3001 = vmatpush1.msra.mxu1 %v12419_v47  ;;  %v9083_v31 = vld [vmem:[#allocation6 + $0x80] sm:$0xff]  ;;  %v9086_v47 = vld [vmem:[#allocation6 + $0x90] sm:$0xff] }
 0x543   :  { %2931 = vmatprep.subr.mxu0 %v12420_v1  ;;  %3002 = vmatprep.subr.mxu1 %v12421_v49  ;;  %12437 = vst [vmem:[#allocation16_spill] sm:$0xff] %v9083_v31  ;;  %12438 = vst [vmem:[#allocation17_spill] sm:$0xff] %v9086_v47  ;;  %v9089_v1 = vld [vmem:[#allocation6 + $0x68] sm:$0xff]  ;;  %v9092_v49 = vld [vmem:[#allocation6 + $0x78] sm:$0xff] }
 0x544   :  { %2932 = vmatpush1.msra.mxu0 %v12422_v42  ;;  %3003 = vmatpush1.msra.mxu1 %v12423_v11  ;;  %12439 = vst [vmem:[#allocation18_spill] sm:$0xff] %v9089_v1  ;;  %12440 = vst [vmem:[#allocation19_spill] sm:$0xff] %v9092_v49  ;;  %v9095_v42 = vld [vmem:[#allocation6 + $0x60] sm:$0xff]  ;;  %v9098_v11 = vld [vmem:[#allocation6 + $0x70] sm:$0xff] }
 0x545   :  { %2933 = vmatprep.subr.mxu0 %v12424_v60  ;;  %3004 = vmatprep.subr.mxu1 %v12425_v4  ;;  %12441 = vst [vmem:[#allocation20_spill] sm:$0xff] %v9095_v42  ;;  %12442 = vst [vmem:[#allocation21_spill] sm:$0xff] %v9098_v11  ;;  %v9101_v60 = vld [vmem:[#allocation6 + $0x48] sm:$0xff]  ;;  %v9104_v4 = vld [vmem:[#allocation6 + $0x58] sm:$0xff] }
 0x546   :  { %2934 = vmatpush1.msra.mxu0 %v8631_v13  ;;  %3005 = vmatpush1.msra.mxu1 %v12426_v58  ;;  %v12432_v13 = vld [vmem:[#allocation214_spill] sm:$0xff]  ;;  %12443 = vst [vmem:[#allocation22_spill] sm:$0xff] %v9101_v60  ;;  %12444 = vst [vmem:[#allocation23_spill] sm:$0xff] %v9104_v4  ;;  %v9107_v58 = vld [vmem:[#allocation6 + $0x40] sm:$0xff] }
 0x547   :  { %2935 = vmatprep.subr.mxu0 %v12427_v26  ;;  %3006 = vmatprep.subr.mxu1 %v12428_v29  ;;  %12445 = vst [vmem:[#allocation24_spill] sm:$0xff] %v9107_v58  ;;  %v9110_v26 = vld [vmem:[#allocation6 + $0x50] sm:$0xff]  ;;  %v9113_v29 = vld [vmem:[#allocation6 + $0x28] sm:$0xff] }
 0x548   :  { %2936 = vmatpush1.msra.mxu0 %v12429_v24  ;;  %2969 = vmatprep.mubr.f32.mxu0 %v11702_v12  ;;  %12446 = vst [vmem:[#allocation25_spill] sm:$0xff] %v9110_v26  ;;  %12447 = vst [vmem:[#allocation27_spill] sm:$0xff] %v9113_v29  ;;  %v9116_v24 = vld [vmem:[#allocation6 + $0x38] sm:$0xff] }
 0x549   :  { %3007 = vmatpush1.msra.mxu1 %v12430_v8  ;;  %3040 = vmatprep.mubr.f32.mxu1 %v11702_v12  ;;  %12448 = vst [vmem:[#allocation26_spill] sm:$0xff] %v9116_v24  ;;  %v9119_v8 = vld [vmem:[#allocation6 + $0x20] sm:$0xff] }
 0x54a   :  { %2970 = vmatmul.mubr.f32.vlgmr.msra.gmra.mxu0 %v8899_v57  ;;  %3041 = vmatmul.mubr.f32.vlgmr.msra.gmra.mxu1 %v8899_v57  ;;  %v8981_v57 = vld [vmem:[#allocation6 + $0x188] sm:$0xff]  ;;  %12449 = vst [vmem:[#allocation29_spill] sm:$0xff] %v9119_v8 }
 0x54b   :  { %3047 = vmatprep.subr.mxu0 %v12431_v50  ;;  %3118 = vmatprep.subr.mxu1 %v12432_v13  ;;  %v9122_v50 = vld [vmem:[#allocation6 + $0x30] sm:$0xff]  ;;  %v9125_v13 = vld [vmem:[#allocation6 + $0x8] sm:$0xff] }
 0x54c   :  { %3048 = vmatpush1.msra.mxu0 %v12433_v61  ;;  %3119 = vmatpush1.msra.mxu1 %v12434_v52  ;;  %12450 = vst [vmem:[#allocation28_spill] sm:$0xff] %v9122_v50  ;;  %12451 = vst [vmem:[#allocation31_spill] sm:$0xff] %v9125_v13  ;;  %v9128_v61 = vld [vmem:[#allocation6 + $0x18] sm:$0xff]  ;;  %v5456_v52 = vld [vmem:[%s10866_s0 + $0x20] sm:$0xff] }
 0x54d   :  { %3049 = vmatprep.subr.mxu0 %v12435_v53  ;;  %3120 = vmatprep.subr.mxu1 %v12436_v54  ;;  %12452 = vst [vmem:[#allocation30_spill] sm:$0xff] %v9128_v61  ;;  %v9134_v53 = vld [vmem:[#allocation6] sm:$0xff]  ;;  %v9138_v54 = vld [vmem:[#allocation6 + $0x10] sm:$0xff] }
 0x54e   :  { %3050 = vmatpush1.msra.mxu0 %v8671_v2  ;;  %3121 = vmatpush1.msra.mxu1 %v8674_v22  ;;  %v8990_v22 = vld [vmem:[#allocation6 + $0x190] sm:$0xff]  ;;  %12453 = vst [vmem:[#allocation33_spill] sm:$0xff] %v9134_v53  ;;  %12454 = vst [vmem:[#allocation32_spill] sm:$0xff] %v9138_v54 }
 0x54f   :  { %3051 = vmatprep.subr.mxu0 %v8677_v59  ;;  %3122 = vmatprep.subr.mxu1 %v8680_v63  ;;  %v8993_v59 = vld [vmem:[#allocation6 + $0x168] sm:$0xff]  ;;  %v8999_v63 = vld [vmem:[#allocation6 + $0x160] sm:$0xff]  ;;  %v9002_v2 = vld [vmem:[#allocation6 + $0x170] sm:$0xff] }
 0x550   :  { %3052 = vmatpush1.msra.mxu0 %v8683_v25  ;;  %3123 = vmatpush1.msra.mxu1 %v8686_v5  ;;  %v8996_v25 = vld [vmem:[#allocation6 + $0x178] sm:$0xff]  ;;  %v9005_v5 = vld [vmem:[#allocation6 + $0x148] sm:$0xff] }
 0x551   :  { %3053 = vmatprep.subr.mxu0 %v8981_v57  ;;  %3124 = vmatprep.subr.mxu1 %v8984_v55 }
 0x552   :  { %3054 = vmatpush1.msra.mxu0 %v8987_v14  ;;  %3125 = vmatpush1.msra.mxu1 %v8990_v22 }
 0x553   :  { %3055 = vmatprep.subr.mxu0 %v8993_v59  ;;  %3126 = vmatprep.subr.mxu1 %v8996_v25 }
 0x554   :  { %3056 = vmatpush1.msra.mxu0 %v8999_v63  ;;  %3127 = vmatpush1.msra.mxu1 %v9002_v2 }
 0x555   :  { %3057 = vmatprep.subr.mxu0 %v9005_v5  ;;  %3128 = vmatprep.subr.mxu1 %v9008_v15 }
 0x556   :  { %3058 = vmatpush1.msra.mxu0 %v9011_v16  ;;  %3129 = vmatpush1.msra.mxu1 %v9014_v17 }
 0x557   :  { %3059 = vmatprep.subr.mxu0 %v9017_v19  ;;  %3130 = vmatprep.subr.mxu1 %v9020_v20 }
 0x558   :  { %3060 = vmatpush1.msra.mxu0 %v9023_v32  ;;  %3131 = vmatpush1.msra.mxu1 %v9026_v34 }
 0x559   :  { %3061 = vmatprep.subr.mxu0 %v9029_v35  ;;  %3132 = vmatprep.subr.mxu1 %v9032_v10 }
 0x55a   :  { %3062 = vmatpush1.msra.mxu0 %v9035_v3  ;;  %3133 = vmatpush1.msra.mxu1 %v9038_v7 }
 0x55b   :  { %3063 = vmatprep.subr.mxu0 %v9041_v9  ;;  %3134 = vmatprep.subr.mxu1 %v9044_v62 }
 0x55c   :  { %3064 = vmatpush1.msra.mxu0 %v9047_v21  ;;  %3135 = vmatpush1.msra.mxu1 %v9050_v30 }
 0x55d   :  { %3065 = vmatprep.subr.mxu0 %v9053_v0  ;;  %3136 = vmatprep.subr.mxu1 %v9056_v36 }
 0x55e   :  { %3066 = vmatpush1.msra.mxu0 %v9059_v37  ;;  %3137 = vmatpush1.msra.mxu1 %v9062_v38 }
 0x55f   :  { %3067 = vmatprep.subr.mxu0 %v9065_v40  ;;  %3138 = vmatprep.subr.mxu1 %v9068_v43 }
 0x560   :  { %3068 = vmatpush1.msra.mxu0 %v9071_v44  ;;  %3139 = vmatpush1.msra.mxu1 %v9074_v45 }
 0x561   :  { %3069 = vmatprep.subr.mxu0 %v9077_v27  ;;  %3140 = vmatprep.subr.mxu1 %v9080_v39 }
 0x562   :  { %3070 = vmatpush1.msra.mxu0 %v9083_v31  ;;  %3141 = vmatpush1.msra.mxu1 %v9086_v47 }
 0x563   :  { %3071 = vmatprep.subr.mxu0 %v9089_v1  ;;  %3142 = vmatprep.subr.mxu1 %v9092_v49 }
 0x564   :  { %3072 = vmatpush1.msra.mxu0 %v9095_v42  ;;  %3143 = vmatpush1.msra.mxu1 %v9098_v11 }
 0x565   :  { %3073 = vmatprep.subr.mxu0 %v9101_v60  ;;  %3144 = vmatprep.subr.mxu1 %v9104_v4 }
 0x566   :  { %3074 = vmatpush1.msra.mxu0 %v9107_v58  ;;  %3145 = vmatpush1.msra.mxu1 %v9110_v26 }
 0x567   :  { %3075 = vmatprep.subr.mxu0 %v9113_v29  ;;  %3146 = vmatprep.subr.mxu1 %v9116_v24 }
 0x568   :  { %3076 = vmatpush1.msra.mxu0 %v9119_v8  ;;  %3147 = vmatpush1.msra.mxu1 %v9122_v50  ;;  %v9148_v50 = vld [vmem:[#allocation11 + $0x1e0] sm:$0xff] }
 0x569   :  { %3077 = vmatprep.subr.mxu0 %v9125_v13  ;;  %3148 = vmatprep.subr.mxu1 %v9128_v61  ;;  %v9142_v13 = vld [vmem:[#allocation11 + $0x1e8] sm:$0xff]  ;;  %v9145_v61 = vld [vmem:[#allocation11 + $0x1f8] sm:$0xff]  ;;  %12457 = vst [vmem:[#allocation37_spill] sm:$0xff] %v9148_v50 }
 0x56a   :  { %3078 = vmatpush1.msra.mxu0 %v9134_v53  ;;  %3111 = vmatprep.mubr.f32.mxu0 %v11702_v12  ;;  %12455 = vst [vmem:[#allocation35_spill] sm:$0xff] %v9142_v13  ;;  %12456 = vst [vmem:[#allocation34_spill] sm:$0xff] %v9145_v61  ;;  %v9151_v53 = vld [vmem:[#allocation11 + $0x1f0] sm:$0xff] }
 0x56b   :  { %3149 = vmatpush1.msra.mxu1 %v9138_v54  ;;  %3182 = vmatprep.mubr.f32.mxu1 %v11702_v12  ;;  %12458 = vst [vmem:[#allocation36_spill] sm:$0xff] %v9151_v53  ;;  %v9154_v54 = vld [vmem:[#allocation11 + $0x1c8] sm:$0xff] }
 0x56c   :  { %3112 = vmatmul.mubr.f32.vlgmr.msra.gmra.mxu0 %v5456_v52  ;;  %3183 = vmatmul.mubr.f32.vlgmr.msra.gmra.mxu1 %v5456_v52  ;;  %12459 = vst [vmem:[#allocation39_spill] sm:$0xff] %v9154_v54  ;;  %v9157_v52 = vld [vmem:[#allocation11 + $0x1d8] sm:$0xff] }
 0x56d   :  { %3217 = vmatprep.subr.mxu0 %v9142_v13  ;;  %3288 = vmatprep.subr.mxu1 %v9145_v61  ;;  %12460 = vst [vmem:[#allocation38_spill] sm:$0xff] %v9157_v52  ;;  %v9160_v13 = vld [vmem:[#allocation11 + $0x1c0] sm:$0xff]  ;;  %v9163_v61 = vld [vmem:[#allocation11 + $0x1d0] sm:$0xff] }
 0x56e   :  { %3218 = vmatpush1.msra.mxu0 %v9148_v50  ;;  %3289 = vmatpush1.msra.mxu1 %v9151_v53  ;;  %12461 = vst [vmem:[#allocation41_spill] sm:$0xff] %v9160_v13  ;;  %12462 = vst [vmem:[#allocation40_spill] sm:$0xff] %v9163_v61  ;;  %v9166_v50 = vld [vmem:[#allocation11 + $0x1a8] sm:$0xff]  ;;  %v9169_v53 = vld [vmem:[#allocation11 + $0x1b8] sm:$0xff] }
 0x56f   :  { %3219 = vmatprep.subr.mxu0 %v9154_v54  ;;  %3290 = vmatprep.subr.mxu1 %v9157_v52  ;;  %12463 = vst [vmem:[#allocation43_spill] sm:$0xff] %v9166_v50  ;;  %12464 = vst [vmem:[#allocation42_spill] sm:$0xff] %v9169_v53  ;;  %v9172_v54 = vld [vmem:[#allocation11 + $0x1a0] sm:$0xff]  ;;  %v9175_v52 = vld [vmem:[#allocation11 + $0x1b0] sm:$0xff] }
 0x570   :  { %3220 = vmatpush1.msra.mxu0 %v9160_v13  ;;  %3291 = vmatpush1.msra.mxu1 %v9163_v61  ;;  %12465 = vst [vmem:[#allocation45_spill] sm:$0xff] %v9172_v54  ;;  %12466 = vst [vmem:[#allocation44_spill] sm:$0xff] %v9175_v52  ;;  %v9178_v13 = vld [vmem:[#allocation11 + $0x188] sm:$0xff]  ;;  %v9181_v61 = vld [vmem:[#allocation11 + $0x198] sm:$0xff] }
 0x571   :  { %3221 = vmatprep.subr.mxu0 %v9166_v50  ;;  %3292 = vmatprep.subr.mxu1 %v9169_v53  ;;  %12467 = vst [vmem:[#allocation47_spill] sm:$0xff] %v9178_v13  ;;  %12468 = vst [vmem:[#allocation46_spill] sm:$0xff] %v9181_v61  ;;  %v9184_v50 = vld [vmem:[#allocation11 + $0x180] sm:$0xff]  ;;  %v9187_v53 = vld [vmem:[#allocation11 + $0x190] sm:$0xff] }
 0x572   :  { %3222 = vmatpush1.msra.mxu0 %v9172_v54  ;;  %3293 = vmatpush1.msra.mxu1 %v9175_v52  ;;  %12469 = vst [vmem:[#allocation49_spill] sm:$0xff] %v9184_v50  ;;  %12470 = vst [vmem:[#allocation48_spill] sm:$0xff] %v9187_v53  ;;  %v9190_v54 = vld [vmem:[#allocation11 + $0x168] sm:$0xff]  ;;  %v9193_v52 = vld [vmem:[#allocation11 + $0x178] sm:$0xff] }
 0x573   :  { %3223 = vmatprep.subr.mxu0 %v9178_v13  ;;  %3294 = vmatprep.subr.mxu1 %v9181_v61  ;;  %12471 = vst [vmem:[#allocation51_spill] sm:$0xff] %v9190_v54  ;;  %12472 = vst [vmem:[#allocation50_spill] sm:$0xff] %v9193_v52  ;;  %v9196_v13 = vld [vmem:[#allocation11 + $0x160] sm:$0xff]  ;;  %v9199_v61 = vld [vmem:[#allocation11 + $0x170] sm:$0xff] }
 0x574   :  { %3224 = vmatpush1.msra.mxu0 %v9184_v50  ;;  %3295 = vmatpush1.msra.mxu1 %v9187_v53  ;;  %12473 = vst [vmem:[#allocation53_spill] sm:$0xff] %v9196_v13  ;;  %12474 = vst [vmem:[#allocation52_spill] sm:$0xff] %v9199_v61  ;;  %v9202_v50 = vld [vmem:[#allocation11 + $0x148] sm:$0xff]  ;;  %v9205_v53 = vld [vmem:[#allocation11 + $0x158] sm:$0xff] }
 0x575   :  { %3225 = vmatprep.subr.mxu0 %v9190_v54  ;;  %3296 = vmatprep.subr.mxu1 %v9193_v52  ;;  %12475 = vst [vmem:[#allocation55_spill] sm:$0xff] %v9202_v50  ;;  %12476 = vst [vmem:[#allocation54_spill] sm:$0xff] %v9205_v53  ;;  %v9208_v54 = vld [vmem:[#allocation11 + $0x140] sm:$0xff]  ;;  %v9211_v52 = vld [vmem:[#allocation11 + $0x150] sm:$0xff] }
 0x576   :  { %3226 = vmatpush1.msra.mxu0 %v9196_v13  ;;  %3297 = vmatpush1.msra.mxu1 %v9199_v61  ;;  %12477 = vst [vmem:[#allocation57_spill] sm:$0xff] %v9208_v54  ;;  %12478 = vst [vmem:[#allocation56_spill] sm:$0xff] %v9211_v52  ;;  %v9214_v13 = vld [vmem:[#allocation11 + $0x128] sm:$0xff]  ;;  %v9217_v61 = vld [vmem:[#allocation11 + $0x138] sm:$0xff] }
 0x577   :  { %3227 = vmatprep.subr.mxu0 %v9202_v50  ;;  %3298 = vmatprep.subr.mxu1 %v9205_v53  ;;  %12479 = vst [vmem:[#allocation59_spill] sm:$0xff] %v9214_v13  ;;  %12480 = vst [vmem:[#allocation58_spill] sm:$0xff] %v9217_v61  ;;  %v9220_v50 = vld [vmem:[#allocation11 + $0x120] sm:$0xff]  ;;  %v9223_v53 = vld [vmem:[#allocation11 + $0x130] sm:$0xff] }
 0x578   :  { %3228 = vmatpush1.msra.mxu0 %v9208_v54  ;;  %3299 = vmatpush1.msra.mxu1 %v9211_v52  ;;  %12481 = vst [vmem:[#allocation61_spill] sm:$0xff] %v9220_v50  ;;  %12482 = vst [vmem:[#allocation60_spill] sm:$0xff] %v9223_v53  ;;  %v9226_v54 = vld [vmem:[#allocation11 + $0x108] sm:$0xff]  ;;  %v9229_v52 = vld [vmem:[#allocation11 + $0x118] sm:$0xff] }
 0x579   :  { %3229 = vmatprep.subr.mxu0 %v9214_v13  ;;  %3300 = vmatprep.subr.mxu1 %v9217_v61  ;;  %12483 = vst [vmem:[#allocation63_spill] sm:$0xff] %v9226_v54  ;;  %12484 = vst [vmem:[#allocation62_spill] sm:$0xff] %v9229_v52  ;;  %v9232_v13 = vld [vmem:[#allocation11 + $0x100] sm:$0xff]  ;;  %v9235_v61 = vld [vmem:[#allocation11 + $0x110] sm:$0xff] }
 0x57a   :  { %3230 = vmatpush1.msra.mxu0 %v9220_v50  ;;  %3301 = vmatpush1.msra.mxu1 %v9223_v53  ;;  %12485 = vst [vmem:[#allocation65_spill] sm:$0xff] %v9232_v13  ;;  %12486 = vst [vmem:[#allocation64_spill] sm:$0xff] %v9235_v61  ;;  %v9238_v50 = vld [vmem:[#allocation11 + $0xe8] sm:$0xff]  ;;  %v9241_v53 = vld [vmem:[#allocation11 + $0xf8] sm:$0xff] }
 0x57b   :  { %3231 = vmatprep.subr.mxu0 %v9226_v54  ;;  %3302 = vmatprep.subr.mxu1 %v9229_v52  ;;  %12487 = vst [vmem:[#allocation67_spill] sm:$0xff] %v9238_v50  ;;  %12488 = vst [vmem:[#allocation66_spill] sm:$0xff] %v9241_v53  ;;  %v9244_v54 = vld [vmem:[#allocation11 + $0xe0] sm:$0xff]  ;;  %v9247_v52 = vld [vmem:[#allocation11 + $0xf0] sm:$0xff] }
 0x57c   :  { %3232 = vmatpush1.msra.mxu0 %v9232_v13  ;;  %3303 = vmatpush1.msra.mxu1 %v9235_v61  ;;  %12489 = vst [vmem:[#allocation69_spill] sm:$0xff] %v9244_v54  ;;  %12490 = vst [vmem:[#allocation68_spill] sm:$0xff] %v9247_v52  ;;  %v9250_v13 = vld [vmem:[#allocation11 + $0xc8] sm:$0xff]  ;;  %v9253_v61 = vld [vmem:[#allocation11 + $0xd8] sm:$0xff] }
 0x57d   :  { %3233 = vmatprep.subr.mxu0 %v9238_v50  ;;  %3304 = vmatprep.subr.mxu1 %v9241_v53  ;;  %12491 = vst [vmem:[#allocation71_spill] sm:$0xff] %v9250_v13  ;;  %12492 = vst [vmem:[#allocation70_spill] sm:$0xff] %v9253_v61  ;;  %v9256_v50 = vld [vmem:[#allocation11 + $0xc0] sm:$0xff]  ;;  %v9259_v53 = vld [vmem:[#allocation11 + $0xd0] sm:$0xff] }
 0x57e   :  { %3234 = vmatpush1.msra.mxu0 %v9244_v54  ;;  %3305 = vmatpush1.msra.mxu1 %v9247_v52  ;;  %12493 = vst [vmem:[#allocation73_spill] sm:$0xff] %v9256_v50  ;;  %12494 = vst [vmem:[#allocation72_spill] sm:$0xff] %v9259_v53  ;;  %v9262_v54 = vld [vmem:[#allocation11 + $0xa8] sm:$0xff]  ;;  %v9265_v52 = vld [vmem:[#allocation11 + $0xb8] sm:$0xff] }
 0x57f   :  { %3235 = vmatprep.subr.mxu0 %v9250_v13  ;;  %3306 = vmatprep.subr.mxu1 %v9253_v61  ;;  %12495 = vst [vmem:[#allocation75_spill] sm:$0xff] %v9262_v54  ;;  %12496 = vst [vmem:[#allocation74_spill] sm:$0xff] %v9265_v52  ;;  %v9268_v13 = vld [vmem:[#allocation11 + $0xa0] sm:$0xff]  ;;  %v9271_v61 = vld [vmem:[#allocation11 + $0xb0] sm:$0xff] }
 0x580   :  { %3236 = vmatpush1.msra.mxu0 %v9256_v50  ;;  %3307 = vmatpush1.msra.mxu1 %v9259_v53  ;;  %12497 = vst [vmem:[#allocation77_spill] sm:$0xff] %v9268_v13  ;;  %12498 = vst [vmem:[#allocation76_spill] sm:$0xff] %v9271_v61  ;;  %v9274_v50 = vld [vmem:[#allocation11 + $0x88] sm:$0xff]  ;;  %v9277_v53 = vld [vmem:[#allocation11 + $0x98] sm:$0xff] }
 0x581   :  { %3237 = vmatprep.subr.mxu0 %v9262_v54  ;;  %3308 = vmatprep.subr.mxu1 %v9265_v52  ;;  %12499 = vst [vmem:[#allocation79_spill] sm:$0xff] %v9274_v50  ;;  %12500 = vst [vmem:[#allocation78_spill] sm:$0xff] %v9277_v53  ;;  %v9280_v54 = vld [vmem:[#allocation11 + $0x80] sm:$0xff]  ;;  %v9283_v52 = vld [vmem:[#allocation11 + $0x90] sm:$0xff] }
 0x582   :  { %3238 = vmatpush1.msra.mxu0 %v9268_v13  ;;  %3309 = vmatpush1.msra.mxu1 %v9271_v61  ;;  %12501 = vst [vmem:[#allocation81_spill] sm:$0xff] %v9280_v54  ;;  %12502 = vst [vmem:[#allocation80_spill] sm:$0xff] %v9283_v52  ;;  %v9286_v13 = vld [vmem:[#allocation11 + $0x68] sm:$0xff]  ;;  %v9289_v61 = vld [vmem:[#allocation11 + $0x78] sm:$0xff] }
 0x583   :  { %3239 = vmatprep.subr.mxu0 %v9274_v50  ;;  %3310 = vmatprep.subr.mxu1 %v9277_v53  ;;  %12503 = vst [vmem:[#allocation83_spill] sm:$0xff] %v9286_v13  ;;  %12504 = vst [vmem:[#allocation82_spill] sm:$0xff] %v9289_v61  ;;  %v9292_v50 = vld [vmem:[#allocation11 + $0x60] sm:$0xff]  ;;  %v9295_v53 = vld [vmem:[#allocation11 + $0x70] sm:$0xff] }
 0x584   :  { %3240 = vmatpush1.msra.mxu0 %v9280_v54  ;;  %3311 = vmatpush1.msra.mxu1 %v9283_v52  ;;  %12505 = vst [vmem:[#allocation85_spill] sm:$0xff] %v9292_v50  ;;  %12506 = vst [vmem:[#allocation84_spill] sm:$0xff] %v9295_v53  ;;  %v9298_v54 = vld [vmem:[#allocation11 + $0x48] sm:$0xff]  ;;  %v9301_v52 = vld [vmem:[#allocation11 + $0x58] sm:$0xff] }
 0x585   :  { %3241 = vmatprep.subr.mxu0 %v9286_v13  ;;  %3312 = vmatprep.subr.mxu1 %v9289_v61  ;;  %12507 = vst [vmem:[#allocation87_spill] sm:$0xff] %v9298_v54  ;;  %12508 = vst [vmem:[#allocation86_spill] sm:$0xff] %v9301_v52  ;;  %v9304_v13 = vld [vmem:[#allocation11 + $0x40] sm:$0xff]  ;;  %v9307_v61 = vld [vmem:[#allocation11 + $0x50] sm:$0xff] }
 0x586   :  { %3242 = vmatpush1.msra.mxu0 %v9292_v50  ;;  %3313 = vmatpush1.msra.mxu1 %v9295_v53  ;;  %12509 = vst [vmem:[#allocation88_spill] sm:$0xff] %v9304_v13  ;;  %12510 = vst [vmem:[#allocation89_spill] sm:$0xff] %v9307_v61  ;;  %v9310_v50 = vld [vmem:[#allocation11 + $0x28] sm:$0xff]  ;;  %v9313_v53 = vld [vmem:[#allocation11 + $0x38] sm:$0xff] }
 0x587   :  { %3243 = vmatprep.subr.mxu0 %v9298_v54  ;;  %3314 = vmatprep.subr.mxu1 %v9301_v52  ;;  %12511 = vst [vmem:[#allocation90_spill] sm:$0xff] %v9310_v50  ;;  %12512 = vst [vmem:[#allocation91_spill] sm:$0xff] %v9313_v53  ;;  %v9316_v54 = vld [vmem:[#allocation11 + $0x20] sm:$0xff]  ;;  %v9319_v52 = vld [vmem:[#allocation11 + $0x30] sm:$0xff] }
 0x588   :  { %3244 = vmatpush1.msra.mxu0 %v9304_v13  ;;  %3315 = vmatpush1.msra.mxu1 %v9307_v61  ;;  %12513 = vst [vmem:[#allocation92_spill] sm:$0xff] %v9316_v54  ;;  %12514 = vst [vmem:[#allocation93_spill] sm:$0xff] %v9319_v52  ;;  %v9322_v13 = vld [vmem:[#allocation11 + $0x8] sm:$0xff]  ;;  %v9325_v61 = vld [vmem:[#allocation11 + $0x18] sm:$0xff] }
 0x589   :  { %3245 = vmatprep.subr.mxu0 %v9310_v50  ;;  %3316 = vmatprep.subr.mxu1 %v9313_v53  ;;  %12515 = vst [vmem:[#allocation94_spill] sm:$0xff] %v9322_v13  ;;  %12516 = vst [vmem:[#allocation95_spill] sm:$0xff] %v9325_v61  ;;  %v9328_v50 = vld [vmem:[#allocation11] sm:$0xff]  ;;  %v9332_v53 = vld [vmem:[#allocation11 + $0x10] sm:$0xff] }
 0x58a   :  { %3246 = vmatpush1.msra.mxu0 %v9316_v54  ;;  %3317 = vmatpush1.msra.mxu1 %v9319_v52  ;;  %12517 = vst [vmem:[#allocation96_spill] sm:$0xff] %v9328_v50  ;;  %12518 = vst [vmem:[#allocation97_spill] sm:$0xff] %v9332_v53  ;;  %v9336_v52 = vld [vmem:[#allocation10 + $0x1e8] sm:$0xff] }
 0x58b   :  { %3247 = vmatprep.subr.mxu0 %v9322_v13  ;;  %3318 = vmatprep.subr.mxu1 %v9325_v61  ;;  %12519 = vst [vmem:[#allocation98_spill] sm:$0xff] %v9336_v52  ;;  %v9339_v13 = vld [vmem:[#allocation10 + $0x1f8] sm:$0xff] }
 0x58c   :  { %3248 = vmatpush1.msra.mxu0 %v9328_v50  ;;  %3281 = vmatprep.mubr.f32.mxu0 %v11702_v12  ;;  %12520 = vst [vmem:[#allocation99_spill] sm:$0xff] %v9339_v13 }
 0x58d   :  { %3319 = vmatpush1.msra.mxu1 %v9332_v53  ;;  %3352 = vmatprep.mubr.f32.mxu1 %v11702_v12 }
 0x58e   :  { %3359 = vmatprep.subr.mxu0 %v9336_v52  ;;  %3430 = vmatprep.subr.mxu1 %v9339_v13 }
 0x5a6   :  { %v2655_v61 = vpop.f32.mrf.mxu0  ;;  %v2726_v50 = vpop.f32.mrf.mxu1 }
 0x5a8   :  { %v2657_v54 = vpop.f32.mrf.mxu0  ;;  %v2728_v53 = vpop.f32.mrf.mxu1 }
 0x5e9   :  { %v2797_v8 = vpop.f32.mrf.mxu0  ;;  %v2868_v11 = vpop.f32.mrf.mxu1 }
 0x5ea   :  { %v2798_v24 = vadd.f32 %v2797_v8, %v2655_v61  ;;  %v2869_v42 = vadd.f32 %v2868_v11, %v2726_v50 }
 0x5eb   :  { %v2799_v29 = vpop.f32.mrf.mxu0  ;;  %v2870_v49 = vpop.f32.mrf.mxu1 }
 0x5ec   :  { %v2873_v26 = vadd.f32 %v2798_v24, %v7705_v51  ;;  %v2800_v58 = vadd.f32 %v2799_v29, %v2657_v54  ;;  %v2875_v13 = vadd.f32 %v2869_v42, %v7715_v23  ;;  %v2871_v1 = vadd.f32 %v2870_v49, %v2728_v53  ;;  %v9359_v54 = vld [vmem:[#allocation10 + $0x1c8] sm:$0xff] }
 0x5ee   :  { %v5452_v4 = vmul.f32 -1.442695, %v2873_v26  ;;  %v2874_v60 = vadd.f32 %v2800_v58, %v7709_v56  ;;  %v5454_v47 = vmul.f32 -1.442695, %v2875_v13  ;;  %v2876_v8 = vadd.f32 %v2871_v1, %v7720_v28  ;;  %v9353_v13 = vld [vmem:[#allocation10 + $0x1e0] sm:$0xff] }
 0x5f0   :  { %5607 = vpow2.f32 %v5452_v4  ;;  %v5453_v52 = vmul.f32 -1.442695, %v2874_v60 }
 0x5f2   :  { %5609 = vpow2.f32 %v5453_v52  ;;  %v9362_v52 = vld [vmem:[#allocation10 + $0x1d8] sm:$0xff] }
 0x5f3   :  { %5611 = vpow2.f32 %v5454_v47 }
 0x5fd   :  { %v5608_v31 = vpop.eup %5607 }
 0x5fe   :  { %v2886_v61 = vadd.f32 1.0, %v5608_v31 }
 0x5ff   :  { %v5610_v24 = vpop.eup %5609 }
 0x600   :  { %5613 = vrcp.f32 %v2886_v61  ;;  %v2887_v26 = vadd.f32 1.0, %v5610_v24  ;;  %v5612_v4 = vpop.eup %5611  ;;  %v9368_v61 = vld [vmem:[#allocation10 + $0x1d0] sm:$0xff]  ;;  %v9371_v24 = vld [vmem:[#allocation10 + $0x1a8] sm:$0xff] }
 0x601   :  { %5615 = vtanh.f32 %v2876_v8  ;;  %v2888_v11 = vadd.f32 1.0, %v5612_v4  ;;  %v9365_v8 = vld [vmem:[#allocation10 + $0x1c0] sm:$0xff]  ;;  %12521 = vst [vmem:[#allocation100_spill] sm:$0xff] %v9371_v24 }
 0x602   :  { %5617 = vrcp.f32 %v2887_v26  ;;  %v9374_v26 = vld [vmem:[#allocation10 + $0x1b8] sm:$0xff]  ;;  %v9377_v4 = vld [vmem:[#allocation10 + $0x1a0] sm:$0xff] }
 0x603   :  { %5619 = vrcp.f32 %v2888_v11  ;;  %12522 = vst [vmem:[#allocation101_spill] sm:$0xff] %v9374_v26  ;;  %12523 = vst [vmem:[#allocation102_spill] sm:$0xff] %v9377_v4  ;;  %v9386_v11 = vld [vmem:[#allocation10 + $0x198] sm:$0xff] }
 0x604   :  { %12526 = vst [vmem:[#allocation105_spill] sm:$0xff] %v9386_v11 }
 0x60a   :  { %v2971_v53 = vpop.f32.mrf.mxu0 }
 0x60d   :  { %v5614_v58 = vpop.eup %5613 }
 0x60e   :  { %v5616_v60 = vpop.eup %5615 }
 0x60f   :  { %v5618_v29 = vpop.eup %5617  ;;  %v2897_v42 = vmul.f32 %v5616_v60, %v5614_v58  ;;  %v9380_v58 = vld [vmem:[#allocation10 + $0x1b0] sm:$0xff]  ;;  %v2973_v60 = vpop.f32.mrf.mxu0 }
 0x610   :  { %v2896_v50 = vmul.f32 %v5618_v29, %v8819_v41  ;;  %v5620_v31 = vpop.eup %5619  ;;  %v9356_v41 = vld [vmem:[#allocation10 + $0x1f0] sm:$0xff]  ;;  %12524 = vst [vmem:[#allocation103_spill] sm:$0xff] %v9380_v58  ;;  %v9383_v29 = vld [vmem:[#allocation10 + $0x188] sm:$0xff] }
 0x611   :  { %12525 = vst [vmem:[#allocation104_spill] sm:$0xff] %v9383_v29 }
 0x612   :  { %v9347_v49 = vadd.f32 %v2897_v42, %v2896_v50  ;;  %v9389_v50 = vld [vmem:[#allocation10 + $0x180] sm:$0xff]  ;;  %v9392_v42 = vld [vmem:[#allocation10 + $0x190] sm:$0xff] }
 0x613   :  { %12527 = vst [vmem:[#allocation106_spill] sm:$0xff] %v9389_v50  ;;  %12528 = vst [vmem:[#allocation107_spill] sm:$0xff] %v9392_v42 }
 0x614   :  { %5621 = vtanh.f32 %v9347_v49 }
 0x621   :  { %v5622_v1 = vpop.eup %5621 }
 0x622   :  { %v2900_v47 = vmul.f32 %v5622_v1, %v5620_v31  ;;  %v9395_v1 = vld [vmem:[#allocation10 + $0x168] sm:$0xff] }
 0x623   :  { %12529 = vst [vmem:[#allocation108_spill] sm:$0xff] %v9395_v1 }
 0x624   :  { %5455 = vst [vmem:[%s10873_s7 + $0x18] sm:$0xff] %v2900_v47  ;;  %3282 = vmatmul.mubr.f32.vlgmr.msra.gmra.mxu0 %v2900_v47  ;;  %3353 = vmatmul.mubr.f32.vlgmr.msra.gmra.mxu1 %v2900_v47  ;;  %v9398_v47 = vld [vmem:[#allocation10 + $0x178] sm:$0xff] }
 0x625   :  { %3360 = vmatpush1.msra.mxu0 %v9353_v13  ;;  %3431 = vmatpush1.msra.mxu1 %v9356_v41  ;;  %12530 = vst [vmem:[#allocation109_spill] sm:$0xff] %v9398_v47 }
 0x626   :  { %3361 = vmatprep.subr.mxu0 %v9359_v54  ;;  %3432 = vmatprep.subr.mxu1 %v9362_v52 }
 0x627   :  { %3362 = vmatpush1.msra.mxu0 %v9365_v8  ;;  %3433 = vmatpush1.msra.mxu1 %v9368_v61 }
 0x628   :  { %3363 = vmatprep.subr.mxu0 %v9371_v24  ;;  %3434 = vmatprep.subr.mxu1 %v9374_v26 }
 0x629   :  { %3364 = vmatpush1.msra.mxu0 %v9377_v4  ;;  %3435 = vmatpush1.msra.mxu1 %v9380_v58  ;;  %v9407_v4 = vld [vmem:[#allocation10 + $0x148] sm:$0xff] }
 0x62a   :  { %3365 = vmatprep.subr.mxu0 %v9383_v29  ;;  %3436 = vmatprep.subr.mxu1 %v9386_v11  ;;  %v3042_v29 = vpop.f32.mrf.mxu1  ;;  %v9401_v11 = vld [vmem:[#allocation10 + $0x160] sm:$0xff]  ;;  %12533 = vst [vmem:[#allocation111_spill] sm:$0xff] %v9407_v4 }
 0x62b   :  { %3366 = vmatpush1.msra.mxu0 %v9389_v50  ;;  %3437 = vmatpush1.msra.mxu1 %v9392_v42  ;;  %12531 = vst [vmem:[#allocation110_spill] sm:$0xff] %v9401_v11  ;;  %v9404_v50 = vld [vmem:[#allocation10 + $0x170] sm:$0xff] }
 0x62c   :  { %v3113_v31 = vpop.f32.mrf.mxu0  ;;  %3367 = vmatprep.subr.mxu0 %v9395_v1  ;;  %3438 = vmatprep.subr.mxu1 %v9398_v47  ;;  %12532 = vst [vmem:[#allocation155_spill] sm:$0xff] %v9404_v50  ;;  %v9410_v1 = vld [vmem:[#allocation10 + $0x158] sm:$0xff] }
 0x62d   :  { %v3114_v58 = vadd.f32 %v3113_v31, %v2971_v53  ;;  %3368 = vmatpush1.msra.mxu0 %v9401_v11  ;;  %3439 = vmatpush1.msra.mxu1 %v9404_v50  ;;  %12534 = vst [vmem:[#allocation112_spill] sm:$0xff] %v9410_v1  ;;  %v9414_v31 = vld [vmem:[#allocation10 + $0x140] sm:$0xff]  ;;  %v9417_v11 = vld [vmem:[#allocation10 + $0x150] sm:$0xff]  ;;  %v9420_v50 = vld [vmem:[#allocation10 + $0x128] sm:$0xff] }
 0x62e   :  { %v3115_v42 = vpop.f32.mrf.mxu0  ;;  %3369 = vmatprep.subr.mxu0 %v9407_v4  ;;  %3440 = vmatprep.subr.mxu1 %v9410_v1  ;;  %12535 = vst [vmem:[#allocation113_spill] sm:$0xff] %v9420_v50  ;;  %v3044_v4 = vpop.f32.mrf.mxu1  ;;  %v9424_v1 = vld [vmem:[#allocation10 + $0x138] sm:$0xff] }
 0x62f   :  { %v3189_v47 = vadd.f32 %v3114_v58, %v11929_v33  ;;  %v3116_v53 = vadd.f32 %v3115_v42, %v2973_v60  ;;  %3370 = vmatpush1.msra.mxu0 %v9414_v31  ;;  %3441 = vmatpush1.msra.mxu1 %v9417_v11  ;;  %12536 = vst [vmem:[#allocation156_spill] sm:$0xff] %v9424_v1  ;;  %v9427_v58 = vld [vmem:[#allocation10 + $0x120] sm:$0xff]  ;;  %v9430_v60 = vld [vmem:[#allocation10 + $0x130] sm:$0xff]  ;;  %v9433_v42 = vld [vmem:[#allocation10 + $0x108] sm:$0xff] }
 0x630   :  { %3371 = vmatprep.subr.mxu0 %v9420_v50  ;;  %3442 = vmatprep.subr.mxu1 %v9424_v1  ;;  %12537 = vst [vmem:[#allocation114_spill] sm:$0xff] %v9427_v58  ;;  %12538 = vst [vmem:[#allocation115_spill] sm:$0xff] %v9430_v60  ;;  %v9439_v1 = vld [vmem:[#allocation10 + $0x100] sm:$0xff] }
 0x631   :  { %v5457_v26 = vmul.f32 -1.442695, %v3189_v47  ;;  %v3190_v24 = vadd.f32 %v3116_v53, %v11933_v6  ;;  %3372 = vmatpush1.msra.mxu0 %v9427_v58  ;;  %3443 = vmatpush1.msra.mxu1 %v9430_v60  ;;  %12539 = vst [vmem:[#allocation116_spill] sm:$0xff] %v9433_v42  ;;  %v3184_v47 = vpop.f32.mrf.mxu1  ;;  %v9436_v53 = vld [vmem:[#allocation10 + $0x118] sm:$0xff]  ;;  %12541 = vst [vmem:[#allocation118_spill] sm:$0xff] %v9439_v1  ;;  %v9442_v58 = vld [vmem:[#allocation10 + $0x110] sm:$0xff] }
 0x632   :  { %3373 = vmatprep.subr.mxu0 %v9433_v42  ;;  %12540 = vst [vmem:[#allocation117_spill] sm:$0xff] %v9436_v53  ;;  %3444 = vmatprep.subr.mxu1 %v9436_v53  ;;  %12542 = vst [vmem:[#allocation119_spill] sm:$0xff] %v9442_v58  ;;  %v9445_v60 = vld [vmem:[#allocation10 + $0xe8] sm:$0xff]  ;;  %v3185_v53 = vadd.f32 %v3184_v47, %v3042_v29  ;;  %v9454_v42 = vld [vmem:[#allocation10 + $0xf0] sm:$0xff] }
 0x633   :  { %5623 = vpow2.f32 %v5457_v26  ;;  %v5458_v50 = vmul.f32 -1.442695, %v3190_v24  ;;  %3374 = vmatpush1.msra.mxu0 %v9439_v1  ;;  %3445 = vmatpush1.msra.mxu1 %v9442_v58  ;;  %v9448_v26 = vld [vmem:[#allocation10 + $0xf8] sm:$0xff]  ;;  %v9451_v24 = vld [vmem:[#allocation10 + $0xe0] sm:$0xff]  ;;  %12545 = vst [vmem:[#allocation122_spill] sm:$0xff] %v9454_v42  ;;  %v9457_v1 = vld [vmem:[#allocation10 + $0xc8] sm:$0xff]  ;;  %v3186_v47 = vpop.f32.mrf.mxu1 }
 0x634   :  { %3375 = vmatprep.subr.mxu0 %v9445_v60  ;;  %12543 = vst [vmem:[#allocation120_spill] sm:$0xff] %v9448_v26  ;;  %3446 = vmatprep.subr.mxu1 %v9448_v26  ;;  %12544 = vst [vmem:[#allocation121_spill] sm:$0xff] %v9451_v24  ;;  %v9460_v58 = vld [vmem:[#allocation10 + $0xd8] sm:$0xff]  ;;  %v9466_v26 = vld [vmem:[#allocation10 + $0xd0] sm:$0xff] }
 0x635   :  { %5625 = vpow2.f32 %v5458_v50  ;;  %3376 = vmatpush1.msra.mxu0 %v9451_v24  ;;  %3447 = vmatpush1.msra.mxu1 %v9454_v42  ;;  %12546 = vst [vmem:[#allocation123_spill] sm:$0xff] %v9457_v1  ;;  %12547 = vst [vmem:[#allocation124_spill] sm:$0xff] %v9460_v58  ;;  %v9463_v50 = vld [vmem:[#allocation10 + $0xc0] sm:$0xff]  ;;  %v9469_v29 = vld [vmem:[#allocation10 + $0xa8] sm:$0xff] }
 0x636   :  { %3377 = vmatprep.subr.mxu0 %v9457_v1  ;;  %3448 = vmatprep.subr.mxu1 %v9460_v58  ;;  %12548 = vst [vmem:[#allocation125_spill] sm:$0xff] %v9463_v50  ;;  %12549 = vst [vmem:[#allocation126_spill] sm:$0xff] %v9466_v26  ;;  %v9472_v42 = vld [vmem:[#allocation10 + $0xb8] sm:$0xff]  ;;  %v9475_v1 = vld [vmem:[#allocation10 + $0xa0] sm:$0xff]  ;;  %v3191_v58 = vadd.f32 %v3185_v53, %v12350_v48 }
 0x637   :  { %3378 = vmatpush1.msra.mxu0 %v9463_v50  ;;  %3449 = vmatpush1.msra.mxu1 %v9466_v26  ;;  %12550 = vst [vmem:[#allocation127_spill] sm:$0xff] %v9469_v29  ;;  %12551 = vst [vmem:[#allocation128_spill] sm:$0xff] %v9472_v42  ;;  %v9479_v50 = vld [vmem:[#allocation10 + $0xb0] sm:$0xff]  ;;  %v9482_v26 = vld [vmem:[#allocation10 + $0x88] sm:$0xff] }
 0x638   :  { %3379 = vmatprep.subr.mxu0 %v9469_v29  ;;  %3450 = vmatprep.subr.mxu1 %v9472_v42  ;;  %12552 = vst [vmem:[#allocation129_spill] sm:$0xff] %v9475_v1  ;;  %12553 = vst [vmem:[#allocation130_spill] sm:$0xff] %v9479_v50  ;;  %v9485_v29 = vld [vmem:[#allocation10 + $0x98] sm:$0xff]  ;;  %v9488_v24 = vld [vmem:[#allocation10 + $0x80] sm:$0xff]  ;;  %v3187_v42 = vadd.f32 %v3186_v47, %v3044_v4 }
 0x639   :  { %3380 = vmatpush1.msra.mxu0 %v9475_v1  ;;  %3451 = vmatpush1.msra.mxu1 %v9479_v50  ;;  %12554 = vst [vmem:[#allocation131_spill] sm:$0xff] %v9482_v26  ;;  %12555 = vst [vmem:[#allocation132_spill] sm:$0xff] %v9485_v29  ;;  %v9491_v1 = vld [vmem:[#allocation10 + $0x90] sm:$0xff]  ;;  %v9494_v53 = vld [vmem:[#allocation10 + $0x68] sm:$0xff] }
 0x63a   :  { %3381 = vmatprep.subr.mxu0 %v9482_v26  ;;  %3452 = vmatprep.subr.mxu1 %v9485_v29  ;;  %12556 = vst [vmem:[#allocation133_spill] sm:$0xff] %v9488_v24  ;;  %12557 = vst [vmem:[#allocation134_spill] sm:$0xff] %v9491_v1  ;;  %v9497_v50 = vld [vmem:[#allocation10 + $0x78] sm:$0xff]  ;;  %v9500_v26 = vld [vmem:[#allocation10 + $0x60] sm:$0xff]  ;;  %v5459_v29 = vmul.f32 -1.442695, %v3191_v58 }
 0x63b   :  { %3382 = vmatpush1.msra.mxu0 %v9488_v24  ;;  %3453 = vmatpush1.msra.mxu1 %v9491_v1  ;;  %12558 = vst [vmem:[#allocation135_spill] sm:$0xff] %v9494_v53  ;;  %12559 = vst [vmem:[#allocation136_spill] sm:$0xff] %v9497_v50  ;;  %v9503_v48 = vld [vmem:[#allocation10 + $0x70] sm:$0xff]  ;;  %v9506_v4 = vld [vmem:[#allocation10 + $0x48] sm:$0xff] }
 0x63c   :  { %3383 = vmatprep.subr.mxu0 %v9494_v53  ;;  %3454 = vmatprep.subr.mxu1 %v9497_v50  ;;  %12560 = vst [vmem:[#allocation137_spill] sm:$0xff] %v9500_v26  ;;  %12561 = vst [vmem:[#allocation138_spill] sm:$0xff] %v9503_v48  ;;  %v9509_v47 = vld [vmem:[#allocation10 + $0x58] sm:$0xff]  ;;  %v9512_v53 = vld [vmem:[#allocation10 + $0x40] sm:$0xff]  ;;  %5627 = vpow2.f32 %v5459_v29 }
 0x63d   :  { %3384 = vmatpush1.msra.mxu0 %v9500_v26  ;;  %3455 = vmatpush1.msra.mxu1 %v9503_v48  ;;  %12562 = vst [vmem:[#allocation139_spill] sm:$0xff] %v9506_v4  ;;  %12563 = vst [vmem:[#allocation140_spill] sm:$0xff] %v9509_v47  ;;  %v3192_v26 = vadd.f32 %v3187_v42, %v12363_v18  ;;  %v9516_v58 = vld [vmem:[#allocation10 + $0x50] sm:$0xff]  ;;  %v9519_v48 = vld [vmem:[#allocation10 + $0x28] sm:$0xff] }
 0x63e   :  { %3385 = vmatprep.subr.mxu0 %v9506_v4  ;;  %3456 = vmatprep.subr.mxu1 %v9509_v47  ;;  %12564 = vst [vmem:[#allocation141_spill] sm:$0xff] %v9512_v53  ;;  %12565 = vst [vmem:[#allocation142_spill] sm:$0xff] %v9516_v58  ;;  %v9522_v1 = vld [vmem:[#allocation10 + $0x38] sm:$0xff]  ;;  %v9525_v47 = vld [vmem:[#allocation10 + $0x20] sm:$0xff] }
 0x63f   :  { %3386 = vmatpush1.msra.mxu0 %v9512_v53  ;;  %3457 = vmatpush1.msra.mxu1 %v9516_v58  ;;  %12566 = vst [vmem:[#allocation143_spill] sm:$0xff] %v9519_v48  ;;  %12567 = vst [vmem:[#allocation144_spill] sm:$0xff] %v9522_v1  ;;  %v9528_v42 = vld [vmem:[#allocation10 + $0x30] sm:$0xff]  ;;  %v9531_v58 = vld [vmem:[#allocation10 + $0x8] sm:$0xff] }
 0x640   :  { %v5624_v50 = vpop.eup %5623  ;;  %3387 = vmatprep.subr.mxu0 %v9519_v48  ;;  %3458 = vmatprep.subr.mxu1 %v9522_v1  ;;  %12568 = vst [vmem:[#allocation145_spill] sm:$0xff] %v9525_v47  ;;  %12569 = vst [vmem:[#allocation146_spill] sm:$0xff] %v9528_v42  ;;  %v9534_v48 = vld [vmem:[#allocation10 + $0x18] sm:$0xff]  ;;  %v9537_v1 = vld [vmem:[#allocation10] sm:$0xff] }
 0x641   :  { %v3202_v4 = vadd.f32 1.0, %v5624_v50  ;;  %3388 = vmatpush1.msra.mxu0 %v9525_v47  ;;  %3459 = vmatpush1.msra.mxu1 %v9528_v42  ;;  %12570 = vst [vmem:[#allocation147_spill] sm:$0xff] %v9531_v58  ;;  %12571 = vst [vmem:[#allocation148_spill] sm:$0xff] %v9534_v48  ;;  %v9540_v29 = vld [vmem:[#allocation10 + $0x10] sm:$0xff] }
 0x642   :  { %v5626_v53 = vpop.eup %5625  ;;  %3389 = vmatprep.subr.mxu0 %v9531_v58  ;;  %3460 = vmatprep.subr.mxu1 %v9534_v48  ;;  %12572 = vst [vmem:[#allocation149_spill] sm:$0xff] %v9537_v1  ;;  %12573 = vst [vmem:[#allocation150_spill] sm:$0xff] %v9540_v29 }
 0x643   :  { %5629 = vrcp.f32 %v3202_v4  ;;  %v3203_v50 = vadd.f32 1.0, %v5626_v53  ;;  %3390 = vmatpush1.msra.mxu0 %v9537_v1  ;;  %3461 = vmatpush1.msra.mxu1 %v9540_v29  ;;  %v9545_v4 = vld [vmem:[#allocation8 + $0x1e8] sm:$0xff]  ;;  %v9548_v53 = vld [vmem:[#allocation8 + $0x1f8] sm:$0xff] }
 0x644   :  { %5631 = vtanh.f32 %v3192_v26  ;;  %3423 = vmatprep.mubr.f32.mxu0 %v11702_v12  ;;  %3494 = vmatprep.mubr.f32.mxu1 %v11702_v12  ;;  %12574 = vst [vmem:[#allocation151_spill] sm:$0xff] %v9545_v4  ;;  %12575 = vst [vmem:[#allocation152_spill] sm:$0xff] %v9548_v53 }
 0x645   :  { %5633 = vrcp.f32 %v3203_v50  ;;  %3533 = vmatprep.subr.mxu0 %v9545_v4  ;;  %3604 = vmatprep.subr.mxu1 %v9548_v53  ;;  %v9559_v53 = vld [vmem:[#allocation8 + $0x1e0] sm:$0xff] }
 0x649   :  { %v5628_v48 = vpop.eup %5627 }
 0x64a   :  { %v3204_v42 = vadd.f32 1.0, %v5628_v48  ;;  %v9562_v48 = vld [vmem:[#allocation8 + $0x1f0] sm:$0xff] }
 0x64c   :  { %5635 = vrcp.f32 %v3204_v42  ;;  %v9580_v42 = vld [vmem:[#allocation8 + $0x1b8] sm:$0xff] }
 0x64d   :  { %12578 = vst [vmem:[#allocation159_spill] sm:$0xff] %v9580_v42 }
 0x650   :  { %v5630_v1 = vpop.eup %5629 }
 0x651   :  { %v5632_v26 = vpop.eup %5631 }
 0x652   :  { %v5634_v58 = vpop.eup %5633  ;;  %v3213_v47 = vmul.f32 %v5632_v26, %v5630_v1  ;;  %v9568_v1 = vld [vmem:[#allocation8 + $0x1d8] sm:$0xff]  ;;  %v9586_v26 = vld [vmem:[#allocation8 + $0x1b0] sm:$0xff] }
 0x653   :  { %v3212_v29 = vmul.f32 %v5634_v58, %v8896_v46  ;;  %v9565_v46 = vld [vmem:[#allocation8 + $0x1c8] sm:$0xff]  ;;  %12580 = vst [vmem:[#allocation161_spill] sm:$0xff] %v9586_v26 }
 0x654   :  { %v9577_v58 = vld [vmem:[#allocation8 + $0x1a8] sm:$0xff] }
 0x655   :  { %v9552_v18 = vadd.f32 %v3213_v47, %v3212_v29  ;;  %v9574_v47 = vld [vmem:[#allocation8 + $0x1d0] sm:$0xff]  ;;  %12577 = vst [vmem:[#allocation154_spill] sm:$0xff] %v9577_v58  ;;  %v9583_v29 = vld [vmem:[#allocation8 + $0x1a0] sm:$0xff] }
 0x656   :  { %12576 = vst [vmem:[#allocation153_spill] sm:$0xff] %v9574_v47  ;;  %12579 = vst [vmem:[#allocation160_spill] sm:$0xff] %v9583_v29 }
 0x657   :  { %5637 = vtanh.f32 %v9552_v18 }
 0x659   :  { %v5636_v50 = vpop.eup %5635 }
 0x664   :  { %v5638_v24 = vpop.eup %5637 }
 0x665   :  { %v9555_v4 = vmul.f32 %v5638_v24, %v5636_v50  ;;  %v9571_v24 = vld [vmem:[#allocation8 + $0x1c0] sm:$0xff]  ;;  %v9589_v50 = vld [vmem:[#allocation8 + $0x188] sm:$0xff] }
 0x666   :  { %12581 = vst [vmem:[#allocation162_spill] sm:$0xff] %v9589_v50 }
 0x667   :  { %3424 = vmatmul.mubr.f32.vlgmr.msra.gmra.mxu0 %v9555_v4  ;;  %3495 = vmatmul.mubr.f32.vlgmr.msra.gmra.mxu1 %v9555_v4 }
 0x668   :  { %3534 = vmatpush1.msra.mxu0 %v9559_v53  ;;  %3605 = vmatpush1.msra.mxu1 %v9562_v48 }
 0x669   :  { %3535 = vmatprep.subr.mxu0 %v9565_v46  ;;  %3606 = vmatprep.subr.mxu1 %v9568_v1 }
 0x66a   :  { %3536 = vmatpush1.msra.mxu0 %v9571_v24  ;;  %3607 = vmatpush1.msra.mxu1 %v9574_v47  ;;  %v9592_v47 = vld [vmem:[#allocation8 + $0x198] sm:$0xff] }
 0x66b   :  { %3537 = vmatprep.subr.mxu0 %v9577_v58  ;;  %3608 = vmatprep.subr.mxu1 %v9580_v42  ;;  %12582 = vst [vmem:[#allocation163_spill] sm:$0xff] %v9592_v47  ;;  %v9595_v58 = vld [vmem:[#allocation8 + $0x180] sm:$0xff]  ;;  %v9598_v42 = vld [vmem:[#allocation8 + $0x190] sm:$0xff] }
 0x66c   :  { %3538 = vmatpush1.msra.mxu0 %v9583_v29  ;;  %3609 = vmatpush1.msra.mxu1 %v9586_v26  ;;  %12583 = vst [vmem:[#allocation164_spill] sm:$0xff] %v9595_v58  ;;  %12584 = vst [vmem:[#allocation165_spill] sm:$0xff] %v9598_v42  ;;  %v9601_v29 = vld [vmem:[#allocation8 + $0x168] sm:$0xff]  ;;  %v9604_v26 = vld [vmem:[#allocation8 + $0x178] sm:$0xff] }
 0x66d   :  { %3539 = vmatprep.subr.mxu0 %v9589_v50  ;;  %3610 = vmatprep.subr.mxu1 %v9592_v47  ;;  %12585 = vst [vmem:[#allocation166_spill] sm:$0xff] %v9601_v29  ;;  %12586 = vst [vmem:[#allocation167_spill] sm:$0xff] %v9604_v26  ;;  %v9607_v50 = vld [vmem:[#allocation8 + $0x160] sm:$0xff]  ;;  %v9610_v47 = vld [vmem:[#allocation8 + $0x170] sm:$0xff] }
 0x66e   :  { %3540 = vmatpush1.msra.mxu0 %v9595_v58  ;;  %3611 = vmatpush1.msra.mxu1 %v9598_v42  ;;  %12587 = vst [vmem:[#allocation168_spill] sm:$0xff] %v9607_v50  ;;  %12588 = vst [vmem:[#allocation169_spill] sm:$0xff] %v9610_v47  ;;  %v9613_v58 = vld [vmem:[#allocation8 + $0x148] sm:$0xff]  ;;  %v9616_v42 = vld [vmem:[#allocation8 + $0x158] sm:$0xff] }
 0x66f   :  { %3541 = vmatprep.subr.mxu0 %v9601_v29  ;;  %3612 = vmatprep.subr.mxu1 %v9604_v26  ;;  %12589 = vst [vmem:[#allocation170_spill] sm:$0xff] %v9613_v58  ;;  %12590 = vst [vmem:[#allocation171_spill] sm:$0xff] %v9616_v42  ;;  %v9619_v29 = vld [vmem:[#allocation8 + $0x140] sm:$0xff]  ;;  %v9622_v26 = vld [vmem:[#allocation8 + $0x150] sm:$0xff] }
 0x670   :  { %3542 = vmatpush1.msra.mxu0 %v9607_v50  ;;  %3613 = vmatpush1.msra.mxu1 %v9610_v47  ;;  %12591 = vst [vmem:[#allocation172_spill] sm:$0xff] %v9619_v29  ;;  %12592 = vst [vmem:[#allocation173_spill] sm:$0xff] %v9622_v26  ;;  %v9625_v50 = vld [vmem:[#allocation8 + $0x128] sm:$0xff]  ;;  %v9628_v47 = vld [vmem:[#allocation8 + $0x138] sm:$0xff] }
 0x671   :  { %3543 = vmatprep.subr.mxu0 %v9613_v58  ;;  %3614 = vmatprep.subr.mxu1 %v9616_v42  ;;  %12593 = vst [vmem:[#allocation174_spill] sm:$0xff] %v9625_v50  ;;  %12594 = vst [vmem:[#allocation175_spill] sm:$0xff] %v9628_v47  ;;  %v9631_v58 = vld [vmem:[#allocation8 + $0x120] sm:$0xff]  ;;  %v9634_v42 = vld [vmem:[#allocation8 + $0x130] sm:$0xff] }
 0x672   :  { %3544 = vmatpush1.msra.mxu0 %v9619_v29  ;;  %3615 = vmatpush1.msra.mxu1 %v9622_v26  ;;  %12595 = vst [vmem:[#allocation176_spill] sm:$0xff] %v9631_v58  ;;  %12596 = vst [vmem:[#allocation177_spill] sm:$0xff] %v9634_v42  ;;  %v9637_v29 = vld [vmem:[#allocation8 + $0x108] sm:$0xff]  ;;  %v9640_v26 = vld [vmem:[#allocation8 + $0x118] sm:$0xff] }
 0x673   :  { %3545 = vmatprep.subr.mxu0 %v9625_v50  ;;  %3616 = vmatprep.subr.mxu1 %v9628_v47  ;;  %12597 = vst [vmem:[#allocation178_spill] sm:$0xff] %v9637_v29  ;;  %12598 = vst [vmem:[#allocation179_spill] sm:$0xff] %v9640_v26  ;;  %v9643_v50 = vld [vmem:[#allocation8 + $0x100] sm:$0xff]  ;;  %v9646_v47 = vld [vmem:[#allocation8 + $0x110] sm:$0xff] }
 0x674   :  { %3546 = vmatpush1.msra.mxu0 %v9631_v58  ;;  %3617 = vmatpush1.msra.mxu1 %v9634_v42  ;;  %12599 = vst [vmem:[#allocation180_spill] sm:$0xff] %v9643_v50  ;;  %12600 = vst [vmem:[#allocation181_spill] sm:$0xff] %v9646_v47  ;;  %v9649_v58 = vld [vmem:[#allocation8 + $0xe8] sm:$0xff]  ;;  %v9652_v42 = vld [vmem:[#allocation8 + $0xf8] sm:$0xff] }
 0x675   :  { %3547 = vmatprep.subr.mxu0 %v9637_v29  ;;  %3618 = vmatprep.subr.mxu1 %v9640_v26  ;;  %12601 = vst [vmem:[#allocation182_spill] sm:$0xff] %v9649_v58  ;;  %12602 = vst [vmem:[#allocation183_spill] sm:$0xff] %v9652_v42  ;;  %v9655_v29 = vld [vmem:[#allocation8 + $0xe0] sm:$0xff]  ;;  %v9658_v26 = vld [vmem:[#allocation8 + $0xf0] sm:$0xff] }
 0x676   :  { %3548 = vmatpush1.msra.mxu0 %v9643_v50  ;;  %3619 = vmatpush1.msra.mxu1 %v9646_v47  ;;  %12603 = vst [vmem:[#allocation184_spill] sm:$0xff] %v9655_v29  ;;  %12604 = vst [vmem:[#allocation185_spill] sm:$0xff] %v9658_v26  ;;  %v9661_v50 = vld [vmem:[#allocation8 + $0xc8] sm:$0xff]  ;;  %v9664_v47 = vld [vmem:[#allocation8 + $0xd8] sm:$0xff] }
 0x677   :  { %3549 = vmatprep.subr.mxu0 %v9649_v58  ;;  %3620 = vmatprep.subr.mxu1 %v9652_v42  ;;  %12605 = vst [vmem:[#allocation186_spill] sm:$0xff] %v9661_v50  ;;  %12606 = vst [vmem:[#allocation187_spill] sm:$0xff] %v9664_v47  ;;  %v9667_v58 = vld [vmem:[#allocation8 + $0xc0] sm:$0xff]  ;;  %v9670_v42 = vld [vmem:[#allocation8 + $0xd0] sm:$0xff] }
 0x678   :  { %3550 = vmatpush1.msra.mxu0 %v9655_v29  ;;  %3621 = vmatpush1.msra.mxu1 %v9658_v26  ;;  %12607 = vst [vmem:[#allocation188_spill] sm:$0xff] %v9667_v58  ;;  %12608 = vst [vmem:[#allocation189_spill] sm:$0xff] %v9670_v42  ;;  %v9673_v29 = vld [vmem:[#allocation8 + $0xa8] sm:$0xff]  ;;  %v9676_v26 = vld [vmem:[#allocation8 + $0xb8] sm:$0xff] }
 0x679   :  { %3551 = vmatprep.subr.mxu0 %v9661_v50  ;;  %3622 = vmatprep.subr.mxu1 %v9664_v47  ;;  %12609 = vst [vmem:[#allocation190_spill] sm:$0xff] %v9673_v29  ;;  %12610 = vst [vmem:[#allocation191_spill] sm:$0xff] %v9676_v26  ;;  %v9679_v50 = vld [vmem:[#allocation8 + $0xa0] sm:$0xff]  ;;  %v9682_v47 = vld [vmem:[#allocation8 + $0xb0] sm:$0xff] }
 0x67a   :  { %3552 = vmatpush1.msra.mxu0 %v9667_v58  ;;  %3623 = vmatpush1.msra.mxu1 %v9670_v42  ;;  %12611 = vst [vmem:[#allocation192_spill] sm:$0xff] %v9679_v50  ;;  %12612 = vst [vmem:[#allocation193_spill] sm:$0xff] %v9682_v47  ;;  %v9685_v58 = vld [vmem:[#allocation8 + $0x88] sm:$0xff]  ;;  %v9688_v42 = vld [vmem:[#allocation8 + $0x98] sm:$0xff] }
 0x67b   :  { %3553 = vmatprep.subr.mxu0 %v9673_v29  ;;  %3624 = vmatprep.subr.mxu1 %v9676_v26  ;;  %12613 = vst [vmem:[#allocation194_spill] sm:$0xff] %v9685_v58  ;;  %12614 = vst [vmem:[#allocation195_spill] sm:$0xff] %v9688_v42  ;;  %v9691_v29 = vld [vmem:[#allocation8 + $0x80] sm:$0xff]  ;;  %v9694_v26 = vld [vmem:[#allocation8 + $0x90] sm:$0xff] }
 0x67c   :  { %3554 = vmatpush1.msra.mxu0 %v9679_v50  ;;  %3625 = vmatpush1.msra.mxu1 %v9682_v47  ;;  %12615 = vst [vmem:[#allocation196_spill] sm:$0xff] %v9691_v29  ;;  %12616 = vst [vmem:[#allocation197_spill] sm:$0xff] %v9694_v26  ;;  %v9697_v50 = vld [vmem:[#allocation8 + $0x68] sm:$0xff]  ;;  %v9700_v47 = vld [vmem:[#allocation8 + $0x78] sm:$0xff] }
 0x67d   :  { %3555 = vmatprep.subr.mxu0 %v9685_v58  ;;  %3626 = vmatprep.subr.mxu1 %v9688_v42  ;;  %12617 = vst [vmem:[#allocation198_spill] sm:$0xff] %v9697_v50  ;;  %12618 = vst [vmem:[#allocation199_spill] sm:$0xff] %v9700_v47  ;;  %v9703_v58 = vld [vmem:[#allocation8 + $0x60] sm:$0xff]  ;;  %v9706_v42 = vld [vmem:[#allocation8 + $0x70] sm:$0xff] }
 0x67e   :  { %3556 = vmatpush1.msra.mxu0 %v9691_v29  ;;  %3627 = vmatpush1.msra.mxu1 %v9694_v26  ;;  %12619 = vst [vmem:[#allocation200_spill] sm:$0xff] %v9703_v58  ;;  %12620 = vst [vmem:[#allocation201_spill] sm:$0xff] %v9706_v42  ;;  %v9709_v29 = vld [vmem:[#allocation8 + $0x48] sm:$0xff]  ;;  %v9712_v26 = vld [vmem:[#allocation8 + $0x58] sm:$0xff] }
 0x67f   :  { %3557 = vmatprep.subr.mxu0 %v9697_v50  ;;  %3628 = vmatprep.subr.mxu1 %v9700_v47  ;;  %12621 = vst [vmem:[#allocation202_spill] sm:$0xff] %v9709_v29  ;;  %12622 = vst [vmem:[#allocation203_spill] sm:$0xff] %v9712_v26  ;;  %v9715_v50 = vld [vmem:[#allocation8 + $0x40] sm:$0xff]  ;;  %v9718_v47 = vld [vmem:[#allocation8 + $0x50] sm:$0xff] }
 0x680   :  { %3558 = vmatpush1.msra.mxu0 %v9703_v58  ;;  %3629 = vmatpush1.msra.mxu1 %v9706_v42  ;;  %12623 = vst [vmem:[#allocation204_spill] sm:$0xff] %v9715_v50  ;;  %12624 = vst [vmem:[#allocation205_spill] sm:$0xff] %v9718_v47  ;;  %v9721_v58 = vld [vmem:[#allocation8 + $0x28] sm:$0xff]  ;;  %v9724_v42 = vld [vmem:[#allocation8 + $0x38] sm:$0xff] }
 0x681   :  { %3559 = vmatprep.subr.mxu0 %v9709_v29  ;;  %3630 = vmatprep.subr.mxu1 %v9712_v26  ;;  %12625 = vst [vmem:[#allocation206_spill] sm:$0xff] %v9721_v58  ;;  %12626 = vst [vmem:[#allocation207_spill] sm:$0xff] %v9724_v42  ;;  %v9727_v29 = vld [vmem:[#allocation8 + $0x20] sm:$0xff]  ;;  %v9730_v26 = vld [vmem:[#allocation8 + $0x30] sm:$0xff] }
 0x682   :  { %3560 = vmatpush1.msra.mxu0 %v9715_v50  ;;  %3631 = vmatpush1.msra.mxu1 %v9718_v47  ;;  %12627 = vst [vmem:[#allocation208_spill] sm:$0xff] %v9730_v26  ;;  %v9733_v50 = vld [vmem:[#allocation8 + $0x8] sm:$0xff]  ;;  %v9736_v47 = vld [vmem:[#allocation8 + $0x18] sm:$0xff] }
 0x683   :  { %3561 = vmatprep.subr.mxu0 %v9721_v58  ;;  %3632 = vmatprep.subr.mxu1 %v9724_v42  ;;  %12628 = vst [vmem:[#allocation209_spill] sm:$0xff] %v9733_v50  ;;  %12629 = vst [vmem:[#allocation210_spill] sm:$0xff] %v9736_v47  ;;  %v9739_v58 = vld [vmem:[#allocation8] sm:$0xff]  ;;  %v9743_v42 = vld [vmem:[#allocation8 + $0x10] sm:$0xff] }
 0x684   :  { %3562 = vmatpush1.msra.mxu0 %v9727_v29  ;;  %3633 = vmatpush1.msra.mxu1 %v9730_v26  ;;  %12630 = vst [vmem:[#allocation211_spill] sm:$0xff] %v9739_v58  ;;  %12631 = vst [vmem:[#allocation212_spill] sm:$0xff] %v9743_v42  ;;  %v9758_v26 = vld [vmem:[#allocation6 + $0x1f0] sm:$0xff] }
 0x685   :  { %3563 = vmatprep.subr.mxu0 %v9733_v50  ;;  %3634 = vmatprep.subr.mxu1 %v9736_v47  ;;  %v9749_v50 = vld [vmem:[#allocation6 + $0x1e8] sm:$0xff]  ;;  %v9752_v47 = vld [vmem:[#allocation6 + $0x1f8] sm:$0xff]  ;;  %12635 = vst [vmem:[#allocation216_spill] sm:$0xff] %v9758_v26 }
 0x686   :  { %3564 = vmatpush1.msra.mxu0 %v9739_v58  ;;  %3597 = vmatprep.mubr.f32.mxu0 %v11702_v12  ;;  %12632 = vst [vmem:[#allocation213_spill] sm:$0xff] %v9749_v50  ;;  %12633 = vst [vmem:[#allocation214_spill] sm:$0xff] %v9752_v47  ;;  %v9755_v58 = vld [vmem:[#allocation6 + $0x1e0] sm:$0xff] }
 0x687   :  { %3635 = vmatpush1.msra.mxu1 %v9743_v42  ;;  %3668 = vmatprep.mubr.f32.mxu1 %v11702_v12  ;;  %12634 = vst [vmem:[#allocation215_spill] sm:$0xff] %v9755_v58  ;;  %v9761_v42 = vld [vmem:[#allocation6 + $0x1c8] sm:$0xff] }
 0x688   :  { %3598 = vmatmul.mubr.f32.vlgmr.msra.gmra.mxu0 %v9555_v4  ;;  %3669 = vmatmul.mubr.f32.vlgmr.msra.gmra.mxu1 %v9555_v4  ;;  %12636 = vst [vmem:[#allocation217_spill] sm:$0xff] %v9761_v42  ;;  %v9764_v4 = vld [vmem:[#allocation6 + $0x1d8] sm:$0xff] }
 0x689   :  { %3675 = vmatprep.subr.mxu0 %v9749_v50  ;;  %3746 = vmatprep.subr.mxu1 %v9752_v47  ;;  %12637 = vst [vmem:[#allocation218_spill] sm:$0xff] %v9764_v4  ;;  %v9767_v50 = vld [vmem:[#allocation6 + $0x1c0] sm:$0xff]  ;;  %v9770_v47 = vld [vmem:[#allocation6 + $0x1d0] sm:$0xff] }
 0x68a   :  { %3676 = vmatpush1.msra.mxu0 %v9755_v58  ;;  %3747 = vmatpush1.msra.mxu1 %v9758_v26  ;;  %v9773_v58 = vld [vmem:[#allocation6 + $0x1a8] sm:$0xff]  ;;  %v9776_v26 = vld [vmem:[#allocation6 + $0x1b8] sm:$0xff] }
 0x68b   :  { %3677 = vmatprep.subr.mxu0 %v9761_v42  ;;  %3748 = vmatprep.subr.mxu1 %v9764_v4  ;;  %v9779_v42 = vld [vmem:[#allocation6 + $0x1a0] sm:$0xff]  ;;  %v9782_v4 = vld [vmem:[#allocation6 + $0x1b0] sm:$0xff] }
 0x68c   :  { %3678 = vmatpush1.msra.mxu0 %v9767_v50  ;;  %3749 = vmatpush1.msra.mxu1 %v9770_v47 }
 0x68d   :  { %3679 = vmatprep.subr.mxu0 %v9773_v58  ;;  %3750 = vmatprep.subr.mxu1 %v9776_v26 }
 0x68e   :  { %3680 = vmatpush1.msra.mxu0 %v9779_v42  ;;  %3751 = vmatpush1.msra.mxu1 %v9782_v4 }
 0x68f   :  { %3681 = vmatprep.subr.mxu0 %v8981_v57  ;;  %3752 = vmatprep.subr.mxu1 %v8984_v55  ;;  %v12638_v57 = vld [vmem:[#allocation16_spill] sm:$0xff]  ;;  %v12639_v55 = vld [vmem:[#allocation17_spill] sm:$0xff] }
 0x690   :  { %3682 = vmatpush1.msra.mxu0 %v8987_v14  ;;  %3753 = vmatpush1.msra.mxu1 %v8990_v22  ;;  %v12640_v14 = vld [vmem:[#allocation18_spill] sm:$0xff]  ;;  %v12641_v22 = vld [vmem:[#allocation19_spill] sm:$0xff] }
 0x691   :  { %3683 = vmatprep.subr.mxu0 %v8993_v59  ;;  %3754 = vmatprep.subr.mxu1 %v8996_v25  ;;  %v12642_v59 = vld [vmem:[#allocation20_spill] sm:$0xff]  ;;  %v12643_v25 = vld [vmem:[#allocation21_spill] sm:$0xff] }
 0x692   :  { %3684 = vmatpush1.msra.mxu0 %v8999_v63  ;;  %3755 = vmatpush1.msra.mxu1 %v9002_v2  ;;  %v12644_v63 = vld [vmem:[#allocation22_spill] sm:$0xff]  ;;  %v12645_v2 = vld [vmem:[#allocation23_spill] sm:$0xff] }
 0x693   :  { %3685 = vmatprep.subr.mxu0 %v9005_v5  ;;  %3756 = vmatprep.subr.mxu1 %v9008_v15  ;;  %v12646_v5 = vld [vmem:[#allocation24_spill] sm:$0xff]  ;;  %v12647_v15 = vld [vmem:[#allocation25_spill] sm:$0xff] }
 0x694   :  { %3686 = vmatpush1.msra.mxu0 %v9011_v16  ;;  %3757 = vmatpush1.msra.mxu1 %v9014_v17  ;;  %v12648_v16 = vld [vmem:[#allocation27_spill] sm:$0xff]  ;;  %v12649_v17 = vld [vmem:[#allocation26_spill] sm:$0xff] }
 0x695   :  { %3687 = vmatprep.subr.mxu0 %v9017_v19  ;;  %3758 = vmatprep.subr.mxu1 %v9020_v20  ;;  %v12650_v19 = vld [vmem:[#allocation29_spill] sm:$0xff]  ;;  %v12651_v20 = vld [vmem:[#allocation28_spill] sm:$0xff] }
 0x696   :  { %3688 = vmatpush1.msra.mxu0 %v9023_v32  ;;  %3759 = vmatpush1.msra.mxu1 %v9026_v34  ;;  %v12652_v32 = vld [vmem:[#allocation31_spill] sm:$0xff]  ;;  %v12653_v34 = vld [vmem:[#allocation30_spill] sm:$0xff] }
 0x697   :  { %3689 = vmatprep.subr.mxu0 %v9029_v35  ;;  %3760 = vmatprep.subr.mxu1 %v9032_v10  ;;  %v5464_v35 = vld [vmem:[%s10866_s0 + $0x28] sm:$0xff] }
 0x698   :  { %3690 = vmatpush1.msra.mxu0 %v9035_v3  ;;  %3761 = vmatpush1.msra.mxu1 %v9038_v7  ;;  %v12654_v10 = vld [vmem:[#allocation33_spill] sm:$0xff]  ;;  %v12655_v3 = vld [vmem:[#allocation32_spill] sm:$0xff]  ;;  %v12656_v7 = vld [vmem:[#allocation35_spill] sm:$0xff] }
 0x699   :  { %3691 = vmatprep.subr.mxu0 %v9041_v9  ;;  %3762 = vmatprep.subr.mxu1 %v9044_v62  ;;  %v12657_v9 = vld [vmem:[#allocation34_spill] sm:$0xff]  ;;  %v12658_v62 = vld [vmem:[#allocation37_spill] sm:$0xff] }
 0x69a   :  { %3692 = vmatpush1.msra.mxu0 %v9047_v21  ;;  %3763 = vmatpush1.msra.mxu1 %v9050_v30  ;;  %v12659_v21 = vld [vmem:[#allocation36_spill] sm:$0xff]  ;;  %v12660_v30 = vld [vmem:[#allocation39_spill] sm:$0xff] }
 0x69b   :  { %3693 = vmatprep.subr.mxu0 %v9053_v0  ;;  %3764 = vmatprep.subr.mxu1 %v9056_v36  ;;  %v12661_v0 = vld [vmem:[#allocation38_spill] sm:$0xff]  ;;  %v12662_v36 = vld [vmem:[#allocation41_spill] sm:$0xff] }
 0x69c   :  { %3694 = vmatpush1.msra.mxu0 %v9059_v37  ;;  %3765 = vmatpush1.msra.mxu1 %v9062_v38  ;;  %v12663_v37 = vld [vmem:[#allocation40_spill] sm:$0xff]  ;;  %v12664_v38 = vld [vmem:[#allocation43_spill] sm:$0xff] }
 0x69d   :  { %3695 = vmatprep.subr.mxu0 %v9065_v40  ;;  %3766 = vmatprep.subr.mxu1 %v9068_v43  ;;  %v12665_v40 = vld [vmem:[#allocation42_spill] sm:$0xff]  ;;  %v12666_v43 = vld [vmem:[#allocation45_spill] sm:$0xff] }
 0x69e   :  { %3696 = vmatpush1.msra.mxu0 %v9071_v44  ;;  %3767 = vmatpush1.msra.mxu1 %v9074_v45  ;;  %v12667_v44 = vld [vmem:[#allocation44_spill] sm:$0xff]  ;;  %v12668_v45 = vld [vmem:[#allocation47_spill] sm:$0xff] }
 0x69f   :  { %3697 = vmatprep.subr.mxu0 %v9077_v27  ;;  %3768 = vmatprep.subr.mxu1 %v9080_v39  ;;  %v12669_v27 = vld [vmem:[#allocation46_spill] sm:$0xff]  ;;  %v12670_v39 = vld [vmem:[#allocation49_spill] sm:$0xff] }
 0x6a0   :  { %3698 = vmatpush1.msra.mxu0 %v12638_v57  ;;  %3769 = vmatpush1.msra.mxu1 %v12639_v55  ;;  %v12671_v57 = vld [vmem:[#allocation48_spill] sm:$0xff]  ;;  %v12672_v55 = vld [vmem:[#allocation51_spill] sm:$0xff] }
 0x6a1   :  { %3699 = vmatprep.subr.mxu0 %v12640_v14  ;;  %3770 = vmatprep.subr.mxu1 %v12641_v22  ;;  %v12673_v14 = vld [vmem:[#allocation50_spill] sm:$0xff]  ;;  %v12674_v22 = vld [vmem:[#allocation53_spill] sm:$0xff] }
 0x6a2   :  { %3700 = vmatpush1.msra.mxu0 %v12642_v59  ;;  %3771 = vmatpush1.msra.mxu1 %v12643_v25  ;;  %v12675_v59 = vld [vmem:[#allocation52_spill] sm:$0xff]  ;;  %v12676_v25 = vld [vmem:[#allocation55_spill] sm:$0xff] }
 0x6a3   :  { %3701 = vmatprep.subr.mxu0 %v12644_v63  ;;  %3772 = vmatprep.subr.mxu1 %v12645_v2  ;;  %v12677_v63 = vld [vmem:[#allocation54_spill] sm:$0xff]  ;;  %v12678_v2 = vld [vmem:[#allocation57_spill] sm:$0xff] }
 0x6a4   :  { %3702 = vmatpush1.msra.mxu0 %v12646_v5  ;;  %3773 = vmatpush1.msra.mxu1 %v12647_v15  ;;  %v12679_v5 = vld [vmem:[#allocation56_spill] sm:$0xff]  ;;  %v12680_v15 = vld [vmem:[#allocation59_spill] sm:$0xff] }
 0x6a5   :  { %3703 = vmatprep.subr.mxu0 %v12648_v16  ;;  %3774 = vmatprep.subr.mxu1 %v12649_v17  ;;  %v12681_v16 = vld [vmem:[#allocation58_spill] sm:$0xff]  ;;  %v12682_v17 = vld [vmem:[#allocation61_spill] sm:$0xff] }
 0x6a6   :  { %3704 = vmatpush1.msra.mxu0 %v12650_v19  ;;  %3775 = vmatpush1.msra.mxu1 %v12651_v20  ;;  %v12683_v19 = vld [vmem:[#allocation60_spill] sm:$0xff]  ;;  %v12684_v20 = vld [vmem:[#allocation63_spill] sm:$0xff] }
 0x6a7   :  { %3705 = vmatprep.subr.mxu0 %v12652_v32  ;;  %3776 = vmatprep.subr.mxu1 %v12653_v34  ;;  %v12685_v32 = vld [vmem:[#allocation62_spill] sm:$0xff]  ;;  %v12686_v34 = vld [vmem:[#allocation65_spill] sm:$0xff] }
 0x6a8   :  { %3706 = vmatpush1.msra.mxu0 %v12654_v10  ;;  %3739 = vmatprep.mubr.f32.mxu0 %v11702_v12  ;;  %v12688_v10 = vld [vmem:[#allocation67_spill] sm:$0xff] }
 0x6a9   :  { %3777 = vmatpush1.msra.mxu1 %v12655_v3  ;;  %3810 = vmatprep.mubr.f32.mxu1 %v11702_v12  ;;  %v12689_v3 = vld [vmem:[#allocation66_spill] sm:$0xff] }
 0x6aa   :  { %3740 = vmatmul.mubr.f32.vlgmr.msra.gmra.mxu0 %v5464_v35  ;;  %3811 = vmatmul.mubr.f32.vlgmr.msra.gmra.mxu1 %v5464_v35  ;;  %v12687_v35 = vld [vmem:[#allocation64_spill] sm:$0xff] }
 0x6ab   :  { %3845 = vmatprep.subr.mxu0 %v12656_v7  ;;  %3916 = vmatprep.subr.mxu1 %v12657_v9  ;;  %v12690_v7 = vld [vmem:[#allocation69_spill] sm:$0xff]  ;;  %v12691_v9 = vld [vmem:[#allocation68_spill] sm:$0xff] }
 0x6ac   :  { %3846 = vmatpush1.msra.mxu0 %v12658_v62  ;;  %3917 = vmatpush1.msra.mxu1 %v12659_v21  ;;  %v12692_v62 = vld [vmem:[#allocation71_spill] sm:$0xff]  ;;  %v12693_v21 = vld [vmem:[#allocation70_spill] sm:$0xff] }
 0x6ad   :  { %3847 = vmatprep.subr.mxu0 %v12660_v30  ;;  %3918 = vmatprep.subr.mxu1 %v12661_v0  ;;  %v12694_v30 = vld [vmem:[#allocation73_spill] sm:$0xff]  ;;  %v12695_v0 = vld [vmem:[#allocation72_spill] sm:$0xff] }
 0x6ae   :  { %3848 = vmatpush1.msra.mxu0 %v12662_v36  ;;  %3919 = vmatpush1.msra.mxu1 %v12663_v37  ;;  %v12696_v36 = vld [vmem:[#allocation75_spill] sm:$0xff]  ;;  %v12697_v37 = vld [vmem:[#allocation74_spill] sm:$0xff] }
 0x6af   :  { %3849 = vmatprep.subr.mxu0 %v12664_v38  ;;  %3920 = vmatprep.subr.mxu1 %v12665_v40  ;;  %v12698_v38 = vld [vmem:[#allocation77_spill] sm:$0xff]  ;;  %v12699_v40 = vld [vmem:[#allocation76_spill] sm:$0xff] }
 0x6b0   :  { %3850 = vmatpush1.msra.mxu0 %v12666_v43  ;;  %3921 = vmatpush1.msra.mxu1 %v12667_v44  ;;  %v12700_v43 = vld [vmem:[#allocation79_spill] sm:$0xff]  ;;  %v12701_v44 = vld [vmem:[#allocation78_spill] sm:$0xff] }
 0x6b1   :  { %3851 = vmatprep.subr.mxu0 %v12668_v45  ;;  %3922 = vmatprep.subr.mxu1 %v12669_v27  ;;  %v12702_v45 = vld [vmem:[#allocation81_spill] sm:$0xff]  ;;  %v12703_v27 = vld [vmem:[#allocation80_spill] sm:$0xff] }
 0x6b2   :  { %3852 = vmatpush1.msra.mxu0 %v12670_v39  ;;  %3923 = vmatpush1.msra.mxu1 %v12671_v57  ;;  %v12704_v39 = vld [vmem:[#allocation83_spill] sm:$0xff]  ;;  %v12705_v57 = vld [vmem:[#allocation82_spill] sm:$0xff] }
 0x6b3   :  { %3853 = vmatprep.subr.mxu0 %v12672_v55  ;;  %3924 = vmatprep.subr.mxu1 %v12673_v14  ;;  %v12706_v55 = vld [vmem:[#allocation85_spill] sm:$0xff]  ;;  %v12707_v14 = vld [vmem:[#allocation84_spill] sm:$0xff] }
 0x6b4   :  { %3854 = vmatpush1.msra.mxu0 %v12674_v22  ;;  %3925 = vmatpush1.msra.mxu1 %v12675_v59  ;;  %v12708_v22 = vld [vmem:[#allocation87_spill] sm:$0xff]  ;;  %v12709_v59 = vld [vmem:[#allocation86_spill] sm:$0xff] }
 0x6b5   :  { %3855 = vmatprep.subr.mxu0 %v12676_v25  ;;  %3926 = vmatprep.subr.mxu1 %v12677_v63  ;;  %v12710_v25 = vld [vmem:[#allocation88_spill] sm:$0xff]  ;;  %v12711_v63 = vld [vmem:[#allocation89_spill] sm:$0xff] }
 0x6b6   :  { %3856 = vmatpush1.msra.mxu0 %v12678_v2  ;;  %3927 = vmatpush1.msra.mxu1 %v12679_v5  ;;  %v12712_v2 = vld [vmem:[#allocation90_spill] sm:$0xff]  ;;  %v12713_v5 = vld [vmem:[#allocation91_spill] sm:$0xff] }
 0x6b7   :  { %3857 = vmatprep.subr.mxu0 %v12680_v15  ;;  %3928 = vmatprep.subr.mxu1 %v12681_v16  ;;  %v12714_v15 = vld [vmem:[#allocation92_spill] sm:$0xff]  ;;  %v12715_v16 = vld [vmem:[#allocation93_spill] sm:$0xff] }
 0x6b8   :  { %3858 = vmatpush1.msra.mxu0 %v12682_v17  ;;  %3929 = vmatpush1.msra.mxu1 %v12683_v19  ;;  %v12716_v17 = vld [vmem:[#allocation94_spill] sm:$0xff]  ;;  %v12717_v19 = vld [vmem:[#allocation95_spill] sm:$0xff] }
 0x6b9   :  { %3859 = vmatprep.subr.mxu0 %v12684_v20  ;;  %3930 = vmatprep.subr.mxu1 %v12685_v32  ;;  %v12718_v20 = vld [vmem:[#allocation96_spill] sm:$0xff]  ;;  %v12719_v32 = vld [vmem:[#allocation97_spill] sm:$0xff] }
 0x6ba   :  { %3860 = vmatpush1.msra.mxu0 %v12686_v34  ;;  %3931 = vmatpush1.msra.mxu1 %v12687_v35  ;;  %v12720_v34 = vld [vmem:[#allocation98_spill] sm:$0xff]  ;;  %v12721_v35 = vld [vmem:[#allocation99_spill] sm:$0xff] }
 0x6bb   :  { %3861 = vmatprep.subr.mxu0 %v12688_v10  ;;  %3932 = vmatprep.subr.mxu1 %v12689_v3 }
 0x6bc   :  { %3862 = vmatpush1.msra.mxu0 %v12690_v7  ;;  %3933 = vmatpush1.msra.mxu1 %v12691_v9 }
 0x6bd   :  { %3863 = vmatprep.subr.mxu0 %v12692_v62  ;;  %3934 = vmatprep.subr.mxu1 %v12693_v21 }
 0x6be   :  { %3864 = vmatpush1.msra.mxu0 %v12694_v30  ;;  %3935 = vmatpush1.msra.mxu1 %v12695_v0 }
 0x6bf   :  { %3865 = vmatprep.subr.mxu0 %v12696_v36  ;;  %3936 = vmatprep.subr.mxu1 %v12697_v37 }
 0x6c0   :  { %3866 = vmatpush1.msra.mxu0 %v12698_v38  ;;  %3937 = vmatpush1.msra.mxu1 %v12699_v40 }
 0x6c1   :  { %3867 = vmatprep.subr.mxu0 %v12700_v43  ;;  %3938 = vmatprep.subr.mxu1 %v12701_v44 }
 0x6c2   :  { %3868 = vmatpush1.msra.mxu0 %v12702_v45  ;;  %3939 = vmatpush1.msra.mxu1 %v12703_v27 }
 0x6c3   :  { %3869 = vmatprep.subr.mxu0 %v12704_v39  ;;  %3940 = vmatprep.subr.mxu1 %v12705_v57 }
 0x6c4   :  { %3870 = vmatpush1.msra.mxu0 %v12706_v55  ;;  %3941 = vmatpush1.msra.mxu1 %v12707_v14 }
 0x6c5   :  { %3871 = vmatprep.subr.mxu0 %v12708_v22  ;;  %3942 = vmatprep.subr.mxu1 %v12709_v59 }
 0x6c6   :  { %3872 = vmatpush1.msra.mxu0 %v12710_v25  ;;  %3943 = vmatpush1.msra.mxu1 %v12711_v63 }
 0x6c7   :  { %3873 = vmatprep.subr.mxu0 %v12712_v2  ;;  %3944 = vmatprep.subr.mxu1 %v12713_v5 }
 0x6c8   :  { %3874 = vmatpush1.msra.mxu0 %v12714_v15  ;;  %3945 = vmatpush1.msra.mxu1 %v12715_v16 }
 0x6c9   :  { %3875 = vmatprep.subr.mxu0 %v12716_v17  ;;  %3946 = vmatprep.subr.mxu1 %v12717_v19 }
 0x6ca   :  { %3876 = vmatpush1.msra.mxu0 %v12718_v20  ;;  %3909 = vmatprep.mubr.f32.mxu0 %v11702_v12 }
 0x6cb   :  { %3947 = vmatpush1.msra.mxu1 %v12719_v32  ;;  %3980 = vmatprep.mubr.f32.mxu1 %v11702_v12 }
 0x6cc   :  { %3987 = vmatprep.subr.mxu0 %v12720_v34  ;;  %4058 = vmatprep.subr.mxu1 %v12721_v35 }
 0x6e4   :  { %v3283_v10 = vpop.f32.mrf.mxu0  ;;  %v3354_v9 = vpop.f32.mrf.mxu1 }
 0x6e6   :  { %v3285_v3 = vpop.f32.mrf.mxu0  ;;  %v3356_v36 = vpop.f32.mrf.mxu1 }
 0x727   :  { %v3425_v7 = vpop.f32.mrf.mxu0  ;;  %v3496_v40 = vpop.f32.mrf.mxu1 }
 0x728   :  { %v3426_v62 = vadd.f32 %v3425_v7, %v3283_v10  ;;  %v3497_v44 = vadd.f32 %v3496_v40, %v3354_v9  ;;  %v12722_v10 = vld [vmem:[#allocation100_spill] sm:$0xff]  ;;  %v12724_v7 = vld [vmem:[#allocation102_spill] sm:$0xff]  ;;  %v12725_v9 = vld [vmem:[#allocation103_spill] sm:$0xff] }
 0x729   :  { %v3427_v21 = vpop.f32.mrf.mxu0  ;;  %v3498_v45 = vpop.f32.mrf.mxu1  ;;  %v12734_v40 = vld [vmem:[#allocation111_spill] sm:$0xff] }
 0x72a   :  { %v3501_v30 = vadd.f32 %v3426_v62, %v7705_v51  ;;  %v3428_v0 = vadd.f32 %v3427_v21, %v3285_v3  ;;  %v3503_v27 = vadd.f32 %v3497_v44, %v7715_v23  ;;  %v3499_v39 = vadd.f32 %v3498_v45, %v3356_v36  ;;  %v12723_v3 = vld [vmem:[#allocation101_spill] sm:$0xff]  ;;  %v12726_v62 = vld [vmem:[#allocation104_spill] sm:$0xff]  ;;  %v12732_v36 = vld [vmem:[#allocation110_spill] sm:$0xff] }
 0x72b   :  { %v12730_v21 = vld [vmem:[#allocation108_spill] sm:$0xff] }
 0x72c   :  { %v5460_v37 = vmul.f32 -1.442695, %v3501_v30  ;;  %v3502_v38 = vadd.f32 %v3428_v0, %v7709_v56  ;;  %v5462_v57 = vmul.f32 -1.442695, %v3503_v27  ;;  %v3504_v14 = vadd.f32 %v3499_v39, %v7720_v28  ;;  %v12736_v27 = vld [vmem:[#allocation113_spill] sm:$0xff] }
 0x72e   :  { %5639 = vpow2.f32 %v5460_v37  ;;  %v5461_v43 = vmul.f32 -1.442695, %v3502_v38  ;;  %v12733_v37 = vld [vmem:[#allocation155_spill] sm:$0xff] }
 0x730   :  { %5641 = vpow2.f32 %v5461_v43  ;;  %v12735_v43 = vld [vmem:[#allocation112_spill] sm:$0xff] }
 0x731   :  { %5643 = vpow2.f32 %v5462_v57 }
 0x73b   :  { %v5640_v55 = vpop.eup %5639 }
 0x73c   :  { %v3514_v22 = vadd.f32 1.0, %v5640_v55 }
 0x73d   :  { %v5642_v59 = vpop.eup %5641 }
 0x73e   :  { %5645 = vrcp.f32 %v3514_v22  ;;  %v3515_v25 = vadd.f32 1.0, %v5642_v59  ;;  %v5644_v63 = vpop.eup %5643  ;;  %v12738_v22 = vld [vmem:[#allocation114_spill] sm:$0xff]  ;;  %v12739_v59 = vld [vmem:[#allocation115_spill] sm:$0xff] }
 0x73f   :  { %5647 = vtanh.f32 %v3504_v14  ;;  %v3516_v16 = vadd.f32 1.0, %v5644_v63  ;;  %v12737_v14 = vld [vmem:[#allocation156_spill] sm:$0xff] }
 0x740   :  { %5649 = vrcp.f32 %v3515_v25  ;;  %v12740_v25 = vld [vmem:[#allocation116_spill] sm:$0xff] }
 0x741   :  { %5651 = vrcp.f32 %v3516_v16  ;;  %v12745_v16 = vld [vmem:[#allocation121_spill] sm:$0xff] }
 0x748   :  { %v3670_v30 = vpop.f32.mrf.mxu1 }
 0x74a   :  { %v3672_v39 = vpop.f32.mrf.mxu1 }
 0x74b   :  { %v5646_v2 = vpop.eup %5645 }
 0x74c   :  { %v5648_v5 = vpop.eup %5647 }
 0x74d   :  { %v5650_v15 = vpop.eup %5649  ;;  %v3525_v19 = vmul.f32 %v5648_v5, %v5646_v2  ;;  %v12743_v5 = vld [vmem:[#allocation119_spill] sm:$0xff] }
 0x74e   :  { %v3524_v17 = vmul.f32 %v5650_v15, %v9347_v49  ;;  %v5652_v32 = vpop.eup %5651  ;;  %v3599_v49 = vpop.f32.mrf.mxu0  ;;  %v12744_v15 = vld [vmem:[#allocation120_spill] sm:$0xff] }
 0x750   :  { %v9915_v20 = vadd.f32 %v3525_v19, %v3524_v17  ;;  %v12746_v19 = vld [vmem:[#allocation122_spill] sm:$0xff] }
 0x752   :  { %5653 = vtanh.f32 %v9915_v20 }
 0x75f   :  { %v5654_v34 = vpop.eup %5653 }
 0x760   :  { %v3528_v35 = vmul.f32 %v5654_v34, %v5652_v32  ;;  %v12747_v32 = vld [vmem:[#allocation123_spill] sm:$0xff]  ;;  %v12748_v34 = vld [vmem:[#allocation124_spill] sm:$0xff] }
 0x762   :  { %5463 = vst [vmem:[%s10873_s7 + $0x20] sm:$0xff] %v3528_v35  ;;  %3910 = vmatmul.mubr.f32.vlgmr.msra.gmra.mxu0 %v3528_v35  ;;  %3981 = vmatmul.mubr.f32.vlgmr.msra.gmra.mxu1 %v3528_v35  ;;  %v12749_v35 = vld [vmem:[#allocation125_spill] sm:$0xff] }
 0x763   :  { %3988 = vmatpush1.msra.mxu0 %v9353_v13  ;;  %4059 = vmatpush1.msra.mxu1 %v9356_v41  ;;  %v3601_v13 = vpop.f32.mrf.mxu0  ;;  %v12727_v41 = vld [vmem:[#allocation105_spill] sm:$0xff] }
 0x764   :  { %3989 = vmatprep.subr.mxu0 %v9359_v54  ;;  %4060 = vmatprep.subr.mxu1 %v9362_v52  ;;  %v12728_v54 = vld [vmem:[#allocation106_spill] sm:$0xff]  ;;  %v12729_v52 = vld [vmem:[#allocation107_spill] sm:$0xff] }
 0x765   :  { %3990 = vmatpush1.msra.mxu0 %v9365_v8  ;;  %4061 = vmatpush1.msra.mxu1 %v9368_v61  ;;  %v12731_v61 = vld [vmem:[#allocation109_spill] sm:$0xff] }
 0x766   :  { %3991 = vmatprep.subr.mxu0 %v12722_v10  ;;  %4062 = vmatprep.subr.mxu1 %v12723_v3  ;;  %v12751_v10 = vld [vmem:[#allocation127_spill] sm:$0xff] }
 0x767   :  { %3992 = vmatpush1.msra.mxu0 %v12724_v7  ;;  %4063 = vmatpush1.msra.mxu1 %v12725_v9  ;;  %v12753_v7 = vld [vmem:[#allocation129_spill] sm:$0xff] }
 0x768   :  { %3993 = vmatprep.subr.mxu0 %v12726_v62  ;;  %4064 = vmatprep.subr.mxu1 %v12727_v41  ;;  %v12754_v9 = vld [vmem:[#allocation157_spill] sm:$0xff]  ;;  %v12755_v62 = vld [vmem:[#allocation130_spill] sm:$0xff]  ;;  %v12756_v41 = vld [vmem:[#allocation131_spill] sm:$0xff] }
 0x769   :  { %3994 = vmatpush1.msra.mxu0 %v12728_v54  ;;  %4065 = vmatpush1.msra.mxu1 %v12729_v52  ;;  %v12757_v54 = vld [vmem:[#allocation132_spill] sm:$0xff]  ;;  %v12758_v52 = vld [vmem:[#allocation133_spill] sm:$0xff] }
 0x76a   :  { %v3741_v8 = vpop.f32.mrf.mxu0  ;;  %3995 = vmatprep.subr.mxu0 %v12730_v21  ;;  %4066 = vmatprep.subr.mxu1 %v12731_v61  ;;  %v3812_v63 = vpop.f32.mrf.mxu1  ;;  %v12759_v21 = vld [vmem:[#allocation134_spill] sm:$0xff]  ;;  %v12760_v61 = vld [vmem:[#allocation135_spill] sm:$0xff] }
 0x76b   :  { %v3742_v0 = vadd.f32 %v3741_v8, %v3599_v49  ;;  %3996 = vmatpush1.msra.mxu0 %v12732_v36  ;;  %4067 = vmatpush1.msra.mxu1 %v12733_v37  ;;  %v3813_v17 = vadd.f32 %v3812_v63, %v3670_v30  ;;  %v12750_v49 = vld [vmem:[#allocation126_spill] sm:$0xff]  ;;  %v12761_v30 = vld [vmem:[#allocation136_spill] sm:$0xff]  ;;  %v12773_v63 = vld [vmem:[#allocation147_spill] sm:$0xff] }
 0x76c   :  { %v3743_v38 = vpop.f32.mrf.mxu0  ;;  %3997 = vmatprep.subr.mxu0 %v12734_v40  ;;  %4068 = vmatprep.subr.mxu1 %v12735_v43  ;;  %v3814_v3 = vpop.f32.mrf.mxu1  ;;  %v12763_v37 = vld [vmem:[#allocation138_spill] sm:$0xff]  ;;  %v12765_v40 = vld [vmem:[#allocation140_spill] sm:$0xff]  ;;  %v12766_v43 = vld [vmem:[#allocation141_spill] sm:$0xff] }
 0x76d   :  { %v3817_v44 = vadd.f32 %v3742_v0, %v11929_v33  ;;  %v3744_v45 = vadd.f32 %v3743_v38, %v3601_v13  ;;  %3998 = vmatpush1.msra.mxu0 %v9414_v31  ;;  %4069 = vmatpush1.msra.mxu1 %v9417_v11  ;;  %v12741_v31 = vld [vmem:[#allocation117_spill] sm:$0xff]  ;;  %v12742_v11 = vld [vmem:[#allocation118_spill] sm:$0xff]  ;;  %v3819_v13 = vadd.f32 %v3813_v17, %v12754_v9  ;;  %v12764_v38 = vld [vmem:[#allocation139_spill] sm:$0xff] }
 0x76e   :  { %3999 = vmatprep.subr.mxu0 %v12736_v27  ;;  %4070 = vmatprep.subr.mxu1 %v12737_v14  ;;  %v3815_v8 = vadd.f32 %v3814_v3, %v3672_v39  ;;  %v12762_v0 = vld [vmem:[#allocation137_spill] sm:$0xff]  ;;  %v12768_v39 = vld [vmem:[#allocation142_spill] sm:$0xff]  ;;  %v12770_v14 = vld [vmem:[#allocation144_spill] sm:$0xff] }
 0x76f   :  { %v5465_v57 = vmul.f32 -1.442695, %v3817_v44  ;;  %v3818_v55 = vadd.f32 %v3744_v45, %v11933_v6  ;;  %4000 = vmatpush1.msra.mxu0 %v12738_v22  ;;  %4071 = vmatpush1.msra.mxu1 %v12739_v59  ;;  %v5467_v36 = vmul.f32 -1.442695, %v3819_v13  ;;  %v12767_v45 = vld [vmem:[#allocation158_spill] sm:$0xff]  ;;  %v12771_v22 = vld [vmem:[#allocation145_spill] sm:$0xff] }
 0x770   :  { %4001 = vmatprep.subr.mxu0 %v12740_v25  ;;  %4072 = vmatprep.subr.mxu1 %v12741_v31  ;;  %v3820_v27 = vadd.f32 %v3815_v8, %v12767_v45  ;;  %v12772_v25 = vld [vmem:[#allocation146_spill] sm:$0xff]  ;;  %v12774_v31 = vld [vmem:[#allocation148_spill] sm:$0xff] }
 0x771   :  { %5655 = vpow2.f32 %v5465_v57  ;;  %v5466_v2 = vmul.f32 -1.442695, %v3818_v55  ;;  %4002 = vmatpush1.msra.mxu0 %v12742_v11  ;;  %4073 = vmatpush1.msra.mxu1 %v12743_v5  ;;  %v12769_v57 = vld [vmem:[#allocation143_spill] sm:$0xff]  ;;  %v12775_v11 = vld [vmem:[#allocation149_spill] sm:$0xff]  ;;  %v12776_v5 = vld [vmem:[#allocation150_spill] sm:$0xff] }
 0x772   :  { %4003 = vmatprep.subr.mxu0 %v9445_v60  ;;  %4074 = vmatprep.subr.mxu1 %v12744_v15  ;;  %v12752_v60 = vld [vmem:[#allocation128_spill] sm:$0xff]  ;;  %v12777_v15 = vld [vmem:[#allocation151_spill] sm:$0xff]  ;;  %v12784_v8 = vld [vmem:[#allocation162_spill] sm:$0xff] }
 0x773   :  { %5657 = vpow2.f32 %v5466_v2  ;;  %4004 = vmatpush1.msra.mxu0 %v12745_v16  ;;  %4075 = vmatpush1.msra.mxu1 %v12746_v19  ;;  %v12778_v16 = vld [vmem:[#allocation152_spill] sm:$0xff] }
 0x774   :  { %4005 = vmatprep.subr.mxu0 %v12747_v32  ;;  %4076 = vmatprep.subr.mxu1 %v12748_v34  ;;  %5659 = vpow2.f32 %v5467_v36  ;;  %v12794_v36 = vld [vmem:[#allocation172_spill] sm:$0xff] }
 0x775   :  { %4006 = vmatpush1.msra.mxu0 %v12749_v35  ;;  %4077 = vmatpush1.msra.mxu1 %v12750_v49 }
 0x776   :  { %4007 = vmatprep.subr.mxu0 %v12751_v10  ;;  %4078 = vmatprep.subr.mxu1 %v12752_v60 }
 0x777   :  { %4008 = vmatpush1.msra.mxu0 %v12753_v7  ;;  %4079 = vmatpush1.msra.mxu1 %v12755_v62  ;;  %v12780_v62 = vld [vmem:[#allocation154_spill] sm:$0xff] }
 0x778   :  { %4009 = vmatprep.subr.mxu0 %v12756_v41  ;;  %4080 = vmatprep.subr.mxu1 %v12757_v54  ;;  %v12781_v41 = vld [vmem:[#allocation159_spill] sm:$0xff]  ;;  %v12782_v54 = vld [vmem:[#allocation160_spill] sm:$0xff] }
 0x779   :  { %4010 = vmatpush1.msra.mxu0 %v12758_v52  ;;  %4081 = vmatpush1.msra.mxu1 %v12759_v21  ;;  %v12783_v52 = vld [vmem:[#allocation161_spill] sm:$0xff]  ;;  %v12790_v21 = vld [vmem:[#allocation168_spill] sm:$0xff] }
 0x77a   :  { %4011 = vmatprep.subr.mxu0 %v12760_v61  ;;  %4082 = vmatprep.subr.mxu1 %v12761_v30  ;;  %v12791_v61 = vld [vmem:[#allocation169_spill] sm:$0xff]  ;;  %v12792_v30 = vld [vmem:[#allocation170_spill] sm:$0xff] }
 0x77b   :  { %4012 = vmatpush1.msra.mxu0 %v12762_v0  ;;  %4083 = vmatpush1.msra.mxu1 %v12763_v37  ;;  %v12793_v0 = vld [vmem:[#allocation171_spill] sm:$0xff]  ;;  %v12795_v37 = vld [vmem:[#allocation173_spill] sm:$0xff] }
 0x77c   :  { %4013 = vmatprep.subr.mxu0 %v12764_v38  ;;  %4084 = vmatprep.subr.mxu1 %v12765_v40  ;;  %v12796_v38 = vld [vmem:[#allocation174_spill] sm:$0xff]  ;;  %v12797_v40 = vld [vmem:[#allocation175_spill] sm:$0xff] }
 0x77d   :  { %4014 = vmatpush1.msra.mxu0 %v12766_v43  ;;  %4085 = vmatpush1.msra.mxu1 %v12768_v39  ;;  %v12798_v43 = vld [vmem:[#allocation176_spill] sm:$0xff]  ;;  %v12801_v39 = vld [vmem:[#allocation179_spill] sm:$0xff] }
 0x77e   :  { %v5656_v44 = vpop.eup %5655  ;;  %4015 = vmatprep.subr.mxu0 %v12769_v57  ;;  %4086 = vmatprep.subr.mxu1 %v12770_v14  ;;  %v12802_v57 = vld [vmem:[#allocation180_spill] sm:$0xff]  ;;  %v12804_v14 = vld [vmem:[#allocation182_spill] sm:$0xff] }
 0x77f   :  { %v3830_v55 = vadd.f32 1.0, %v5656_v44  ;;  %4016 = vmatpush1.msra.mxu0 %v12771_v22  ;;  %4087 = vmatpush1.msra.mxu1 %v12772_v25  ;;  %v12799_v44 = vld [vmem:[#allocation177_spill] sm:$0xff]  ;;  %v12805_v22 = vld [vmem:[#allocation183_spill] sm:$0xff] }
 0x780   :  { %v5658_v59 = vpop.eup %5657  ;;  %4017 = vmatprep.subr.mxu0 %v12773_v63  ;;  %4088 = vmatprep.subr.mxu1 %v12774_v31  ;;  %v12807_v25 = vld [vmem:[#allocation185_spill] sm:$0xff]  ;;  %v12808_v63 = vld [vmem:[#allocation186_spill] sm:$0xff]  ;;  %v12810_v31 = vld [vmem:[#allocation188_spill] sm:$0xff] }
 0x781   :  { %5661 = vrcp.f32 %v3830_v55  ;;  %v3831_v2 = vadd.f32 1.0, %v5658_v59  ;;  %4018 = vmatpush1.msra.mxu0 %v12775_v11  ;;  %4089 = vmatpush1.msra.mxu1 %v12776_v5  ;;  %v5660_v17 = vpop.eup %5659  ;;  %v12803_v55 = vld [vmem:[#allocation181_spill] sm:$0xff]  ;;  %v12806_v59 = vld [vmem:[#allocation184_spill] sm:$0xff]  ;;  %v12812_v5 = vld [vmem:[#allocation190_spill] sm:$0xff] }
 0x782   :  { %5663 = vtanh.f32 %v3820_v27  ;;  %4051 = vmatprep.mubr.f32.mxu0 %v11702_v12  ;;  %4122 = vmatprep.mubr.f32.mxu1 %v11702_v12  ;;  %v3832_v35 = vadd.f32 1.0, %v5660_v17  ;;  %v12800_v27 = vld [vmem:[#allocation178_spill] sm:$0xff]  ;;  %v12811_v11 = vld [vmem:[#allocation189_spill] sm:$0xff] }
 0x783   :  { %5665 = vrcp.f32 %v3831_v2  ;;  %4161 = vmatprep.subr.mxu0 %v12777_v15  ;;  %4232 = vmatprep.subr.mxu1 %v12778_v16  ;;  %v12809_v2 = vld [vmem:[#allocation187_spill] sm:$0xff]  ;;  %v12814_v16 = vld [vmem:[#allocation192_spill] sm:$0xff]  ;;  %v12815_v17 = vld [vmem:[#allocation193_spill] sm:$0xff] }
 0x784   :  { %5667 = vrcp.f32 %v3832_v35  ;;  %v12813_v15 = vld [vmem:[#allocation191_spill] sm:$0xff]  ;;  %v12819_v35 = vld [vmem:[#allocation197_spill] sm:$0xff] }
 0x78e   :  { %v5662_v19 = vpop.eup %5661 }
 0x78f   :  { %v5664_v32 = vpop.eup %5663 }
 0x790   :  { %v5666_v34 = vpop.eup %5665  ;;  %v3841_v10 = vmul.f32 %v5664_v32, %v5662_v19  ;;  %v12816_v19 = vld [vmem:[#allocation194_spill] sm:$0xff]  ;;  %v12817_v32 = vld [vmem:[#allocation195_spill] sm:$0xff] }
 0x791   :  { %v3840_v49 = vmul.f32 %v5666_v34, %v9552_v18  ;;  %v5668_v60 = vpop.eup %5667  ;;  %v12779_v18 = vld [vmem:[#allocation153_spill] sm:$0xff]  ;;  %v12818_v34 = vld [vmem:[#allocation196_spill] sm:$0xff] }
 0x793   :  { %v9992_v3 = vadd.f32 %v3841_v10, %v3840_v49  ;;  %v12820_v49 = vld [vmem:[#allocation198_spill] sm:$0xff]  ;;  %v12821_v10 = vld [vmem:[#allocation199_spill] sm:$0xff] }
 0x795   :  { %5669 = vtanh.f32 %v9992_v3 }
 0x7a2   :  { %v5670_v7 = vpop.eup %5669 }
 0x7a3   :  { %v9995_v13 = vmul.f32 %v5670_v7, %v5668_v60  ;;  %v12822_v60 = vld [vmem:[#allocation200_spill] sm:$0xff]  ;;  %v12823_v7 = vld [vmem:[#allocation201_spill] sm:$0xff] }
 0x7a5   :  { %4052 = vmatmul.mubr.f32.vlgmr.msra.gmra.mxu0 %v9995_v13  ;;  %4123 = vmatmul.mubr.f32.vlgmr.msra.gmra.mxu1 %v9995_v13 }
 0x7a6   :  { %4162 = vmatpush1.msra.mxu0 %v9559_v53  ;;  %4233 = vmatpush1.msra.mxu1 %v9562_v48  ;;  %v12785_v53 = vld [vmem:[#allocation163_spill] sm:$0xff]  ;;  %v12786_v48 = vld [vmem:[#allocation164_spill] sm:$0xff] }
 0x7a7   :  { %4163 = vmatprep.subr.mxu0 %v9565_v46  ;;  %4234 = vmatprep.subr.mxu1 %v9568_v1  ;;  %v12787_v46 = vld [vmem:[#allocation165_spill] sm:$0xff]  ;;  %v12788_v1 = vld [vmem:[#allocation166_spill] sm:$0xff] }
 0x7a8   :  { %4164 = vmatpush1.msra.mxu0 %v9571_v24  ;;  %4235 = vmatpush1.msra.mxu1 %v12779_v18  ;;  %v12789_v24 = vld [vmem:[#allocation167_spill] sm:$0xff]  ;;  %v12824_v18 = vld [vmem:[#allocation202_spill] sm:$0xff] }
 0x7a9   :  { %4165 = vmatprep.subr.mxu0 %v12780_v62  ;;  %4236 = vmatprep.subr.mxu1 %v12781_v41  ;;  %v12825_v62 = vld [vmem:[#allocation203_spill] sm:$0xff]  ;;  %v12826_v41 = vld [vmem:[#allocation204_spill] sm:$0xff] }
 0x7aa   :  { %4166 = vmatpush1.msra.mxu0 %v12782_v54  ;;  %4237 = vmatpush1.msra.mxu1 %v12783_v52  ;;  %v12827_v54 = vld [vmem:[#allocation205_spill] sm:$0xff]  ;;  %v12828_v52 = vld [vmem:[#allocation206_spill] sm:$0xff] }
 0x7ab   :  { %4167 = vmatprep.subr.mxu0 %v12784_v8  ;;  %4238 = vmatprep.subr.mxu1 %v12785_v53  ;;  %v12829_v8 = vld [vmem:[#allocation207_spill] sm:$0xff]  ;;  %v12830_v53 = vld [vmem:[#allocation208_spill] sm:$0xff] }
 0x7ac   :  { %4168 = vmatpush1.msra.mxu0 %v12786_v48  ;;  %4239 = vmatpush1.msra.mxu1 %v12787_v46  ;;  %v12831_v48 = vld [vmem:[#allocation209_spill] sm:$0xff]  ;;  %v12832_v46 = vld [vmem:[#allocation210_spill] sm:$0xff] }
 0x7ad   :  { %4169 = vmatprep.subr.mxu0 %v12788_v1  ;;  %4240 = vmatprep.subr.mxu1 %v12789_v24  ;;  %v12833_v1 = vld [vmem:[#allocation211_spill] sm:$0xff]  ;;  %v12834_v24 = vld [vmem:[#allocation212_spill] sm:$0xff] }
 0x7ae   :  { %4170 = vmatpush1.msra.mxu0 %v12790_v21  ;;  %4241 = vmatpush1.msra.mxu1 %v12791_v61  ;;  %v12835_v21 = vld [vmem:[#allocation213_spill] sm:$0xff]  ;;  %v12837_v61 = vld [vmem:[#allocation215_spill] sm:$0xff] }
 0x7af   :  { %4171 = vmatprep.subr.mxu0 %v12792_v30  ;;  %4242 = vmatprep.subr.mxu1 %v12793_v0  ;;  %v12838_v30 = vld [vmem:[#allocation216_spill] sm:$0xff]  ;;  %v12839_v0 = vld [vmem:[#allocation217_spill] sm:$0xff] }
 0x7b0   :  { %4172 = vmatpush1.msra.mxu0 %v12794_v36  ;;  %4243 = vmatpush1.msra.mxu1 %v12795_v37  ;;  %v12840_v36 = vld [vmem:[#allocation218_spill] sm:$0xff]  ;;  %v10080_v37 = vld [vmem:[#allocation6 + $0x198] sm:$0xff] }
 0x7b1   :  { %4173 = vmatprep.subr.mxu0 %v12796_v38  ;;  %4244 = vmatprep.subr.mxu1 %v12797_v40  ;;  %v10083_v38 = vld [vmem:[#allocation6 + $0x180] sm:$0xff]  ;;  %v10104_v40 = vld [vmem:[#allocation6 + $0x158] sm:$0xff] }
 0x7b2   :  { %4174 = vmatpush1.msra.mxu0 %v12798_v43  ;;  %4245 = vmatpush1.msra.mxu1 %v12799_v44  ;;  %v10107_v43 = vld [vmem:[#allocation6 + $0x140] sm:$0xff]  ;;  %v10110_v44 = vld [vmem:[#allocation6 + $0x150] sm:$0xff] }
 0x7b3   :  { %4175 = vmatprep.subr.mxu0 %v12800_v27  ;;  %4246 = vmatprep.subr.mxu1 %v12801_v39  ;;  %v10113_v27 = vld [vmem:[#allocation6 + $0x128] sm:$0xff]  ;;  %v10116_v39 = vld [vmem:[#allocation6 + $0x138] sm:$0xff] }
 0x7b4   :  { %4176 = vmatpush1.msra.mxu0 %v12802_v57  ;;  %4247 = vmatpush1.msra.mxu1 %v12803_v55  ;;  %v10119_v57 = vld [vmem:[#allocation6 + $0x120] sm:$0xff]  ;;  %v10122_v55 = vld [vmem:[#allocation6 + $0x130] sm:$0xff] }
 0x7b5   :  { %4177 = vmatprep.subr.mxu0 %v12804_v14  ;;  %4248 = vmatprep.subr.mxu1 %v12805_v22  ;;  %v10125_v14 = vld [vmem:[#allocation6 + $0x108] sm:$0xff]  ;;  %v10128_v22 = vld [vmem:[#allocation6 + $0x118] sm:$0xff] }
 0x7b6   :  { %4178 = vmatpush1.msra.mxu0 %v12806_v59  ;;  %4249 = vmatpush1.msra.mxu1 %v12807_v25  ;;  %v10131_v59 = vld [vmem:[#allocation6 + $0x100] sm:$0xff]  ;;  %v10134_v25 = vld [vmem:[#allocation6 + $0x110] sm:$0xff] }
 0x7b7   :  { %4179 = vmatprep.subr.mxu0 %v12808_v63  ;;  %4250 = vmatprep.subr.mxu1 %v12809_v2  ;;  %v10137_v63 = vld [vmem:[#allocation6 + $0xe8] sm:$0xff]  ;;  %v10140_v2 = vld [vmem:[#allocation6 + $0xf8] sm:$0xff] }
 0x7b8   :  { %4180 = vmatpush1.msra.mxu0 %v12810_v31  ;;  %4251 = vmatpush1.msra.mxu1 %v12811_v11  ;;  %v10143_v31 = vld [vmem:[#allocation6 + $0xe0] sm:$0xff]  ;;  %v10146_v11 = vld [vmem:[#allocation6 + $0xf0] sm:$0xff] }
 0x7b9   :  { %4181 = vmatprep.subr.mxu0 %v12812_v5  ;;  %4252 = vmatprep.subr.mxu1 %v12813_v15  ;;  %v10149_v5 = vld [vmem:[#allocation6 + $0xc8] sm:$0xff]  ;;  %v10152_v15 = vld [vmem:[#allocation6 + $0xd8] sm:$0xff] }
 0x7ba   :  { %4182 = vmatpush1.msra.mxu0 %v12814_v16  ;;  %4253 = vmatpush1.msra.mxu1 %v12815_v17  ;;  %v10155_v16 = vld [vmem:[#allocation6 + $0xc0] sm:$0xff]  ;;  %v10158_v17 = vld [vmem:[#allocation6 + $0xd0] sm:$0xff] }
 0x7bb   :  { %4183 = vmatprep.subr.mxu0 %v12816_v19  ;;  %4254 = vmatprep.subr.mxu1 %v12817_v32  ;;  %v10161_v19 = vld [vmem:[#allocation6 + $0xa8] sm:$0xff]  ;;  %v10164_v32 = vld [vmem:[#allocation6 + $0xb8] sm:$0xff] }
 0x7bc   :  { %4184 = vmatpush1.msra.mxu0 %v12818_v34  ;;  %4255 = vmatpush1.msra.mxu1 %v12819_v35  ;;  %v10167_v34 = vld [vmem:[#allocation6 + $0xa0] sm:$0xff]  ;;  %v10170_v35 = vld [vmem:[#allocation6 + $0xb0] sm:$0xff] }
 0x7bd   :  { %4185 = vmatprep.subr.mxu0 %v12820_v49  ;;  %4256 = vmatprep.subr.mxu1 %v12821_v10  ;;  %v10173_v49 = vld [vmem:[#allocation6 + $0x88] sm:$0xff]  ;;  %v10176_v10 = vld [vmem:[#allocation6 + $0x98] sm:$0xff] }
 0x7be   :  { %4186 = vmatpush1.msra.mxu0 %v12822_v60  ;;  %4257 = vmatpush1.msra.mxu1 %v12823_v7  ;;  %v10179_v60 = vld [vmem:[#allocation6 + $0x80] sm:$0xff]  ;;  %v10182_v7 = vld [vmem:[#allocation6 + $0x90] sm:$0xff] }
 0x7bf   :  { %4187 = vmatprep.subr.mxu0 %v12824_v18  ;;  %4258 = vmatprep.subr.mxu1 %v12825_v62  ;;  %12841 = vst [vmem:[#allocation16_spill] sm:$0xff] %v10179_v60  ;;  %12842 = vst [vmem:[#allocation17_spill] sm:$0xff] %v10182_v7  ;;  %v10185_v18 = vld [vmem:[#allocation6 + $0x68] sm:$0xff]  ;;  %v10188_v62 = vld [vmem:[#allocation6 + $0x78] sm:$0xff] }
 0x7c0   :  { %4188 = vmatpush1.msra.mxu0 %v12826_v41  ;;  %4259 = vmatpush1.msra.mxu1 %v12827_v54  ;;  %12843 = vst [vmem:[#allocation18_spill] sm:$0xff] %v10185_v18  ;;  %12844 = vst [vmem:[#allocation19_spill] sm:$0xff] %v10188_v62  ;;  %v10191_v41 = vld [vmem:[#allocation6 + $0x60] sm:$0xff]  ;;  %v10194_v54 = vld [vmem:[#allocation6 + $0x70] sm:$0xff] }
 0x7c1   :  { %4189 = vmatprep.subr.mxu0 %v12828_v52  ;;  %4260 = vmatprep.subr.mxu1 %v12829_v8  ;;  %12845 = vst [vmem:[#allocation20_spill] sm:$0xff] %v10191_v41  ;;  %12846 = vst [vmem:[#allocation21_spill] sm:$0xff] %v10194_v54  ;;  %v10197_v52 = vld [vmem:[#allocation6 + $0x48] sm:$0xff]  ;;  %v10200_v8 = vld [vmem:[#allocation6 + $0x58] sm:$0xff] }
 0x7c2   :  { %4190 = vmatpush1.msra.mxu0 %v9727_v29  ;;  %4261 = vmatpush1.msra.mxu1 %v12830_v53  ;;  %v12836_v29 = vld [vmem:[#allocation214_spill] sm:$0xff]  ;;  %12847 = vst [vmem:[#allocation22_spill] sm:$0xff] %v10197_v52  ;;  %12848 = vst [vmem:[#allocation23_spill] sm:$0xff] %v10200_v8  ;;  %v10203_v53 = vld [vmem:[#allocation6 + $0x40] sm:$0xff] }
 0x7c3   :  { %4191 = vmatprep.subr.mxu0 %v12831_v48  ;;  %4262 = vmatprep.subr.mxu1 %v12832_v46  ;;  %12849 = vst [vmem:[#allocation24_spill] sm:$0xff] %v10203_v53  ;;  %v10206_v48 = vld [vmem:[#allocation6 + $0x50] sm:$0xff]  ;;  %v10209_v46 = vld [vmem:[#allocation6 + $0x28] sm:$0xff] }
 0x7c4   :  { %4192 = vmatpush1.msra.mxu0 %v12833_v1  ;;  %4225 = vmatprep.mubr.f32.mxu0 %v11702_v12  ;;  %12850 = vst [vmem:[#allocation25_spill] sm:$0xff] %v10206_v48  ;;  %12851 = vst [vmem:[#allocation27_spill] sm:$0xff] %v10209_v46  ;;  %v10212_v1 = vld [vmem:[#allocation6 + $0x38] sm:$0xff] }
 0x7c5   :  { %4263 = vmatpush1.msra.mxu1 %v12834_v24  ;;  %4296 = vmatprep.mubr.f32.mxu1 %v11702_v12  ;;  %12852 = vst [vmem:[#allocation26_spill] sm:$0xff] %v10212_v1  ;;  %v10215_v24 = vld [vmem:[#allocation6 + $0x20] sm:$0xff] }
 0x7c6   :  { %4226 = vmatmul.mubr.f32.vlgmr.msra.gmra.mxu0 %v9995_v13  ;;  %4297 = vmatmul.mubr.f32.vlgmr.msra.gmra.mxu1 %v9995_v13  ;;  %v10077_v13 = vld [vmem:[#allocation6 + $0x188] sm:$0xff]  ;;  %12853 = vst [vmem:[#allocation29_spill] sm:$0xff] %v10215_v24 }
 0x7c7   :  { %4303 = vmatprep.subr.mxu0 %v12835_v21  ;;  %4374 = vmatprep.subr.mxu1 %v12836_v29  ;;  %v10218_v21 = vld [vmem:[#allocation6 + $0x30] sm:$0xff]  ;;  %v10221_v29 = vld [vmem:[#allocation6 + $0x8] sm:$0xff] }
 0x7c8   :  { %4304 = vmatpush1.msra.mxu0 %v12837_v61  ;;  %4375 = vmatpush1.msra.mxu1 %v12838_v30  ;;  %12854 = vst [vmem:[#allocation28_spill] sm:$0xff] %v10218_v21  ;;  %12855 = vst [vmem:[#allocation31_spill] sm:$0xff] %v10221_v29  ;;  %v10224_v61 = vld [vmem:[#allocation6 + $0x18] sm:$0xff]  ;;  %v5472_v30 = vld [vmem:[%s10866_s0 + $0x30] sm:$0xff] }
 0x7c9   :  { %4305 = vmatprep.subr.mxu0 %v12839_v0  ;;  %4376 = vmatprep.subr.mxu1 %v12840_v36  ;;  %12856 = vst [vmem:[#allocation30_spill] sm:$0xff] %v10224_v61  ;;  %v10230_v0 = vld [vmem:[#allocation6] sm:$0xff]  ;;  %v10234_v36 = vld [vmem:[#allocation6 + $0x10] sm:$0xff] }
 0x7ca   :  { %4306 = vmatpush1.msra.mxu0 %v9767_v50  ;;  %4377 = vmatpush1.msra.mxu1 %v9770_v47  ;;  %v10086_v47 = vld [vmem:[#allocation6 + $0x190] sm:$0xff]  ;;  %12857 = vst [vmem:[#allocation33_spill] sm:$0xff] %v10230_v0  ;;  %12858 = vst [vmem:[#allocation32_spill] sm:$0xff] %v10234_v36 }
 0x7cb   :  { %4307 = vmatprep.subr.mxu0 %v9773_v58  ;;  %4378 = vmatprep.subr.mxu1 %v9776_v26  ;;  %v10089_v58 = vld [vmem:[#allocation6 + $0x168] sm:$0xff]  ;;  %v10095_v26 = vld [vmem:[#allocation6 + $0x160] sm:$0xff]  ;;  %v10098_v50 = vld [vmem:[#allocation6 + $0x170] sm:$0xff] }
 0x7cc   :  { %4308 = vmatpush1.msra.mxu0 %v9779_v42  ;;  %4379 = vmatpush1.msra.mxu1 %v9782_v4  ;;  %v10092_v42 = vld [vmem:[#allocation6 + $0x178] sm:$0xff]  ;;  %v10101_v4 = vld [vmem:[#allocation6 + $0x148] sm:$0xff] }
 0x7cd   :  { %4309 = vmatprep.subr.mxu0 %v10077_v13  ;;  %4380 = vmatprep.subr.mxu1 %v10080_v37 }
 0x7ce   :  { %4310 = vmatpush1.msra.mxu0 %v10083_v38  ;;  %4381 = vmatpush1.msra.mxu1 %v10086_v47 }
 0x7cf   :  { %4311 = vmatprep.subr.mxu0 %v10089_v58  ;;  %4382 = vmatprep.subr.mxu1 %v10092_v42 }
 0x7d0   :  { %4312 = vmatpush1.msra.mxu0 %v10095_v26  ;;  %4383 = vmatpush1.msra.mxu1 %v10098_v50 }
 0x7d1   :  { %4313 = vmatprep.subr.mxu0 %v10101_v4  ;;  %4384 = vmatprep.subr.mxu1 %v10104_v40 }
 0x7d2   :  { %4314 = vmatpush1.msra.mxu0 %v10107_v43  ;;  %4385 = vmatpush1.msra.mxu1 %v10110_v44 }
 0x7d3   :  { %4315 = vmatprep.subr.mxu0 %v10113_v27  ;;  %4386 = vmatprep.subr.mxu1 %v10116_v39 }
 0x7d4   :  { %4316 = vmatpush1.msra.mxu0 %v10119_v57  ;;  %4387 = vmatpush1.msra.mxu1 %v10122_v55 }
 0x7d5   :  { %4317 = vmatprep.subr.mxu0 %v10125_v14  ;;  %4388 = vmatprep.subr.mxu1 %v10128_v22 }
 0x7d6   :  { %4318 = vmatpush1.msra.mxu0 %v10131_v59  ;;  %4389 = vmatpush1.msra.mxu1 %v10134_v25 }
 0x7d7   :  { %4319 = vmatprep.subr.mxu0 %v10137_v63  ;;  %4390 = vmatprep.subr.mxu1 %v10140_v2 }
 0x7d8   :  { %4320 = vmatpush1.msra.mxu0 %v10143_v31  ;;  %4391 = vmatpush1.msra.mxu1 %v10146_v11 }
 0x7d9   :  { %4321 = vmatprep.subr.mxu0 %v10149_v5  ;;  %4392 = vmatprep.subr.mxu1 %v10152_v15 }
 0x7da   :  { %4322 = vmatpush1.msra.mxu0 %v10155_v16  ;;  %4393 = vmatpush1.msra.mxu1 %v10158_v17 }
 0x7db   :  { %4323 = vmatprep.subr.mxu0 %v10161_v19  ;;  %4394 = vmatprep.subr.mxu1 %v10164_v32 }
 0x7dc   :  { %4324 = vmatpush1.msra.mxu0 %v10167_v34  ;;  %4395 = vmatpush1.msra.mxu1 %v10170_v35 }
 0x7dd   :  { %4325 = vmatprep.subr.mxu0 %v10173_v49  ;;  %4396 = vmatprep.subr.mxu1 %v10176_v10 }
 0x7de   :  { %4326 = vmatpush1.msra.mxu0 %v10179_v60  ;;  %4397 = vmatpush1.msra.mxu1 %v10182_v7 }
 0x7df   :  { %4327 = vmatprep.subr.mxu0 %v10185_v18  ;;  %4398 = vmatprep.subr.mxu1 %v10188_v62 }
 0x7e0   :  { %4328 = vmatpush1.msra.mxu0 %v10191_v41  ;;  %4399 = vmatpush1.msra.mxu1 %v10194_v54 }
 0x7e1   :  { %4329 = vmatprep.subr.mxu0 %v10197_v52  ;;  %4400 = vmatprep.subr.mxu1 %v10200_v8 }
 0x7e2   :  { %4330 = vmatpush1.msra.mxu0 %v10203_v53  ;;  %4401 = vmatpush1.msra.mxu1 %v10206_v48 }
 0x7e3   :  { %4331 = vmatprep.subr.mxu0 %v10209_v46  ;;  %4402 = vmatprep.subr.mxu1 %v10212_v1 }
 0x7e4   :  { %4332 = vmatpush1.msra.mxu0 %v10215_v24  ;;  %4403 = vmatpush1.msra.mxu1 %v10218_v21  ;;  %v10244_v21 = vld [vmem:[#allocation11 + $0x1e0] sm:$0xff] }
 0x7e5   :  { %4333 = vmatprep.subr.mxu0 %v10221_v29  ;;  %4404 = vmatprep.subr.mxu1 %v10224_v61  ;;  %v10238_v29 = vld [vmem:[#allocation11 + $0x1e8] sm:$0xff]  ;;  %v10241_v61 = vld [vmem:[#allocation11 + $0x1f8] sm:$0xff]  ;;  %12861 = vst [vmem:[#allocation37_spill] sm:$0xff] %v10244_v21 }
 0x7e6   :  { %4334 = vmatpush1.msra.mxu0 %v10230_v0  ;;  %4367 = vmatprep.mubr.f32.mxu0 %v11702_v12  ;;  %12859 = vst [vmem:[#allocation35_spill] sm:$0xff] %v10238_v29  ;;  %12860 = vst [vmem:[#allocation34_spill] sm:$0xff] %v10241_v61  ;;  %v10247_v0 = vld [vmem:[#allocation11 + $0x1f0] sm:$0xff] }
 0x7e7   :  { %4405 = vmatpush1.msra.mxu1 %v10234_v36  ;;  %4438 = vmatprep.mubr.f32.mxu1 %v11702_v12  ;;  %12862 = vst [vmem:[#allocation36_spill] sm:$0xff] %v10247_v0  ;;  %v10250_v36 = vld [vmem:[#allocation11 + $0x1c8] sm:$0xff] }
 0x7e8   :  { %4368 = vmatmul.mubr.f32.vlgmr.msra.gmra.mxu0 %v5472_v30  ;;  %4439 = vmatmul.mubr.f32.vlgmr.msra.gmra.mxu1 %v5472_v30  ;;  %12863 = vst [vmem:[#allocation39_spill] sm:$0xff] %v10250_v36  ;;  %v10253_v30 = vld [vmem:[#allocation11 + $0x1d8] sm:$0xff] }
 0x7e9   :  { %4473 = vmatprep.subr.mxu0 %v10238_v29  ;;  %4544 = vmatprep.subr.mxu1 %v10241_v61  ;;  %12864 = vst [vmem:[#allocation38_spill] sm:$0xff] %v10253_v30  ;;  %v10256_v29 = vld [vmem:[#allocation11 + $0x1c0] sm:$0xff]  ;;  %v10259_v61 = vld [vmem:[#allocation11 + $0x1d0] sm:$0xff] }
 0x7ea   :  { %4474 = vmatpush1.msra.mxu0 %v10244_v21  ;;  %4545 = vmatpush1.msra.mxu1 %v10247_v0  ;;  %12865 = vst [vmem:[#allocation41_spill] sm:$0xff] %v10256_v29  ;;  %12866 = vst [vmem:[#allocation40_spill] sm:$0xff] %v10259_v61  ;;  %v10262_v21 = vld [vmem:[#allocation11 + $0x1a8] sm:$0xff]  ;;  %v10265_v0 = vld [vmem:[#allocation11 + $0x1b8] sm:$0xff] }
 0x7eb   :  { %4475 = vmatprep.subr.mxu0 %v10250_v36  ;;  %4546 = vmatprep.subr.mxu1 %v10253_v30  ;;  %12867 = vst [vmem:[#allocation43_spill] sm:$0xff] %v10262_v21  ;;  %12868 = vst [vmem:[#allocation42_spill] sm:$0xff] %v10265_v0  ;;  %v10268_v36 = vld [vmem:[#allocation11 + $0x1a0] sm:$0xff]  ;;  %v10271_v30 = vld [vmem:[#allocation11 + $0x1b0] sm:$0xff] }
 0x7ec   :  { %4476 = vmatpush1.msra.mxu0 %v10256_v29  ;;  %4547 = vmatpush1.msra.mxu1 %v10259_v61  ;;  %12869 = vst [vmem:[#allocation45_spill] sm:$0xff] %v10268_v36  ;;  %12870 = vst [vmem:[#allocation44_spill] sm:$0xff] %v10271_v30  ;;  %v10274_v29 = vld [vmem:[#allocation11 + $0x188] sm:$0xff]  ;;  %v10277_v61 = vld [vmem:[#allocation11 + $0x198] sm:$0xff] }
 0x7ed   :  { %4477 = vmatprep.subr.mxu0 %v10262_v21  ;;  %4548 = vmatprep.subr.mxu1 %v10265_v0  ;;  %12871 = vst [vmem:[#allocation47_spill] sm:$0xff] %v10274_v29  ;;  %12872 = vst [vmem:[#allocation46_spill] sm:$0xff] %v10277_v61  ;;  %v10280_v21 = vld [vmem:[#allocation11 + $0x180] sm:$0xff]  ;;  %v10283_v0 = vld [vmem:[#allocation11 + $0x190] sm:$0xff] }
 0x7ee   :  { %4478 = vmatpush1.msra.mxu0 %v10268_v36  ;;  %4549 = vmatpush1.msra.mxu1 %v10271_v30  ;;  %12873 = vst [vmem:[#allocation49_spill] sm:$0xff] %v10280_v21  ;;  %12874 = vst [vmem:[#allocation48_spill] sm:$0xff] %v10283_v0  ;;  %v10286_v36 = vld [vmem:[#allocation11 + $0x168] sm:$0xff]  ;;  %v10289_v30 = vld [vmem:[#allocation11 + $0x178] sm:$0xff] }
 0x7ef   :  { %4479 = vmatprep.subr.mxu0 %v10274_v29  ;;  %4550 = vmatprep.subr.mxu1 %v10277_v61  ;;  %12875 = vst [vmem:[#allocation51_spill] sm:$0xff] %v10286_v36  ;;  %12876 = vst [vmem:[#allocation50_spill] sm:$0xff] %v10289_v30  ;;  %v10292_v29 = vld [vmem:[#allocation11 + $0x160] sm:$0xff]  ;;  %v10295_v61 = vld [vmem:[#allocation11 + $0x170] sm:$0xff] }
 0x7f0   :  { %4480 = vmatpush1.msra.mxu0 %v10280_v21  ;;  %4551 = vmatpush1.msra.mxu1 %v10283_v0  ;;  %12877 = vst [vmem:[#allocation53_spill] sm:$0xff] %v10292_v29  ;;  %12878 = vst [vmem:[#allocation52_spill] sm:$0xff] %v10295_v61  ;;  %v10298_v21 = vld [vmem:[#allocation11 + $0x148] sm:$0xff]  ;;  %v10301_v0 = vld [vmem:[#allocation11 + $0x158] sm:$0xff] }
 0x7f1   :  { %4481 = vmatprep.subr.mxu0 %v10286_v36  ;;  %4552 = vmatprep.subr.mxu1 %v10289_v30  ;;  %12879 = vst [vmem:[#allocation55_spill] sm:$0xff] %v10298_v21  ;;  %12880 = vst [vmem:[#allocation54_spill] sm:$0xff] %v10301_v0  ;;  %v10304_v36 = vld [vmem:[#allocation11 + $0x140] sm:$0xff]  ;;  %v10307_v30 = vld [vmem:[#allocation11 + $0x150] sm:$0xff] }
 0x7f2   :  { %4482 = vmatpush1.msra.mxu0 %v10292_v29  ;;  %4553 = vmatpush1.msra.mxu1 %v10295_v61  ;;  %12881 = vst [vmem:[#allocation57_spill] sm:$0xff] %v10304_v36  ;;  %12882 = vst [vmem:[#allocation56_spill] sm:$0xff] %v10307_v30  ;;  %v10310_v29 = vld [vmem:[#allocation11 + $0x128] sm:$0xff]  ;;  %v10313_v61 = vld [vmem:[#allocation11 + $0x138] sm:$0xff] }
 0x7f3   :  { %4483 = vmatprep.subr.mxu0 %v10298_v21  ;;  %4554 = vmatprep.subr.mxu1 %v10301_v0  ;;  %12883 = vst [vmem:[#allocation59_spill] sm:$0xff] %v10310_v29  ;;  %12884 = vst [vmem:[#allocation58_spill] sm:$0xff] %v10313_v61  ;;  %v10316_v21 = vld [vmem:[#allocation11 + $0x120] sm:$0xff]  ;;  %v10319_v0 = vld [vmem:[#allocation11 + $0x130] sm:$0xff] }
 0x7f4   :  { %4484 = vmatpush1.msra.mxu0 %v10304_v36  ;;  %4555 = vmatpush1.msra.mxu1 %v10307_v30  ;;  %12885 = vst [vmem:[#allocation61_spill] sm:$0xff] %v10316_v21  ;;  %12886 = vst [vmem:[#allocation60_spill] sm:$0xff] %v10319_v0  ;;  %v10322_v36 = vld [vmem:[#allocation11 + $0x108] sm:$0xff]  ;;  %v10325_v30 = vld [vmem:[#allocation11 + $0x118] sm:$0xff] }
 0x7f5   :  { %4485 = vmatprep.subr.mxu0 %v10310_v29  ;;  %4556 = vmatprep.subr.mxu1 %v10313_v61  ;;  %12887 = vst [vmem:[#allocation63_spill] sm:$0xff] %v10322_v36  ;;  %12888 = vst [vmem:[#allocation62_spill] sm:$0xff] %v10325_v30  ;;  %v10328_v29 = vld [vmem:[#allocation11 + $0x100] sm:$0xff]  ;;  %v10331_v61 = vld [vmem:[#allocation11 + $0x110] sm:$0xff] }
 0x7f6   :  { %4486 = vmatpush1.msra.mxu0 %v10316_v21  ;;  %4557 = vmatpush1.msra.mxu1 %v10319_v0  ;;  %12889 = vst [vmem:[#allocation65_spill] sm:$0xff] %v10328_v29  ;;  %12890 = vst [vmem:[#allocation64_spill] sm:$0xff] %v10331_v61  ;;  %v10334_v21 = vld [vmem:[#allocation11 + $0xe8] sm:$0xff]  ;;  %v10337_v0 = vld [vmem:[#allocation11 + $0xf8] sm:$0xff] }
 0x7f7   :  { %4487 = vmatprep.subr.mxu0 %v10322_v36  ;;  %4558 = vmatprep.subr.mxu1 %v10325_v30  ;;  %12891 = vst [vmem:[#allocation67_spill] sm:$0xff] %v10334_v21  ;;  %12892 = vst [vmem:[#allocation66_spill] sm:$0xff] %v10337_v0  ;;  %v10340_v36 = vld [vmem:[#allocation11 + $0xe0] sm:$0xff]  ;;  %v10343_v30 = vld [vmem:[#allocation11 + $0xf0] sm:$0xff] }
 0x7f8   :  { %4488 = vmatpush1.msra.mxu0 %v10328_v29  ;;  %4559 = vmatpush1.msra.mxu1 %v10331_v61  ;;  %12893 = vst [vmem:[#allocation69_spill] sm:$0xff] %v10340_v36  ;;  %12894 = vst [vmem:[#allocation68_spill] sm:$0xff] %v10343_v30  ;;  %v10346_v29 = vld [vmem:[#allocation11 + $0xc8] sm:$0xff]  ;;  %v10349_v61 = vld [vmem:[#allocation11 + $0xd8] sm:$0xff] }
 0x7f9   :  { %4489 = vmatprep.subr.mxu0 %v10334_v21  ;;  %4560 = vmatprep.subr.mxu1 %v10337_v0  ;;  %12895 = vst [vmem:[#allocation71_spill] sm:$0xff] %v10346_v29  ;;  %12896 = vst [vmem:[#allocation70_spill] sm:$0xff] %v10349_v61  ;;  %v10352_v21 = vld [vmem:[#allocation11 + $0xc0] sm:$0xff]  ;;  %v10355_v0 = vld [vmem:[#allocation11 + $0xd0] sm:$0xff] }
 0x7fa   :  { %4490 = vmatpush1.msra.mxu0 %v10340_v36  ;;  %4561 = vmatpush1.msra.mxu1 %v10343_v30  ;;  %12897 = vst [vmem:[#allocation73_spill] sm:$0xff] %v10352_v21  ;;  %12898 = vst [vmem:[#allocation72_spill] sm:$0xff] %v10355_v0  ;;  %v10358_v36 = vld [vmem:[#allocation11 + $0xa8] sm:$0xff]  ;;  %v10361_v30 = vld [vmem:[#allocation11 + $0xb8] sm:$0xff] }
 0x7fb   :  { %4491 = vmatprep.subr.mxu0 %v10346_v29  ;;  %4562 = vmatprep.subr.mxu1 %v10349_v61  ;;  %12899 = vst [vmem:[#allocation75_spill] sm:$0xff] %v10358_v36  ;;  %12900 = vst [vmem:[#allocation74_spill] sm:$0xff] %v10361_v30  ;;  %v10364_v29 = vld [vmem:[#allocation11 + $0xa0] sm:$0xff]  ;;  %v10367_v61 = vld [vmem:[#allocation11 + $0xb0] sm:$0xff] }
 0x7fc   :  { %4492 = vmatpush1.msra.mxu0 %v10352_v21  ;;  %4563 = vmatpush1.msra.mxu1 %v10355_v0  ;;  %12901 = vst [vmem:[#allocation77_spill] sm:$0xff] %v10364_v29  ;;  %12902 = vst [vmem:[#allocation76_spill] sm:$0xff] %v10367_v61  ;;  %v10370_v21 = vld [vmem:[#allocation11 + $0x88] sm:$0xff]  ;;  %v10373_v0 = vld [vmem:[#allocation11 + $0x98] sm:$0xff] }
 0x7fd   :  { %4493 = vmatprep.subr.mxu0 %v10358_v36  ;;  %4564 = vmatprep.subr.mxu1 %v10361_v30  ;;  %12903 = vst [vmem:[#allocation79_spill] sm:$0xff] %v10370_v21  ;;  %12904 = vst [vmem:[#allocation78_spill] sm:$0xff] %v10373_v0  ;;  %v10376_v36 = vld [vmem:[#allocation11 + $0x80] sm:$0xff]  ;;  %v10379_v30 = vld [vmem:[#allocation11 + $0x90] sm:$0xff] }
 0x7fe   :  { %4494 = vmatpush1.msra.mxu0 %v10364_v29  ;;  %4565 = vmatpush1.msra.mxu1 %v10367_v61  ;;  %12905 = vst [vmem:[#allocation81_spill] sm:$0xff] %v10376_v36  ;;  %12906 = vst [vmem:[#allocation80_spill] sm:$0xff] %v10379_v30  ;;  %v10382_v29 = vld [vmem:[#allocation11 + $0x68] sm:$0xff]  ;;  %v10385_v61 = vld [vmem:[#allocation11 + $0x78] sm:$0xff] }
 0x7ff   :  { %4495 = vmatprep.subr.mxu0 %v10370_v21  ;;  %4566 = vmatprep.subr.mxu1 %v10373_v0  ;;  %12907 = vst [vmem:[#allocation83_spill] sm:$0xff] %v10382_v29  ;;  %12908 = vst [vmem:[#allocation82_spill] sm:$0xff] %v10385_v61  ;;  %v10388_v21 = vld [vmem:[#allocation11 + $0x60] sm:$0xff]  ;;  %v10391_v0 = vld [vmem:[#allocation11 + $0x70] sm:$0xff] }
 0x800   :  { %4496 = vmatpush1.msra.mxu0 %v10376_v36  ;;  %4567 = vmatpush1.msra.mxu1 %v10379_v30  ;;  %12909 = vst [vmem:[#allocation85_spill] sm:$0xff] %v10388_v21  ;;  %12910 = vst [vmem:[#allocation84_spill] sm:$0xff] %v10391_v0  ;;  %v10394_v36 = vld [vmem:[#allocation11 + $0x48] sm:$0xff]  ;;  %v10397_v30 = vld [vmem:[#allocation11 + $0x58] sm:$0xff] }
 0x801   :  { %4497 = vmatprep.subr.mxu0 %v10382_v29  ;;  %4568 = vmatprep.subr.mxu1 %v10385_v61  ;;  %12911 = vst [vmem:[#allocation87_spill] sm:$0xff] %v10394_v36  ;;  %12912 = vst [vmem:[#allocation86_spill] sm:$0xff] %v10397_v30  ;;  %v10400_v29 = vld [vmem:[#allocation11 + $0x40] sm:$0xff]  ;;  %v10403_v61 = vld [vmem:[#allocation11 + $0x50] sm:$0xff] }
 0x802   :  { %4498 = vmatpush1.msra.mxu0 %v10388_v21  ;;  %4569 = vmatpush1.msra.mxu1 %v10391_v0  ;;  %12913 = vst [vmem:[#allocation88_spill] sm:$0xff] %v10400_v29  ;;  %12914 = vst [vmem:[#allocation89_spill] sm:$0xff] %v10403_v61  ;;  %v10406_v21 = vld [vmem:[#allocation11 + $0x28] sm:$0xff]  ;;  %v10409_v0 = vld [vmem:[#allocation11 + $0x38] sm:$0xff] }
 0x803   :  { %4499 = vmatprep.subr.mxu0 %v10394_v36  ;;  %4570 = vmatprep.subr.mxu1 %v10397_v30  ;;  %12915 = vst [vmem:[#allocation90_spill] sm:$0xff] %v10406_v21  ;;  %12916 = vst [vmem:[#allocation91_spill] sm:$0xff] %v10409_v0  ;;  %v10412_v36 = vld [vmem:[#allocation11 + $0x20] sm:$0xff]  ;;  %v10415_v30 = vld [vmem:[#allocation11 + $0x30] sm:$0xff] }
 0x804   :  { %4500 = vmatpush1.msra.mxu0 %v10400_v29  ;;  %4571 = vmatpush1.msra.mxu1 %v10403_v61  ;;  %12917 = vst [vmem:[#allocation92_spill] sm:$0xff] %v10412_v36  ;;  %12918 = vst [vmem:[#allocation93_spill] sm:$0xff] %v10415_v30  ;;  %v10418_v29 = vld [vmem:[#allocation11 + $0x8] sm:$0xff]  ;;  %v10421_v61 = vld [vmem:[#allocation11 + $0x18] sm:$0xff] }
 0x805   :  { %4501 = vmatprep.subr.mxu0 %v10406_v21  ;;  %4572 = vmatprep.subr.mxu1 %v10409_v0  ;;  %12919 = vst [vmem:[#allocation94_spill] sm:$0xff] %v10418_v29  ;;  %12920 = vst [vmem:[#allocation95_spill] sm:$0xff] %v10421_v61  ;;  %v10424_v21 = vld [vmem:[#allocation11] sm:$0xff]  ;;  %v10428_v0 = vld [vmem:[#allocation11 + $0x10] sm:$0xff] }
 0x806   :  { %4502 = vmatpush1.msra.mxu0 %v10412_v36  ;;  %4573 = vmatpush1.msra.mxu1 %v10415_v30  ;;  %12921 = vst [vmem:[#allocation96_spill] sm:$0xff] %v10424_v21  ;;  %12922 = vst [vmem:[#allocation97_spill] sm:$0xff] %v10428_v0  ;;  %v10432_v30 = vld [vmem:[#allocation10 + $0x1e8] sm:$0xff] }
 0x807   :  { %4503 = vmatprep.subr.mxu0 %v10418_v29  ;;  %4574 = vmatprep.subr.mxu1 %v10421_v61  ;;  %12923 = vst [vmem:[#allocation98_spill] sm:$0xff] %v10432_v30  ;;  %v10435_v29 = vld [vmem:[#allocation10 + $0x1f8] sm:$0xff] }
 0x808   :  { %4504 = vmatpush1.msra.mxu0 %v10424_v21  ;;  %4537 = vmatprep.mubr.f32.mxu0 %v11702_v12  ;;  %12924 = vst [vmem:[#allocation99_spill] sm:$0xff] %v10435_v29 }
 0x809   :  { %4575 = vmatpush1.msra.mxu1 %v10428_v0  ;;  %4608 = vmatprep.mubr.f32.mxu1 %v11702_v12 }
 0x80a   :  { %4615 = vmatprep.subr.mxu0 %v10432_v30  ;;  %4686 = vmatprep.subr.mxu1 %v10435_v29 }
 0x822   :  { %v3911_v61 = vpop.f32.mrf.mxu0  ;;  %v3982_v21 = vpop.f32.mrf.mxu1 }
 0x824   :  { %v3913_v36 = vpop.f32.mrf.mxu0  ;;  %v3984_v0 = vpop.f32.mrf.mxu1 }
 0x865   :  { %v4053_v24 = vpop.f32.mrf.mxu0  ;;  %v4124_v54 = vpop.f32.mrf.mxu1 }
 0x866   :  { %v4054_v1 = vadd.f32 %v4053_v24, %v3911_v61  ;;  %v4125_v41 = vadd.f32 %v4124_v54, %v3982_v21 }
 0x867   :  { %v4055_v46 = vpop.f32.mrf.mxu0  ;;  %v4126_v62 = vpop.f32.mrf.mxu1 }
 0x868   :  { %v4129_v48 = vadd.f32 %v4054_v1, %v7705_v51  ;;  %v4056_v53 = vadd.f32 %v4055_v46, %v3913_v36  ;;  %v4131_v29 = vadd.f32 %v4125_v41, %v7715_v23  ;;  %v4127_v18 = vadd.f32 %v4126_v62, %v3984_v0  ;;  %v10455_v36 = vld [vmem:[#allocation10 + $0x1c8] sm:$0xff] }
 0x86a   :  { %v5468_v8 = vmul.f32 -1.442695, %v4129_v48  ;;  %v4130_v52 = vadd.f32 %v4056_v53, %v7709_v56  ;;  %v5470_v7 = vmul.f32 -1.442695, %v4131_v29  ;;  %v4132_v24 = vadd.f32 %v4127_v18, %v7720_v28  ;;  %v10449_v29 = vld [vmem:[#allocation10 + $0x1e0] sm:$0xff] }
 0x86c   :  { %5671 = vpow2.f32 %v5468_v8  ;;  %v5469_v30 = vmul.f32 -1.442695, %v4130_v52 }
 0x86e   :  { %5673 = vpow2.f32 %v5469_v30  ;;  %v10458_v30 = vld [vmem:[#allocation10 + $0x1d8] sm:$0xff] }
 0x86f   :  { %5675 = vpow2.f32 %v5470_v7 }
 0x879   :  { %v5672_v60 = vpop.eup %5671 }
 0x87a   :  { %v4142_v61 = vadd.f32 1.0, %v5672_v60 }
 0x87b   :  { %v5674_v1 = vpop.eup %5673 }
 0x87c   :  { %5677 = vrcp.f32 %v4142_v61  ;;  %v4143_v48 = vadd.f32 1.0, %v5674_v1  ;;  %v5676_v8 = vpop.eup %5675  ;;  %v10464_v61 = vld [vmem:[#allocation10 + $0x1d0] sm:$0xff]  ;;  %v10467_v1 = vld [vmem:[#allocation10 + $0x1a8] sm:$0xff] }
 0x87d   :  { %5679 = vtanh.f32 %v4132_v24  ;;  %v4144_v54 = vadd.f32 1.0, %v5676_v8  ;;  %v10461_v24 = vld [vmem:[#allocation10 + $0x1c0] sm:$0xff]  ;;  %12925 = vst [vmem:[#allocation100_spill] sm:$0xff] %v10467_v1 }
 0x87e   :  { %5681 = vrcp.f32 %v4143_v48  ;;  %v10470_v48 = vld [vmem:[#allocation10 + $0x1b8] sm:$0xff]  ;;  %v10473_v8 = vld [vmem:[#allocation10 + $0x1a0] sm:$0xff] }
 0x87f   :  { %5683 = vrcp.f32 %v4144_v54  ;;  %12926 = vst [vmem:[#allocation101_spill] sm:$0xff] %v10470_v48  ;;  %12927 = vst [vmem:[#allocation102_spill] sm:$0xff] %v10473_v8  ;;  %v10482_v54 = vld [vmem:[#allocation10 + $0x198] sm:$0xff] }
 0x880   :  { %12930 = vst [vmem:[#allocation105_spill] sm:$0xff] %v10482_v54 }
 0x886   :  { %v4227_v0 = vpop.f32.mrf.mxu0 }
 0x889   :  { %v5678_v53 = vpop.eup %5677 }
 0x88a   :  { %v5680_v52 = vpop.eup %5679 }
 0x88b   :  { %v5682_v46 = vpop.eup %5681  ;;  %v4153_v41 = vmul.f32 %v5680_v52, %v5678_v53  ;;  %v10476_v53 = vld [vmem:[#allocation10 + $0x1b0] sm:$0xff]  ;;  %v4229_v52 = vpop.f32.mrf.mxu0 }
 0x88c   :  { %v4152_v21 = vmul.f32 %v5682_v46, %v9915_v20  ;;  %v5684_v60 = vpop.eup %5683  ;;  %v10452_v20 = vld [vmem:[#allocation10 + $0x1f0] sm:$0xff]  ;;  %12928 = vst [vmem:[#allocation103_spill] sm:$0xff] %v10476_v53  ;;  %v10479_v46 = vld [vmem:[#allocation10 + $0x188] sm:$0xff] }
 0x88d   :  { %12929 = vst [vmem:[#allocation104_spill] sm:$0xff] %v10479_v46 }
 0x88e   :  { %v10443_v62 = vadd.f32 %v4153_v41, %v4152_v21  ;;  %v10485_v21 = vld [vmem:[#allocation10 + $0x180] sm:$0xff]  ;;  %v10488_v41 = vld [vmem:[#allocation10 + $0x190] sm:$0xff] }
 0x88f   :  { %12931 = vst [vmem:[#allocation106_spill] sm:$0xff] %v10485_v21  ;;  %12932 = vst [vmem:[#allocation107_spill] sm:$0xff] %v10488_v41 }
 0x890   :  { %5685 = vtanh.f32 %v10443_v62 }
 0x89d   :  { %v5686_v18 = vpop.eup %5685 }
 0x89e   :  { %v4156_v7 = vmul.f32 %v5686_v18, %v5684_v60  ;;  %v10491_v18 = vld [vmem:[#allocation10 + $0x168] sm:$0xff] }
 0x89f   :  { %12933 = vst [vmem:[#allocation108_spill] sm:$0xff] %v10491_v18 }
 0x8a0   :  { %5471 = vst [vmem:[%s10873_s7 + $0x28] sm:$0xff] %v4156_v7  ;;  %4538 = vmatmul.mubr.f32.vlgmr.msra.gmra.mxu0 %v4156_v7  ;;  %4609 = vmatmul.mubr.f32.vlgmr.msra.gmra.mxu1 %v4156_v7  ;;  %v10494_v7 = vld [vmem:[#allocation10 + $0x178] sm:$0xff] }
 0x8a1   :  { %4616 = vmatpush1.msra.mxu0 %v10449_v29  ;;  %4687 = vmatpush1.msra.mxu1 %v10452_v20  ;;  %12934 = vst [vmem:[#allocation109_spill] sm:$0xff] %v10494_v7 }
 0x8a2   :  { %4617 = vmatprep.subr.mxu0 %v10455_v36  ;;  %4688 = vmatprep.subr.mxu1 %v10458_v30 }
 0x8a3   :  { %4618 = vmatpush1.msra.mxu0 %v10461_v24  ;;  %4689 = vmatpush1.msra.mxu1 %v10464_v61 }
 0x8a4   :  { %4619 = vmatprep.subr.mxu0 %v10467_v1  ;;  %4690 = vmatprep.subr.mxu1 %v10470_v48 }
 0x8a5   :  { %4620 = vmatpush1.msra.mxu0 %v10473_v8  ;;  %4691 = vmatpush1.msra.mxu1 %v10476_v53  ;;  %v10503_v8 = vld [vmem:[#allocation10 + $0x148] sm:$0xff] }
 0x8a6   :  { %4621 = vmatprep.subr.mxu0 %v10479_v46  ;;  %4692 = vmatprep.subr.mxu1 %v10482_v54  ;;  %v4298_v46 = vpop.f32.mrf.mxu1  ;;  %v10497_v54 = vld [vmem:[#allocation10 + $0x160] sm:$0xff]  ;;  %12937 = vst [vmem:[#allocation111_spill] sm:$0xff] %v10503_v8 }
 0x8a7   :  { %4622 = vmatpush1.msra.mxu0 %v10485_v21  ;;  %4693 = vmatpush1.msra.mxu1 %v10488_v41  ;;  %12935 = vst [vmem:[#allocation110_spill] sm:$0xff] %v10497_v54  ;;  %v10500_v21 = vld [vmem:[#allocation10 + $0x170] sm:$0xff] }
 0x8a8   :  { %v4369_v60 = vpop.f32.mrf.mxu0  ;;  %4623 = vmatprep.subr.mxu0 %v10491_v18  ;;  %4694 = vmatprep.subr.mxu1 %v10494_v7  ;;  %12936 = vst [vmem:[#allocation155_spill] sm:$0xff] %v10500_v21  ;;  %v10506_v18 = vld [vmem:[#allocation10 + $0x158] sm:$0xff] }
 0x8a9   :  { %v4370_v53 = vadd.f32 %v4369_v60, %v4227_v0  ;;  %4624 = vmatpush1.msra.mxu0 %v10497_v54  ;;  %4695 = vmatpush1.msra.mxu1 %v10500_v21  ;;  %12938 = vst [vmem:[#allocation112_spill] sm:$0xff] %v10506_v18  ;;  %v10510_v60 = vld [vmem:[#allocation10 + $0x140] sm:$0xff]  ;;  %v10513_v54 = vld [vmem:[#allocation10 + $0x150] sm:$0xff]  ;;  %v10516_v21 = vld [vmem:[#allocation10 + $0x128] sm:$0xff] }
 0x8aa   :  { %v4371_v41 = vpop.f32.mrf.mxu0  ;;  %4625 = vmatprep.subr.mxu0 %v10503_v8  ;;  %4696 = vmatprep.subr.mxu1 %v10506_v18  ;;  %12939 = vst [vmem:[#allocation113_spill] sm:$0xff] %v10516_v21  ;;  %v4300_v8 = vpop.f32.mrf.mxu1  ;;  %v10520_v18 = vld [vmem:[#allocation10 + $0x138] sm:$0xff] }
 0x8ab   :  { %v4445_v7 = vadd.f32 %v4370_v53, %v11929_v33  ;;  %v4372_v0 = vadd.f32 %v4371_v41, %v4229_v52  ;;  %4626 = vmatpush1.msra.mxu0 %v10510_v60  ;;  %4697 = vmatpush1.msra.mxu1 %v10513_v54  ;;  %12940 = vst [vmem:[#allocation156_spill] sm:$0xff] %v10520_v18  ;;  %v10523_v53 = vld [vmem:[#allocation10 + $0x120] sm:$0xff]  ;;  %v10526_v52 = vld [vmem:[#allocation10 + $0x130] sm:$0xff]  ;;  %v10529_v41 = vld [vmem:[#allocation10 + $0x108] sm:$0xff] }
 0x8ac   :  { %4627 = vmatprep.subr.mxu0 %v10516_v21  ;;  %4698 = vmatprep.subr.mxu1 %v10520_v18  ;;  %12941 = vst [vmem:[#allocation114_spill] sm:$0xff] %v10523_v53  ;;  %12942 = vst [vmem:[#allocation115_spill] sm:$0xff] %v10526_v52  ;;  %v10535_v18 = vld [vmem:[#allocation10 + $0x100] sm:$0xff] }
 0x8ad   :  { %v5473_v48 = vmul.f32 -1.442695, %v4445_v7  ;;  %v4446_v1 = vadd.f32 %v4372_v0, %v11933_v6  ;;  %4628 = vmatpush1.msra.mxu0 %v10523_v53  ;;  %4699 = vmatpush1.msra.mxu1 %v10526_v52  ;;  %12943 = vst [vmem:[#allocation116_spill] sm:$0xff] %v10529_v41  ;;  %v4440_v7 = vpop.f32.mrf.mxu1  ;;  %v10532_v0 = vld [vmem:[#allocation10 + $0x118] sm:$0xff]  ;;  %12945 = vst [vmem:[#allocation118_spill] sm:$0xff] %v10535_v18  ;;  %v10538_v53 = vld [vmem:[#allocation10 + $0x110] sm:$0xff] }
 0x8ae   :  { %4629 = vmatprep.subr.mxu0 %v10529_v41  ;;  %12944 = vst [vmem:[#allocation117_spill] sm:$0xff] %v10532_v0  ;;  %4700 = vmatprep.subr.mxu1 %v10532_v0  ;;  %12946 = vst [vmem:[#allocation119_spill] sm:$0xff] %v10538_v53  ;;  %v10541_v52 = vld [vmem:[#allocation10 + $0xe8] sm:$0xff]  ;;  %v4441_v0 = vadd.f32 %v4440_v7, %v4298_v46  ;;  %v10550_v41 = vld [vmem:[#allocation10 + $0xf0] sm:$0xff] }
 0x8af   :  { %5687 = vpow2.f32 %v5473_v48  ;;  %v5474_v21 = vmul.f32 -1.442695, %v4446_v1  ;;  %4630 = vmatpush1.msra.mxu0 %v10535_v18  ;;  %4701 = vmatpush1.msra.mxu1 %v10538_v53  ;;  %12947 = vst [vmem:[#allocation120_spill] sm:$0xff] %v10541_v52  ;;  %v10544_v48 = vld [vmem:[#allocation10 + $0xf8] sm:$0xff]  ;;  %v10547_v1 = vld [vmem:[#allocation10 + $0xe0] sm:$0xff]  ;;  %12950 = vst [vmem:[#allocation123_spill] sm:$0xff] %v10550_v41  ;;  %v4442_v7 = vpop.f32.mrf.mxu1 }
 0x8b0   :  { %4631 = vmatprep.subr.mxu0 %v10541_v52  ;;  %12948 = vst [vmem:[#allocation121_spill] sm:$0xff] %v10544_v48  ;;  %4702 = vmatprep.subr.mxu1 %v10544_v48  ;;  %12949 = vst [vmem:[#allocation122_spill] sm:$0xff] %v10547_v1  ;;  %v10553_v18 = vld [vmem:[#allocation10 + $0xc8] sm:$0xff]  ;;  %v10556_v53 = vld [vmem:[#allocation10 + $0xd8] sm:$0xff] }
 0x8b1   :  { %5689 = vpow2.f32 %v5474_v21  ;;  %4632 = vmatpush1.msra.mxu0 %v10547_v1  ;;  %4703 = vmatpush1.msra.mxu1 %v10550_v41  ;;  %12951 = vst [vmem:[#allocation124_spill] sm:$0xff] %v10553_v18  ;;  %12952 = vst [vmem:[#allocation125_spill] sm:$0xff] %v10556_v53  ;;  %v10559_v21 = vld [vmem:[#allocation10 + $0xc0] sm:$0xff]  ;;  %v10562_v48 = vld [vmem:[#allocation10 + $0xd0] sm:$0xff] }
 0x8b2   :  { %4633 = vmatprep.subr.mxu0 %v10553_v18  ;;  %4704 = vmatprep.subr.mxu1 %v10556_v53  ;;  %12953 = vst [vmem:[#allocation126_spill] sm:$0xff] %v10559_v21  ;;  %12954 = vst [vmem:[#allocation127_spill] sm:$0xff] %v10562_v48  ;;  %v10565_v46 = vld [vmem:[#allocation10 + $0xa8] sm:$0xff]  ;;  %v10568_v41 = vld [vmem:[#allocation10 + $0xb8] sm:$0xff]  ;;  %v4447_v53 = vadd.f32 %v4441_v0, %v12754_v9 }
 0x8b3   :  { %4634 = vmatpush1.msra.mxu0 %v10559_v21  ;;  %4705 = vmatpush1.msra.mxu1 %v10562_v48  ;;  %12955 = vst [vmem:[#allocation128_spill] sm:$0xff] %v10565_v46  ;;  %12956 = vst [vmem:[#allocation129_spill] sm:$0xff] %v10568_v41  ;;  %v10571_v18 = vld [vmem:[#allocation10 + $0xa0] sm:$0xff]  ;;  %v10575_v21 = vld [vmem:[#allocation10 + $0xb0] sm:$0xff] }
 0x8b4   :  { %4635 = vmatprep.subr.mxu0 %v10565_v46  ;;  %4706 = vmatprep.subr.mxu1 %v10568_v41  ;;  %12957 = vst [vmem:[#allocation130_spill] sm:$0xff] %v10571_v18  ;;  %12958 = vst [vmem:[#allocation131_spill] sm:$0xff] %v10575_v21  ;;  %v10578_v48 = vld [vmem:[#allocation10 + $0x88] sm:$0xff]  ;;  %v10581_v46 = vld [vmem:[#allocation10 + $0x98] sm:$0xff]  ;;  %v4443_v41 = vadd.f32 %v4442_v7, %v4300_v8 }
 0x8b5   :  { %4636 = vmatpush1.msra.mxu0 %v10571_v18  ;;  %4707 = vmatpush1.msra.mxu1 %v10575_v21  ;;  %12959 = vst [vmem:[#allocation132_spill] sm:$0xff] %v10578_v48  ;;  %12960 = vst [vmem:[#allocation133_spill] sm:$0xff] %v10581_v46  ;;  %v10584_v1 = vld [vmem:[#allocation10 + $0x80] sm:$0xff]  ;;  %v10587_v18 = vld [vmem:[#allocation10 + $0x90] sm:$0xff] }
 0x8b6   :  { %4637 = vmatprep.subr.mxu0 %v10578_v48  ;;  %4708 = vmatprep.subr.mxu1 %v10581_v46  ;;  %12961 = vst [vmem:[#allocation134_spill] sm:$0xff] %v10584_v1  ;;  %12962 = vst [vmem:[#allocation135_spill] sm:$0xff] %v10587_v18  ;;  %v10590_v0 = vld [vmem:[#allocation10 + $0x68] sm:$0xff]  ;;  %v10593_v21 = vld [vmem:[#allocation10 + $0x78] sm:$0xff]  ;;  %v5475_v46 = vmul.f32 -1.442695, %v4447_v53 }
 0x8b7   :  { %4638 = vmatpush1.msra.mxu0 %v10584_v1  ;;  %4709 = vmatpush1.msra.mxu1 %v10587_v18  ;;  %12963 = vst [vmem:[#allocation136_spill] sm:$0xff] %v10590_v0  ;;  %12964 = vst [vmem:[#allocation137_spill] sm:$0xff] %v10593_v21  ;;  %v10596_v48 = vld [vmem:[#allocation10 + $0x60] sm:$0xff]  ;;  %v10599_v9 = vld [vmem:[#allocation10 + $0x70] sm:$0xff] }
 0x8b8   :  { %4639 = vmatprep.subr.mxu0 %v10590_v0  ;;  %4710 = vmatprep.subr.mxu1 %v10593_v21  ;;  %12965 = vst [vmem:[#allocation138_spill] sm:$0xff] %v10596_v48  ;;  %12966 = vst [vmem:[#allocation139_spill] sm:$0xff] %v10599_v9  ;;  %v10602_v8 = vld [vmem:[#allocation10 + $0x48] sm:$0xff]  ;;  %v10605_v7 = vld [vmem:[#allocation10 + $0x58] sm:$0xff]  ;;  %5691 = vpow2.f32 %v5475_v46 }
 0x8b9   :  { %4640 = vmatpush1.msra.mxu0 %v10596_v48  ;;  %4711 = vmatpush1.msra.mxu1 %v10599_v9  ;;  %12967 = vst [vmem:[#allocation140_spill] sm:$0xff] %v10602_v8  ;;  %12968 = vst [vmem:[#allocation141_spill] sm:$0xff] %v10605_v7  ;;  %v10608_v0 = vld [vmem:[#allocation10 + $0x40] sm:$0xff]  ;;  %v4448_v48 = vadd.f32 %v4443_v41, %v12767_v45  ;;  %v10612_v53 = vld [vmem:[#allocation10 + $0x50] sm:$0xff] }
 0x8ba   :  { %4641 = vmatprep.subr.mxu0 %v10602_v8  ;;  %4712 = vmatprep.subr.mxu1 %v10605_v7  ;;  %12969 = vst [vmem:[#allocation142_spill] sm:$0xff] %v10608_v0  ;;  %12970 = vst [vmem:[#allocation143_spill] sm:$0xff] %v10612_v53  ;;  %v10615_v9 = vld [vmem:[#allocation10 + $0x28] sm:$0xff]  ;;  %v10618_v18 = vld [vmem:[#allocation10 + $0x38] sm:$0xff] }
 0x8bb   :  { %4642 = vmatpush1.msra.mxu0 %v10608_v0  ;;  %4713 = vmatpush1.msra.mxu1 %v10612_v53  ;;  %12971 = vst [vmem:[#allocation144_spill] sm:$0xff] %v10615_v9  ;;  %12972 = vst [vmem:[#allocation145_spill] sm:$0xff] %v10618_v18  ;;  %v10621_v7 = vld [vmem:[#allocation10 + $0x20] sm:$0xff]  ;;  %v10624_v41 = vld [vmem:[#allocation10 + $0x30] sm:$0xff] }
 0x8bc   :  { %v5688_v21 = vpop.eup %5687  ;;  %4643 = vmatprep.subr.mxu0 %v10615_v9  ;;  %4714 = vmatprep.subr.mxu1 %v10618_v18  ;;  %12973 = vst [vmem:[#allocation146_spill] sm:$0xff] %v10621_v7  ;;  %12974 = vst [vmem:[#allocation147_spill] sm:$0xff] %v10624_v41  ;;  %v10627_v53 = vld [vmem:[#allocation10 + $0x8] sm:$0xff]  ;;  %v10630_v9 = vld [vmem:[#allocation10 + $0x18] sm:$0xff] }
 0x8bd   :  { %v4458_v8 = vadd.f32 1.0, %v5688_v21  ;;  %4644 = vmatpush1.msra.mxu0 %v10621_v7  ;;  %4715 = vmatpush1.msra.mxu1 %v10624_v41  ;;  %12975 = vst [vmem:[#allocation148_spill] sm:$0xff] %v10627_v53  ;;  %12976 = vst [vmem:[#allocation149_spill] sm:$0xff] %v10630_v9  ;;  %v10633_v18 = vld [vmem:[#allocation10] sm:$0xff]  ;;  %v10636_v46 = vld [vmem:[#allocation10 + $0x10] sm:$0xff] }
 0x8be   :  { %v5690_v0 = vpop.eup %5689  ;;  %4645 = vmatprep.subr.mxu0 %v10627_v53  ;;  %4716 = vmatprep.subr.mxu1 %v10630_v9  ;;  %12977 = vst [vmem:[#allocation150_spill] sm:$0xff] %v10633_v18  ;;  %12978 = vst [vmem:[#allocation151_spill] sm:$0xff] %v10636_v46 }
 0x8bf   :  { %5693 = vrcp.f32 %v4458_v8  ;;  %v4459_v21 = vadd.f32 1.0, %v5690_v0  ;;  %4646 = vmatpush1.msra.mxu0 %v10633_v18  ;;  %4717 = vmatpush1.msra.mxu1 %v10636_v46  ;;  %v6519_v8 = vld [vmem:[#allocation8 + $0x1e8] sm:$0xff]  ;;  %v6520_v0 = vld [vmem:[#allocation8 + $0x1f8] sm:$0xff] }
 0x8c0   :  { %5695 = vtanh.f32 %v4448_v48  ;;  %4679 = vmatprep.mubr.f32.mxu0 %v11702_v12  ;;  %4750 = vmatprep.mubr.f32.mxu1 %v11702_v12 }
 0x8c1   :  { %5697 = vrcp.f32 %v4459_v21  ;;  %4789 = vmatprep.subr.mxu0 %v6519_v8  ;;  %4860 = vmatprep.subr.mxu1 %v6520_v0  ;;  %v6521_v8 = vld [vmem:[#allocation8 + $0x1e0] sm:$0xff]  ;;  %v6522_v0 = vld [vmem:[#allocation8 + $0x1f0] sm:$0xff] }
 0x8c5   :  { %v5692_v53 = vpop.eup %5691 }
 0x8c6   :  { %v4460_v45 = vadd.f32 1.0, %v5692_v53  ;;  %v6523_v53 = vld [vmem:[#allocation8 + $0x1c8] sm:$0xff] }
 0x8c8   :  { %5699 = vrcp.f32 %v4460_v45  ;;  %v6526_v45 = vld [vmem:[#allocation8 + $0x1d0] sm:$0xff] }
 0x8cc   :  { %v5694_v9 = vpop.eup %5693 }
 0x8cd   :  { %v5696_v41 = vpop.eup %5695 }
 0x8ce   :  { %v5698_v7 = vpop.eup %5697  ;;  %v4469_v18 = vmul.f32 %v5696_v41, %v5694_v9  ;;  %v6524_v9 = vld [vmem:[#allocation8 + $0x1d8] sm:$0xff]  ;;  %v6529_v41 = vld [vmem:[#allocation8 + $0x1a0] sm:$0xff] }
 0x8cf   :  { %v4468_v48 = vmul.f32 %v5698_v7, %v9992_v3  ;;  %v6525_v3 = vld [vmem:[#allocation8 + $0x1c0] sm:$0xff]  ;;  %v6528_v7 = vld [vmem:[#allocation8 + $0x1b8] sm:$0xff] }
 0x8d1   :  { %v10642_v1 = vadd.f32 %v4469_v18, %v4468_v48  ;;  %v6527_v18 = vld [vmem:[#allocation8 + $0x1a8] sm:$0xff] }
 0x8d2   :  { %v6531_v48 = vld [vmem:[#allocation8 + $0x188] sm:$0xff] }
 0x8d3   :  { %5701 = vtanh.f32 %v10642_v1 }
 0x8d5   :  { %v5700_v21 = vpop.eup %5699 }
 0x8e0   :  { %v5702_v46 = vpop.eup %5701 }
 0x8e1   :  { %v10645_v52 = vmul.f32 %v5702_v46, %v5700_v21  ;;  %v6530_v46 = vld [vmem:[#allocation8 + $0x1b0] sm:$0xff]  ;;  %v6532_v21 = vld [vmem:[#allocation8 + $0x198] sm:$0xff] }
 0x8e3   :  { %4680 = vmatmul.mubr.f32.vlgmr.msra.gmra.mxu0 %v10645_v52  ;;  %4751 = vmatmul.mubr.f32.vlgmr.msra.gmra.mxu1 %v10645_v52 }
 0x8e4   :  { %4790 = vmatpush1.msra.mxu0 %v6521_v8  ;;  %4861 = vmatpush1.msra.mxu1 %v6522_v0  ;;  %v6533_v8 = vld [vmem:[#allocation8 + $0x180] sm:$0xff]  ;;  %v6534_v0 = vld [vmem:[#allocation8 + $0x190] sm:$0xff] }
 0x8e5   :  { %4791 = vmatprep.subr.mxu0 %v6523_v53  ;;  %4862 = vmatprep.subr.mxu1 %v6524_v9  ;;  %v6535_v53 = vld [vmem:[#allocation8 + $0x168] sm:$0xff]  ;;  %v6536_v9 = vld [vmem:[#allocation8 + $0x178] sm:$0xff] }
 0x8e6   :  { %4792 = vmatpush1.msra.mxu0 %v6525_v3  ;;  %4863 = vmatpush1.msra.mxu1 %v6526_v45  ;;  %v6537_v3 = vld [vmem:[#allocation8 + $0x160] sm:$0xff]  ;;  %v6538_v45 = vld [vmem:[#allocation8 + $0x170] sm:$0xff] }
 0x8e7   :  { %4793 = vmatprep.subr.mxu0 %v6527_v18  ;;  %4864 = vmatprep.subr.mxu1 %v6528_v7  ;;  %v6539_v18 = vld [vmem:[#allocation8 + $0x148] sm:$0xff]  ;;  %v6540_v7 = vld [vmem:[#allocation8 + $0x158] sm:$0xff] }
 0x8e8   :  { %4794 = vmatpush1.msra.mxu0 %v6529_v41  ;;  %4865 = vmatpush1.msra.mxu1 %v6530_v46  ;;  %v6541_v41 = vld [vmem:[#allocation8 + $0x140] sm:$0xff]  ;;  %v6542_v46 = vld [vmem:[#allocation8 + $0x150] sm:$0xff] }
 0x8e9   :  { %4795 = vmatprep.subr.mxu0 %v6531_v48  ;;  %4866 = vmatprep.subr.mxu1 %v6532_v21  ;;  %v6543_v48 = vld [vmem:[#allocation8 + $0x128] sm:$0xff]  ;;  %v6544_v21 = vld [vmem:[#allocation8 + $0x138] sm:$0xff] }
 0x8ea   :  { %4796 = vmatpush1.msra.mxu0 %v6533_v8  ;;  %4867 = vmatpush1.msra.mxu1 %v6534_v0  ;;  %v6545_v8 = vld [vmem:[#allocation8 + $0x120] sm:$0xff]  ;;  %v6546_v0 = vld [vmem:[#allocation8 + $0x130] sm:$0xff] }
 0x8eb   :  { %4797 = vmatprep.subr.mxu0 %v6535_v53  ;;  %4868 = vmatprep.subr.mxu1 %v6536_v9  ;;  %v6547_v53 = vld [vmem:[#allocation8 + $0x108] sm:$0xff]  ;;  %v6548_v9 = vld [vmem:[#allocation8 + $0x118] sm:$0xff] }
 0x8ec   :  { %4798 = vmatpush1.msra.mxu0 %v6537_v3  ;;  %4869 = vmatpush1.msra.mxu1 %v6538_v45  ;;  %v6549_v3 = vld [vmem:[#allocation8 + $0x100] sm:$0xff]  ;;  %v6550_v45 = vld [vmem:[#allocation8 + $0x110] sm:$0xff] }
 0x8ed   :  { %4799 = vmatprep.subr.mxu0 %v6539_v18  ;;  %4870 = vmatprep.subr.mxu1 %v6540_v7  ;;  %v6551_v18 = vld [vmem:[#allocation8 + $0xe8] sm:$0xff]  ;;  %v6552_v7 = vld [vmem:[#allocation8 + $0xf8] sm:$0xff] }
 0x8ee   :  { %4800 = vmatpush1.msra.mxu0 %v6541_v41  ;;  %4871 = vmatpush1.msra.mxu1 %v6542_v46  ;;  %v6553_v41 = vld [vmem:[#allocation8 + $0xe0] sm:$0xff]  ;;  %v6554_v46 = vld [vmem:[#allocation8 + $0xf0] sm:$0xff] }
 0x8ef   :  { %4801 = vmatprep.subr.mxu0 %v6543_v48  ;;  %4872 = vmatprep.subr.mxu1 %v6544_v21  ;;  %v6555_v48 = vld [vmem:[#allocation8 + $0xc8] sm:$0xff]  ;;  %v6556_v21 = vld [vmem:[#allocation8 + $0xd8] sm:$0xff] }
 0x8f0   :  { %4802 = vmatpush1.msra.mxu0 %v6545_v8  ;;  %4873 = vmatpush1.msra.mxu1 %v6546_v0  ;;  %v6557_v8 = vld [vmem:[#allocation8 + $0xc0] sm:$0xff]  ;;  %v6558_v0 = vld [vmem:[#allocation8 + $0xd0] sm:$0xff] }
 0x8f1   :  { %4803 = vmatprep.subr.mxu0 %v6547_v53  ;;  %4874 = vmatprep.subr.mxu1 %v6548_v9  ;;  %v6559_v53 = vld [vmem:[#allocation8 + $0xa8] sm:$0xff]  ;;  %v6560_v9 = vld [vmem:[#allocation8 + $0xb8] sm:$0xff] }
 0x8f2   :  { %4804 = vmatpush1.msra.mxu0 %v6549_v3  ;;  %4875 = vmatpush1.msra.mxu1 %v6550_v45  ;;  %v6561_v3 = vld [vmem:[#allocation8 + $0xa0] sm:$0xff]  ;;  %v6562_v45 = vld [vmem:[#allocation8 + $0xb0] sm:$0xff] }
 0x8f3   :  { %4805 = vmatprep.subr.mxu0 %v6551_v18  ;;  %4876 = vmatprep.subr.mxu1 %v6552_v7  ;;  %v6563_v18 = vld [vmem:[#allocation8 + $0x88] sm:$0xff]  ;;  %v6564_v7 = vld [vmem:[#allocation8 + $0x98] sm:$0xff] }
 0x8f4   :  { %4806 = vmatpush1.msra.mxu0 %v6553_v41  ;;  %4877 = vmatpush1.msra.mxu1 %v6554_v46  ;;  %v6565_v41 = vld [vmem:[#allocation8 + $0x80] sm:$0xff]  ;;  %v6566_v46 = vld [vmem:[#allocation8 + $0x90] sm:$0xff] }
 0x8f5   :  { %4807 = vmatprep.subr.mxu0 %v6555_v48  ;;  %4878 = vmatprep.subr.mxu1 %v6556_v21  ;;  %v6567_v48 = vld [vmem:[#allocation8 + $0x68] sm:$0xff]  ;;  %v6568_v21 = vld [vmem:[#allocation8 + $0x78] sm:$0xff] }
 0x8f6   :  { %4808 = vmatpush1.msra.mxu0 %v6557_v8  ;;  %4879 = vmatpush1.msra.mxu1 %v6558_v0  ;;  %v6569_v8 = vld [vmem:[#allocation8 + $0x60] sm:$0xff]  ;;  %v6570_v0 = vld [vmem:[#allocation8 + $0x70] sm:$0xff] }
 0x8f7   :  { %4809 = vmatprep.subr.mxu0 %v6559_v53  ;;  %4880 = vmatprep.subr.mxu1 %v6560_v9  ;;  %v6571_v53 = vld [vmem:[#allocation8 + $0x48] sm:$0xff]  ;;  %v6572_v9 = vld [vmem:[#allocation8 + $0x58] sm:$0xff] }
 0x8f8   :  { %4810 = vmatpush1.msra.mxu0 %v6561_v3  ;;  %4881 = vmatpush1.msra.mxu1 %v6562_v45  ;;  %v6573_v3 = vld [vmem:[#allocation8 + $0x40] sm:$0xff]  ;;  %v6574_v45 = vld [vmem:[#allocation8 + $0x50] sm:$0xff] }
 0x8f9   :  { %4811 = vmatprep.subr.mxu0 %v6563_v18  ;;  %4882 = vmatprep.subr.mxu1 %v6564_v7  ;;  %v6575_v18 = vld [vmem:[#allocation8 + $0x28] sm:$0xff]  ;;  %v6576_v7 = vld [vmem:[#allocation8 + $0x38] sm:$0xff] }
 0x8fa   :  { %4812 = vmatpush1.msra.mxu0 %v6565_v41  ;;  %4883 = vmatpush1.msra.mxu1 %v6566_v46  ;;  %v6577_v41 = vld [vmem:[#allocation8 + $0x20] sm:$0xff]  ;;  %v6578_v46 = vld [vmem:[#allocation8 + $0x30] sm:$0xff] }
 0x8fb   :  { %4813 = vmatprep.subr.mxu0 %v6567_v48  ;;  %4884 = vmatprep.subr.mxu1 %v6568_v21  ;;  %v6579_v48 = vld [vmem:[#allocation8 + $0x8] sm:$0xff]  ;;  %v6580_v21 = vld [vmem:[#allocation8 + $0x18] sm:$0xff] }
 0x8fc   :  { %4814 = vmatpush1.msra.mxu0 %v6569_v8  ;;  %4885 = vmatpush1.msra.mxu1 %v6570_v0  ;;  %v6581_v8 = vld [vmem:[#allocation8] sm:$0xff]  ;;  %v6582_v0 = vld [vmem:[#allocation8 + $0x10] sm:$0xff] }
 0x8fd   :  { %4815 = vmatprep.subr.mxu0 %v6571_v53  ;;  %4886 = vmatprep.subr.mxu1 %v6572_v9  ;;  %v6583_v53 = vld [vmem:[#allocation6 + $0x1e8] sm:$0xff]  ;;  %v6584_v9 = vld [vmem:[#allocation6 + $0x1f8] sm:$0xff] }
 0x8fe   :  { %4816 = vmatpush1.msra.mxu0 %v6573_v3  ;;  %4887 = vmatpush1.msra.mxu1 %v6574_v45  ;;  %v6585_v3 = vld [vmem:[#allocation6 + $0x1e0] sm:$0xff]  ;;  %v6586_v45 = vld [vmem:[#allocation6 + $0x1f0] sm:$0xff] }
 0x8ff   :  { %4817 = vmatprep.subr.mxu0 %v6575_v18  ;;  %4888 = vmatprep.subr.mxu1 %v6576_v7  ;;  %v6587_v18 = vld [vmem:[#allocation6 + $0x1c8] sm:$0xff]  ;;  %v6588_v7 = vld [vmem:[#allocation6 + $0x1d8] sm:$0xff] }
 0x900   :  { %4818 = vmatpush1.msra.mxu0 %v6577_v41  ;;  %4889 = vmatpush1.msra.mxu1 %v6578_v46  ;;  %v6589_v41 = vld [vmem:[#allocation6 + $0x1c0] sm:$0xff]  ;;  %v6590_v46 = vld [vmem:[#allocation6 + $0x1d0] sm:$0xff] }
 0x901   :  { %4819 = vmatprep.subr.mxu0 %v6579_v48  ;;  %4890 = vmatprep.subr.mxu1 %v6580_v21  ;;  %v6591_v48 = vld [vmem:[#allocation6 + $0x1a8] sm:$0xff]  ;;  %v6592_v21 = vld [vmem:[#allocation6 + $0x1b8] sm:$0xff] }
 0x902   :  { %4820 = vmatpush1.msra.mxu0 %v6581_v8  ;;  %4853 = vmatprep.mubr.f32.mxu0 %v11702_v12  ;;  %v6594_v8 = vld [vmem:[#allocation6 + $0x1b0] sm:$0xff] }
 0x903   :  { %4891 = vmatpush1.msra.mxu1 %v6582_v0  ;;  %4924 = vmatprep.mubr.f32.mxu1 %v11702_v12  ;;  %v13012_v0 = vld [vmem:[#allocation48_spill] sm:$0xff] }
 0x904   :  { %4854 = vmatmul.mubr.f32.vlgmr.msra.gmra.mxu0 %v10645_v52  ;;  %4925 = vmatmul.mubr.f32.vlgmr.msra.gmra.mxu1 %v10645_v52  ;;  %v6593_v52 = vld [vmem:[#allocation6 + $0x1a0] sm:$0xff] }
 0x905   :  { %4931 = vmatprep.subr.mxu0 %v6583_v53  ;;  %5002 = vmatprep.subr.mxu1 %v6584_v9  ;;  %v13013_v53 = vld [vmem:[#allocation51_spill] sm:$0xff]  ;;  %v13014_v9 = vld [vmem:[#allocation50_spill] sm:$0xff] }
 0x906   :  { %4932 = vmatpush1.msra.mxu0 %v6585_v3  ;;  %5003 = vmatpush1.msra.mxu1 %v6586_v45  ;;  %v13015_v3 = vld [vmem:[#allocation53_spill] sm:$0xff]  ;;  %v13016_v45 = vld [vmem:[#allocation52_spill] sm:$0xff] }
 0x907   :  { %4933 = vmatprep.subr.mxu0 %v6587_v18  ;;  %5004 = vmatprep.subr.mxu1 %v6588_v7  ;;  %v13017_v18 = vld [vmem:[#allocation55_spill] sm:$0xff]  ;;  %v13018_v7 = vld [vmem:[#allocation54_spill] sm:$0xff] }
 0x908   :  { %4934 = vmatpush1.msra.mxu0 %v6589_v41  ;;  %5005 = vmatpush1.msra.mxu1 %v6590_v46  ;;  %v13019_v41 = vld [vmem:[#allocation57_spill] sm:$0xff]  ;;  %v13020_v46 = vld [vmem:[#allocation56_spill] sm:$0xff] }
 0x909   :  { %4935 = vmatprep.subr.mxu0 %v6591_v48  ;;  %5006 = vmatprep.subr.mxu1 %v6592_v21  ;;  %v13021_v48 = vld [vmem:[#allocation59_spill] sm:$0xff]  ;;  %v13022_v21 = vld [vmem:[#allocation58_spill] sm:$0xff] }
 0x90a   :  { %4936 = vmatpush1.msra.mxu0 %v6593_v52  ;;  %5007 = vmatpush1.msra.mxu1 %v6594_v8  ;;  %v13023_v52 = vld [vmem:[#allocation61_spill] sm:$0xff]  ;;  %v13024_v8 = vld [vmem:[#allocation60_spill] sm:$0xff] }
 0x90b   :  { %4937 = vmatprep.subr.mxu0 %v10077_v13  ;;  %5008 = vmatprep.subr.mxu1 %v10080_v37  ;;  %v12979_v13 = vld [vmem:[#allocation16_spill] sm:$0xff]  ;;  %v12980_v37 = vld [vmem:[#allocation17_spill] sm:$0xff] }
 0x90c   :  { %4938 = vmatpush1.msra.mxu0 %v10083_v38  ;;  %5009 = vmatpush1.msra.mxu1 %v10086_v47  ;;  %v12981_v38 = vld [vmem:[#allocation18_spill] sm:$0xff]  ;;  %v12982_v47 = vld [vmem:[#allocation19_spill] sm:$0xff] }
 0x90d   :  { %4939 = vmatprep.subr.mxu0 %v10089_v58  ;;  %5010 = vmatprep.subr.mxu1 %v10092_v42  ;;  %v12983_v58 = vld [vmem:[#allocation20_spill] sm:$0xff]  ;;  %v12984_v42 = vld [vmem:[#allocation21_spill] sm:$0xff] }
 0x90e   :  { %4940 = vmatpush1.msra.mxu0 %v10095_v26  ;;  %5011 = vmatpush1.msra.mxu1 %v10098_v50  ;;  %v12985_v26 = vld [vmem:[#allocation22_spill] sm:$0xff]  ;;  %v12986_v50 = vld [vmem:[#allocation23_spill] sm:$0xff] }
 0x90f   :  { %4941 = vmatprep.subr.mxu0 %v10101_v4  ;;  %5012 = vmatprep.subr.mxu1 %v10104_v40  ;;  %v12987_v4 = vld [vmem:[#allocation24_spill] sm:$0xff]  ;;  %v12988_v40 = vld [vmem:[#allocation25_spill] sm:$0xff] }
 0x910   :  { %4942 = vmatpush1.msra.mxu0 %v10107_v43  ;;  %5013 = vmatpush1.msra.mxu1 %v10110_v44  ;;  %v12989_v43 = vld [vmem:[#allocation27_spill] sm:$0xff]  ;;  %v12990_v44 = vld [vmem:[#allocation26_spill] sm:$0xff] }
 0x911   :  { %4943 = vmatprep.subr.mxu0 %v10113_v27  ;;  %5014 = vmatprep.subr.mxu1 %v10116_v39  ;;  %v12991_v27 = vld [vmem:[#allocation29_spill] sm:$0xff]  ;;  %v12992_v39 = vld [vmem:[#allocation28_spill] sm:$0xff] }
 0x912   :  { %4944 = vmatpush1.msra.mxu0 %v10119_v57  ;;  %5015 = vmatpush1.msra.mxu1 %v10122_v55  ;;  %v12993_v57 = vld [vmem:[#allocation31_spill] sm:$0xff]  ;;  %v12994_v55 = vld [vmem:[#allocation30_spill] sm:$0xff] }
 0x913   :  { %4945 = vmatprep.subr.mxu0 %v10125_v14  ;;  %5016 = vmatprep.subr.mxu1 %v10128_v22  ;;  %v5480_v14 = vld [vmem:[%s10866_s0 + $0x38] sm:$0xff]  ;;  %v12995_v22 = vld [vmem:[#allocation33_spill] sm:$0xff] }
 0x914   :  { %4946 = vmatpush1.msra.mxu0 %v10131_v59  ;;  %5017 = vmatpush1.msra.mxu1 %v10134_v25  ;;  %v12996_v59 = vld [vmem:[#allocation32_spill] sm:$0xff]  ;;  %v12997_v25 = vld [vmem:[#allocation35_spill] sm:$0xff] }
 0x915   :  { %4947 = vmatprep.subr.mxu0 %v10137_v63  ;;  %5018 = vmatprep.subr.mxu1 %v10140_v2  ;;  %v12998_v63 = vld [vmem:[#allocation34_spill] sm:$0xff]  ;;  %v12999_v2 = vld [vmem:[#allocation37_spill] sm:$0xff] }
 0x916   :  { %4948 = vmatpush1.msra.mxu0 %v10143_v31  ;;  %5019 = vmatpush1.msra.mxu1 %v10146_v11  ;;  %v13000_v31 = vld [vmem:[#allocation36_spill] sm:$0xff]  ;;  %v13001_v11 = vld [vmem:[#allocation39_spill] sm:$0xff] }
 0x917   :  { %4949 = vmatprep.subr.mxu0 %v10149_v5  ;;  %5020 = vmatprep.subr.mxu1 %v10152_v15  ;;  %v13002_v5 = vld [vmem:[#allocation38_spill] sm:$0xff]  ;;  %v13003_v15 = vld [vmem:[#allocation41_spill] sm:$0xff] }
 0x918   :  { %4950 = vmatpush1.msra.mxu0 %v10155_v16  ;;  %5021 = vmatpush1.msra.mxu1 %v10158_v17  ;;  %v13004_v16 = vld [vmem:[#allocation40_spill] sm:$0xff]  ;;  %v13005_v17 = vld [vmem:[#allocation43_spill] sm:$0xff] }
 0x919   :  { %4951 = vmatprep.subr.mxu0 %v10161_v19  ;;  %5022 = vmatprep.subr.mxu1 %v10164_v32  ;;  %v13006_v19 = vld [vmem:[#allocation42_spill] sm:$0xff]  ;;  %v13007_v32 = vld [vmem:[#allocation45_spill] sm:$0xff] }
 0x91a   :  { %4952 = vmatpush1.msra.mxu0 %v10167_v34  ;;  %5023 = vmatpush1.msra.mxu1 %v10170_v35  ;;  %v13008_v34 = vld [vmem:[#allocation44_spill] sm:$0xff]  ;;  %v13009_v35 = vld [vmem:[#allocation47_spill] sm:$0xff] }
 0x91b   :  { %4953 = vmatprep.subr.mxu0 %v10173_v49  ;;  %5024 = vmatprep.subr.mxu1 %v10176_v10  ;;  %v13010_v49 = vld [vmem:[#allocation46_spill] sm:$0xff]  ;;  %v13011_v10 = vld [vmem:[#allocation49_spill] sm:$0xff] }
 0x91c   :  { %4954 = vmatpush1.msra.mxu0 %v12979_v13  ;;  %5025 = vmatpush1.msra.mxu1 %v12980_v37  ;;  %v13025_v13 = vld [vmem:[#allocation63_spill] sm:$0xff]  ;;  %v13026_v37 = vld [vmem:[#allocation62_spill] sm:$0xff] }
 0x91d   :  { %4955 = vmatprep.subr.mxu0 %v12981_v38  ;;  %5026 = vmatprep.subr.mxu1 %v12982_v47  ;;  %v13027_v38 = vld [vmem:[#allocation65_spill] sm:$0xff]  ;;  %v13028_v47 = vld [vmem:[#allocation64_spill] sm:$0xff] }
 0x91e   :  { %4956 = vmatpush1.msra.mxu0 %v12983_v58  ;;  %5027 = vmatpush1.msra.mxu1 %v12984_v42  ;;  %v13029_v58 = vld [vmem:[#allocation67_spill] sm:$0xff]  ;;  %v13030_v42 = vld [vmem:[#allocation66_spill] sm:$0xff] }
 0x91f   :  { %4957 = vmatprep.subr.mxu0 %v12985_v26  ;;  %5028 = vmatprep.subr.mxu1 %v12986_v50  ;;  %v13031_v26 = vld [vmem:[#allocation69_spill] sm:$0xff]  ;;  %v13032_v50 = vld [vmem:[#allocation68_spill] sm:$0xff] }
 0x920   :  { %4958 = vmatpush1.msra.mxu0 %v12987_v4  ;;  %5029 = vmatpush1.msra.mxu1 %v12988_v40  ;;  %v13033_v4 = vld [vmem:[#allocation71_spill] sm:$0xff]  ;;  %v13034_v40 = vld [vmem:[#allocation70_spill] sm:$0xff] }
 0x921   :  { %4959 = vmatprep.subr.mxu0 %v12989_v43  ;;  %5030 = vmatprep.subr.mxu1 %v12990_v44  ;;  %v13035_v43 = vld [vmem:[#allocation73_spill] sm:$0xff]  ;;  %v13036_v44 = vld [vmem:[#allocation72_spill] sm:$0xff] }
 0x922   :  { %4960 = vmatpush1.msra.mxu0 %v12991_v27  ;;  %5031 = vmatpush1.msra.mxu1 %v12992_v39  ;;  %v13037_v27 = vld [vmem:[#allocation75_spill] sm:$0xff]  ;;  %v13038_v39 = vld [vmem:[#allocation74_spill] sm:$0xff] }
 0x923   :  { %4961 = vmatprep.subr.mxu0 %v12993_v57  ;;  %5032 = vmatprep.subr.mxu1 %v12994_v55  ;;  %v13039_v57 = vld [vmem:[#allocation77_spill] sm:$0xff]  ;;  %v13040_v55 = vld [vmem:[#allocation76_spill] sm:$0xff] }
 0x924   :  { %4962 = vmatpush1.msra.mxu0 %v12995_v22  ;;  %4995 = vmatprep.mubr.f32.mxu0 %v11702_v12  ;;  %v13042_v22 = vld [vmem:[#allocation78_spill] sm:$0xff] }
 0x925   :  { %5033 = vmatpush1.msra.mxu1 %v12996_v59  ;;  %5066 = vmatprep.mubr.f32.mxu1 %v11702_v12  ;;  %v13043_v59 = vld [vmem:[#allocation81_spill] sm:$0xff] }
 0x926   :  { %4996 = vmatmul.mubr.f32.vlgmr.msra.gmra.mxu0 %v5480_v14  ;;  %5067 = vmatmul.mubr.f32.vlgmr.msra.gmra.mxu1 %v5480_v14  ;;  %v13041_v14 = vld [vmem:[#allocation79_spill] sm:$0xff] }
 0x927   :  { %5101 = vmatprep.subr.mxu0 %v12997_v25  ;;  %5172 = vmatprep.subr.mxu1 %v12998_v63  ;;  %v13044_v25 = vld [vmem:[#allocation80_spill] sm:$0xff]  ;;  %v13045_v63 = vld [vmem:[#allocation83_spill] sm:$0xff] }
 0x928   :  { %5102 = vmatpush1.msra.mxu0 %v12999_v2  ;;  %5173 = vmatpush1.msra.mxu1 %v13000_v31  ;;  %v13046_v2 = vld [vmem:[#allocation82_spill] sm:$0xff]  ;;  %v13047_v31 = vld [vmem:[#allocation85_spill] sm:$0xff] }
 0x929   :  { %5103 = vmatprep.subr.mxu0 %v13001_v11  ;;  %5174 = vmatprep.subr.mxu1 %v13002_v5  ;;  %v13048_v11 = vld [vmem:[#allocation84_spill] sm:$0xff]  ;;  %v13049_v5 = vld [vmem:[#allocation87_spill] sm:$0xff] }
 0x92a   :  { %5104 = vmatpush1.msra.mxu0 %v13003_v15  ;;  %5175 = vmatpush1.msra.mxu1 %v13004_v16  ;;  %v13050_v15 = vld [vmem:[#allocation86_spill] sm:$0xff]  ;;  %v13051_v16 = vld [vmem:[#allocation88_spill] sm:$0xff] }
 0x92b   :  { %5105 = vmatprep.subr.mxu0 %v13005_v17  ;;  %5176 = vmatprep.subr.mxu1 %v13006_v19  ;;  %v13052_v17 = vld [vmem:[#allocation89_spill] sm:$0xff]  ;;  %v13053_v19 = vld [vmem:[#allocation90_spill] sm:$0xff] }
 0x92c   :  { %5106 = vmatpush1.msra.mxu0 %v13007_v32  ;;  %5177 = vmatpush1.msra.mxu1 %v13008_v34  ;;  %v13054_v32 = vld [vmem:[#allocation91_spill] sm:$0xff]  ;;  %v13055_v34 = vld [vmem:[#allocation92_spill] sm:$0xff] }
 0x92d   :  { %5107 = vmatprep.subr.mxu0 %v13009_v35  ;;  %5178 = vmatprep.subr.mxu1 %v13010_v49  ;;  %v13056_v35 = vld [vmem:[#allocation93_spill] sm:$0xff]  ;;  %v13057_v49 = vld [vmem:[#allocation94_spill] sm:$0xff] }
 0x92e   :  { %5108 = vmatpush1.msra.mxu0 %v13011_v10  ;;  %5179 = vmatpush1.msra.mxu1 %v13012_v0  ;;  %v13058_v10 = vld [vmem:[#allocation95_spill] sm:$0xff]  ;;  %v13059_v0 = vld [vmem:[#allocation96_spill] sm:$0xff] }
 0x92f   :  { %5109 = vmatprep.subr.mxu0 %v13013_v53  ;;  %5180 = vmatprep.subr.mxu1 %v13014_v9  ;;  %v13060_v53 = vld [vmem:[#allocation97_spill] sm:$0xff]  ;;  %v13061_v9 = vld [vmem:[#allocation98_spill] sm:$0xff] }
 0x930   :  { %5110 = vmatpush1.msra.mxu0 %v13015_v3  ;;  %5181 = vmatpush1.msra.mxu1 %v13016_v45  ;;  %v13062_v3 = vld [vmem:[#allocation99_spill] sm:$0xff] }
 0x931   :  { %5111 = vmatprep.subr.mxu0 %v13017_v18  ;;  %5182 = vmatprep.subr.mxu1 %v13018_v7 }
 0x932   :  { %5112 = vmatpush1.msra.mxu0 %v13019_v41  ;;  %5183 = vmatpush1.msra.mxu1 %v13020_v46 }
 0x933   :  { %5113 = vmatprep.subr.mxu0 %v13021_v48  ;;  %5184 = vmatprep.subr.mxu1 %v13022_v21 }
 0x934   :  { %5114 = vmatpush1.msra.mxu0 %v13023_v52  ;;  %5185 = vmatpush1.msra.mxu1 %v13024_v8 }
 0x935   :  { %5115 = vmatprep.subr.mxu0 %v13025_v13  ;;  %5186 = vmatprep.subr.mxu1 %v13026_v37 }
 0x936   :  { %5116 = vmatpush1.msra.mxu0 %v13027_v38  ;;  %5187 = vmatpush1.msra.mxu1 %v13028_v47 }
 0x937   :  { %5117 = vmatprep.subr.mxu0 %v13029_v58  ;;  %5188 = vmatprep.subr.mxu1 %v13030_v42 }
 0x938   :  { %5118 = vmatpush1.msra.mxu0 %v13031_v26  ;;  %5189 = vmatpush1.msra.mxu1 %v13032_v50 }
 0x939   :  { %5119 = vmatprep.subr.mxu0 %v13033_v4  ;;  %5190 = vmatprep.subr.mxu1 %v13034_v40 }
 0x93a   :  { %5120 = vmatpush1.msra.mxu0 %v13035_v43  ;;  %5191 = vmatpush1.msra.mxu1 %v13036_v44 }
 0x93b   :  { %5121 = vmatprep.subr.mxu0 %v13037_v27  ;;  %5192 = vmatprep.subr.mxu1 %v13038_v39 }
 0x93c   :  { %5122 = vmatpush1.msra.mxu0 %v13039_v57  ;;  %5193 = vmatpush1.msra.mxu1 %v13040_v55 }
 0x93d   :  { %5123 = vmatprep.subr.mxu0 %v13041_v14  ;;  %5194 = vmatprep.subr.mxu1 %v13042_v22 }
 0x93e   :  { %5124 = vmatpush1.msra.mxu0 %v13043_v59  ;;  %5195 = vmatpush1.msra.mxu1 %v13044_v25 }
 0x93f   :  { %5125 = vmatprep.subr.mxu0 %v13045_v63  ;;  %5196 = vmatprep.subr.mxu1 %v13046_v2 }
 0x940   :  { %5126 = vmatpush1.msra.mxu0 %v13047_v31  ;;  %5197 = vmatpush1.msra.mxu1 %v13048_v11 }
 0x941   :  { %5127 = vmatprep.subr.mxu0 %v13049_v5  ;;  %5198 = vmatprep.subr.mxu1 %v13050_v15  ;;  %v13063_v15 = vld [vmem:[#allocation100_spill] sm:$0xff] }
 0x942   :  { %5128 = vmatpush1.msra.mxu0 %v13051_v16  ;;  %5199 = vmatpush1.msra.mxu1 %v13052_v17  ;;  %v13064_v16 = vld [vmem:[#allocation101_spill] sm:$0xff]  ;;  %v13065_v17 = vld [vmem:[#allocation102_spill] sm:$0xff] }
 0x943   :  { %5129 = vmatprep.subr.mxu0 %v13053_v19  ;;  %5200 = vmatprep.subr.mxu1 %v13054_v32  ;;  %v13066_v19 = vld [vmem:[#allocation103_spill] sm:$0xff]  ;;  %v13067_v32 = vld [vmem:[#allocation104_spill] sm:$0xff] }
 0x944   :  { %5130 = vmatpush1.msra.mxu0 %v13055_v34  ;;  %5201 = vmatpush1.msra.mxu1 %v13056_v35  ;;  %v13071_v34 = vld [vmem:[#allocation108_spill] sm:$0xff] }
 0x945   :  { %5131 = vmatprep.subr.mxu0 %v13057_v49  ;;  %5202 = vmatprep.subr.mxu1 %v13058_v10  ;;  %v13073_v10 = vld [vmem:[#allocation110_spill] sm:$0xff] }
 0x946   :  { %5132 = vmatpush1.msra.mxu0 %v13059_v0  ;;  %5165 = vmatprep.mubr.f32.mxu0 %v11702_v12  ;;  %v13074_v0 = vld [vmem:[#allocation155_spill] sm:$0xff] }
 0x947   :  { %5203 = vmatpush1.msra.mxu1 %v13060_v53  ;;  %5236 = vmatprep.mubr.f32.mxu1 %v11702_v12 }
 0x948   :  { %5243 = vmatprep.subr.mxu0 %v13061_v9  ;;  %5314 = vmatprep.subr.mxu1 %v13062_v3  ;;  %v13075_v9 = vld [vmem:[#allocation111_spill] sm:$0xff]  ;;  %v13076_v3 = vld [vmem:[#allocation112_spill] sm:$0xff] }
 0x960   :  { %v4539_v45 = vpop.f32.mrf.mxu0  ;;  %v4610_v41 = vpop.f32.mrf.mxu1 }
 0x962   :  { %v4541_v18 = vpop.f32.mrf.mxu0  ;;  %v4612_v8 = vpop.f32.mrf.mxu1 }
 0x9a3   :  { %v4681_v7 = vpop.f32.mrf.mxu0  ;;  %v4752_v38 = vpop.f32.mrf.mxu1 }
 0x9a4   :  { %v4682_v46 = vadd.f32 %v4681_v7, %v4539_v45  ;;  %v4753_v58 = vadd.f32 %v4752_v38, %v4610_v41  ;;  %v13077_v7 = vld [vmem:[#allocation113_spill] sm:$0xff]  ;;  %v13084_v38 = vld [vmem:[#allocation119_spill] sm:$0xff] }
 0x9a5   :  { %v4683_v48 = vpop.f32.mrf.mxu0  ;;  %v4754_v42 = vpop.f32.mrf.mxu1 }
 0x9a6   :  { %v4757_v21 = vadd.f32 %v4682_v46, %v7705_v51  ;;  %v4684_v52 = vadd.f32 %v4683_v48, %v4541_v18  ;;  %v4759_v26 = vadd.f32 %v4753_v58, %v7715_v23  ;;  %v4755_v50 = vadd.f32 %v4754_v42, %v4612_v8  ;;  %v13080_v8 = vld [vmem:[#allocation115_spill] sm:$0xff]  ;;  %v13087_v58 = vld [vmem:[#allocation122_spill] sm:$0xff] }
 0x9a8   :  { %v5476_v13 = vmul.f32 -1.442695, %v4757_v21  ;;  %v4758_v37 = vadd.f32 %v4684_v52, %v7709_v56  ;;  %v5478_v4 = vmul.f32 -1.442695, %v4759_v26  ;;  %v4760_v43 = vadd.f32 %v4755_v50, %v7720_v28  ;;  %v13078_v21 = vld [vmem:[#allocation156_spill] sm:$0xff]  ;;  %v13079_v52 = vld [vmem:[#allocation114_spill] sm:$0xff] }
 0x9a9   :  { %v13088_v26 = vld [vmem:[#allocation123_spill] sm:$0xff]  ;;  %v13089_v50 = vld [vmem:[#allocation124_spill] sm:$0xff] }
 0x9aa   :  { %5703 = vpow2.f32 %v5476_v13  ;;  %v5477_v47 = vmul.f32 -1.442695, %v4758_v37  ;;  %v13081_v13 = vld [vmem:[#allocation116_spill] sm:$0xff] }
 0x9ac   :  { %5705 = vpow2.f32 %v5477_v47  ;;  %v13085_v47 = vld [vmem:[#allocation120_spill] sm:$0xff] }
 0x9ad   :  { %5707 = vpow2.f32 %v5478_v4  ;;  %v13090_v4 = vld [vmem:[#allocation125_spill] sm:$0xff] }
 0x9b7   :  { %v5704_v40 = vpop.eup %5703 }
 0x9b8   :  { %v4770_v44 = vadd.f32 1.0, %v5704_v40  ;;  %v13091_v40 = vld [vmem:[#allocation126_spill] sm:$0xff] }
 0x9b9   :  { %v5706_v27 = vpop.eup %5705 }
 0x9ba   :  { %5709 = vrcp.f32 %v4770_v44  ;;  %v4771_v39 = vadd.f32 1.0, %v5706_v27  ;;  %v5708_v57 = vpop.eup %5707  ;;  %v13093_v44 = vld [vmem:[#allocation128_spill] sm:$0xff] }
 0x9bb   :  { %5711 = vtanh.f32 %v4760_v43  ;;  %v4772_v59 = vadd.f32 1.0, %v5708_v57  ;;  %v13092_v43 = vld [vmem:[#allocation127_spill] sm:$0xff]  ;;  %v13095_v57 = vld [vmem:[#allocation130_spill] sm:$0xff] }
 0x9bc   :  { %5713 = vrcp.f32 %v4771_v39  ;;  %v13094_v39 = vld [vmem:[#allocation129_spill] sm:$0xff] }
 0x9bd   :  { %5715 = vrcp.f32 %v4772_v59  ;;  %v13098_v59 = vld [vmem:[#allocation132_spill] sm:$0xff] }
 0x9c4   :  { %v4926_v35 = vpop.f32.mrf.mxu1 }
 0x9c6   :  { %v4928_v41 = vpop.f32.mrf.mxu1 }
 0x9c7   :  { %v5710_v55 = vpop.eup %5709 }
 0x9c8   :  { %v5712_v14 = vpop.eup %5711 }
 0x9c9   :  { %v5714_v22 = vpop.eup %5713  ;;  %v4781_v63 = vmul.f32 %v5712_v14, %v5710_v55  ;;  %v13096_v55 = vld [vmem:[#allocation157_spill] sm:$0xff] }
 0x9ca   :  { %v4780_v25 = vmul.f32 %v5714_v22, %v10443_v62  ;;  %v5716_v31 = vpop.eup %5715  ;;  %v4855_v62 = vpop.f32.mrf.mxu0  ;;  %v13097_v22 = vld [vmem:[#allocation131_spill] sm:$0xff] }
 0x9cc   :  { %v10783_v2 = vadd.f32 %v4781_v63, %v4780_v25  ;;  %v13099_v25 = vld [vmem:[#allocation133_spill] sm:$0xff]  ;;  %v13100_v63 = vld [vmem:[#allocation134_spill] sm:$0xff] }
 0x9ce   :  { %5717 = vtanh.f32 %v10783_v2 }
 0x9db   :  { %v5718_v11 = vpop.eup %5717 }
 0x9dc   :  { %v4784_v5 = vmul.f32 %v5718_v11, %v5716_v31  ;;  %v13101_v11 = vld [vmem:[#allocation135_spill] sm:$0xff] }
 0x9de   :  { %5479 = vst [vmem:[%s10873_s7 + $0x30] sm:$0xff] %v4784_v5  ;;  %5166 = vmatmul.mubr.f32.vlgmr.msra.gmra.mxu0 %v4784_v5  ;;  %5237 = vmatmul.mubr.f32.vlgmr.msra.gmra.mxu1 %v4784_v5  ;;  %v13102_v5 = vld [vmem:[#allocation136_spill] sm:$0xff] }
 0x9df   :  { %5244 = vmatpush1.msra.mxu0 %v10449_v29  ;;  %5315 = vmatpush1.msra.mxu1 %v10452_v20  ;;  %v4857_v29 = vpop.f32.mrf.mxu0  ;;  %v13068_v20 = vld [vmem:[#allocation105_spill] sm:$0xff] }
 0x9e0   :  { %5245 = vmatprep.subr.mxu0 %v10455_v36  ;;  %5316 = vmatprep.subr.mxu1 %v10458_v30  ;;  %v13069_v36 = vld [vmem:[#allocation106_spill] sm:$0xff]  ;;  %v13070_v30 = vld [vmem:[#allocation107_spill] sm:$0xff] }
 0x9e1   :  { %5246 = vmatpush1.msra.mxu0 %v10461_v24  ;;  %5317 = vmatpush1.msra.mxu1 %v10464_v61  ;;  %v13072_v61 = vld [vmem:[#allocation109_spill] sm:$0xff] }
 0x9e2   :  { %5247 = vmatprep.subr.mxu0 %v13063_v15  ;;  %5318 = vmatprep.subr.mxu1 %v13064_v16  ;;  %v13104_v15 = vld [vmem:[#allocation138_spill] sm:$0xff] }
 0x9e3   :  { %5248 = vmatpush1.msra.mxu0 %v13065_v17  ;;  %5319 = vmatpush1.msra.mxu1 %v13066_v19  ;;  %v13105_v17 = vld [vmem:[#allocation139_spill] sm:$0xff]  ;;  %v13106_v19 = vld [vmem:[#allocation140_spill] sm:$0xff] }
 0x9e4   :  { %5249 = vmatprep.subr.mxu0 %v13067_v32  ;;  %5320 = vmatprep.subr.mxu1 %v13068_v20  ;;  %v13108_v32 = vld [vmem:[#allocation142_spill] sm:$0xff] }
 0x9e5   :  { %5250 = vmatpush1.msra.mxu0 %v13069_v36  ;;  %5321 = vmatpush1.msra.mxu1 %v13070_v30  ;;  %v13109_v36 = vld [vmem:[#allocation158_spill] sm:$0xff] }
 0x9e6   :  { %v4997_v24 = vpop.f32.mrf.mxu0  ;;  %5251 = vmatprep.subr.mxu0 %v13071_v34  ;;  %5322 = vmatprep.subr.mxu1 %v13072_v61  ;;  %v13111_v34 = vld [vmem:[#allocation144_spill] sm:$0xff] }
 0x9e7   :  { %v4998_v49 = vadd.f32 %v4997_v24, %v4855_v62  ;;  %5252 = vmatpush1.msra.mxu0 %v13073_v10  ;;  %5323 = vmatpush1.msra.mxu1 %v13074_v0  ;;  %v13103_v62 = vld [vmem:[#allocation137_spill] sm:$0xff]  ;;  %v13110_v24 = vld [vmem:[#allocation143_spill] sm:$0xff] }
 0x9e8   :  { %v4999_v53 = vpop.f32.mrf.mxu0  ;;  %5253 = vmatprep.subr.mxu0 %v13075_v9  ;;  %5324 = vmatprep.subr.mxu1 %v13076_v3  ;;  %v13114_v0 = vld [vmem:[#allocation147_spill] sm:$0xff]  ;;  %v13116_v3 = vld [vmem:[#allocation149_spill] sm:$0xff] }
 0x9e9   :  { %v5073_v45 = vadd.f32 %v4998_v49, %v11929_v33  ;;  %v5000_v18 = vadd.f32 %v4999_v53, %v4857_v29  ;;  %5254 = vmatpush1.msra.mxu0 %v10510_v60  ;;  %5325 = vmatpush1.msra.mxu1 %v10513_v54  ;;  %v5068_v33 = vpop.f32.mrf.mxu1  ;;  %v13082_v60 = vld [vmem:[#allocation117_spill] sm:$0xff]  ;;  %v13083_v54 = vld [vmem:[#allocation118_spill] sm:$0xff]  ;;  %v13115_v53 = vld [vmem:[#allocation148_spill] sm:$0xff] }
 0x9ea   :  { %5255 = vmatprep.subr.mxu0 %v13077_v7  ;;  %5326 = vmatprep.subr.mxu1 %v13078_v21  ;;  %v5069_v42 = vadd.f32 %v5068_v33, %v4926_v35  ;;  %v13107_v29 = vld [vmem:[#allocation141_spill] sm:$0xff]  ;;  %v13113_v49 = vld [vmem:[#allocation146_spill] sm:$0xff] }
 0x9eb   :  { %v5481_v46 = vmul.f32 -1.442695, %v5073_v45  ;;  %v5074_v48 = vadd.f32 %v5000_v18, %v11933_v6  ;;  %5256 = vmatpush1.msra.mxu0 %v13079_v52  ;;  %5327 = vmatpush1.msra.mxu1 %v13080_v8  ;;  %v13086_v6 = vld [vmem:[#allocation121_spill] sm:$0xff]  ;;  %v5070_v27 = vpop.f32.mrf.mxu1  ;;  %v13117_v45 = vld [vmem:[#allocation150_spill] sm:$0xff]  ;;  %v13118_v18 = vld [vmem:[#allocation151_spill] sm:$0xff] }
 0x9ec   :  { %5257 = vmatprep.subr.mxu0 %v13081_v13  ;;  %5328 = vmatprep.subr.mxu1 %v13082_v60  ;;  %v5075_v14 = vadd.f32 %v5069_v42, %v13096_v55  ;;  %v5071_v31 = vadd.f32 %v5070_v27, %v4928_v41  ;;  %v13112_v35 = vld [vmem:[#allocation145_spill] sm:$0xff] }
 0x9ed   :  { %5719 = vpow2.f32 %v5481_v46  ;;  %v5482_v37 = vmul.f32 -1.442695, %v5074_v48  ;;  %5258 = vmatpush1.msra.mxu0 %v13083_v54  ;;  %5329 = vmatpush1.msra.mxu1 %v13084_v38 }
 0x9ee   :  { %5259 = vmatprep.subr.mxu0 %v13085_v47  ;;  %5330 = vmatprep.subr.mxu1 %v13086_v6  ;;  %v5483_v16 = vmul.f32 -1.442695, %v5075_v14  ;;  %v5076_v30 = vadd.f32 %v5071_v31, %v13109_v36 }
 0x9ef   :  { %5721 = vpow2.f32 %v5482_v37  ;;  %5260 = vmatpush1.msra.mxu0 %v13087_v58  ;;  %5331 = vmatpush1.msra.mxu1 %v13088_v26 }
 0x9f0   :  { %5261 = vmatprep.subr.mxu0 %v13089_v50  ;;  %5332 = vmatprep.subr.mxu1 %v13090_v4  ;;  %5723 = vpow2.f32 %v5483_v16 }
 0x9f1   :  { %5262 = vmatpush1.msra.mxu0 %v13091_v40  ;;  %5333 = vmatpush1.msra.mxu1 %v13092_v43 }
 0x9f2   :  { %5263 = vmatprep.subr.mxu0 %v13093_v44  ;;  %5334 = vmatprep.subr.mxu1 %v13094_v39 }
 0x9f3   :  { %5264 = vmatpush1.msra.mxu0 %v13095_v57  ;;  %5335 = vmatpush1.msra.mxu1 %v13097_v22 }
 0x9f4   :  { %5265 = vmatprep.subr.mxu0 %v13098_v59  ;;  %5336 = vmatprep.subr.mxu1 %v13099_v25 }
 0x9f5   :  { %5266 = vmatpush1.msra.mxu0 %v13100_v63  ;;  %5337 = vmatpush1.msra.mxu1 %v13101_v11 }
 0x9f6   :  { %5267 = vmatprep.subr.mxu0 %v13102_v5  ;;  %5338 = vmatprep.subr.mxu1 %v13103_v62 }
 0x9f7   :  { %5268 = vmatpush1.msra.mxu0 %v13104_v15  ;;  %5339 = vmatpush1.msra.mxu1 %v13105_v17 }
 0x9f8   :  { %5269 = vmatprep.subr.mxu0 %v13106_v19  ;;  %5340 = vmatprep.subr.mxu1 %v13107_v29 }
 0x9f9   :  { %5270 = vmatpush1.msra.mxu0 %v13108_v32  ;;  %5341 = vmatpush1.msra.mxu1 %v13110_v24 }
 0x9fa   :  { %v5720_v20 = vpop.eup %5719  ;;  %5271 = vmatprep.subr.mxu0 %v13111_v34  ;;  %5342 = vmatprep.subr.mxu1 %v13112_v35 }
 0x9fb   :  { %v5086_v61 = vadd.f32 1.0, %v5720_v20  ;;  %5272 = vmatpush1.msra.mxu0 %v13113_v49  ;;  %5343 = vmatpush1.msra.mxu1 %v13114_v0 }
 0x9fc   :  { %v5722_v10 = vpop.eup %5721  ;;  %5273 = vmatprep.subr.mxu0 %v13115_v53  ;;  %5344 = vmatprep.subr.mxu1 %v13116_v3 }
 0x9fd   :  { %5725 = vrcp.f32 %v5086_v61  ;;  %v5087_v9 = vadd.f32 1.0, %v5722_v10  ;;  %5274 = vmatpush1.msra.mxu0 %v13117_v45  ;;  %5307 = vmatprep.mubr.f32.mxu0 %v11702_v12  ;;  %v5724_v7 = vpop.eup %5723 }
 0x9fe   :  { %5727 = vtanh.f32 %v5076_v30  ;;  %5345 = vmatpush1.msra.mxu1 %v13118_v18  ;;  %5378 = vmatprep.mubr.f32.mxu1 %v11702_v12  ;;  %v5088_v21 = vadd.f32 1.0, %v5724_v7 }
 0x9ff   :  { %5729 = vrcp.f32 %v5087_v9 }
 0xa00   :  { %5731 = vrcp.f32 %v5088_v21 }
 0xa0a   :  { %v5726_v41 = vpop.eup %5725 }
 0xa0b   :  { %v5728_v46 = vpop.eup %5727 }
 0xa0c   :  { %v5730_v48 = vpop.eup %5729  ;;  %v5097_v8 = vmul.f32 %v5728_v46, %v5726_v41 }
 0xa0d   :  { %v5096_v52 = vmul.f32 %v5730_v48, %v10642_v1  ;;  %v5732_v33 = vpop.eup %5731 }
 0xa0f   :  { %v5098_v13 = vadd.f32 %v5097_v8, %v5096_v52 }
 0xa11   :  { %5733 = vtanh.f32 %v5098_v13 }
 0xa1e   :  { %v5734_v37 = vpop.eup %5733 }
 0xa1f   :  { %v5100_v60 = vmul.f32 %v5734_v37, %v5732_v33 }
 0xa21   :  { %5308 = vmatmul.mubr.f32.vlgmr.msra.gmra.mxu0 %v5100_v60  ;;  %5379 = vmatmul.mubr.f32.vlgmr.msra.gmra.mxu1 %v5100_v60 }
 0xa9e   :  { %v5167_v54 = vpop.f32.mrf.mxu0  ;;  %v5238_v12 = vpop.f32.mrf.mxu1 }
 0xaa0   :  { %v5169_v38 = vpop.f32.mrf.mxu0  ;;  %v5240_v50 = vpop.f32.mrf.mxu1 }
 0xae1   :  { %v5309_v47 = vpop.f32.mrf.mxu0  ;;  %v5380_v40 = vpop.f32.mrf.mxu1 }
 0xae2   :  { %v5310_v6 = vadd.f32 %v5309_v47, %v5167_v54  ;;  %v5381_v44 = vadd.f32 %v5380_v40, %v5238_v12 }
 0xae3   :  { %v5311_v58 = vpop.f32.mrf.mxu0  ;;  %v5382_v27 = vpop.f32.mrf.mxu1 }
 0xae4   :  { %v5385_v42 = vadd.f32 %v5310_v6, %v7705_v51  ;;  %v5312_v26 = vadd.f32 %v5311_v58, %v5169_v38  ;;  %v5387_v39 = vadd.f32 %v5381_v44, %v7715_v23  ;;  %v5383_v57 = vadd.f32 %v5382_v27, %v5240_v50 }
 0xae6   :  { %v5484_v1 = vmul.f32 -1.442695, %v5385_v42  ;;  %v5386_v4 = vadd.f32 %v5312_v26, %v7709_v56  ;;  %v5486_v55 = vmul.f32 -1.442695, %v5387_v39  ;;  %v5388_v22 = vadd.f32 %v5383_v57, %v7720_v28 }
 0xae8   :  { %5735 = vpow2.f32 %v5484_v1  ;;  %v5485_v43 = vmul.f32 -1.442695, %v5386_v4 }
 0xaea   :  { %5737 = vpow2.f32 %v5485_v43 }
 0xaeb   :  { %5739 = vpow2.f32 %v5486_v55 }
 0xaf5   :  { %v5736_v14 = vpop.eup %5735 }
 0xaf6   :  { %v5398_v59 = vadd.f32 1.0, %v5736_v14 }
 0xaf7   :  { %v5738_v51 = vpop.eup %5737 }
 0xaf8   :  { %5741 = vrcp.f32 %v5398_v59  ;;  %v5399_v25 = vadd.f32 1.0, %v5738_v51  ;;  %v5740_v56 = vpop.eup %5739 }
 0xaf9   :  { %5743 = vtanh.f32 %v5388_v22  ;;  %v5400_v5 = vadd.f32 1.0, %v5740_v56 }
 0xafa   :  { %5745 = vrcp.f32 %v5399_v25 }
 0xafb   :  { %5747 = vrcp.f32 %v5400_v5 }
 0xb05   :  { %v5742_v63 = vpop.eup %5741 }
 0xb06   :  { %v5744_v31 = vpop.eup %5743 }
 0xb07   :  { %v5746_v11 = vpop.eup %5745  ;;  %v5409_v23 = vmul.f32 %v5744_v31, %v5742_v63 }
 0xb08   :  { %v5408_v62 = vmul.f32 %v5746_v11, %v10783_v2  ;;  %v5748_v16 = vpop.eup %5747 }
 0xb0a   :  { %v5410_v15 = vadd.f32 %v5409_v23, %v5408_v62 }
 0xb0c   :  { %5749 = vtanh.f32 %v5410_v15 }
 0xb19   :  { %v5750_v28 = vpop.eup %5749 }
 0xb1a   :  { %v5412_v17 = vmul.f32 %v5750_v28, %v5748_v16 }
 0xb1c   :  { %5487 = vst [vmem:[%s10873_s7 + $0x38] sm:$0xff] %v5412_v17 }
 0xb1d   :  { %5423 = vsyncpa [#allocation7], 1 }
 0xb1e   :  { %5424 = vsyncpa [#allocation9], 1 }
 0xb1f   :  { %5425 = vsyncpa [#allocation12], 1 }

</bundles_post_ra>
